<compile_context>
chip_gen: v7x
topology: tpu7x:2x2x1
jax: 0.10.0
libtpu: 0.0.40
codegen_flags: <defaults>
</compile_context>

<pallas_src>
import functools

import jax
import jax.numpy as jnp
from jax.experimental import pallas as pl
from jax.experimental.pallas import tpu as pltpu


def _recurrent_block_kernel(xpad_ref, w_ref, scale_ref, shift_ref, out_ref,
                            scr, pend, *, t, hb):
    """One grid step runs the full recurrence for one image.

    xpad_ref : (1, H+2, W+2, Cp)  zero-padded input (spatial + channel), f32
    w_ref    : (3, 3*Cp, Cp)      conv weights, [dy, dx*Cp + ci, co], bf16
    scale_ref: (1, Cp)            folded BN scale (gamma / sqrt(var+eps)), f32
    shift_ref: (1, Cp)            folded conv-bias + BN shift, f32
    out_ref  : (1, H, W, Cp)      f32
    scr      : (H+2, W+2, Cp)     bf16 scratch holding padded (x + x1)
    pend     : (hb, W, Cp)        bf16 pending row-block (write-lag buffer)
    """
    _, Hp, Wp, Cp = xpad_ref.shape
    H, W = Hp - 2, Wp - 2
    nblk = H // hb            # hb chosen in the wrapper so it divides H
    rows = hb * W             # matmul rows per row-block

    # ---- zero only the 1-pixel border of the scratch ---------------------------
    # Interior is fully overwritten by the first conv pass before it is read;
    # kept per-step (not program_id-gated) so it is correct under megacore
    # sharding of the grid (each TC has its own scratch copy).
    zrow = jnp.zeros((1, Wp, Cp), jnp.bfloat16)
    zcol = jnp.zeros((Hp, 1, Cp), jnp.bfloat16)
    scr[0:1, :, :] = zrow
    scr[Hp - 1:Hp, :, :] = zrow
    scr[:, 0:1, :] = zcol
    scr[:, Wp - 1:Wp, :] = zcol

    # (1, Cp) epilogue constants; broadcast against (rows, Cp) is a free sublane
    # broadcast on the VPU -- do NOT materialize a (rows, Cp) copy.
    scale = scale_ref[...]
    shift = shift_ref[...]

    # ---- conv-input readers (both return bf16, ready for the MXU) --------------
    def read_x(r0, n):
        return xpad_ref[0, r0:r0 + n, :, :].astype(jnp.bfloat16)

    def read_scr(r0, n):
        return scr[r0:r0 + n, :, :]

    def x_interior(h0):                       # f32 residual term (kept in f32)
        return xpad_ref[0, h0 + 1:h0 + 1 + hb, 1:W + 1, :]

    # ---- conv3x3 + folded BN + ReLU on one row block ----------------------------
    def conv_rows(read, h0):
        """Output rows [h0, h0+hb). Returns (hb, W, Cp) f32."""
        acc = None
        for dy in range(3):
            slab = read(h0 + dy, hb)                                   # (hb, Wp, Cp) bf16
            # 3 dx taps concatenated along the contraction axis -> K = 3*Cp,
            # built in bf16 so the im2col temporary is half-size.
            patch = jnp.concatenate(
                [slab[:, dx:dx + W, :] for dx in range(3)], axis=-1)   # (hb, W, 3Cp)
            patch = patch.reshape(rows, 3 * Cp)
            part = jnp.dot(patch, w_ref[dy],
                           preferred_element_type=jnp.float32)
            acc = part if acc is None else acc + part                  # init from dy=0
        y = jnp.maximum(acc * scale + shift, 0.0)                      # f32 epilogue
        return y.reshape(hb, W, Cp)

    # ---- pass 1: x1 = conv(x); scratch <- padded bf16(x + x1) -------------------
    # Reads only the (separate) input block, so each row block writes directly.
    for b in range(nblk):
        h0 = b * hb
        y = conv_rows(read_x, h0)
        scr[h0 + 1:h0 + 1 + hb, 1:W + 1, :] = (
            x_interior(h0) + y).astype(jnp.bfloat16)

    # ---- middle recurrences: x1 = conv(x + x1), scratch updated in place -------
    # Consecutive row blocks overlap the scratch by exactly one padded row, so a
    # one-block write lag (flush previous block AFTER this block's reads) makes
    # the in-place update safe without a second full-image buffer.
    for _ in range(t - 1):
        for b in range(nblk):
            h0 = b * hb
            y = conv_rows(read_scr, h0)          # reads old rows [h0, h0+hb+1]
            if b > 0:                            # flush previous block's result
                p0 = (b - 1) * hb
                scr[p0 + 1:p0 + 1 + hb, 1:W + 1, :] = pend[...]
            pend[...] = (x_interior(h0) + y).astype(jnp.bfloat16)
        p0 = (nblk - 1) * hb                     # flush the last block
        scr[p0 + 1:p0 + 1 + hb, 1:W + 1, :] = pend[...]

    # ---- final pass: x1 = conv(x + x1) -> out_ref -------------------------------
    for b in range(nblk):
        h0 = b * hb
        out_ref[0, h0:h0 + hb, :, :] = conv_rows(read_scr, h0)


def recurrent_block_pallas(x_nchw, w_oihw, conv_bias, bn_gamma, bn_beta,
                           bn_mean, bn_var, *, t=2, eps=1e-5, target_rows=256):
    """Runs Recurrent_block.forward. Input/output are NCHW float32."""
    if t < 1:
        raise ValueError("t must be >= 1")
    N, C, H, W = x_nchw.shape
    # TODO(synk): pad-to-128 lanes is wasteful for C <= 32; fine for real
    # R2U-Net channel counts (64..512).
    Cp = ((C + 127) // 128) * 128          # lane-dense channel padding
    Hp, Wp = H + 2, W + 2

    # NCHW -> NHWC, zero-pad spatial by 1 and channels to Cp (glue, outside kernel).
    x_nhwc = jnp.transpose(x_nchw, (0, 2, 3, 1)).astype(jnp.float32)
    x_pad = jnp.pad(x_nhwc, ((0, 0), (1, 1), (1, 1), (0, Cp - C)))

    # PyTorch (Cout, Cin, kh, kw) -> (kh, kw, Cin, Cout); zero-pad channels; merge
    # the 3 dx taps with Cin into one contraction axis -> (3, 3*Cp, Cp), bf16.
    w_hwio = jnp.transpose(w_oihw, (2, 3, 1, 0)).astype(jnp.float32)
    w_p = jnp.zeros((3, 3, Cp, Cp), jnp.float32).at[:, :, :C, :C].set(w_hwio)
    w3 = w_p.reshape(3, 3 * Cp, Cp).astype(jnp.bfloat16)

    # Fold conv bias + eval-mode BatchNorm into per-channel scale/shift (f32).
    # Padded channels get scale=shift=0 -> they stay exactly zero through the block.
    bn_scale = (bn_gamma / jnp.sqrt(bn_var + eps)).astype(jnp.float32)
    scale = jnp.zeros((1, Cp), jnp.float32).at[0, :C].set(bn_scale)
    shift = jnp.zeros((1, Cp), jnp.float32).at[0, :C].set(
        ((conv_bias - bn_mean) * bn_scale + bn_beta).astype(jnp.float32))

    # Row-block size (image rows per matmul); ~256 matmul rows amortizes MXU
    # weight pushes on v6e/v7x; must divide H.
    hb = max(1, min(H, target_rows // max(W, 1)))
    while H % hb != 0:
        hb -= 1

    # VMEM limit scaled to the chip generation (96 MiB-class on the 128 MiB
    # parts, ~48 MiB on v7x's 64 MiB VMEM).
    try:
        phys_vmem = int(pltpu.get_tpu_info().vmem_capacity_bytes)
    except Exception:
        phys_vmem = 64 * 1024 * 1024
    vmem_limit = min((phys_vmem * 3) // 4, 100 * 1024 * 1024)

    kernel = functools.partial(_recurrent_block_kernel, t=t, hb=hb)

    out_p = pl.pallas_call(
        kernel,
        out_shape=jax.ShapeDtypeStruct((N, H, W, Cp), jnp.float32),
        grid_spec=pltpu.PrefetchScalarGridSpec(
            num_scalar_prefetch=0,
            grid=(N,),                                   # one image per grid step
            in_specs=[
                pl.BlockSpec((1, Hp, Wp, Cp), lambda n: (n, 0, 0, 0)),  # x_pad
                pl.BlockSpec((3, 3 * Cp, Cp), lambda n: (0, 0, 0)),     # weights
                pl.BlockSpec((1, Cp), lambda n: (0, 0)),                # scale
                pl.BlockSpec((1, Cp), lambda n: (0, 0)),                # shift
            ],
            out_specs=pl.BlockSpec((1, H, W, Cp), lambda n: (n, 0, 0, 0)),
            scratch_shapes=[
                pltpu.VMEM((Hp, Wp, Cp), jnp.bfloat16),   # recurrent (x + x1)
                pltpu.VMEM((hb, W, Cp), jnp.bfloat16),    # write-lag pending block
            ],
        ),
        compiler_params=pltpu.CompilerParams(
            dimension_semantics=("parallel",),            # megacore: shard over N
            vmem_limit_bytes=vmem_limit,
        ),
    )(x_pad, w3, scale, shift)

    # Drop channel padding, NHWC -> NCHW.
    out_nhwc = out_p[..., :C]
    return jnp.transpose(out_nhwc, (0, 3, 1, 2))


def recurrent_block_reference(x_nchw, w_oihw, conv_bias, bn_gamma, bn_beta,
                              bn_mean, bn_var, *, t=2, eps=1e-5):
    """Pure-JAX reference (lax conv, f32) for correctness checking."""
    x_nhwc = jnp.transpose(x_nchw, (0, 2, 3, 1)).astype(jnp.float32)
    w_hwio = jnp.transpose(w_oihw, (2, 3, 1, 0)).astype(jnp.float32)
    bn_scale = bn_gamma / jnp.sqrt(bn_var + eps)
    shift = (conv_bias - bn_mean) * bn_scale + bn_beta

    def conv_bn_relu(inp):
        y = jax.lax.conv_general_dilated(
            inp, w_hwio, window_strides=(1, 1),
            padding=((1, 1), (1, 1)),
            dimension_numbers=("NHWC", "HWIO", "NHWC"))
        return jnp.maximum(y * bn_scale + shift, 0.0)

    x1 = conv_bn_relu(x_nhwc)
    for _ in range(t):
        x1 = conv_bn_relu(x_nhwc + x1)
    return jnp.transpose(x1, (0, 3, 1, 2))


if __name__ == "__main__":
    # Small shapes consistent with the module: N=2, ch_out=4, 16x16 spatial.
    N, C, H, W = 2, 4, 16, 16
    t = 2

    key = jax.random.PRNGKey(0)
    kx, kw, kb, kg, kbe, km, kv = jax.random.split(key, 7)

    x = jax.random.normal(kx, (N, C, H, W), dtype=jnp.float32)

    # Deterministic synthetic parameters (shapes match nn.Conv2d / nn.BatchNorm2d).
    w_oihw = 0.1 * jax.random.normal(kw, (C, C, 3, 3), dtype=jnp.float32)
    conv_bias = 0.05 * jax.random.normal(kb, (C,), dtype=jnp.float32)
    bn_gamma = 1.0 + 0.1 * jax.random.normal(kg, (C,), dtype=jnp.float32)
    bn_beta = 0.1 * jax.random.normal(kbe, (C,), dtype=jnp.float32)
    bn_mean = 0.1 * jax.random.normal(km, (C,), dtype=jnp.float32)
    bn_var = 0.5 + jnp.abs(jax.random.normal(kv, (C,), dtype=jnp.float32))

    out = recurrent_block_pallas(x, w_oihw, conv_bias, bn_gamma, bn_beta,
                                 bn_mean, bn_var, t=t)
    out = jax.block_until_ready(out)

    ref = recurrent_block_reference(x, w_oihw, conv_bias, bn_gamma, bn_beta,
                                    bn_mean, bn_var, t=t)
    ref = jax.block_until_ready(ref)

    assert out.shape == (N, C, H, W)
    # bf16 matmul operands (f32 accumulation) -> slightly looser tolerance.
    assert jnp.allclose(out, ref, atol=3e-2, rtol=3e-2), (
        f"max abs diff = {jnp.max(jnp.abs(out - ref))}")

    print("KERNEL_OK")
</pallas_src>

<mosaic_0001>
module attributes {stable_mosaic.version = 11 : i64} {
  func.func @_recurrent_block_kernel(%arg0: i32, %arg1: memref<1x18x18x128xf32, #tpu.memory_space<vmem>>, %arg2: memref<3x384x128xbf16, #tpu.memory_space<vmem>>, %arg3: memref<1x128xf32, #tpu.memory_space<vmem>>, %arg4: memref<1x128xf32, #tpu.memory_space<vmem>>, %arg5: memref<1x16x16x128xf32, #tpu.memory_space<vmem>>, %arg6: memref<18x18x128xbf16, #tpu.memory_space<vmem>>, %arg7: memref<16x16x128xbf16, #tpu.memory_space<vmem>>) attributes {dimension_semantics = [#tpu.dimension_semantics<parallel>], iteration_bounds = array<i64: 2>, scalar_prefetch = 0 : i64, scratch_operands = 2 : i64, tpu.core_type = #tpu.core_type<tc>, window_params = [{transform_indices = @transform_0, window_bounds = array<i64: 1, 18, 18, 128>}, {pipeline_mode = #tpu.pipeline_mode<synchronous>, transform_indices = @transform_1, window_bounds = array<i64: 3, 384, 128>}, {pipeline_mode = #tpu.pipeline_mode<synchronous>, transform_indices = @transform_2, window_bounds = array<i64: 1, 128>}, {pipeline_mode = #tpu.pipeline_mode<synchronous>, transform_indices = @transform_3, window_bounds = array<i64: 1, 128>}, {transform_indices = @transform_4, window_bounds = array<i64: 1, 16, 16, 128>}]} {
    %cst = arith.constant 0.000000e+00 : bf16
    %0 = vector.broadcast %cst : bf16 to vector<1x18x128xbf16>
    %cst_0 = arith.constant 0.000000e+00 : bf16
    %1 = vector.broadcast %cst_0 : bf16 to vector<18x1x128xbf16>
    %c0 = arith.constant 0 : index
    %c0_1 = arith.constant 0 : index
    %c0_2 = arith.constant 0 : index
    %2 = vector.load %arg6[%c0, %c0_1, %c0_2] : memref<18x18x128xbf16, #tpu.memory_space<vmem>>, vector<1x18x128xbf16>
    tpu.vector_store %arg6[%c0, %c0_1, %c0_2], %0 {strides = array<i32>} : memref<18x18x128xbf16, #tpu.memory_space<vmem>>, vector<1x18x128xbf16>,
    %c17 = arith.constant 17 : index
    %c0_3 = arith.constant 0 : index
    %c0_4 = arith.constant 0 : index
    %3 = vector.load %arg6[%c17, %c0_3, %c0_4] : memref<18x18x128xbf16, #tpu.memory_space<vmem>>, vector<1x18x128xbf16>
    tpu.vector_store %arg6[%c17, %c0_3, %c0_4], %0 {strides = array<i32>} : memref<18x18x128xbf16, #tpu.memory_space<vmem>>, vector<1x18x128xbf16>,
    %c0_5 = arith.constant 0 : index
    %c0_6 = arith.constant 0 : index
    %c0_7 = arith.constant 0 : index
    %4 = vector.load %arg6[%c0_5, %c0_6, %c0_7] : memref<18x18x128xbf16, #tpu.memory_space<vmem>>, vector<18x1x128xbf16>
    tpu.vector_store %arg6[%c0_5, %c0_6, %c0_7], %1 {strides = array<i32>} : memref<18x18x128xbf16, #tpu.memory_space<vmem>>, vector<18x1x128xbf16>,
    %c0_8 = arith.constant 0 : index
    %c17_9 = arith.constant 17 : index
    %c0_10 = arith.constant 0 : index
    %5 = vector.load %arg6[%c0_8, %c17_9, %c0_10] : memref<18x18x128xbf16, #tpu.memory_space<vmem>>, vector<18x1x128xbf16>
    tpu.vector_store %arg6[%c0_8, %c17_9, %c0_10], %1 {strides = array<i32>} : memref<18x18x128xbf16, #tpu.memory_space<vmem>>, vector<18x1x128xbf16>,
    %c0_11 = arith.constant 0 : index
    %c0_12 = arith.constant 0 : index
    %6 = vector.load %arg3[%c0_11, %c0_12] : memref<1x128xf32, #tpu.memory_space<vmem>>, vector<1x128xf32>
    %c0_13 = arith.constant 0 : index
    %c0_14 = arith.constant 0 : index
    %7 = vector.load %arg4[%c0_13, %c0_14] : memref<1x128xf32, #tpu.memory_space<vmem>>, vector<1x128xf32>
    %c0_15 = arith.constant 0 : index
    %c0_16 = arith.constant 0 : index
    %c0_17 = arith.constant 0 : index
    %c0_18 = arith.constant 0 : index
    %8 = vector.load %arg1[%c0_15, %c0_16, %c0_17, %c0_18] : memref<1x18x18x128xf32, #tpu.memory_space<vmem>>, vector<1x16x18x128xf32>
    %9 = vector.shape_cast %8 : vector<1x16x18x128xf32> to vector<16x18x128xf32>
    %10 = arith.truncf %9 : vector<16x18x128xf32> to vector<16x18x128xbf16>
    %11 = vector.extract_strided_slice %10 {offsets = [0, 0, 0], sizes = [16, 16, 128], strides = [1, 1, 1]} : vector<16x18x128xbf16> to vector<16x16x128xbf16>
    %12 = vector.extract_strided_slice %10 {offsets = [0, 1, 0], sizes = [16, 16, 128], strides = [1, 1, 1]} : vector<16x18x128xbf16> to vector<16x16x128xbf16>
    %13 = vector.extract_strided_slice %10 {offsets = [0, 2, 0], sizes = [16, 16, 128], strides = [1, 1, 1]} : vector<16x18x128xbf16> to vector<16x16x128xbf16>
    %14 = tpu.concatenate %11, %12, %13 in 2 : vector<16x16x128xbf16>, vector<16x16x128xbf16>, vector<16x16x128xbf16> -> vector<16x16x384xbf16>
    %15 = vector.shape_cast %14 : vector<16x16x384xbf16> to vector<256x384xbf16>
    %c0_19 = arith.constant 0 : index
    %c0_20 = arith.constant 0 : index
    %c0_21 = arith.constant 0 : index
    %16 = vector.load %arg2[%c0_19, %c0_20, %c0_21] : memref<3x384x128xbf16, #tpu.memory_space<vmem>>, vector<1x384x128xbf16>
    %17 = vector.shape_cast %16 : vector<1x384x128xbf16> to vector<384x128xbf16>
    %cst_22 = arith.constant dense<0.000000e+00> : vector<256x128xf32>
    %18 = tpu.matmul %15, %17, %cst_22 {dimension_numbers = #tpu.dot_dimension_numbers<[1], [0], [0], [1], [0, 0, 1, 1], [], []>} : vector<256x384xbf16>, vector<384x128xbf16>, vector<256x128xf32> -> vector<256x128xf32>
    %c0_23 = arith.constant 0 : index
    %c1 = arith.constant 1 : index
    %c0_24 = arith.constant 0 : index
    %c0_25 = arith.constant 0 : index
    %19 = vector.load %arg1[%c0_23, %c1, %c0_24, %c0_25] : memref<1x18x18x128xf32, #tpu.memory_space<vmem>>, vector<1x16x18x128xf32>
    %20 = vector.shape_cast %19 : vector<1x16x18x128xf32> to vector<16x18x128xf32>
    %21 = arith.truncf %20 : vector<16x18x128xf32> to vector<16x18x128xbf16>
    %22 = vector.extract_strided_slice %21 {offsets = [0, 0, 0], sizes = [16, 16, 128], strides = [1, 1, 1]} : vector<16x18x128xbf16> to vector<16x16x128xbf16>
    %23 = vector.extract_strided_slice %21 {offsets = [0, 1, 0], sizes = [16, 16, 128], strides = [1, 1, 1]} : vector<16x18x128xbf16> to vector<16x16x128xbf16>
    %24 = vector.extract_strided_slice %21 {offsets = [0, 2, 0], sizes = [16, 16, 128], strides = [1, 1, 1]} : vector<16x18x128xbf16> to vector<16x16x128xbf16>
    %25 = tpu.concatenate %22, %23, %24 in 2 : vector<16x16x128xbf16>, vector<16x16x128xbf16>, vector<16x16x128xbf16> -> vector<16x16x384xbf16>
    %26 = vector.shape_cast %25 : vector<16x16x384xbf16> to vector<256x384xbf16>
    %c1_26 = arith.constant 1 : index
    %c0_27 = arith.constant 0 : index
    %c0_28 = arith.constant 0 : index
    %27 = vector.load %arg2[%c1_26, %c0_27, %c0_28] : memref<3x384x128xbf16, #tpu.memory_space<vmem>>, vector<1x384x128xbf16>
    %28 = vector.shape_cast %27 : vector<1x384x128xbf16> to vector<384x128xbf16>
    %cst_29 = arith.constant dense<0.000000e+00> : vector<256x128xf32>
    %29 = tpu.matmul %26, %28, %cst_29 {dimension_numbers = #tpu.dot_dimension_numbers<[1], [0], [0], [1], [0, 0, 1, 1], [], []>} : vector<256x384xbf16>, vector<384x128xbf16>, vector<256x128xf32> -> vector<256x128xf32>
    %30 = arith.addf %18, %29 : vector<256x128xf32>
    %c0_30 = arith.constant 0 : index
    %c2 = arith.constant 2 : index
    %c0_31 = arith.constant 0 : index
    %c0_32 = arith.constant 0 : index
    %31 = vector.load %arg1[%c0_30, %c2, %c0_31, %c0_32] : memref<1x18x18x128xf32, #tpu.memory_space<vmem>>, vector<1x16x18x128xf32>
    %32 = vector.shape_cast %31 : vector<1x16x18x128xf32> to vector<16x18x128xf32>
    %33 = arith.truncf %32 : vector<16x18x128xf32> to vector<16x18x128xbf16>
    %34 = vector.extract_strided_slice %33 {offsets = [0, 0, 0], sizes = [16, 16, 128], strides = [1, 1, 1]} : vector<16x18x128xbf16> to vector<16x16x128xbf16>
    %35 = vector.extract_strided_slice %33 {offsets = [0, 1, 0], sizes = [16, 16, 128], strides = [1, 1, 1]} : vector<16x18x128xbf16> to vector<16x16x128xbf16>
    %36 = vector.extract_strided_slice %33 {offsets = [0, 2, 0], sizes = [16, 16, 128], strides = [1, 1, 1]} : vector<16x18x128xbf16> to vector<16x16x128xbf16>
    %37 = tpu.concatenate %34, %35, %36 in 2 : vector<16x16x128xbf16>, vector<16x16x128xbf16>, vector<16x16x128xbf16> -> vector<16x16x384xbf16>
    %38 = vector.shape_cast %37 : vector<16x16x384xbf16> to vector<256x384xbf16>
    %c2_33 = arith.constant 2 : index
    %c0_34 = arith.constant 0 : index
    %c0_35 = arith.constant 0 : index
    %39 = vector.load %arg2[%c2_33, %c0_34, %c0_35] : memref<3x384x128xbf16, #tpu.memory_space<vmem>>, vector<1x384x128xbf16>
    %40 = vector.shape_cast %39 : vector<1x384x128xbf16> to vector<384x128xbf16>
    %cst_36 = arith.constant dense<0.000000e+00> : vector<256x128xf32>
    %41 = tpu.matmul %38, %40, %cst_36 {dimension_numbers = #tpu.dot_dimension_numbers<[1], [0], [0], [1], [0, 0, 1, 1], [], []>} : vector<256x384xbf16>, vector<384x128xbf16>, vector<256x128xf32> -> vector<256x128xf32>
    %42 = arith.addf %30, %41 : vector<256x128xf32>
    %43 = vector.broadcast %6 : vector<1x128xf32> to vector<256x128xf32>
    %44 = arith.mulf %42, %43 : vector<256x128xf32>
    %45 = vector.broadcast %7 : vector<1x128xf32> to vector<256x128xf32>
    %46 = arith.addf %44, %45 : vector<256x128xf32>
    %cst_37 = arith.constant 0.000000e+00 : f32
    %47 = vector.broadcast %cst_37 : f32 to vector<256x128xf32>
    %48 = arith.maximumf %46, %47 : vector<256x128xf32>
    %49 = vector.shape_cast %48 : vector<256x128xf32> to vector<16x16x128xf32>
    %c0_38 = arith.constant 0 : index
    %c1_39 = arith.constant 1 : index
    %c1_40 = arith.constant 1 : index
    %c0_41 = arith.constant 0 : index
    %50 = vector.load %arg1[%c0_38, %c1_39, %c1_40, %c0_41] : memref<1x18x18x128xf32, #tpu.memory_space<vmem>>, vector<1x16x16x128xf32>
    %51 = vector.shape_cast %50 : vector<1x16x16x128xf32> to vector<16x16x128xf32>
    %52 = arith.addf %51, %49 : vector<16x16x128xf32>
    %53 = arith.truncf %52 : vector<16x16x128xf32> to vector<16x16x128xbf16>
    %c1_42 = arith.constant 1 : index
    %c1_43 = arith.constant 1 : index
    %c0_44 = arith.constant 0 : index
    %54 = vector.load %arg6[%c1_42, %c1_43, %c0_44] : memref<18x18x128xbf16, #tpu.memory_space<vmem>>, vector<16x16x128xbf16>
    tpu.vector_store %arg6[%c1_42, %c1_43, %c0_44], %53 {strides = array<i32>} : memref<18x18x128xbf16, #tpu.memory_space<vmem>>, vector<16x16x128xbf16>,
    %c0_45 = arith.constant 0 : index
    %c0_46 = arith.constant 0 : index
    %c0_47 = arith.constant 0 : index
    %55 = vector.load %arg6[%c0_45, %c0_46, %c0_47] : memref<18x18x128xbf16, #tpu.memory_space<vmem>>, vector<16x18x128xbf16>
    %56 = vector.extract_strided_slice %55 {offsets = [0, 0, 0], sizes = [16, 16, 128], strides = [1, 1, 1]} : vector<16x18x128xbf16> to vector<16x16x128xbf16>
    %57 = vector.extract_strided_slice %55 {offsets = [0, 1, 0], sizes = [16, 16, 128], strides = [1, 1, 1]} : vector<16x18x128xbf16> to vector<16x16x128xbf16>
    %58 = vector.extract_strided_slice %55 {offsets = [0, 2, 0], sizes = [16, 16, 128], strides = [1, 1, 1]} : vector<16x18x128xbf16> to vector<16x16x128xbf16>
    %59 = tpu.concatenate %56, %57, %58 in 2 : vector<16x16x128xbf16>, vector<16x16x128xbf16>, vector<16x16x128xbf16> -> vector<16x16x384xbf16>
    %60 = vector.shape_cast %59 : vector<16x16x384xbf16> to vector<256x384xbf16>
    %c0_48 = arith.constant 0 : index
    %c0_49 = arith.constant 0 : index
    %c0_50 = arith.constant 0 : index
    %61 = vector.load %arg2[%c0_48, %c0_49, %c0_50] : memref<3x384x128xbf16, #tpu.memory_space<vmem>>, vector<1x384x128xbf16>
    %62 = vector.shape_cast %61 : vector<1x384x128xbf16> to vector<384x128xbf16>
    %cst_51 = arith.constant dense<0.000000e+00> : vector<256x128xf32>
    %63 = tpu.matmul %60, %62, %cst_51 {dimension_numbers = #tpu.dot_dimension_numbers<[1], [0], [0], [1], [0, 0, 1, 1], [], []>} : vector<256x384xbf16>, vector<384x128xbf16>, vector<256x128xf32> -> vector<256x128xf32>
    %c1_52 = arith.constant 1 : index
    %c0_53 = arith.constant 0 : index
    %c0_54 = arith.constant 0 : index
    %64 = vector.load %arg6[%c1_52, %c0_53, %c0_54] : memref<18x18x128xbf16, #tpu.memory_space<vmem>>, vector<16x18x128xbf16>
    %65 = vector.extract_strided_slice %64 {offsets = [0, 0, 0], sizes = [16, 16, 128], strides = [1, 1, 1]} : vector<16x18x128xbf16> to vector<16x16x128xbf16>
    %66 = vector.extract_strided_slice %64 {offsets = [0, 1, 0], sizes = [16, 16, 128], strides = [1, 1, 1]} : vector<16x18x128xbf16> to vector<16x16x128xbf16>
    %67 = vector.extract_strided_slice %64 {offsets = [0, 2, 0], sizes = [16, 16, 128], strides = [1, 1, 1]} : vector<16x18x128xbf16> to vector<16x16x128xbf16>
    %68 = tpu.concatenate %65, %66, %67 in 2 : vector<16x16x128xbf16>, vector<16x16x128xbf16>, vector<16x16x128xbf16> -> vector<16x16x384xbf16>
    %69 = vector.shape_cast %68 : vector<16x16x384xbf16> to vector<256x384xbf16>
    %c1_55 = arith.constant 1 : index
    %c0_56 = arith.constant 0 : index
    %c0_57 = arith.constant 0 : index
    %70 = vector.load %arg2[%c1_55, %c0_56, %c0_57] : memref<3x384x128xbf16, #tpu.memory_space<vmem>>, vector<1x384x128xbf16>
    %71 = vector.shape_cast %70 : vector<1x384x128xbf16> to vector<384x128xbf16>
    %cst_58 = arith.constant dense<0.000000e+00> : vector<256x128xf32>
    %72 = tpu.matmul %69, %71, %cst_58 {dimension_numbers = #tpu.dot_dimension_numbers<[1], [0], [0], [1], [0, 0, 1, 1], [], []>} : vector<256x384xbf16>, vector<384x128xbf16>, vector<256x128xf32> -> vector<256x128xf32>
    %73 = arith.addf %63, %72 : vector<256x128xf32>
    %c2_59 = arith.constant 2 : index
    %c0_60 = arith.constant 0 : index
    %c0_61 = arith.constant 0 : index
    %74 = vector.load %arg6[%c2_59, %c0_60, %c0_61] : memref<18x18x128xbf16, #tpu.memory_space<vmem>>, vector<16x18x128xbf16>
    %75 = vector.extract_strided_slice %74 {offsets = [0, 0, 0], sizes = [16, 16, 128], strides = [1, 1, 1]} : vector<16x18x128xbf16> to vector<16x16x128xbf16>
    %76 = vector.extract_strided_slice %74 {offsets = [0, 1, 0], sizes = [16, 16, 128], strides = [1, 1, 1]} : vector<16x18x128xbf16> to vector<16x16x128xbf16>
    %77 = vector.extract_strided_slice %74 {offsets = [0, 2, 0], sizes = [16, 16, 128], strides = [1, 1, 1]} : vector<16x18x128xbf16> to vector<16x16x128xbf16>
    %78 = tpu.concatenate %75, %76, %77 in 2 : vector<16x16x128xbf16>, vector<16x16x128xbf16>, vector<16x16x128xbf16> -> vector<16x16x384xbf16>
    %79 = vector.shape_cast %78 : vector<16x16x384xbf16> to vector<256x384xbf16>
    %c2_62 = arith.constant 2 : index
    %c0_63 = arith.constant 0 : index
    %c0_64 = arith.constant 0 : index
    %80 = vector.load %arg2[%c2_62, %c0_63, %c0_64] : memref<3x384x128xbf16, #tpu.memory_space<vmem>>, vector<1x384x128xbf16>
    %81 = vector.shape_cast %80 : vector<1x384x128xbf16> to vector<384x128xbf16>
    %cst_65 = arith.constant dense<0.000000e+00> : vector<256x128xf32>
    %82 = tpu.matmul %79, %81, %cst_65 {dimension_numbers = #tpu.dot_dimension_numbers<[1], [0], [0], [1], [0, 0, 1, 1], [], []>} : vector<256x384xbf16>, vector<384x128xbf16>, vector<256x128xf32> -> vector<256x128xf32>
    %83 = arith.addf %73, %82 : vector<256x128xf32>
    %84 = vector.broadcast %6 : vector<1x128xf32> to vector<256x128xf32>
    %85 = arith.mulf %83, %84 : vector<256x128xf32>
    %86 = vector.broadcast %7 : vector<1x128xf32> to vector<256x128xf32>
    %87 = arith.addf %85, %86 : vector<256x128xf32>
    %cst_66 = arith.constant 0.000000e+00 : f32
    %88 = vector.broadcast %cst_66 : f32 to vector<256x128xf32>
    %89 = arith.maximumf %87, %88 : vector<256x128xf32>
    %90 = vector.shape_cast %89 : vector<256x128xf32> to vector<16x16x128xf32>
    %c0_67 = arith.constant 0 : index
    %c1_68 = arith.constant 1 : index
    %c1_69 = arith.constant 1 : index
    %c0_70 = arith.constant 0 : index
    %91 = vector.load %arg1[%c0_67, %c1_68, %c1_69, %c0_70] : memref<1x18x18x128xf32, #tpu.memory_space<vmem>>, vector<1x16x16x128xf32>
    %92 = vector.shape_cast %91 : vector<1x16x16x128xf32> to vector<16x16x128xf32>
    %93 = arith.addf %92, %90 : vector<16x16x128xf32>
    %94 = arith.truncf %93 : vector<16x16x128xf32> to vector<16x16x128xbf16>
    %c0_71 = arith.constant 0 : index
    %c0_72 = arith.constant 0 : index
    %c0_73 = arith.constant 0 : index
    %95 = vector.load %arg7[%c0_71, %c0_72, %c0_73] : memref<16x16x128xbf16, #tpu.memory_space<vmem>>, vector<16x16x128xbf16>
    tpu.vector_store %arg7[%c0_71, %c0_72, %c0_73], %94 {strides = array<i32>} : memref<16x16x128xbf16, #tpu.memory_space<vmem>>, vector<16x16x128xbf16>,
    %c0_74 = arith.constant 0 : index
    %c0_75 = arith.constant 0 : index
    %c0_76 = arith.constant 0 : index
    %96 = vector.load %arg7[%c0_74, %c0_75, %c0_76] : memref<16x16x128xbf16, #tpu.memory_space<vmem>>, vector<16x16x128xbf16>
    %c1_77 = arith.constant 1 : index
    %c1_78 = arith.constant 1 : index
    %c0_79 = arith.constant 0 : index
    %97 = vector.load %arg6[%c1_77, %c1_78, %c0_79] : memref<18x18x128xbf16, #tpu.memory_space<vmem>>, vector<16x16x128xbf16>
    tpu.vector_store %arg6[%c1_77, %c1_78, %c0_79], %96 {strides = array<i32>} : memref<18x18x128xbf16, #tpu.memory_space<vmem>>, vector<16x16x128xbf16>,
    %c0_80 = arith.constant 0 : index
    %c0_81 = arith.constant 0 : index
    %c0_82 = arith.constant 0 : index
    %98 = vector.load %arg6[%c0_80, %c0_81, %c0_82] : memref<18x18x128xbf16, #tpu.memory_space<vmem>>, vector<16x18x128xbf16>
    %99 = vector.extract_strided_slice %98 {offsets = [0, 0, 0], sizes = [16, 16, 128], strides = [1, 1, 1]} : vector<16x18x128xbf16> to vector<16x16x128xbf16>
    %100 = vector.extract_strided_slice %98 {offsets = [0, 1, 0], sizes = [16, 16, 128], strides = [1, 1, 1]} : vector<16x18x128xbf16> to vector<16x16x128xbf16>
    %101 = vector.extract_strided_slice %98 {offsets = [0, 2, 0], sizes = [16, 16, 128], strides = [1, 1, 1]} : vector<16x18x128xbf16> to vector<16x16x128xbf16>
    %102 = tpu.concatenate %99, %100, %101 in 2 : vector<16x16x128xbf16>, vector<16x16x128xbf16>, vector<16x16x128xbf16> -> vector<16x16x384xbf16>
    %103 = vector.shape_cast %102 : vector<16x16x384xbf16> to vector<256x384xbf16>
    %c0_83 = arith.constant 0 : index
    %c0_84 = arith.constant 0 : index
    %c0_85 = arith.constant 0 : index
    %104 = vector.load %arg2[%c0_83, %c0_84, %c0_85] : memref<3x384x128xbf16, #tpu.memory_space<vmem>>, vector<1x384x128xbf16>
    %105 = vector.shape_cast %104 : vector<1x384x128xbf16> to vector<384x128xbf16>
    %cst_86 = arith.constant dense<0.000000e+00> : vector<256x128xf32>
    %106 = tpu.matmul %103, %105, %cst_86 {dimension_numbers = #tpu.dot_dimension_numbers<[1], [0], [0], [1], [0, 0, 1, 1], [], []>} : vector<256x384xbf16>, vector<384x128xbf16>, vector<256x128xf32> -> vector<256x128xf32>
    %c1_87 = arith.constant 1 : index
    %c0_88 = arith.constant 0 : index
    %c0_89 = arith.constant 0 : index
    %107 = vector.load %arg6[%c1_87, %c0_88, %c0_89] : memref<18x18x128xbf16, #tpu.memory_space<vmem>>, vector<16x18x128xbf16>
    %108 = vector.extract_strided_slice %107 {offsets = [0, 0, 0], sizes = [16, 16, 128], strides = [1, 1, 1]} : vector<16x18x128xbf16> to vector<16x16x128xbf16>
    %109 = vector.extract_strided_slice %107 {offsets = [0, 1, 0], sizes = [16, 16, 128], strides = [1, 1, 1]} : vector<16x18x128xbf16> to vector<16x16x128xbf16>
    %110 = vector.extract_strided_slice %107 {offsets = [0, 2, 0], sizes = [16, 16, 128], strides = [1, 1, 1]} : vector<16x18x128xbf16> to vector<16x16x128xbf16>
    %111 = tpu.concatenate %108, %109, %110 in 2 : vector<16x16x128xbf16>, vector<16x16x128xbf16>, vector<16x16x128xbf16> -> vector<16x16x384xbf16>
    %112 = vector.shape_cast %111 : vector<16x16x384xbf16> to vector<256x384xbf16>
    %c1_90 = arith.constant 1 : index
    %c0_91 = arith.constant 0 : index
    %c0_92 = arith.constant 0 : index
    %113 = vector.load %arg2[%c1_90, %c0_91, %c0_92] : memref<3x384x128xbf16, #tpu.memory_space<vmem>>, vector<1x384x128xbf16>
    %114 = vector.shape_cast %113 : vector<1x384x128xbf16> to vector<384x128xbf16>
    %cst_93 = arith.constant dense<0.000000e+00> : vector<256x128xf32>
    %115 = tpu.matmul %112, %114, %cst_93 {dimension_numbers = #tpu.dot_dimension_numbers<[1], [0], [0], [1], [0, 0, 1, 1], [], []>} : vector<256x384xbf16>, vector<384x128xbf16>, vector<256x128xf32> -> vector<256x128xf32>
    %116 = arith.addf %106, %115 : vector<256x128xf32>
    %c2_94 = arith.constant 2 : index
    %c0_95 = arith.constant 0 : index
    %c0_96 = arith.constant 0 : index
    %117 = vector.load %arg6[%c2_94, %c0_95, %c0_96] : memref<18x18x128xbf16, #tpu.memory_space<vmem>>, vector<16x18x128xbf16>
    %118 = vector.extract_strided_slice %117 {offsets = [0, 0, 0], sizes = [16, 16, 128], strides = [1, 1, 1]} : vector<16x18x128xbf16> to vector<16x16x128xbf16>
    %119 = vector.extract_strided_slice %117 {offsets = [0, 1, 0], sizes = [16, 16, 128], strides = [1, 1, 1]} : vector<16x18x128xbf16> to vector<16x16x128xbf16>
    %120 = vector.extract_strided_slice %117 {offsets = [0, 2, 0], sizes = [16, 16, 128], strides = [1, 1, 1]} : vector<16x18x128xbf16> to vector<16x16x128xbf16>
    %121 = tpu.concatenate %118, %119, %120 in 2 : vector<16x16x128xbf16>, vector<16x16x128xbf16>, vector<16x16x128xbf16> -> vector<16x16x384xbf16>
    %122 = vector.shape_cast %121 : vector<16x16x384xbf16> to vector<256x384xbf16>
    %c2_97 = arith.constant 2 : index
    %c0_98 = arith.constant 0 : index
    %c0_99 = arith.constant 0 : index
    %123 = vector.load %arg2[%c2_97, %c0_98, %c0_99] : memref<3x384x128xbf16, #tpu.memory_space<vmem>>, vector<1x384x128xbf16>
    %124 = vector.shape_cast %123 : vector<1x384x128xbf16> to vector<384x128xbf16>
    %cst_100 = arith.constant dense<0.000000e+00> : vector<256x128xf32>
    %125 = tpu.matmul %122, %124, %cst_100 {dimension_numbers = #tpu.dot_dimension_numbers<[1], [0], [0], [1], [0, 0, 1, 1], [], []>} : vector<256x384xbf16>, vector<384x128xbf16>, vector<256x128xf32> -> vector<256x128xf32>
    %126 = arith.addf %116, %125 : vector<256x128xf32>
    %127 = vector.broadcast %6 : vector<1x128xf32> to vector<256x128xf32>
    %128 = arith.mulf %126, %127 : vector<256x128xf32>
    %129 = vector.broadcast %7 : vector<1x128xf32> to vector<256x128xf32>
    %130 = arith.addf %128, %129 : vector<256x128xf32>
    %cst_101 = arith.constant 0.000000e+00 : f32
    %131 = vector.broadcast %cst_101 : f32 to vector<256x128xf32>
    %132 = arith.maximumf %130, %131 : vector<256x128xf32>
    %133 = vector.shape_cast %132 : vector<256x128xf32> to vector<16x16x128xf32>
    %c0_102 = arith.constant 0 : index
    %c0_103 = arith.constant 0 : index
    %c0_104 = arith.constant 0 : index
    %c0_105 = arith.constant 0 : index
    %134 = vector.load %arg5[%c0_102, %c0_103, %c0_104, %c0_105] : memref<1x16x16x128xf32, #tpu.memory_space<vmem>>, vector<1x16x16x128xf32>
    %135 = vector.shape_cast %134 : vector<1x16x16x128xf32> to vector<16x16x128xf32>
    %136 = vector.shape_cast %133 : vector<16x16x128xf32> to vector<1x16x16x128xf32>
    tpu.vector_store %arg5[%c0_102, %c0_103, %c0_104, %c0_105], %136 {strides = array<i32>} : memref<1x16x16x128xf32, #tpu.memory_space<vmem>>, vector<1x16x16x128xf32>,
    return
  }
  func.func @transform_0(%arg0: i32) -> (i32, i32, i32, i32) {
    %c0_i32 = arith.constant 0 : i32
    %c0_i32_0 = arith.constant 0 : i32
    %c0_i32_1 = arith.constant 0 : i32
    %c0_i32_2 = arith.constant 0 : i32
    return %arg0, %c0_i32, %c0_i32_0, %c0_i32_1 : i32, i32, i32, i32
  }
  func.func @transform_1(%arg0: i32) -> (i32, i32, i32) {
    %c0_i32 = arith.constant 0 : i32
    %c0_i32_0 = arith.constant 0 : i32
    %c0_i32_1 = arith.constant 0 : i32
    %c0_i32_2 = arith.constant 0 : i32
    return %c0_i32, %c0_i32_0, %c0_i32_1 : i32, i32, i32
  }
  func.func @transform_2(%arg0: i32) -> (i32, i32) {
    %c0_i32 = arith.constant 0 : i32
    %c0_i32_0 = arith.constant 0 : i32
    %c0_i32_1 = arith.constant 0 : i32
    return %c0_i32, %c0_i32_0 : i32, i32
  }
  func.func @transform_3(%arg0: i32) -> (i32, i32) {
    %c0_i32 = arith.constant 0 : i32
    %c0_i32_0 = arith.constant 0 : i32
    %c0_i32_1 = arith.constant 0 : i32
    return %c0_i32, %c0_i32_0 : i32, i32
  }
  func.func @transform_4(%arg0: i32) -> (i32, i32, i32, i32) {
    %c0_i32 = arith.constant 0 : i32
    %c0_i32_0 = arith.constant 0 : i32
    %c0_i32_1 = arith.constant 0 : i32
    %c0_i32_2 = arith.constant 0 : i32
    return %arg0, %c0_i32, %c0_i32_0, %c0_i32_1 : i32, i32, i32, i32
  }
}

</mosaic_0001>

<bundles_post_ra>
// kernel: tpu_custom_call.1
= control target key start
LH: loop header
LB: loop body
LE: loop exit
PB: predicated region body
PF: predicated region fallthrough
CT: control target
= control target key end

     0   :  { %9 = vsyncpa [#allocation5], 0  ;;  %s18549_s0 = inlined_call_operand.vmem [shape: f32[2,18,18,128], index: 0, kind: input, shape index: {}]   ;;  %s18550_s1 = inlined_call_operand.vmem [shape: bf16[3,384,128], index: 1, kind: input, shape index: {}]   ;;  %s18551_s2 = inlined_call_operand.vmem [shape: f32[1,128], index: 2, kind: input, shape index: {}]   ;;  %s18552_s3 = inlined_call_operand.vmem [shape: f32[1,128], index: 3, kind: input, shape index: {}]   ;;  %s18553_s4 = inlined_call_operand.hbm [shape: f32[2,16,16,128], index: 4, kind: output, shape index: {}]  }
   0x1   :  { %11 = vsyncpa [#allocation5 + $0x1], 0  ;;  %s14328_s15 = smov 0   ;;  %s14330_s16 = smov 0  }
   0x2   :  { %s14332_s17 = smov 0   ;;  %s14334_s18 = smov 0  }
   0x3 LB: > { %s14349_s19 = sadd.s32 4294967295, %s14297_s18   ;;  %s10613_s20 = sadd.s32 4294967294, %s14297_s18   ;;  %s14297_s18 = sphi %s14334_s18, %s18724_s18   ;;  %s14293_s17 = sphi %s14332_s17, %s18723_s17   ;;  %s14289_s16 = sphi %s14330_s16, %s18722_s16   ;;  %s14285_s15 = sphi %s14328_s15, %s18721_s15  }
   0x4   : > { %s14353_s21 = sadd.s32 1, %s14297_s18   ;;  %s113_s22 = sadd.s32 1, %s14293_s17 }
   0x5   : > { %s110_s23 = ssub.s32 %s14297_s18, %s14353_s21  ;;  %p123_p0 = scmp.ne.s32.totalorder %s14293_s17, %s14289_s16 }
   0x6   : > { %p111_p1 = scmp.eq.s32.totalorder %s110_s23, 0  ;;  %p124_p2 = scmp.eq.s32.totalorder %s14349_s19, 1 }
   0x7   : > { %p129_p3 = scmp.ne.s32.totalorder %s14289_s16, %s14285_s15  ;;  %p130_p4 = scmp.eq.s32.totalorder %s10613_s20, 1 }
   0x8   : > { %s14364_s24 = scalar_select %p111_p1, %s14293_s17, %s113_s22  }
   0x9   : > { %p14366_p5 = por %p124_p2, %p123_p0  ;;  %p14370_p6 = por %p130_p4, %p129_p3 }
   0xa   : > { %p10616_p7 = scmp.ge.s32.totalorder %s14297_s18, 1  ;;  %p165_p8 = scmp.lt.s32.totalorder %s14297_s18, 3 }
   0xc   : > { %p166_p9 = pnand %p10616_p7, %p165_p8 }
   0xe   : > { %169 = sbr.rel (%p166_p9) target bundleno = 1947 (0x79b), region = 36 }
  0x15   : > { %v13806_v0 = vld [vmem:[%s18550_s1 + $0x100] sm:$0xff]   ;;  %p191_p10 = scmp.lt.s32.totalorder %s14349_s19, 1  ;;  %v13808_v2 = vld [vmem:[%s18550_s1 + $0x108] sm:$0xff]   ;;  %v13810_v4 = vld [vmem:[%s18550_s1 + $0x110] sm:$0xff]   ;;  %vm640_vm0 = vcmask 1046528   ;;  %vm204_vm2 = vcmask 1040384  }
  0x16   : > { %v13807_v1 = vld [vmem:[%s18550_s1 + $0xc0] sm:$0xff]   ;;  %13267 = vmatprep.subr.bf16.mxu1 %v13806_v0  ;;  %11611 = vmatprep.subr.bf16.mxu0 %v13806_v0  ;;  %v13809_v3 = vld [vmem:[%s18550_s1 + $0xc8] sm:$0xff]   ;;  %v13811_v5 = vld [vmem:[%s18550_s1 + $0xd0] sm:$0xff]   ;;  %vm399_vm1 = vsmask.f32 7424  ;;  %vm3642_vm7 = vcmask 1043456  }
  0x17   : > { %13275 = vmatpush3.bf16.msra.mxu1 %v13807_v1  ;;  %11612 = vmatpush3.bf16.msra.mxu0 %v13807_v1  ;;  %s192_s11 = scalar_select %p191_p10, %s14349_s19, 1  ;;  %v13812_v6 = vld [vmem:[%s18550_s1 + $0x118] sm:$0xff]   ;;  %v13814_v8 = vld [vmem:[%s18550_s1 + $0x120] sm:$0xff]   ;;  %v13816_v10 = vld [vmem:[%s18550_s1 + $0x128] sm:$0xff]   ;;  %vm205_vm3 = vsmask.f32 256 }
  0x18   : > { %13268 = vmatprep.subr.bf16.mxu1 %v13808_v2  ;;  %11613 = vmatprep.subr.bf16.mxu0 %v13808_v2  ;;  %v13813_v7 = vld [vmem:[%s18550_s1 + $0xd8] sm:$0xff]   ;;  %v13815_v9 = vld [vmem:[%s18550_s1 + $0xe0] sm:$0xff]   ;;  %v13817_v19 = vld [vmem:[%s18550_s1 + $0xe8] sm:$0xff]   ;;  %vm261_vm5 = vsmask.f32 7938  ;;  %s188_s28 = sand.u32 1, %s14289_s16  }
  0x19   : > { %s13763_s22 = smul.u32 432, %s192_s11  ;;  %v13818_v24 = vld [vmem:[%s18550_s1 + $0x130] sm:$0xff]   ;;  %v13820_v36 = vld [vmem:[%s18550_s1 + $0x138] sm:$0xff]   ;;  %v13822_v44 = vld [vmem:[%s18550_s1 + $0x140] sm:$0xff]   ;;  %vm3319_vm8 = vsmask.f32 4368 }
  0x1a   : > { %v13819_v34 = vld [vmem:[%s18550_s1 + $0xf0] sm:$0xff]   ;;  %v13821_v43 = vld [vmem:[%s18550_s1 + $0xf8] sm:$0xff]   ;;  %v13823_v53 = vld [vmem:[%s18550_s1 + $0x148] sm:$0xff]   ;;  %s10617_s29 = sshll.u32 %s188_s28, 8  ;;  %s11578_s9 = sshll.u32 %s14349_s19, 12 }
  0x1b   : > { %13276 = vmatpush3.bf16.msra.mxu1 %v13809_v3  ;;  %11614 = vmatpush3.bf16.msra.mxu0 %v13809_v3  ;;  %s14408_s6 = scalar_lea.vmem %s18549_s0, %s13763_s22  ;;  %v13824_v1 = vld [vmem:[%s18550_s1 + $0x150] sm:$0xff]   ;;  %vm15438_vm4 = vmand %vm204_vm2, %vm205_vm3  ;;  %s18379_s8 = scalar_lea.vmem [#allocation4], %s10617_s29 }
  0x1c   : > { %13269 = vmatprep.subr.bf16.mxu1 %v13810_v4  ;;  %11615 = vmatprep.subr.bf16.mxu0 %v13810_v4  ;;  %v10631_v11 = vld [vmem:[%s14408_s6 + $0x78] sm:$0xff]  ;;  %v10632_v12 = vld [vmem:[%s14408_s6 + $0x80] sm:$0xff]  ;;  %v10633_v13 = vld [vmem:[%s14408_s6 + $0x88] sm:$0x3]  ;;  %s10551_s10 = sshll.u32 %s18379_s8, 4  ;;  %s18499_s13 = scalar_lea.hbm %s18553_s4, %s11578_s9  ;;  %s18501_s10 = int_to_ptr.vmem [resolvable:$true] %s10551_s10 }
  0x1d   : > { %v810_v14 = vpack.c.bf16 %v10632_v12, %v10631_v11  ;;  %v811_v15 = vpack.c.bf16 %v10633_v13, %v10633_v13  ;;  %v10634_v16 = vld [vmem:[%s14408_s6 + $0x90] sm:$0xff]  ;;  %v10635_v17 = vld [vmem:[%s14408_s6 + $0x98] sm:$0xff]  ;;  %v10636_v18 = vld [vmem:[%s14408_s6 + $0xa0] sm:$0x3]  ;;  %s18508_s19 = scalar_lea.sflag [#allocation5], %s188_s28  ;;  %s14235_s14 = scalar_lea.vmem %s18501_s10, 4096 }
  0x1e   : > { %v14425_v23 = vpack.c.bf16 %v10635_v17, %v10634_v16  ;;  %v14430_v25 = vpack.c.bf16 %v10636_v18, %v10636_v18  ;;  %v10637_v31 = vld [vmem:[%s14408_s6 + $0xa8] sm:$0xff]  ;;  %v10638_v32 = vld [vmem:[%s14408_s6 + $0xb0] sm:$0xff]  ;;  %v10639_v42 = vld [vmem:[%s14408_s6 + $0xb8] sm:$0x3]  ;;  %p14236_p11 = scmp.ne.s32.totalorder %s18501_s10, %s14235_s14  ;;  %s14300_s20 = smov [#allocation4]  }
  0x1f   : > { %13277 = vmatpush3.bf16.msra.mxu1 %v13811_v5  ;;  %11616 = vmatpush3.bf16.msra.mxu0 %v13811_v5  ;;  %v883_v20 = vshrl.u32 %v810_v14, 16  ;;  %v885_v21 = vshll.u32 %v810_v14, 16  ;;  %v890_v22 = vshll.u32 %v811_v15, 16  ;;  %v1086_v26 = vrot.slane %v810_v14, 1  ;;  %v10640_v49 = vld [vmem:[%s14408_s6 + $0xc0] sm:$0xff]  ;;  %v10641_v50 = vld [vmem:[%s14408_s6 + $0xc8] sm:$0xff]  ;;  %vm15575_vm6 = vmand %vm204_vm2, %vm261_vm5 }
  0x20   : > { %13270 = vmatprep.subr.bf16.mxu1 %v13812_v6  ;;  %11617 = vmatprep.subr.bf16.mxu0 %v13812_v6  ;;  %v1087_v27 = vrot.slane %v811_v15, 1  ;;  %v897_v30 = vshll.u32 %v14425_v23, 16  ;;  %v895_v37 = vshrl.u32 %v14425_v23, 16  ;;  %v902_v39 = vshll.u32 %v14430_v25, 16  ;;  %v10642_v57 = vld [vmem:[%s14408_s6 + $0xd0] sm:$0x3]  ;;  %vm15798_vm9 = vmand %vm3642_vm7, %vm261_vm5  ;;  %p14237_p12 = pnand %p14236_p11, %p14366_p5 }
  0x21   : > { %v887_v28 = vrot.slane %v885_v21, 1  ;;  %v892_v29 = vrot.slane %v890_v22, 1  ;;  %v14446_v40 = vpack.c.bf16 %v10638_v32, %v10637_v31  ;;  %v14456_v47 = vpack.c.bf16 %v10639_v42, %v10639_v42  ;;  %v10643_v58 = vld [vmem:[%s14408_s6 + $0xd8] sm:$0xff]  ;;  %v10644_v59 = vld [vmem:[%s14408_s6 + $0xe0] sm:$0xff]  ;;  %v10645_v60 = vld [vmem:[%s14408_s6 + $0xe8] sm:$0x3] }
  0x22   : > { %v14436_v33 = vsel %vm640_vm0, %v1086_v26, %v1087_v27  ;;  %v899_v38 = vrot.slane %v897_v30, 1  ;;  %v904_v46 = vrot.slane %v902_v39, 1  ;;  %v14461_v51 = vpack.c.bf16 %v10641_v50, %v10640_v49  ;;  %v13825_v5 = vld [vmem:[%s18550_s1 + $0x158] sm:$0xff]   ;;  %v10648_v11 = vld [vmem:[%s14408_s6 + $0x100] sm:$0x3]  ;;  %v10649_v12 = vld [vmem:[%s14408_s6 + $0x108] sm:$0xff]  ;;  %p14238_p13 = pneg %p14237_p12 }
  0x23   : > { %13278 = vmatpush3.bf16.msra.mxu1 %v13813_v7  ;;  %11618 = vmatpush3.bf16.msra.mxu0 %v13813_v7  ;;  %v888_v35 = vor.u32 %v887_v28, %v883_v20  ;;  %v909_v48 = vshll.u32 %v14446_v40, 16  ;;  %v907_v54 = vshrl.u32 %v14446_v40, 16  ;;  %v914_v56 = vshll.u32 %v14456_v47, 16  ;;  %v10650_v13 = vld [vmem:[%s14408_s6 + $0x110] sm:$0xff]  ;;  %v10651_v20 = vld [vmem:[%s14408_s6 + $0x118] sm:$0x3]  ;;  %vm15804_vm10 = vmor %vm205_vm3, %vm3319_vm8 }
  0x24   : > { %13271 = vmatprep.subr.bf16.mxu1 %v13814_v8  ;;  %11619 = vmatprep.subr.bf16.mxu0 %v13814_v8  ;;  %v900_v45 = vor.u32 %v899_v38, %v895_v37  ;;  %v14473_v63 = vpack.c.bf16 %v10642_v57, %v10642_v57  ;;  %v921_v0 = vshll.u32 %v14461_v51, 16  ;;  %v14479_v2 = vpack.c.bf16 %v10644_v59, %v10643_v58  ;;  %v13826_v22 = vld [vmem:[%s18550_s1 + $0x160] sm:$0xff]   ;;  %v10619_v37 = vld [vmem:[%s14408_s6 + $0x18] sm:$0xff]  ;;  %v10621_v38 = vld [vmem:[%s14408_s6 + $0x28] sm:$0x3]  ;;  %s14239_s22 = sshll.u32 %s14300_s20, 4  ;;  %s14240_s22 = int_to_ptr.vmem [resolvable:$false] %s14239_s22 }
  0x25   : > { %v893_v41 = vsel %vm399_vm1, %v888_v35, %v892_v29  ;;  %v911_v55 = vrot.slane %v909_v48, 1  ;;  %v916_v62 = vrot.slane %v914_v56, 1  ;;  %v14481_v3 = vpack.c.bf16 %v10645_v60, %v10645_v60  ;;  %v13827_v35 = vld [vmem:[%s18550_s1 + $0x168] sm:$0xff]   ;;  %v10620_v39 = vld [vmem:[%s14408_s6 + $0x20] sm:$0xff]  ;;  %v13829_v57 = vld [vmem:[%s18550_s1 + $0x178] sm:$0xff]   ;;  %s14241_s23 = scalar_lea.vmem %s14240_s22, 8192  ;;  %p14242_p0 = scmp.lt.s32.totalorder %s18501_s10, %s14240_s22 }
  0x26   : > { %1395 = vmatprep.mubr.bf16.mxu1 %v893_v41  ;;  %v905_v52 = vsel %vm399_vm1, %v900_v45, %v904_v46  ;;  %v919_v4 = vshrl.u32 %v14461_v51, 16  ;;  %v923_v7 = vrot.slane %v921_v0, 1  ;;  %v926_v8 = vshll.u32 %v14473_v63, 16  ;;  %v10622_v58 = vld [vmem:[%s14408_s6 + $0x30] sm:$0xff]  ;;  %v10624_v0 = vld [vmem:[%s14408_s6 + $0x40] sm:$0x3]  ;;  %p14243_p1 = scmp.lt.s32.totalorder %s14241_s23, %s14235_s14 }
  0x27   : > { %13279 = vmatpush3.bf16.msra.mxu1 %v13815_v9  ;;  %11620 = vmatpush3.bf16.msra.mxu0 %v13815_v9  ;;  %v912_v61 = vor.u32 %v911_v55, %v907_v54  ;;  %v10646_v9 = vld [vmem:[%s14408_s6 + $0xf0] sm:$0xff]  ;;  %v938_v15 = vshll.u32 %v14481_v3, 16  ;;  %v821_v17 = vpack.c.bf16 %v10648_v11, %v10648_v11  ;;  %v14500_v21 = vpack.c.bf16 %v10650_v13, %v10649_v12  ;;  %v13840_v13 = vld [vmem:[%s18550_s1 + $0x1c0] sm:$0xff]  }
  0x28   : > { %13272 = vmatprep.subr.bf16.mxu1 %v13816_v10  ;;  %11621 = vmatprep.subr.bf16.mxu0 %v13816_v10  ;;  %v10647_v10 = vld [vmem:[%s14408_s6 + $0xf8] sm:$0xff]  ;;  %v924_v18 = vor.u32 %v923_v7, %v919_v4  ;;  %v931_v26 = vshrl.u32 %v14479_v2, 16  ;;  %v14509_v32 = vpack.c.bf16 %v10651_v20, %v10651_v20  ;;  %v1090_v41 = vrot.slane %v14430_v25, 1  ;;  %v10654_v54 = vld [vmem:[%s14408_s6 + $0x130] sm:$0x3]  ;;  %p14244_p2 = por %p14243_p1, %p14242_p0 }
  0x29   : > { %v917_v6 = vsel %vm399_vm1, %v912_v61, %v916_v62  ;;  %v14497_v16 = vpack.c.bf16 %v10647_v10, %v10646_v9  ;;  %v940_v28 = vrot.slane %v938_v15, 1  ;;  %v950_v31 = vshll.u32 %v821_v17, 16  ;;  %v10655_v9 = vld [vmem:[%s14408_s6 + $0x138] sm:$0xff]  ;;  %v10656_v10 = vld [vmem:[%s14408_s6 + $0x140] sm:$0xff] }
  0x2a   : > { %v1092_v45 = vrot.slane %v14446_v40, 1  ;;  %v1093_v46 = vrot.slane %v14456_v47, 1  ;;  %v1095_v25 = vrot.slane %v14461_v51, 1  ;;  %v1096_v50 = vrot.slane %v14473_v63, 1  ;;  %v10623_v63 = vld [vmem:[%s14408_s6 + $0x38] sm:$0xff]  ;;  %p14245_p3 = pnand %p14244_p2, %p14238_p13 }
  0x2b   : > { %13280 = vmatpush3.bf16.msra.mxu1 %v13817_v19  ;;  %11622 = vmatpush3.bf16.msra.mxu0 %v13817_v19  ;;  %v928_v19 = vrot.slane %v926_v8, 1  ;;  %v943_v29 = vshrl.u32 %v14497_v16, 16  ;;  %v945_v30 = vshll.u32 %v14497_v16, 16  ;;  %v14536_v55 = vpack.c.bf16 %v10620_v39, %v10619_v37  ;;  %v13842_v37 = vld [vmem:[%s18550_s1 + $0x1c8] sm:$0xff]  }
  0x2c   : > { %13273 = vmatprep.subr.bf16.mxu1 %v13818_v24  ;;  %11623 = vmatprep.subr.bf16.mxu0 %v13818_v24  ;;  %v1089_v24 = vrot.slane %v14425_v23, 1  ;;  %v14538_v56 = vpack.c.bf16 %v10621_v38, %v10621_v38  ;;  %v1098_v47 = vrot.slane %v14479_v2, 1  ;;  %v14549_v59 = vsel %vm640_vm0, %v1095_v25, %v1096_v50  ;;  %v13843_v25 = vld [vmem:[%s18550_s1 + $0x188] sm:$0xff]  }
  0x2d   : > { %v947_v42 = vrot.slane %v945_v30, 1  ;;  %v1099_v60 = vrot.slane %v14481_v3, 1  ;;  %v1101_v61 = vrot.slane %v14497_v16, 1  ;;  %v1102_v62 = vrot.slane %v821_v17, 1  ;;  %v10657_v17 = vld [vmem:[%s14408_s6 + $0x148] sm:$0x3] }
  0x2e   : > { %v14529_v49 = vsel %vm640_vm0, %v1089_v24, %v1090_v41  ;;  %v837_v4 = vshll.u32 %v14536_v55, 16  ;;  %v952_v8 = vrot.slane %v950_v31, 1  ;;  %v14573_v15 = vpack.c.bf16 %v10654_v54, %v10654_v54  ;;  %v10625_v31 = vld [vmem:[%s14408_s6 + $0x48] sm:$0xff]  ;;  %v10627_v41 = vld [vmem:[%s14408_s6 + $0x58] sm:$0x3] }
  0x2f   : > { %13281 = vmatpush3.bf16.msra.mxu1 %v13819_v34  ;;  %11624 = vmatpush3.bf16.msra.mxu0 %v13819_v34  ;;  %v955_v34 = vshrl.u32 %v14500_v21, 16  ;;  %v14560_v7 = vsel %vm640_vm0, %v1098_v47, %v1099_v60  ;;  %v14563_v3 = vsel %vm640_vm0, %v1101_v61, %v1102_v62  ;;  %v1105_v24 = vrot.slane %v14509_v32, 1 }
  0x30   : > { %13274 = vmatprep.subr.bf16.mxu1 %v13820_v36  ;;  %11625 = vmatprep.subr.bf16.mxu0 %v13820_v36  ;;  %v957_v36 = vshll.u32 %v14500_v21, 16  ;;  %v839_v11 = vrot.slane %v837_v4, 1  ;;  %v1108_v30 = vrot.slane %v14573_v15, 1  ;;  %v14605_v39 = vpack.c.bf16 %v10656_v10, %v10655_v9  ;;  %v10630_v4 = vld [vmem:[%s14408_s6 + $0x70] sm:$0x3] }
  0x32   : > { %v1110_v54 = vrot.slane %v14605_v39, 1 }
  0x33   : > { %13282 = vmatpush3.bf16.msra.mxu1 %v13821_v43  ;;  %11626 = vmatpush3.bf16.msra.mxu0 %v13821_v43  ;;  %v962_v43 = vshll.u32 %v14509_v32, 16 }
  0x34   : > { %12835 = vmatprep.subr.bf16.mxu1 %v13822_v44  ;;  %11883 = vmatprep.subr.bf16.mxu0 %v13840_v13 }
  0x35   : > { %v964_v61 = vrot.slane %v962_v43, 1 }
  0x36   : > { %1396 = vmatmul.mubr.bf16.vlgmr.msra.gmra.mrb[0].mxu1 %v810_v14  ;;  %v933_v14 = vshll.u32 %v14479_v2, 16 }
  0x37   : > { %12836 = vmatpush3.bf16.msra.mxu1 %v13822_v44  ;;  %1403 = vmatprep.mubr.bf16.mxu1 %v905_v52  ;;  %v13828_v44 = vld [vmem:[%s18550_s1 + $0x170] sm:$0xff]   ;;  %v10652_v52 = vld [vmem:[%s14408_s6 + $0x120] sm:$0xff] }
  0x38   : > { %12837 = vmatprep.subr.bf16.mxu1 %v13823_v53  ;;  %v935_v27 = vrot.slane %v933_v14, 1 }
  0x3a   : > { %v936_v48 = vor.u32 %v935_v27, %v931_v26  ;;  %v948_v26 = vor.u32 %v947_v42, %v943_v29  ;;  %v14590_v27 = vpack.c.bf16 %v10624_v0, %v10624_v0  ;;  %v10628_v0 = vld [vmem:[%s14408_s6 + $0x60] sm:$0xff] }
  0x3b   : > { %12838 = vmatpush3.bf16.msra.mxu1 %v13823_v53  ;;  %v10653_v53 = vld [vmem:[%s14408_s6 + $0x128] sm:$0xff] }
  0x3c   : > { %12839 = vmatprep.subr.bf16.mxu1 %v13824_v1  ;;  %v14571_v14 = vpack.c.bf16 %v10653_v53, %v10652_v52  ;;  %v953_v50 = vsel %vm399_vm1, %v948_v26, %v952_v8  ;;  %v981_v26 = vshll.u32 %v14605_v39, 16 }
  0x3e   : > { %1404 = vmatmul.mubr.bf16.gmra.mrb[4].mxu1 %v14425_v23  ;;  %v929_v23 = vsel %vm399_vm1, %v924_v18, %v928_v19  ;;  %v14576_v18 = vpack.c.bf16 %v10623_v63, %v10622_v58  ;;  %v13830_v19 = vld [vmem:[%s18550_s1 + $0x40] sm:$0xff]   ;;  %v969_v62 = vshll.u32 %v14571_v14, 16  ;;  %v14637_v63 = vpack.c.bf16 %v10627_v41, %v10627_v41  ;;  %v10659_v41 = vld [vmem:[%s14408_s6 + $0x158] sm:$0xff] }
  0x3f   : > { %1411 = vmatprep.mubr.bf16.mxu1 %v917_v6  ;;  %12840 = vmatpush3.bf16.msra.mxu1 %v13824_v1  ;;  %v835_v1 = vshrl.u32 %v14536_v55, 16  ;;  %v941_v6 = vsel %vm399_vm1, %v936_v48, %v940_v28  ;;  %v1107_v28 = vrot.slane %v14571_v14, 1  ;;  %v14615_v48 = vpack.c.bf16 %v10657_v17, %v10657_v17 }
  0x40   : > { %12841 = vmatprep.subr.bf16.mxu1 %v13825_v5  ;;  %v847_v29 = vshrl.u32 %v14576_v18, 16  ;;  %v866_v8 = vshll.u32 %v14637_v63, 16  ;;  %v967_v9 = vshrl.u32 %v14571_v14, 16  ;;  %v971_v17 = vrot.slane %v969_v62, 1  ;;  %v10765_v62 = vld [vmem:[%s14408_s6 + $0x40] sm:$0x3] }
  0x41   : > { %v14581_v20 = vor.u32 %v839_v11, %v835_v1  ;;  %v14609_v42 = vsel %vm640_vm0, %v1107_v28, %v1108_v30  ;;  %v1111_v58 = vrot.slane %v14615_v48, 1  ;;  %v10629_v1 = vld [vmem:[%s14408_s6 + $0x68] sm:$0xff]  ;;  %v974_v11 = vshll.u32 %v14573_v15, 16  ;;  %v13852_v15 = vld [vmem:[%s18550_s1 + $0x1e0] sm:$0xff]  }
  0x43   : > { %12842 = vmatpush3.bf16.msra.mxu1 %v13825_v5  ;;  %v842_v5 = vshll.u32 %v14538_v56, 16 }
  0x44   : > { %12843 = vmatprep.subr.bf16.mxu1 %v13826_v22 }
  0x45   : > { %v844_v12 = vrot.slane %v842_v5, 1 }
  0x46   : > { %1412 = vmatmul.mubr.bf16.gmra.mrb[8].mxu1 %v14446_v40  ;;  %v14541_v40 = vsel %vm640_vm0, %v1092_v45, %v1093_v46  ;;  %v854_v45 = vshll.u32 %v14590_v27, 16  ;;  %v959_v46 = vrot.slane %v957_v36, 1  ;;  %v13846_v36 = vld [vmem:[%s18550_s1 + $0x1d0] sm:$0xff]  }
  0x47   : > { %1419 = vmatprep.mubr.bf16.mxu1 %v929_v23  ;;  %12844 = vmatpush3.bf16.msra.mxu1 %v13826_v22  ;;  %v1104_v22 = vrot.slane %v14500_v21, 1  ;;  %v845_v23 = vsel %vm399_vm1, %v14581_v20, %v844_v12  ;;  %v868_v12 = vrot.slane %v866_v8, 1 }
  0x48   : > { %12845 = vmatprep.subr.bf16.mxu1 %v13827_v35  ;;  %1363 = vmatprep.mubr.bf16.mxu0 %v845_v23  ;;  %v856_v53 = vrot.slane %v854_v45, 1  ;;  %v960_v60 = vor.u32 %v959_v46, %v955_v34  ;;  %v14648_v34 = vsel %vm640_vm0, %v1110_v54, %v1111_v58  ;;  %v983_v54 = vrot.slane %v981_v26, 1 }
  0x49   : > { %v14602_v38 = vsel %vm640_vm0, %v1104_v22, %v1105_v24  ;;  %1364 = vmatmul.mubr.bf16.vlgmr.msra.gmra.mrb[0].mxu0 %v14536_v55  ;;  %v14667_v24 = vpack.c.bf16 %v10630_v4, %v10630_v4  ;;  %v10768_v4 = vld [vmem:[%s14408_s6 + $0x58] sm:$0x3] }
  0x4a   : > { %v965_v13 = vsel %vm399_vm1, %v960_v60, %v964_v61  ;;  %v13855_v60 = vld [vmem:[%s18550_s1 + $0x1a8] sm:$0xff]   ;;  %v13858_v61 = vld [vmem:[%s18550_s1 + $0x1f0] sm:$0xff]   ;;  %v14717_v8 = vpack.c.bf16 %v10768_v4, %v10768_v4 }
  0x4b   : > { %12846 = vmatpush3.bf16.msra.mxu1 %v13827_v35  ;;  %v10626_v35 = vld [vmem:[%s14408_s6 + $0x50] sm:$0xff]  ;;  %v878_v23 = vshll.u32 %v14667_v24, 16 }
  0x4c   : > { %12847 = vmatprep.subr.bf16.mxu1 %v13828_v44  ;;  %v14627_v47 = vpack.c.bf16 %v10626_v35, %v10625_v31  ;;  %v10658_v31 = vld [vmem:[%s14408_s6 + $0x150] sm:$0xff]  ;;  %18582 = vst [vmem:[#allocation8_spill] sm:$0xff] %v14717_v8 }
  0x4d   : > { %v880_v46 = vrot.slane %v878_v23, 1  ;;  %v14694_v58 = vpack.c.bf16 %v10659_v41, %v10658_v31  ;;  %v13861_v31 = vld [vmem:[%s18550_s1 + $0x1b8] sm:$0xff]   ;;  %v10773_v41 = vld [vmem:[%s14408_s6 + $0x80] sm:$0xff] }
  0x4e   : > { %1420 = vmatmul.mubr.bf16.gmra.mrb[12].mxu1 %v14461_v51  ;;  %v13841_v51 = vld [vmem:[%s18550_s1 + $0x180] sm:$0xff]   ;;  %v859_v32 = vshrl.u32 %v14627_v47, 16  ;;  %v861_v43 = vshll.u32 %v14627_v47, 16 }
  0x4f   : > { %1427 = vmatprep.mubr.bf16.mxu1 %v941_v6  ;;  %12848 = vmatpush3.bf16.msra.mxu1 %v13828_v44  ;;  %v849_v44 = vshll.u32 %v14576_v18, 16  ;;  %v13848_v6 = vld [vmem:[%s18550_s1 + $0x1d8] sm:$0xff]  }
  0x50   : > { %12849 = vmatprep.subr.bf16.mxu1 %v13829_v57  ;;  %11884 = vmatpush3.bf16.msra.mxu0 %v13841_v51  ;;  %v863_v10 = vrot.slane %v861_v43, 1  ;;  %v13849_v51 = vld [vmem:[%s18550_s1 + $0x198] sm:$0xff]   ;;  %v993_v43 = vshll.u32 %v14694_v58, 16 }
  0x51   : > { %v851_v52 = vrot.slane %v849_v44, 1  ;;  %11885 = vmatprep.subr.bf16.mxu0 %v13842_v37  ;;  %v972_v37 = vor.u32 %v971_v17, %v967_v9  ;;  %v13854_v44 = vld [vmem:[%s18550_s1 + $0x1e8] sm:$0xff]   ;;  %v13860_v9 = vld [vmem:[%s18550_s1 + $0x1f8] sm:$0xff]  }
  0x52   : > { %v14665_v22 = vor.u32 %v863_v10, %v859_v32 }
  0x53   : > { %12850 = vmatpush3.bf16.msra.mxu1 %v13829_v57  ;;  %v14629_v57 = vor.u32 %v851_v52, %v847_v29  ;;  %v976_v29 = vrot.slane %v974_v11, 1  ;;  %v10660_v52 = vld [vmem:[%s14408_s6 + $0x160] sm:$0x3]  ;;  %v10663_v11 = vld [vmem:[%s14408_s6 + $0x178] sm:$0x3] }
  0x54   : > { %11747 = vmatprep.subr.bf16.mxu1 %v13830_v19  ;;  %11886 = vmatpush3.bf16.msra.mxu0 %v13843_v25  ;;  %v14660_v19 = vpack.c.bf16 %v10629_v1, %v10628_v0  ;;  %v869_v28 = vsel %vm399_vm1, %v14665_v22, %v868_v12  ;;  %v979_v25 = vshrl.u32 %v14605_v39, 16  ;;  %v14706_v0 = vpack.c.bf16 %v10660_v52, %v10660_v52  ;;  %v10661_v1 = vld [vmem:[%s14408_s6 + $0x168] sm:$0xff] }
  0x55   : > { %v857_v5 = vsel %vm399_vm1, %v14629_v57, %v856_v53  ;;  %11887 = vmatprep.subr.bf16.mxu0 %v13846_v36  ;;  %v977_v36 = vsel %vm399_vm1, %v972_v37, %v976_v29  ;;  %v2220_v12 = vshll.u32 %v14717_v8, 16 }
  0x56   : > { %1428 = vmatmul.mubr.bf16.gmra.mrb[16].mxu1 %v14479_v2  ;;  %v13847_v2 = vld [vmem:[%s18550_s1 + $0x190] sm:$0xff]   ;;  %1371 = vmatprep.mubr.bf16.mxu0 %v857_v5  ;;  %v871_v30 = vshrl.u32 %v14660_v19, 16  ;;  %v873_v35 = vshll.u32 %v14660_v19, 16  ;;  %v984_v5 = vor.u32 %v983_v54, %v979_v25  ;;  %v998_v17 = vshll.u32 %v14706_v0, 16 }
  0x57   : > { %1435 = vmatprep.mubr.bf16.mxu1 %v953_v50  ;;  %1372 = vmatmul.mubr.bf16.gmra.mrb[4].mxu0 %v14576_v18  ;;  %v986_v50 = vshll.u32 %v14615_v48, 16  ;;  %v2222_v37 = vrot.slane %v2220_v12, 1 }
  0x58   : > { %11888 = vmatpush3.bf16.msra.mxu0 %v13847_v2  ;;  %1379 = vmatprep.mubr.bf16.mxu0 %v869_v28  ;;  %v875_v45 = vrot.slane %v873_v35, 1  ;;  %v14709_v2 = vpack.c.bf16 %v10765_v62, %v10765_v62  ;;  %v991_v28 = vshrl.u32 %v14694_v58, 16  ;;  %v14735_v35 = vpack.c.bf16 %v10663_v11, %v10663_v11 }
  0x59   : > { %11889 = vmatprep.subr.bf16.mxu0 %v13848_v6  ;;  %v988_v32 = vrot.slane %v986_v50, 1  ;;  %v10662_v6 = vld [vmem:[%s14408_s6 + $0x170] sm:$0xff] }
  0x5a   : > { %v14691_v53 = vor.u32 %v875_v45, %v871_v30  ;;  %18581 = vst [vmem:[#allocation7_spill] sm:$0xff] %v14709_v2  ;;  %v2208_v10 = vshll.u32 %v14709_v2, 16  ;;  %v995_v30 = vrot.slane %v993_v43, 1  ;;  %v10665_v45 = vld [vmem:[%s14408_s6 + $0x188] sm:$0xff]  ;;  %v10666_v50 = vld [vmem:[%s14408_s6 + $0x190] sm:$0x3] }
  0x5b   : > { %v989_v26 = vsel %vm399_vm1, %v984_v5, %v988_v32  ;;  %v14757_v62 = vpack.c.bf16 %v10666_v50, %v10666_v50  ;;  %v10776_v5 = vld [vmem:[%s14408_s6 + $0x98] sm:$0xff]  ;;  %v10807_v2 = vld [vmem:[%s14408_s6 + $0x190] sm:$0x3] }
  0x5c   : > { %11890 = vmatpush3.bf16.msra.mxu0 %v13849_v51  ;;  %v881_v48 = vsel %vm399_vm1, %v14691_v53, %v880_v46  ;;  %v14727_v51 = vpack.c.bf16 %v10662_v6, %v10661_v1  ;;  %v1000_v46 = vrot.slane %v998_v17, 1  ;;  %v996_v52 = vor.u32 %v995_v30, %v991_v28  ;;  %v10775_v1 = vld [vmem:[%s14408_s6 + $0x90] sm:$0xff] }
  0x5d   : > { %11891 = vmatprep.subr.bf16.mxu0 %v13852_v15  ;;  %v2210_v15 = vrot.slane %v2208_v10, 1  ;;  %v1022_v12 = vshll.u32 %v14757_v62, 16  ;;  %v14771_v17 = vpack.c.bf16 %v10776_v5, %v10775_v1  ;;  %v10780_v1 = vld [vmem:[%s14408_s6 + $0xb8] sm:$0x3] }
  0x5e   : > { %1436 = vmatmul.mubr.bf16.gmra.mrb[20].mxu1 %v14497_v16  ;;  %v13853_v16 = vld [vmem:[%s18550_s1 + $0x1a0] sm:$0xff]   ;;  %v1005_v25 = vshll.u32 %v14727_v51, 16  ;;  %v1003_v4 = vshrl.u32 %v14727_v51, 16  ;;  %v1001_v32 = vsel %vm399_vm1, %v996_v52, %v1000_v46 }
  0x5f   : > { %1443 = vmatprep.mubr.bf16.mxu1 %v965_v13  ;;  %1380 = vmatmul.mubr.bf16.gmra.mrb[8].mxu0 %v14627_v47  ;;  %v10771_v13 = vld [vmem:[%s14408_s6 + $0x70] sm:$0x3]  ;;  %v2211_v23 = vsel %vm399_vm1, %v14629_v57, %v2210_v15  ;;  %v10777_v15 = vld [vmem:[%s14408_s6 + $0xa0] sm:$0x3]  ;;  %v1024_v46 = vrot.slane %v1022_v12, 1  ;;  %v2249_v52 = vshrl.u32 %v14771_v17, 16 }
  0x60   : > { %11892 = vmatpush3.bf16.msra.mxu0 %v13853_v16  ;;  %1387 = vmatprep.mubr.bf16.mxu0 %v881_v48  ;;  %v14739_v29 = vpack.c.bf16 %v10771_v13, %v10771_v13  ;;  %v10772_v16 = vld [vmem:[%s14408_s6 + $0x78] sm:$0xff]  ;;  %v1007_v43 = vrot.slane %v1005_v25, 1 }
  0x61   : > { %11893 = vmatprep.subr.bf16.mxu0 %v13854_v44  ;;  %v10664_v44 = vld [vmem:[%s14408_s6 + $0x180] sm:$0xff]  ;;  %v14749_v54 = vpack.c.bf16 %v10773_v41, %v10772_v16  ;;  %v10779_v16 = vld [vmem:[%s14408_s6 + $0xb0] sm:$0xff] }
  0x62   : > { %18583 = vst [vmem:[#allocation9_spill] sm:$0xff] %v14739_v29  ;;  %v14752_v48 = vpack.c.bf16 %v10665_v45, %v10664_v44 }
  0x63   : > { %v2237_v13 = vshrl.u32 %v14749_v54, 16 }
  0x64   : > { %11894 = vmatpush3.bf16.msra.mxu0 %v13855_v60  ;;  %v1010_v60 = vshll.u32 %v14735_v35, 16  ;;  %v1017_v10 = vshll.u32 %v14752_v48, 16  ;;  %v1015_v44 = vshrl.u32 %v14752_v48, 16 }
  0x65   : > { %11895 = vmatprep.subr.bf16.mxu0 %v13858_v61  ;;  %v2232_v61 = vshll.u32 %v14739_v29, 16 }
  0x66   : > { %1444 = vmatmul.mubr.bf16.gmra.mrb[24].mxu1 %v14500_v21  ;;  %v13859_v21 = vld [vmem:[%s18550_s1 + $0x1b0] sm:$0xff]   ;;  %v1019_v45 = vrot.slane %v1017_v10, 1  ;;  %v18554_v10 = vrot.slane %v14536_v55, 1 }
  0x67   : > { %1451 = vmatprep.mubr.bf16.mxu1 %v977_v36  ;;  %1388 = vmatmul.mubr.bf16.gmra.mrb[12].mxu0 %v14660_v19  ;;  %v10774_v36 = vld [vmem:[%s14408_s6 + $0x88] sm:$0x3]  ;;  %v2234_v11 = vrot.slane %v2232_v61, 1 }
  0x68   : > { %11896 = vmatpush3.bf16.msra.mxu0 %v13859_v21  ;;  %2729 = vmatprep.mubr.bf16.mxu0 %v2211_v23  ;;  %v14764_v6 = vpack.c.bf16 %v10774_v36, %v10774_v36  ;;  %v2239_v21 = vshll.u32 %v14749_v54, 16  ;;  %v2251_v23 = vshll.u32 %v14771_v17, 16  ;;  %v1020_v61 = vor.u32 %v1019_v45, %v1015_v44  ;;  %v10785_v44 = vld [vmem:[%s14408_s6 + $0xe0] sm:$0xff] }
  0x69   : > { %11897 = vmatprep.subr.bf16.mxu0 %v13860_v9  ;;  %v1012_v9 = vrot.slane %v1010_v60, 1 }
  0x6a   : > { %18584 = vst [vmem:[#allocation10_spill] sm:$0xff] %v14764_v6  ;;  %v2241_v28 = vrot.slane %v2239_v21, 1  ;;  %v2244_v30 = vshll.u32 %v14764_v6, 16  ;;  %v2253_v60 = vrot.slane %v2251_v23, 1  ;;  %v14799_v21 = vpack.c.bf16 %v10780_v1, %v10780_v1 }
  0x6c   : > { %11898 = vmatpush3.bf16.msra.mxu0 %v13861_v31  ;;  %v2235_v31 = vsel %vm399_vm1, %v14691_v53, %v2234_v11  ;;  %v14785_v25 = vor.u32 %v2241_v28, %v2237_v13  ;;  %v2246_v50 = vrot.slane %v2244_v30, 1  ;;  %18586 = vst [vmem:[#allocation12_spill] sm:$0xff] %v14799_v21  ;;  %v14803_v11 = vor.u32 %v2253_v60, %v2249_v52 }
  0x6d   : > { %v1075_v13 = vrot.slane %v14538_v56, 1  ;;  %v2268_v30 = vshll.u32 %v14799_v21, 16  ;;  %v1081_v52 = vrot.slane %v14637_v63, 1 }
  0x6e   : > { %1452 = vmatmul.mubr.bf16.gmra.mrb[28].mxu1 %v14571_v14  ;;  %v2223_v14 = vsel %vm399_vm1, %v14665_v22, %v2222_v37  ;;  %v10778_v37 = vld [vmem:[%s14408_s6 + $0xa8] sm:$0xff] }
  0x6f   : > { %1459 = vmatprep.mubr.bf16.mxu1 %v989_v26  ;;  %2730 = vmatmul.mubr.bf16.vlgmr.msra.gmra.mrb[16].mxu0 %v14576_v18  ;;  %v1008_v26 = vor.u32 %v1007_v43, %v1003_v4  ;;  %v14789_v36 = vpack.c.bf16 %v10779_v16, %v10778_v37  ;;  %v2247_v4 = vsel %vm399_vm1, %v14785_v25, %v2246_v50  ;;  %v10782_v43 = vld [vmem:[%s14408_s6 + $0xc8] sm:$0xff]  ;;  %v14815_v37 = vrot.slane %v14576_v18, 1 }
  0x70   : > { %2737 = vmatprep.mubr.bf16.mxu0 %v2223_v14  ;;  %v1076_v45 = vsel %vm640_vm0, %v18554_v10, %v1075_v13  ;;  %v14828_v50 = vrot.slane %v14627_v47, 1  ;;  %v10796_v10 = vld [vmem:[%s14408_s6 + $0x138] sm:$0xff] }
  0x71   : > { %v1013_v41 = vsel %vm399_vm1, %v1008_v26, %v1012_v9  ;;  %v2263_v5 = vshll.u32 %v14789_v36, 16  ;;  %v1025_v9 = vsel %vm399_vm1, %v1020_v61, %v1024_v46  ;;  %v1078_v46 = vrot.slane %v14590_v27, 1 }
  0x73   : > { %v2265_v28 = vrot.slane %v2263_v5, 1  ;;  %v10786_v5 = vld [vmem:[%s14408_s6 + $0xe8] sm:$0x3]  ;;  %v1079_v13 = vsel %vm640_vm0, %v14815_v37, %v1078_v46 }
  0x76   : > { %1460 = vmatmul.mubr.bf16.gmra.mrb[32].mxu1 %v14605_v39  ;;  %v14781_v39 = vpack.c.bf16 %v10777_v15, %v10777_v15  ;;  %v2261_v15 = vshrl.u32 %v14789_v36, 16 }
  0x77   : > { %1467 = vmatprep.mubr.bf16.mxu1 %v1001_v32  ;;  %2738 = vmatmul.mubr.bf16.gmra.mrb[20].mxu0 %v14627_v47  ;;  %v10781_v32 = vld [vmem:[%s14408_s6 + $0xc0] sm:$0xff] }
  0x78   : > { %18585 = vst [vmem:[#allocation11_spill] sm:$0xff] %v14781_v39  ;;  %2745 = vmatprep.mubr.bf16.mxu0 %v2235_v31  ;;  %v2256_v14 = vshll.u32 %v14781_v39, 16  ;;  %v14808_v26 = vpack.c.bf16 %v10782_v43, %v10781_v32  ;;  %v10783_v31 = vld [vmem:[%s14408_s6 + $0xd0] sm:$0x3]  ;;  %v14831_v60 = vor.u32 %v2265_v28, %v2261_v15  ;;  %v13831_v32 = vld [vmem:[%s18550_s1] sm:$0xff]   ;;  %v14850_v15 = vpack.c.bf16 %v10786_v5, %v10786_v5 }
  0x79   : > { %v14821_v56 = vpack.c.bf16 %v10783_v31, %v10783_v31  ;;  %v1082_v28 = vsel %vm640_vm0, %v14828_v50, %v1081_v52  ;;  %v14858_v31 = vrot.slane %v14660_v19, 1  ;;  %v10805_v39 = vld [vmem:[%s14408_s6 + $0x180] sm:$0xff] }
  0x7a   : > { %v2258_v12 = vrot.slane %v2256_v14, 1  ;;  %v2275_v16 = vshll.u32 %v14808_v26, 16  ;;  %v2270_v14 = vrot.slane %v2268_v30, 1  ;;  %v2273_v61 = vshrl.u32 %v14808_v26, 16  ;;  %18588 = vst [vmem:[#allocation14_spill] sm:$0xff] %v14850_v15  ;;  %v13832_v30 = vld [vmem:[%s18550_s1 + $0x48] sm:$0xff]  }
  0x7b   : > { %18587 = vst [vmem:[#allocation13_spill] sm:$0xff] %v14821_v56  ;;  %v2280_v27 = vshll.u32 %v14821_v56, 16 }
  0x7c   : > { %v2259_v23 = vsel %vm399_vm1, %v14803_v11, %v2258_v12  ;;  %v2271_v63 = vsel %vm399_vm1, %v14831_v60, %v2270_v14  ;;  %v10788_v12 = vld [vmem:[%s14408_s6 + $0xf8] sm:$0xff] }
  0x7e   : > { %1468 = vmatmul.mubr.bf16.gmra.mrb[36].mxu1 %v14694_v58 }
  0x7f   : > { %1475 = vmatprep.mubr.bf16.mxu1 %v1013_v41  ;;  %2746 = vmatmul.mubr.bf16.gmra.mrb[24].mxu0 %v14660_v19  ;;  %v10784_v41 = vld [vmem:[%s14408_s6 + $0xd8] sm:$0xff] }
  0x80   : > { %2753 = vmatprep.mubr.bf16.mxu0 %v2247_v4  ;;  %v14835_v1 = vpack.c.bf16 %v10785_v44, %v10784_v41  ;;  %v2277_v4 = vrot.slane %v2275_v16, 1  ;;  %v2282_v41 = vrot.slane %v2280_v27, 1  ;;  %v1084_v44 = vrot.slane %v14667_v24, 1  ;;  %v13835_v27 = vld [vmem:[%s18550_s1 + $0x10] sm:$0xff]  }
  0x82   : > { %v2287_v43 = vshll.u32 %v14835_v1, 16  ;;  %v14863_v16 = vor.u32 %v2277_v4, %v2273_v61  ;;  %v2285_v46 = vshrl.u32 %v14835_v1, 16  ;;  %v2292_v61 = vshll.u32 %v14850_v15, 16  ;;  %v10789_v4 = vld [vmem:[%s14408_s6 + $0x100] sm:$0x3] }
  0x84   : > { %v2289_v14 = vrot.slane %v2287_v43, 1  ;;  %v2283_v24 = vsel %vm399_vm1, %v14863_v16, %v2282_v41  ;;  %v14885_v43 = vpack.c.bf16 %v10789_v4, %v10789_v4  ;;  %v13838_v41 = vld [vmem:[%s18550_s1 + $0x60] sm:$0xff]  }
  0x86   : > { %1476 = vmatmul.mubr.bf16.gmra.mrb[40].mxu1 %v14727_v51  ;;  %18589 = vst [vmem:[#allocation15_spill] sm:$0xff] %v14885_v43  ;;  %v2304_v4 = vshll.u32 %v14885_v43, 16 }
  0x87   : > { %1483 = vmatprep.mubr.bf16.mxu1 %v1025_v9  ;;  %2754 = vmatmul.mubr.bf16.gmra.mrb[28].mxu0 %v14749_v54  ;;  %v10787_v9 = vld [vmem:[%s14408_s6 + $0xf0] sm:$0xff] }
  0x88   : > { %2761 = vmatprep.mubr.bf16.mxu0 %v2259_v23  ;;  %v13833_v23 = vld [vmem:[%s18550_s1 + $0x8] sm:$0xff]   ;;  %v14870_v52 = vpack.c.bf16 %v10788_v12, %v10787_v9  ;;  %v13836_v9 = vld [vmem:[%s18550_s1 + $0x58] sm:$0xff]  }
  0x89   : > { %v13837_v12 = vld [vmem:[%s18550_s1 + $0x18] sm:$0xff]  }
  0x8a   : > { %v2299_v5 = vshll.u32 %v14870_v52, 16 }
  0x8e   : > { %1484 = vmatmul.mubr.bf16.gmra.mrb[44].mxu1 %v14752_v48 }
  0x8f   : > { %12851 = vmatprep.mubr.bf16.mxu1 %v1076_v45  ;;  %2762 = vmatmul.mubr.bf16.gmra.mrb[32].mxu0 %v14771_v17  ;;  %v13834_v45 = vld [vmem:[%s18550_s1 + $0x50] sm:$0xff]  }
  0x90   : > { %2769 = vmatprep.mubr.bf16.mxu0 %v2271_v63  ;;  %v10790_v63 = vld [vmem:[%s14408_s6 + $0x108] sm:$0xff] }
  0x96   : > { %12852 = vmatmul.mubr.bf16.vlgmr.msra.gmra.mrb[48].mxu1 %v1079_v13  ;;  %v10791_v13 = vld [vmem:[%s14408_s6 + $0x110] sm:$0xff] }
  0x97   : > { %11748 = vmatpush3.bf16.msra.mxu1 %v13831_v32  ;;  %12855 = vmatprep.mubr.bf16.mxu1 %v1082_v28  ;;  %v1085_v32 = vsel %vm640_vm0, %v14858_v31, %v1084_v44  ;;  %v14893_v28 = vor.u32 %v2289_v14, %v2285_v46  ;;  %v14899_v44 = vpack.c.bf16 %v10791_v13, %v10790_v63  ;;  %v10792_v46 = vld [vmem:[%s14408_s6 + $0x118] sm:$0x3]  ;;  %v13839_v14 = vld [vmem:[%s18550_s1 + $0x20] sm:$0xff]   ;;  %v10794_v63 = vld [vmem:[%s14408_s6 + $0x128] sm:$0xff] }
  0x98   : > { %11749 = vmatprep.subr.bf16.mxu1 %v13832_v30  ;;  %2770 = vmatmul.mubr.bf16.gmra.mrb[36].mxu0 %v14789_v36  ;;  %v2294_v30 = vrot.slane %v2292_v61, 1 }
  0x99   : > { %2777 = vmatprep.mubr.bf16.mxu0 %v2283_v24  ;;  %v2311_v24 = vshll.u32 %v14899_v44, 16 }
  0x9a   : > { %v2295_v61 = vsel %vm399_vm1, %v14893_v28, %v2294_v30  ;;  %v2309_v30 = vshrl.u32 %v14899_v44, 16 }
  0x9b   : > { %11750 = vmatpush3.bf16.msra.mxu1 %v13833_v23  ;;  %v2297_v23 = vshrl.u32 %v14870_v52, 16 }
  0x9c   : > { %11751 = vmatprep.subr.bf16.mxu1 %v13834_v45  ;;  %v2301_v45 = vrot.slane %v2299_v5, 1  ;;  %v13845_v5 = vld [vmem:[%s18550_s1 + $0x28] sm:$0xff]  }
  0x9e   : > { %12856 = vmatmul.mubr.bf16.gmra.mrb[52].mxu1 %v1085_v32  ;;  %v10793_v32 = vld [vmem:[%s14408_s6 + $0x120] sm:$0xff]  ;;  %v14921_v13 = vor.u32 %v2301_v45, %v2297_v23  ;;  %v10795_v23 = vld [vmem:[%s14408_s6 + $0x130] sm:$0x3] }
  0x9f   : > { %12859 = vmatprep.mubr.bf16.mxu1 %v14436_v33  ;;  %11752 = vmatpush3.bf16.msra.mxu1 %v13835_v27  ;;  %v14913_v33 = vpack.c.bf16 %v10792_v46, %v10792_v46  ;;  %v13844_v27 = vld [vmem:[%s18550_s1 + $0x68] sm:$0xff]   ;;  %v2313_v46 = vrot.slane %v2311_v24, 1  ;;  %v13857_v24 = vld [vmem:[%s18550_s1 + $0x38] sm:$0xff]  }
  0xa0   : > { %11753 = vmatprep.subr.bf16.mxu1 %v13836_v9  ;;  %2778 = vmatmul.mubr.bf16.gmra.mrb[40].mxu0 %v14808_v26  ;;  %v2306_v9 = vrot.slane %v2304_v4, 1 }
  0xa1   : > { %18590 = vst [vmem:[#allocation16_spill] sm:$0xff] %v14913_v33  ;;  %2785 = vmatprep.mubr.bf16.mxu0 %v2295_v61  ;;  %v2316_v61 = vshll.u32 %v14913_v33, 16  ;;  %v10800_v33 = vld [vmem:[%s14408_s6 + $0x158] sm:$0xff] }
  0xa2   : > { %v2307_v45 = vsel %vm399_vm1, %v14921_v13, %v2306_v9  ;;  %v14957_v9 = vld [vmem:[%s18550_s1 + $0x80] sm:$0xff]  }
  0xa3   : > { %11754 = vmatpush3.bf16.msra.mxu1 %v13837_v12  ;;  %v13850_v12 = vld [vmem:[%s18550_s1 + $0x70] sm:$0xff]  }
  0xa4   : > { %11755 = vmatprep.subr.bf16.mxu1 %v13838_v41  ;;  %v14928_v41 = vpack.c.bf16 %v10794_v63, %v10793_v32  ;;  %v10797_v32 = vld [vmem:[%s14408_s6 + $0x140] sm:$0xff]  ;;  %v14950_v63 = vor.u32 %v2313_v46, %v2309_v30  ;;  %v10798_v46 = vld [vmem:[%s14408_s6 + $0x148] sm:$0x3] }
  0xa6   : > { %12860 = vmatmul.mubr.bf16.gmra.mrb[56].mxu1 %v14529_v49  ;;  %v13851_v49 = vld [vmem:[%s18550_s1 + $0x30] sm:$0xff]   ;;  %v2323_v4 = vshll.u32 %v14928_v41, 16 }
  0xa7   : > { %12863 = vmatprep.mubr.bf16.mxu1 %v14541_v40  ;;  %11756 = vmatpush3.bf16.msra.mxu1 %v13839_v14  ;;  %v14942_v40 = vpack.c.bf16 %v10795_v23, %v10795_v23  ;;  %v13856_v14 = vld [vmem:[%s18550_s1 + $0x78] sm:$0xff]  }
  0xa8   : > { %11757 = vmatprep.subr.bf16.mxu1 %v13844_v27  ;;  %2786 = vmatmul.mubr.bf16.gmra.mrb[44].mxu0 %v14835_v1  ;;  %v2318_v27 = vrot.slane %v2316_v61, 1  ;;  %v2325_v23 = vrot.slane %v2323_v4, 1  ;;  %v1116_v4 = vrot.slane %v14727_v51, 1 }
  0xa9   : > { %18591 = vst [vmem:[#allocation17_spill] sm:$0xff] %v14942_v40  ;;  %2793 = vmatprep.mubr.bf16.mxu0 %v2307_v45  ;;  %v2328_v30 = vshll.u32 %v14942_v40, 16  ;;  %v10799_v45 = vld [vmem:[%s14408_s6 + $0x150] sm:$0xff] }
  0xab   : > { %11758 = vmatpush3.bf16.msra.mxu1 %v13845_v5  ;;  %v2321_v5 = vshrl.u32 %v14928_v41, 16  ;;  %v2330_v40 = vrot.slane %v2328_v30, 1 }
  0xac   : > { %11759 = vmatprep.subr.bf16.mxu1 %v13850_v12  ;;  %v14959_v12 = vpack.c.bf16 %v10797_v32, %v10796_v10  ;;  %v1113_v10 = vrot.slane %v14694_v58, 1  ;;  %v319_v32 = vld [vmem:[%s14408_s6] sm:$0xff]  ;;  %v1117_v58 = vrot.slane %v14735_v35, 1 }
  0xae   : > { %12864 = vmatmul.mubr.bf16.gmra.mrb[60].mxu1 %v14549_v59  ;;  %v2319_v59 = vsel %vm399_vm1, %v14950_v63, %v2318_v27  ;;  %v2335_v61 = vshll.u32 %v14959_v12, 16  ;;  %v321_v27 = vld [vmem:[%s14408_s6 + $0x10] sm:$0x3] }
  0xaf   : > { %12867 = vmatprep.mubr.bf16.mxu1 %v14560_v7  ;;  %11760 = vmatpush3.bf16.msra.mxu1 %v13851_v49  ;;  %v14970_v7 = vpack.c.bf16 %v10798_v46, %v10798_v46  ;;  %v1114_v49 = vrot.slane %v14706_v0, 1  ;;  %v2333_v0 = vshrl.u32 %v14959_v12, 16  ;;  %v14984_v46 = vpack.c.bf16 %v10800_v33, %v10799_v45 }
  0xb0   : > { %11761 = vmatprep.subr.bf16.mxu1 %v13856_v14  ;;  %2794 = vmatmul.mubr.bf16.gmra.mrb[48].mxu0 %v14870_v52  ;;  %v320_v14 = vld [vmem:[%s14408_s6 + $0x8] sm:$0xff]  ;;  %v14990_v15 = vpack.c.bf16 %v321_v27, %v321_v27  ;;  %v1119_v33 = vrot.slane %v14752_v48, 1  ;;  %v10803_v27 = vld [vmem:[%s14408_s6 + $0x170] sm:$0xff] }
  0xb1   : > { %18592 = vst [vmem:[#allocation18_spill] sm:$0xff] %v14970_v7  ;;  %2801 = vmatprep.mubr.bf16.mxu0 %v2319_v59  ;;  %v2337_v59 = vrot.slane %v2335_v61, 1  ;;  %v2340_v51 = vshll.u32 %v14970_v7, 16  ;;  %v14988_v43 = vpack.c.bf16 %v320_v14, %v319_v32  ;;  %v10802_v48 = vld [vmem:[%s14408_s6 + $0x168] sm:$0xff]  ;;  %v10804_v7 = vld [vmem:[%s14408_s6 + $0x178] sm:$0x3] }
  0xb2   : > { %v408_v61 = vshll.u32 %v14990_v15, 16 }
  0xb3   : > { %11762 = vmatpush3.bf16.msra.mxu1 %v13857_v24  ;;  %v14979_v24 = vor.u32 %v2325_v23, %v2321_v5  ;;  %v10801_v5 = vld [vmem:[%s14408_s6 + $0x160] sm:$0x3]  ;;  %v403_v30 = vshll.u32 %v14988_v43, 16  ;;  %v15004_v32 = vor.u32 %v2337_v59, %v2333_v0  ;;  %v2342_v14 = vrot.slane %v2340_v51, 1  ;;  %v10806_v59 = vld [vmem:[%s14408_s6 + $0x188] sm:$0xff] }
  0xb4   : > { %12883 = vmatprep.subr.bf16.mxu1 %v14957_v9  ;;  %v327_v23 = vld [vmem:[%s14408_s6 + $0x40] sm:$0x3]  ;;  %v15002_v45 = vpack.c.bf16 %v10801_v5, %v10801_v5  ;;  %v15018_v0 = vpack.c.bf16 %v10803_v27, %v10802_v48  ;;  %v401_v6 = vshrl.u32 %v14988_v43, 16  ;;  %v410_v29 = vrot.slane %v408_v61, 1  ;;  %v330_v61 = vld [vmem:[%s14408_s6 + $0x58] sm:$0x3] }
  0xb5   : > { %v2331_v35 = vsel %vm399_vm1, %v14979_v24, %v2330_v40  ;;  %v2345_v40 = vshrl.u32 %v14984_v46, 16  ;;  %v15013_v21 = vpack.c.bf16 %v327_v23, %v327_v23  ;;  %v2343_v51 = vsel %vm399_vm1, %v15004_v32, %v2342_v14 }
  0xb6   : > { %12868 = vmatmul.mubr.bf16.gmra.mrb[64].mxu1 %v14563_v3  ;;  %v324_v3 = vld [vmem:[%s14408_s6 + $0x28] sm:$0x3]  ;;  %18593 = vst [vmem:[#allocation19_spill] sm:$0xff] %v15002_v45  ;;  %v2352_v5 = vshll.u32 %v15002_v45, 16  ;;  %v15026_v23 = vpack.c.bf16 %v10804_v7, %v10804_v7  ;;  %v405_v48 = vrot.slane %v403_v30, 1  ;;  %v2359_v27 = vshll.u32 %v15018_v0, 16 }
  0xb7   : > { %12871 = vmatprep.mubr.bf16.mxu1 %v14602_v38  ;;  %v2347_v38 = vshll.u32 %v14984_v46, 16  ;;  %v15011_v56 = vpack.c.bf16 %v324_v3, %v324_v3  ;;  %v432_v3 = vshll.u32 %v15013_v21, 16  ;;  %v15032_v14 = vpack.c.bf16 %v10806_v59, %v10805_v39 }
  0xb8   : > { %2802 = vmatmul.mubr.bf16.gmra.mrb[52].mxu0 %v14899_v44  ;;  %v1120_v45 = vrot.slane %v14757_v62, 1  ;;  %v2354_v7 = vrot.slane %v2352_v5, 1  ;;  %v406_v39 = vor.u32 %v405_v48, %v401_v6  ;;  %v2361_v30 = vrot.slane %v2359_v27, 1  ;;  %v10810_v48 = vld [vmem:[%s14408_s6 + $0x1a8] sm:$0x3] }
  0xb9   : > { %2809 = vmatprep.mubr.bf16.mxu0 %v2331_v35  ;;  %v2349_v35 = vrot.slane %v2347_v38, 1  ;;  %v1118_v38 = vsel %vm640_vm0, %v1116_v4, %v1117_v58  ;;  %v434_v4 = vrot.slane %v432_v3, 1  ;;  %v2357_v58 = vshrl.u32 %v15018_v0, 16 }
  0xba   : > { %v15040_v59 = vpack.c.bf16 %v10807_v2, %v10807_v2  ;;  %v2371_v62 = vshll.u32 %v15032_v14, 16  ;;  %v2369_v5 = vshrl.u32 %v15032_v14, 16  ;;  %v1121_v3 = vsel %vm640_vm0, %v1119_v33, %v1120_v45 }
  0xbb   : > { %v15035_v8 = vor.u32 %v2349_v35, %v2345_v40  ;;  %v411_v6 = vsel %vm399_vm1, %v406_v39, %v410_v29  ;;  %v15056_v27 = vpack.c.bf16 %v330_v61, %v330_v61  ;;  %v13863_v29 = vld [vmem:[%s18550_s1 + $0x88] sm:$0xff]  }
  0xbc   : > { %v2373_v2 = vrot.slane %v2371_v62, 1 }
  0xbd   : > { %v2355_v40 = vsel %vm399_vm1, %v15035_v8, %v2354_v7  ;;  %v444_v45 = vshll.u32 %v15056_v27, 16 }
  0xbe   : > { %12872 = vmatmul.mubr.bf16.gmra.mrb[68].mxu1 %v14609_v42  ;;  %v420_v42 = vshll.u32 %v15011_v56, 16  ;;  %v2374_v61 = vor.u32 %v2373_v2, %v2369_v5  ;;  %v435_v5 = vsel %vm399_vm1, %v14629_v57, %v434_v4 }
  0xbf   : > { %12875 = vmatprep.mubr.bf16.mxu1 %v14648_v34  ;;  %v1115_v34 = vsel %vm640_vm0, %v1113_v10, %v1114_v49  ;;  %v2364_v49 = vshll.u32 %v15026_v23, 16 }
  0xc0   : > { %2810 = vmatmul.mubr.bf16.gmra.mrb[56].mxu0 %v14928_v41  ;;  %v422_v10 = vrot.slane %v420_v42, 1  ;;  %v10809_v42 = vld [vmem:[%s14408_s6 + $0x1a0] sm:$0xff] }
  0xc1   : > { %2817 = vmatprep.mubr.bf16.mxu0 %v2343_v51  ;;  %v2366_v35 = vrot.slane %v2364_v49, 1  ;;  %v10808_v51 = vld [vmem:[%s14408_s6 + $0x198] sm:$0xff]  ;;  %v15066_v49 = vpack.c.bf16 %v10810_v48, %v10810_v48  ;;  %v13866_v48 = vld [vmem:[%s18550_s1 + $0xa0] sm:$0xff]  }
  0xc2   : > { %v15058_v7 = vpack.c.bf16 %v10809_v42, %v10808_v51  ;;  %v423_v62 = vsel %vm399_vm1, %v14581_v20, %v422_v10  ;;  %v13865_v20 = vld [vmem:[%s18550_s1 + $0x98] sm:$0xff]  }
  0xc3   : > { %v2388_v51 = vshll.u32 %v15066_v49, 16 }
  0xc5   : > { %v2390_v10 = vrot.slane %v2388_v51, 1 }
  0xc6   : > { %12876 = vmatmul.mubr.bf16.gmra.mrb[72].mxu1 %v1115_v34  ;;  %v2376_v34 = vshll.u32 %v15040_v59, 16 }
  0xc7   : > { %12879 = vmatprep.mubr.bf16.mxu1 %v1118_v38  ;;  %v15053_v38 = vor.u32 %v2361_v30, %v2357_v58  ;;  %v2383_v58 = vshll.u32 %v15058_v7, 16  ;;  %v2381_v30 = vshrl.u32 %v15058_v7, 16 }
  0xc8   : > { %2818 = vmatmul.mubr.bf16.gmra.mrb[60].mxu0 %v14959_v12  ;;  %v2378_v39 = vrot.slane %v2376_v34, 1  ;;  %v336_v34 = vld [vmem:[%s14408_s6 + $0x88] sm:$0x3] }
  0xc9   : > { %2825 = vmatprep.mubr.bf16.mxu0 %v2355_v40  ;;  %v2367_v33 = vsel %vm399_vm1, %v15053_v38, %v2366_v35  ;;  %v13864_v40 = vld [vmem:[%s18550_s1 + $0x90] sm:$0xff]   ;;  %v2385_v35 = vrot.slane %v2383_v58, 1  ;;  %v15096_v4 = vpack.c.bf16 %v336_v34, %v336_v34  ;;  %v348_v34 = vld [vmem:[%s14408_s6 + $0xe8] sm:$0x3] }
  0xca   : > { %v2379_v42 = vsel %vm399_vm1, %v2374_v61, %v2378_v39  ;;  %v339_v39 = vld [vmem:[%s14408_s6 + $0xa0] sm:$0x3] }
  0xcb   : > { %v15113_v61 = vpack.c.bf16 %v339_v39, %v339_v39 }
  0xcd   : > { %v480_v51 = vshll.u32 %v15113_v61, 16 }
  0xce   : > { %12880 = vmatmul.mubr.bf16.gmra.mrb[76].mxu1 %v1121_v3  ;;  %v333_v3 = vld [vmem:[%s14408_s6 + $0x70] sm:$0x3] }
  0xcf   : > { %1829 = vmatprep.mubr.bf16.mxu1 %v411_v6  ;;  %v446_v6 = vrot.slane %v444_v45, 1  ;;  %v15088_v2 = vpack.c.bf16 %v333_v3, %v333_v3 }
  0xd0   : > { %2826 = vmatmul.mubr.bf16.gmra.mrb[64].mxu0 %v14984_v46 }
  0xd1   : > { %2833 = vmatprep.mubr.bf16.mxu0 %v2367_v33  ;;  %v456_v57 = vshll.u32 %v15088_v2, 16  ;;  %v447_v45 = vsel %vm399_vm1, %v14665_v22, %v446_v6  ;;  %v13869_v22 = vld [vmem:[%s18550_s1 + $0xb8] sm:$0xff]  }
  0xd3   : > { %v458_v58 = vrot.slane %v456_v57, 1 }
  0xd6   : > { %1830 = vmatmul.mubr.bf16.vlgmr.msra.gmra.mrb[80].mxu1 %v14988_v43 }
  0xd7   : > { %12884 = vmatpush3.bf16.msra.mxu1 %v14957_v9  ;;  %1837 = vmatprep.mubr.bf16.mxu1 %v423_v62  ;;  %v2386_v9 = vor.u32 %v2385_v35, %v2381_v30  ;;  %v468_v30 = vshll.u32 %v15096_v4, 16  ;;  %v13868_v62 = vld [vmem:[%s18550_s1 + $0xb0] sm:$0xff]   ;;  %v342_v35 = vld [vmem:[%s14408_s6 + $0xb8] sm:$0x3] }
  0xd8   : > { %12885 = vmatprep.subr.bf16.mxu1 %v13863_v29  ;;  %2834 = vmatmul.mubr.bf16.gmra.mrb[68].mxu0 %v15018_v0  ;;  %v15126_v3 = vpack.c.bf16 %v342_v35, %v342_v35 }
  0xd9   : > { %2841 = vmatprep.mubr.bf16.mxu0 %v2379_v42  ;;  %v2391_v33 = vsel %vm399_vm1, %v2386_v9, %v2390_v10  ;;  %v15124_v42 = vld [vmem:[%s18550_s1 + $0x200] sm:$0xff]   ;;  %v345_v10 = vld [vmem:[%s14408_s6 + $0xd0] sm:$0x3] }
  0xda   : > { %v15137_v6 = vpack.c.bf16 %v345_v10, %v345_v10 }
  0xdb   : > { %12886 = vmatpush3.bf16.msra.mxu1 %v13863_v29  ;;  %v13867_v29 = vld [vmem:[%s18550_s1 + $0xa8] sm:$0xff]  }
  0xdc   : > { %12887 = vmatprep.subr.bf16.mxu1 %v13864_v40 }
  0xde   : > { %1838 = vmatmul.mubr.bf16.gmra.mrb[84].mxu1 %v14536_v55 }
  0xdf   : > { %1845 = vmatprep.mubr.bf16.mxu1 %v435_v5  ;;  %12888 = vmatpush3.bf16.msra.mxu1 %v13864_v40  ;;  %v470_v40 = vrot.slane %v468_v30, 1 }
  0xe0   : > { %12889 = vmatprep.subr.bf16.mxu1 %v13865_v20  ;;  %2842 = vmatmul.mubr.bf16.gmra.mrb[72].mxu0 %v15032_v14 }
  0xe1   : > { %2849 = vmatprep.mubr.bf16.mxu0 %v2391_v33  ;;  %v15144_v33 = vpack.c.bf16 %v348_v34, %v348_v34 }
  0xe3   : > { %12890 = vmatpush3.bf16.msra.mxu1 %v13865_v20  ;;  %v492_v20 = vshll.u32 %v15126_v3, 16 }
  0xe4   : > { %12891 = vmatprep.subr.bf16.mxu1 %v13866_v48 }
  0xe5   : > { %v494_v9 = vrot.slane %v492_v20, 1 }
  0xe6   : > { %1846 = vmatmul.mubr.bf16.gmra.mrb[88].mxu1 %v14576_v18  ;;  %v459_v18 = vsel %vm399_vm1, %v14691_v53, %v458_v58  ;;  %v482_v53 = vrot.slane %v480_v51, 1 }
  0xe7   : > { %1853 = vmatprep.mubr.bf16.mxu1 %v447_v45  ;;  %12892 = vmatpush3.bf16.msra.mxu1 %v13866_v48 }
  0xe8   : > { %12893 = vmatprep.subr.bf16.mxu1 %v13867_v29  ;;  %2850 = vmatmul.mubr.bf16.gmra.mrb[76].mxu0 %v15058_v7  ;;  %v483_v5 = vsel %vm399_vm1, %v14803_v11, %v482_v53 }
  0xeb   : > { %12894 = vmatpush3.bf16.msra.mxu1 %v13867_v29 }
  0xec   : > { %12895 = vmatprep.subr.bf16.mxu1 %v13868_v62 }
  0xee   : > { %1854 = vmatmul.mubr.bf16.gmra.mrb[92].mxu1 %v14627_v47  ;;  %v471_v47 = vsel %vm399_vm1, %v14785_v25, %v470_v40  ;;  %v495_v25 = vsel %vm399_vm1, %v14831_v60, %v494_v9  ;;  %v516_v60 = vshll.u32 %v15144_v33, 16 }
  0xef   : > { %1861 = vmatprep.mubr.bf16.mxu1 %v459_v18  ;;  %12896 = vmatpush3.bf16.msra.mxu1 %v13868_v62  ;;  %v351_v62 = vld [vmem:[%s14408_s6 + $0x100] sm:$0x3] }
  0xf0   : > { %12897 = vmatprep.subr.bf16.mxu1 %v13869_v22  ;;  %v15155_v18 = vpack.c.bf16 %v351_v62, %v351_v62 }
  0xf2   : > { %v528_v20 = vshll.u32 %v15155_v18, 16 }
  0xf3   : > { %12898 = vmatpush3.bf16.msra.mxu1 %v13869_v22  ;;  %v518_v22 = vrot.slane %v516_v60, 1 }
  0xf4   : > { %12931 = vmatprep.subr.bf16.mxu1 %v15124_v42  ;;  %v530_v9 = vrot.slane %v528_v20, 1 }
  0xf6   : > { %1862 = vmatmul.mubr.bf16.gmra.mrb[96].mxu1 %v14660_v19  ;;  %v504_v19 = vshll.u32 %v15137_v6, 16 }
  0xf7   : > { %1869 = vmatprep.mubr.bf16.mxu1 %v471_v47 }
  0xf8   : > { %v506_v48 = vrot.slane %v504_v19, 1 }
  0xfa   : > { %v507_v39 = vsel %vm399_vm1, %v14863_v16, %v506_v48  ;;  %v519_v16 = vsel %vm399_vm1, %v14893_v28, %v518_v22  ;;  %v531_v28 = vsel %vm399_vm1, %v14921_v13, %v530_v9 }
  0xfe   : > { %1870 = vmatmul.mubr.bf16.gmra.mrb[100].mxu1 %v14749_v54 }
  0xff   : > { %1877 = vmatprep.mubr.bf16.mxu1 %v483_v5  ;;  %v354_v5 = vld [vmem:[%s14408_s6 + $0x118] sm:$0x3] }
 0x106   : > { %1878 = vmatmul.mubr.bf16.gmra.mrb[104].mxu1 %v14771_v17 }
 0x107   : > { %1885 = vmatprep.mubr.bf16.mxu1 %v495_v25  ;;  %v15166_v25 = vpack.c.bf16 %v354_v5, %v354_v5  ;;  %v360_v5 = vld [vmem:[%s14408_s6 + $0x148] sm:$0x3] }
 0x109   : > { %v11651_v11 = vpop.f32.mrb[0].mxu1 }
 0x10a   : > { %v11652_v57 = vpop.f32.mrb[1].mxu1 }
 0x10b   : > { %v15146_v29 = vadd.f32 %v11652_v57, %v11651_v11  ;;  %v11654_v45 = vpop.f32.mrb[2].mxu1 }
 0x10c   : > { %v11655_v58 = vpop.f32.mrb[3].mxu1 }
 0x10d   : > { %v15151_v30 = vadd.f32 %v11655_v58, %v11654_v45  ;;  %v540_v45 = vshll.u32 %v15166_v25, 16 }
 0x10e   : > { %1886 = vmatmul.mubr.bf16.gmra.mrb[108].mxu1 %v14789_v36 }
 0x10f   : > { %1893 = vmatprep.mubr.bf16.mxu1 %v507_v39  ;;  %v357_v39 = vld [vmem:[%s14408_s6 + $0x130] sm:$0x3]  ;;  %v542_v60 = vrot.slane %v540_v45, 1 }
 0x110   : > { %v15177_v62 = vpack.c.bf16 %v357_v39, %v357_v39 }
 0x111   : > { %v11657_v40 = vpop.f32.mrb[4].mxu1  ;;  %v543_v13 = vsel %vm399_vm1, %v14950_v63, %v542_v60 }
 0x112   : > { %v11658_v35 = vpop.f32.mrb[5].mxu1 }
 0x113   : > { %v15157_v51 = vadd.f32 %v11658_v35, %v11657_v40  ;;  %v11660_v47 = vpop.f32.mrb[6].mxu1 }
 0x114   : > { %v11661_v53 = vpop.f32.mrb[7].mxu1 }
 0x115   : > { %18594 = vst [vmem:[#allocation20_spill] sm:$0xff] %v15157_v51  ;;  %v15162_v10 = vadd.f32 %v11661_v53, %v11660_v47 }
 0x116   : > { %1894 = vmatmul.mubr.bf16.gmra.mrb[112].mxu1 %v14808_v26 }
 0x117   : > { %18595 = vst [vmem:[#allocation21_spill] sm:$0xff] %v15162_v10  ;;  %1901 = vmatprep.mubr.bf16.mxu1 %v519_v16  ;;  %v552_v16 = vshll.u32 %v15177_v62, 16 }
 0x119   : > { %v11663_v19 = vpop.f32.mrb[8].mxu1 }
 0x11a   : > { %v11664_v34 = vpop.f32.mrb[9].mxu1 }
 0x11b   : > { %v15168_v48 = vadd.f32 %v11664_v34, %v11663_v19  ;;  %v11666_v11 = vpop.f32.mrb[10].mxu1  ;;  %v554_v34 = vrot.slane %v552_v16, 1 }
 0x11c   : > { %v11667_v57 = vpop.f32.mrb[11].mxu1  ;;  %v11627_v9 = vpop.f32.mrb[0].mxu0 }
 0x11d   : > { %18596 = vst [vmem:[#allocation22_spill] sm:$0xff] %v15168_v48  ;;  %v15173_v58 = vadd.f32 %v11667_v57, %v11666_v11  ;;  %v11628_v19 = vpop.f32.mrb[1].mxu0  ;;  %v15188_v11 = vpack.c.bf16 %v360_v5, %v360_v5  ;;  %v363_v5 = vld [vmem:[%s14408_s6 + $0x160] sm:$0x3] }
 0x11e   : > { %1902 = vmatmul.mubr.bf16.gmra.mrb[116].mxu1 %v14835_v1  ;;  %v15190_v57 = vadd.f32 %v11628_v19, %v11627_v9 }
 0x11f   : > { %18597 = vst [vmem:[#allocation23_spill] sm:$0xff] %v15173_v58  ;;  %1909 = vmatprep.mubr.bf16.mxu1 %v531_v28  ;;  %v11630_v28 = vpop.f32.mrb[2].mxu0 }
 0x120   : > { %v11631_v39 = vpop.f32.mrb[3].mxu0 }
 0x121   : > { %v11669_v22 = vpop.f32.mrb[12].mxu1  ;;  %v15192_v60 = vadd.f32 %v11631_v39, %v11630_v28  ;;  %v15203_v39 = vpack.c.bf16 %v363_v5, %v363_v5  ;;  %v366_v5 = vld [vmem:[%s14408_s6 + $0x178] sm:$0x3] }
 0x122   : > { %v11670_v40 = vpop.f32.mrb[13].mxu1 }
 0x123   : > { %v15179_v35 = vadd.f32 %v11670_v40, %v11669_v22  ;;  %v11672_v47 = vpop.f32.mrb[14].mxu1 }
 0x124   : > { %v11673_v53 = vpop.f32.mrb[15].mxu1 }
 0x125   : > { %18598 = vst [vmem:[#allocation24_spill] sm:$0xff] %v15179_v35  ;;  %v15184_v20 = vadd.f32 %v11673_v53, %v11672_v47  ;;  %v555_v53 = vsel %vm399_vm1, %v14979_v24, %v554_v34  ;;  %v576_v35 = vshll.u32 %v15203_v39, 16 }
 0x126   : > { %1910 = vmatmul.mubr.bf16.gmra.mrb[120].mxu1 %v14870_v52 }
 0x127   : > { %18599 = vst [vmem:[#allocation25_spill] sm:$0xff] %v15184_v20  ;;  %1917 = vmatprep.mubr.bf16.mxu1 %v543_v13  ;;  %v564_v13 = vshll.u32 %v15188_v11, 16  ;;  %v578_v58 = vrot.slane %v576_v35, 1 }
 0x129   : > { %v11675_v45 = vpop.f32.mrb[16].mxu1  ;;  %v566_v28 = vrot.slane %v564_v13, 1 }
 0x12a   : > { %v11676_v63 = vpop.f32.mrb[17].mxu1  ;;  %v11633_v9 = vpop.f32.mrb[4].mxu0 }
 0x12b   : > { %v15194_v22 = vadd.f32 %v11676_v63, %v11675_v45  ;;  %v11678_v40 = vpop.f32.mrb[18].mxu1  ;;  %v11634_v19 = vpop.f32.mrb[5].mxu0 }
 0x12c   : > { %v11679_v47 = vpop.f32.mrb[19].mxu1  ;;  %v15205_v45 = vadd.f32 %v11634_v19, %v11633_v9  ;;  %v11636_v63 = vpop.f32.mrb[6].mxu0 }
 0x12d   : > { %18600 = vst [vmem:[#allocation26_spill] sm:$0xff] %v15194_v22  ;;  %v15199_v16 = vadd.f32 %v11679_v47, %v11678_v40  ;;  %v11637_v20 = vpop.f32.mrb[7].mxu0 }
 0x12e   : > { %1918 = vmatmul.mubr.bf16.gmra.mrb[124].mxu1 %v14899_v44  ;;  %v15207_v34 = vadd.f32 %v11637_v20, %v11636_v63  ;;  %v15218_v20 = vpack.c.bf16 %v366_v5, %v366_v5 }
 0x12f   : > { %18601 = vst [vmem:[#allocation27_spill] sm:$0xff] %v15199_v16  ;;  %1925 = vmatprep.mubr.bf16.mxu1 %v555_v53  ;;  %v567_v53 = vsel %vm399_vm1, %v15004_v32, %v566_v28 }
 0x131   : > { %v11681_v22 = vpop.f32.mrb[20].mxu1 }
 0x132   : > { %v11682_v24 = vpop.f32.mrb[21].mxu1  ;;  %v11639_v9 = vpop.f32.mrb[8].mxu0 }
 0x133   : > { %v15209_v40 = vadd.f32 %v11682_v24, %v11681_v22  ;;  %v11684_v47 = vpop.f32.mrb[22].mxu1  ;;  %v11640_v19 = vpop.f32.mrb[9].mxu0 }
 0x134   : > { %v11685_v16 = vpop.f32.mrb[23].mxu1  ;;  %v15220_v22 = vadd.f32 %v11640_v19, %v11639_v9  ;;  %v11642_v63 = vpop.f32.mrb[10].mxu0 }
 0x135   : > { %18602 = vst [vmem:[#allocation28_spill] sm:$0xff] %v15209_v40  ;;  %v15214_v13 = vadd.f32 %v11685_v16, %v11684_v47  ;;  %v11643_v40 = vpop.f32.mrb[11].mxu0 }
 0x136   : > { %1926 = vmatmul.mubr.bf16.gmra.mrb[128].mxu1 %v14928_v41  ;;  %v15222_v32 = vadd.f32 %v11643_v40, %v11642_v63 }
 0x137   : > { %18603 = vst [vmem:[#allocation29_spill] sm:$0xff] %v15214_v13  ;;  %1933 = vmatprep.mubr.bf16.mxu1 %v567_v53  ;;  %v579_v13 = vsel %vm399_vm1, %v15035_v8, %v578_v58  ;;  %v588_v53 = vshll.u32 %v15218_v20, 16 }
 0x139   : > { %v11687_v24 = vpop.f32.mrb[24].mxu1  ;;  %v590_v19 = vrot.slane %v588_v53, 1 }
 0x13a   : > { %v11688_v48 = vpop.f32.mrb[25].mxu1  ;;  %v11645_v5 = vpop.f32.mrb[12].mxu0 }
 0x13b   : > { %v15224_v28 = vadd.f32 %v11688_v48, %v11687_v24  ;;  %v11690_v16 = vpop.f32.mrb[26].mxu1  ;;  %v11646_v9 = vpop.f32.mrb[13].mxu0 }
 0x13c   : > { %v11691_v47 = vpop.f32.mrb[27].mxu1  ;;  %v15232_v10 = vadd.f32 %v11646_v9, %v11645_v5  ;;  %v11648_v40 = vpop.f32.mrb[14].mxu0  ;;  %v641_v5 = vrot.slane %v14988_v43, 1  ;;  %v642_v9 = vrot.slane %v14990_v15, 1  ;;  %v645_v15 = vrot.slane %v15011_v56, 1 }
 0x13d   : > { %18604 = vst [vmem:[#allocation30_spill] sm:$0xff] %v15224_v28  ;;  %v15229_v35 = vadd.f32 %v11691_v47, %v11690_v16  ;;  %v11649_v63 = vpop.f32.mrb[15].mxu0  ;;  %v591_v16 = vsel %vm399_vm1, %v15053_v38, %v590_v19 }
 0x13e   : > { %1934 = vmatmul.mubr.bf16.gmra.mrb[132].mxu1 %v14959_v12  ;;  %v15234_v28 = vadd.f32 %v11649_v63, %v11648_v40 }
 0x13f   : > { %18605 = vst [vmem:[#allocation31_spill] sm:$0xff] %v15229_v35  ;;  %1941 = vmatprep.mubr.bf16.mxu1 %v579_v13 }
 0x141   : > { %v11693_v48 = vpop.f32.mrb[28].mxu1 }
 0x142   : > { %v11694_v24 = vpop.f32.mrb[29].mxu1  ;;  %v11899_v13 = vpop.f32.mrb[16].mxu0 }
 0x143   : > { %v15236_v51 = vadd.f32 %v11694_v24, %v11693_v48  ;;  %v11696_v8 = vpop.f32.mrb[30].mxu1  ;;  %v11900_v53 = vpop.f32.mrb[17].mxu0 }
 0x144   : > { %v11697_v58 = vpop.f32.mrb[31].mxu1  ;;  %v11902_v40 = vpop.f32.mrb[18].mxu0  ;;  %v15245_v63 = vadd.f32 %v11900_v53, %v11899_v13  ;;  %v648_v53 = vrot.slane %v15013_v21, 1  ;;  %v13871_v21 = vld [vmem:[%s18550_s1 + $0x208] sm:$0xff]  }
 0x145   : > { %18606 = vst [vmem:[#allocation32_spill] sm:$0xff] %v15236_v51  ;;  %v15240_v47 = vadd.f32 %v11697_v58, %v11696_v8  ;;  %v11903_v24 = vpop.f32.mrb[19].mxu0  ;;  %v643_v58 = vsel %vm640_vm0, %v641_v5, %v642_v9 }
 0x146   : > { %1942 = vmatmul.mubr.bf16.gmra.mrb[136].mxu1 %v14984_v46  ;;  %v15247_v35 = vadd.f32 %v11903_v24, %v11902_v40  ;;  %v649_v56 = vsel %vm640_vm0, %v14815_v37, %v648_v53  ;;  %v13872_v53 = vld [vmem:[%s18550_s1 + $0x210] sm:$0xff]  }
 0x147   : > { %18607 = vst [vmem:[#allocation33_spill] sm:$0xff] %v15240_v47  ;;  %1949 = vmatprep.mubr.bf16.mxu1 %v591_v16 }
 0x149   : > { %v11699_v48 = vpop.f32.mrb[32].mxu1 }
 0x14a   : > { %v11700_v51 = vpop.f32.mrb[33].mxu1  ;;  %v11905_v43 = vpop.f32.mrb[20].mxu0 }
 0x14b   : > { %v15249_v38 = vadd.f32 %v11700_v51, %v11699_v48  ;;  %v11702_v19 = vpop.f32.mrb[34].mxu1  ;;  %v11906_v13 = vpop.f32.mrb[21].mxu0 }
 0x14c   : > { %v11703_v8 = vpop.f32.mrb[35].mxu1  ;;  %v11908_v47 = vpop.f32.mrb[22].mxu0  ;;  %v15257_v40 = vadd.f32 %v11906_v13, %v11905_v43  ;;  %v651_v13 = vrot.slane %v15056_v27, 1 }
 0x14d   : > { %18608 = vst [vmem:[#allocation34_spill] sm:$0xff] %v15249_v38  ;;  %v15252_v16 = vadd.f32 %v11703_v8, %v11702_v19  ;;  %v11909_v48 = vpop.f32.mrb[23].mxu0  ;;  %v18611_v19 = vrot.slane %v14536_v55, 1 }
 0x14e   : > { %1950 = vmatmul.mubr.bf16.gmra.mrb[140].mxu1 %v15018_v0  ;;  %v15259_v38 = vadd.f32 %v11909_v48, %v11908_v47  ;;  %v652_v27 = vsel %vm640_vm0, %v14828_v50, %v651_v13  ;;  %v18616_v13 = vrot.slane %v14749_v54, 1 }
 0x14f   : > { %18609 = vst [vmem:[#allocation35_spill] sm:$0xff] %v15252_v16  ;;  %12899 = vmatprep.mubr.bf16.mxu1 %v643_v58  ;;  %v646_v8 = vsel %vm640_vm0, %v18611_v19, %v645_v15  ;;  %v654_v15 = vrot.slane %v15088_v2, 1 }
 0x151   : > { %v11705_v51 = vpop.f32.mrb[36].mxu1 }
 0x152   : > { %v11706_v24 = vpop.f32.mrb[37].mxu1  ;;  %v11911_v47 = vpop.f32.mrb[24].mxu0 }
 0x153   : > { %v15261_v5 = vadd.f32 %v11706_v24, %v11705_v51  ;;  %v11708_v9 = vpop.f32.mrb[38].mxu1  ;;  %v11912_v55 = vpop.f32.mrb[25].mxu0 }
 0x154   : > { %v11709_v58 = vpop.f32.mrb[39].mxu1  ;;  %v11914_v51 = vpop.f32.mrb[26].mxu0  ;;  %v15279_v48 = vadd.f32 %v11912_v55, %v11911_v47  ;;  %v13873_v47 = vld [vmem:[%s18550_s1 + $0x218] sm:$0xff]  }
 0x155   : > { %18610 = vst [vmem:[#allocation36_spill] sm:$0xff] %v15261_v5  ;;  %v15271_v43 = vadd.f32 %v11709_v58, %v11708_v9  ;;  %v11915_v9 = vpop.f32.mrb[27].mxu0 }
 0x156   : > { %12900 = vmatmul.mubr.bf16.vlgmr.msra.gmra.mrb[48].mxu1 %v646_v8  ;;  %v15281_v8 = vadd.f32 %v11915_v9, %v11914_v51  ;;  %v657_v9 = vrot.slane %v15096_v4, 1 }
 0x157   : > { %18612 = vst [vmem:[#allocation37_spill] sm:$0xff] %v15271_v43  ;;  %12932 = vmatpush3.bf16.msra.mxu1 %v15124_v42  ;;  %12903 = vmatprep.mubr.bf16.mxu1 %v649_v56  ;;  %v655_v56 = vsel %vm640_vm0, %v14858_v31, %v654_v15  ;;  %v660_v15 = vrot.slane %v15113_v61, 1  ;;  %v18617_v43 = vrot.slane %v14771_v17, 1 }
 0x158   : > { %12933 = vmatprep.subr.bf16.mxu1 %v13871_v21  ;;  %v658_v61 = vsel %vm640_vm0, %v18616_v13, %v657_v9  ;;  %v663_v9 = vrot.slane %v15126_v3, 1  ;;  %v18568_v13 = vrot.slane %v14808_v26, 1 }
 0x159   : > { %v11711_v24 = vpop.f32.mrb[40].mxu1  ;;  %v661_v5 = vsel %vm640_vm0, %v18617_v43, %v660_v15  ;;  %v666_v43 = vrot.slane %v15137_v6, 1  ;;  %v13876_v15 = vld [vmem:[%s18550_s1 + $0x230] sm:$0xff]  }
 0x15a   : > { %v11712_v19 = vpop.f32.mrb[41].mxu1  ;;  %v11917_v51 = vpop.f32.mrb[28].mxu0 }
 0x15b   : > { %v15283_v42 = vadd.f32 %v11712_v19, %v11711_v24  ;;  %v11714_v58 = vpop.f32.mrb[42].mxu1  ;;  %12934 = vmatpush3.bf16.msra.mxu1 %v13871_v21  ;;  %v11918_v21 = vpop.f32.mrb[29].mxu0  ;;  %v13874_v19 = vld [vmem:[%s18550_s1 + $0x220] sm:$0xff]   ;;  %v667_v6 = vsel %vm640_vm0, %v18568_v13, %v666_v43 }
 0x15c   : > { %v11715_v2 = vpop.f32.mrb[43].mxu1  ;;  %12935 = vmatprep.subr.bf16.mxu1 %v13872_v53 }
 0x15d   : > { %18613 = vst [vmem:[#allocation38_spill] sm:$0xff] %v15283_v42  ;;  %v15292_v55 = vadd.f32 %v11715_v2, %v11714_v58  ;;  %v11920_v58 = vpop.f32.mrb[30].mxu0  ;;  %v15301_v2 = vadd.f32 %v11918_v21, %v11917_v51  ;;  %v13875_v51 = vld [vmem:[%s18550_s1 + $0x228] sm:$0xff]  }
 0x15e   : > { %12904 = vmatmul.mubr.bf16.gmra.mrb[52].mxu1 %v652_v27 }
 0x15f   : > { %18614 = vst [vmem:[#allocation39_spill] sm:$0xff] %v15292_v55  ;;  %12907 = vmatprep.mubr.bf16.mxu1 %v655_v56  ;;  %12936 = vmatpush3.bf16.msra.mxu1 %v13872_v53  ;;  %v11921_v56 = vpop.f32.mrb[31].mxu0 }
 0x160   : > { %12937 = vmatprep.subr.bf16.mxu1 %v13873_v47  ;;  %v15303_v24 = vadd.f32 %v11921_v56, %v11920_v58  ;;  %v18569_v58 = vrot.slane %v14789_v36, 1 }
 0x161   : > { %v11717_v27 = vpop.f32.mrb[44].mxu1 }
 0x162   : > { %v11718_v55 = vpop.f32.mrb[45].mxu1  ;;  %v664_v3 = vsel %vm640_vm0, %v18569_v58, %v663_v9  ;;  %v672_v9 = vrot.slane %v15155_v18, 1  ;;  %v18571_v18 = vrot.slane %v14899_v44, 1 }
 0x163   : > { %v15305_v4 = vadd.f32 %v11718_v55, %v11717_v27  ;;  %v11720_v53 = vpop.f32.mrb[46].mxu1  ;;  %12938 = vmatpush3.bf16.msra.mxu1 %v13873_v47  ;;  %v11923_v55 = vpop.f32.mrb[32].mxu0 }
 0x164   : > { %v11721_v42 = vpop.f32.mrb[47].mxu1  ;;  %12939 = vmatprep.subr.bf16.mxu1 %v13874_v19  ;;  %v11924_v47 = vpop.f32.mrb[33].mxu0 }
 0x165   : > { %18615 = vst [vmem:[#allocation40_spill] sm:$0xff] %v15305_v4  ;;  %v15316_v21 = vadd.f32 %v11721_v42, %v11720_v53  ;;  %v11926_v42 = vpop.f32.mrb[34].mxu0  ;;  %v15325_v27 = vadd.f32 %v11924_v47, %v11923_v55  ;;  %v669_v55 = vrot.slane %v15144_v33, 1 }
 0x166   : > { %12908 = vmatmul.mubr.bf16.gmra.mrb[56].mxu1 %v658_v61  ;;  %v11927_v56 = vpop.f32.mrb[35].mxu0  ;;  %v18573_v61 = vrot.slane %v14835_v1, 1 }
 0x167   : > { %18618 = vst [vmem:[#allocation41_spill] sm:$0xff] %v15316_v21  ;;  %12911 = vmatprep.mubr.bf16.mxu1 %v661_v5  ;;  %12940 = vmatpush3.bf16.msra.mxu1 %v13874_v19  ;;  %v15327_v5 = vadd.f32 %v11927_v56, %v11926_v42  ;;  %v13877_v19 = vld [vmem:[%s18550_s1 + $0x238] sm:$0xff]  }
 0x168   : > { %12941 = vmatprep.subr.bf16.mxu1 %v13875_v51 }
 0x16b   : > { %12942 = vmatpush3.bf16.msra.mxu1 %v13875_v51  ;;  %v11929_v53 = vpop.f32.mrb[36].mxu0  ;;  %v18570_v51 = vrot.slane %v14870_v52, 1 }
 0x16c   : > { %12943 = vmatprep.subr.bf16.mxu1 %v13876_v15  ;;  %v11930_v47 = vpop.f32.mrb[37].mxu0 }
 0x16d   : > { %v11932_v43 = vpop.f32.mrb[38].mxu0  ;;  %v15342_v42 = vadd.f32 %v11930_v47, %v11929_v53  ;;  %v673_v33 = vsel %vm640_vm0, %v18570_v51, %v672_v9  ;;  %v18572_v47 = vrot.slane %v14928_v41, 1 }
 0x16e   : > { %12912 = vmatmul.mubr.bf16.gmra.mrb[60].mxu1 %v664_v3  ;;  %v11933_v56 = vpop.f32.mrb[39].mxu0  ;;  %v670_v3 = vsel %vm640_vm0, %v18573_v61, %v669_v55 }
 0x16f   : > { %12915 = vmatprep.mubr.bf16.mxu1 %v667_v6  ;;  %12944 = vmatpush3.bf16.msra.mxu1 %v13876_v15  ;;  %v15344_v13 = vadd.f32 %v11933_v56, %v11932_v43  ;;  %v675_v6 = vrot.slane %v15166_v25, 1  ;;  %v678_v43 = vrot.slane %v15177_v62, 1  ;;  %v681_v62 = vrot.slane %v15188_v11, 1 }
 0x170   : > { %12945 = vmatprep.subr.bf16.mxu1 %v13877_v19 }
 0x171   : > { %v676_v9 = vsel %vm640_vm0, %v18571_v18, %v675_v6 }
 0x173   : > { %12946 = vmatpush3.bf16.msra.mxu1 %v13877_v19  ;;  %v11935_v15 = vpop.f32.mrb[40].mxu0 }
 0x174   : > { %v11936_v53 = vpop.f32.mrb[41].mxu0 }
 0x175   : > { %v11938_v56 = vpop.f32.mrb[42].mxu0  ;;  %v15356_v58 = vadd.f32 %v11936_v53, %v11935_v15  ;;  %v18574_v53 = vrot.slane %v14984_v46, 1 }
 0x176   : > { %12916 = vmatmul.mubr.bf16.gmra.mrb[64].mxu1 %v670_v3  ;;  %v11939_v19 = vpop.f32.mrb[43].mxu0  ;;  %v679_v3 = vsel %vm640_vm0, %v18572_v47, %v678_v43 }
 0x177   : > { %12919 = vmatprep.mubr.bf16.mxu1 %v673_v33  ;;  %v15358_v55 = vadd.f32 %v11939_v19, %v11938_v56  ;;  %v18575_v33 = vrot.slane %v14959_v12, 1  ;;  %v684_v56 = vrot.slane %v15203_v39, 1  ;;  %v687_v39 = vrot.slane %v15218_v20, 1  ;;  %v18620_v20 = vld [vmem:[#allocation8_spill] sm:$0xff] }
 0x179   : > { %v682_v43 = vsel %vm640_vm0, %v18575_v33, %v681_v62 }
 0x17b   : > { %v11941_v25 = vpop.f32.mrb[44].mxu0 }
 0x17c   : > { %v11942_v15 = vpop.f32.mrb[45].mxu0 }
 0x17d   : > { %v11944_v19 = vpop.f32.mrb[46].mxu0  ;;  %v15370_v51 = vadd.f32 %v11942_v15, %v11941_v25  ;;  %v18619_v15 = vld [vmem:[#allocation7_spill] sm:$0xff] }
 0x17e   : > { %12920 = vmatmul.mubr.bf16.gmra.mrb[68].mxu1 %v676_v9  ;;  %v11945_v6 = vpop.f32.mrb[47].mxu0  ;;  %v685_v9 = vsel %vm640_vm0, %v18574_v53, %v684_v56  ;;  %v2441_v47 = vrot.slane %v18619_v15, 1  ;;  %v18621_v15 = vld [vmem:[#allocation9_spill] sm:$0xff] }
 0x17f   : > { %12923 = vmatprep.mubr.bf16.mxu1 %v679_v3  ;;  %v15372_v18 = vadd.f32 %v11945_v6, %v11944_v19  ;;  %v18576_v3 = vrot.slane %v15018_v0, 1 }
 0x180   : > { %v2442_v56 = vsel %vm640_vm0, %v14815_v37, %v2441_v47 }
 0x181   : > { %v688_v62 = vsel %vm640_vm0, %v18576_v3, %v687_v39  ;;  %v18623_v3 = vld [vmem:[#allocation11_spill] sm:$0xff] }
 0x183   : > { %v11947_v11 = vpop.f32.mrb[48].mxu0 }
 0x184   : > { %v11948_v25 = vpop.f32.mrb[49].mxu0 }
 0x185   : > { %v15383_v19 = vadd.f32 %v11948_v25, %v11947_v11  ;;  %v11950_v6 = vpop.f32.mrb[50].mxu0  ;;  %v2447_v11 = vrot.slane %v18621_v15, 1  ;;  %v2453_v15 = vrot.slane %v18623_v3, 1 }
 0x186   : > { %12924 = vmatmul.mubr.bf16.gmra.mrb[72].mxu1 %v682_v43  ;;  %v11951_v61 = vpop.f32.mrb[51].mxu0 }
 0x187   : > { %12927 = vmatprep.mubr.bf16.mxu1 %v685_v9  ;;  %v15385_v21 = vadd.f32 %v11951_v61, %v11950_v6  ;;  %v2444_v9 = vrot.slane %v18620_v20, 1  ;;  %v2448_v37 = vsel %vm640_vm0, %v14858_v31, %v2447_v11  ;;  %v18625_v31 = vrot.slane %v14771_v17, 1 }
 0x189   : > { %v2445_v39 = vsel %vm640_vm0, %v14828_v50, %v2444_v9  ;;  %v2454_v9 = vsel %vm640_vm0, %v18625_v31, %v2453_v15 }
 0x18b   : > { %v11953_v43 = vpop.f32.mrb[52].mxu0 }
 0x18c   : > { %v11954_v53 = vpop.f32.mrb[53].mxu0 }
 0x18d   : > { %v15394_v25 = vadd.f32 %v11954_v53, %v11953_v43  ;;  %v11956_v33 = vpop.f32.mrb[54].mxu0 }
 0x18e   : > { %12928 = vmatmul.mubr.bf16.gmra.mrb[76].mxu1 %v688_v62  ;;  %v11957_v61 = vpop.f32.mrb[55].mxu0  ;;  %v18622_v62 = vld [vmem:[#allocation10_spill] sm:$0xff] }
 0x18f   : > { %12947 = vmatprep.mubr.bf16.mxu1 %v2442_v56  ;;  %v15396_v6 = vadd.f32 %v11957_v61, %v11956_v33  ;;  %v2450_v56 = vrot.slane %v18622_v62, 1  ;;  %v18624_v61 = vrot.slane %v14749_v54, 1  ;;  %v18629_v54 = vrot.slane %v14789_v36, 1  ;;  %v13879_v36 = vld [vmem:[%s18550_s1 + $0x148] sm:$0xff]  }
 0x191   : > { %v2451_v50 = vsel %vm640_vm0, %v18624_v61, %v2450_v56  ;;  %v18630_v56 = vrot.slane %v14808_v26, 1 }
 0x193   : > { %v11959_v47 = vpop.f32.mrb[56].mxu0 }
 0x194   : > { %v11960_v20 = vpop.f32.mrb[57].mxu0 }
 0x195   : > { %v15404_v53 = vadd.f32 %v11960_v20, %v11959_v47  ;;  %v11962_v43 = vpop.f32.mrb[58].mxu0  ;;  %v18627_v47 = vld [vmem:[#allocation13_spill] sm:$0xff] }
 0x196   : > { %12948 = vmatmul.mubr.bf16.vlgmr.msra.gmra.mrb[48].mxu1 %v2445_v39  ;;  %v11963_v4 = vpop.f32.mrb[59].mxu0  ;;  %v18626_v39 = vld [vmem:[#allocation12_spill] sm:$0xff]  ;;  %v2459_v62 = vrot.slane %v18627_v47, 1  ;;  %v213_v47 = vld [vmem:[#allocation2 + $0x18] sm:$0x1] }
 0x197   : > { %12951 = vmatprep.mubr.bf16.mxu1 %v2448_v37  ;;  %v15406_v33 = vadd.f32 %v11963_v4, %v11962_v43  ;;  %v2456_v37 = vrot.slane %v18626_v39, 1  ;;  %v18632_v39 = vld [vmem:[#allocation15_spill] sm:$0xff] }
 0x198   : > { %v2460_v15 = vsel %vm640_vm0, %v18630_v56, %v2459_v62  ;;  %v214_v56 = vsel %vm15438_vm4, 0, %v213_v47 }
 0x199   : > { %v2457_v17 = vsel %vm640_vm0, %v18629_v54, %v2456_v37  ;;  %v2465_v37 = vrot.slane %v18632_v39, 1  ;;  %215 = vst [vmem:[#allocation2 + $0x18] sm:$0x1] %v214_v56 }
 0x19b   : > { %v11965_v11 = vpop.f32.mrb[60].mxu0 }
 0x19c   : > { %v11966_v3 = vpop.f32.mrb[61].mxu0 }
 0x19d   : > { %v15416_v20 = vadd.f32 %v11966_v3, %v11965_v11  ;;  %v11968_v4 = vpop.f32.mrb[62].mxu0  ;;  %v13878_v11 = vld [vmem:[%s18550_s1 + $0x140] sm:$0xff]  }
 0x19e   : > { %12952 = vmatmul.mubr.bf16.gmra.mrb[52].mxu1 %v2451_v50  ;;  %v11969_v43 = vpop.f32.mrb[63].mxu0  ;;  %v18631_v50 = vld [vmem:[#allocation14_spill] sm:$0xff]  ;;  %12979 = vmatprep.subr.bf16.mxu1 %v13878_v11 }
 0x19f   : > { %12955 = vmatprep.mubr.bf16.mxu1 %v2454_v9  ;;  %v15418_v16 = vadd.f32 %v11969_v43, %v11968_v4  ;;  %v2462_v31 = vrot.slane %v18631_v50, 1  ;;  %v18634_v43 = vmov 0  ;;  %12980 = vmatpush3.bf16.msra.mxu1 %v13878_v11  ;;  %v18637_v50 = vrot.slane %v14835_v1, 1  ;;  %v13880_v11 = vld [vmem:[%s18550_s1 + $0x150] sm:$0xff]  }
 0x1a0   : > { %v18635_v43 = vsel %vm15438_vm4, 4294967295, %v18634_v43  ;;  %12981 = vmatprep.subr.bf16.mxu1 %v13879_v36 }
 0x1a1   : > { %18628 = vst [vmem:[#allocation7_spill] sm:$0xff] %v15418_v16  ;;  %18636 = vst [vmem:[#allocation9_spill] sm:$0xff] %v18635_v43 }
 0x1a3   : > { %v11971_v61 = vpop.f32.mrb[64].mxu0  ;;  %12982 = vmatpush3.bf16.msra.mxu1 %v13879_v36 }
 0x1a4   : > { %v11972_v9 = vpop.f32.mrb[65].mxu0  ;;  %12983 = vmatprep.subr.bf16.mxu1 %v13880_v11 }
 0x1a5   : > { %v15434_v26 = vadd.f32 %v11972_v9, %v11971_v61  ;;  %v11974_v3 = vpop.f32.mrb[66].mxu0  ;;  %v2463_v9 = vsel %vm640_vm0, %v18637_v50, %v2462_v31  ;;  %v18639_v31 = vld [vmem:[#allocation16_spill] sm:$0xff] }
 0x1a6   : > { %12956 = vmatmul.mubr.bf16.gmra.mrb[56].mxu1 %v2457_v17  ;;  %v11975_v4 = vpop.f32.mrb[67].mxu0 }
 0x1a7   : > { %12959 = vmatprep.mubr.bf16.mxu1 %v2460_v15  ;;  %18633 = vst [vmem:[#allocation8_spill] sm:$0xff] %v15434_v26  ;;  %v15442_v17 = vadd.f32 %v11975_v4, %v11974_v3  ;;  %v18638_v26 = vrot.slane %v14870_v52, 1  ;;  %v2468_v4 = vrot.slane %v18639_v31, 1  ;;  %12984 = vmatpush3.bf16.msra.mxu1 %v13880_v11 }
 0x1a9   : > { %v11763_v62 = vpop.f32.mrb[80].mxu1  ;;  %v2466_v16 = vsel %vm640_vm0, %v18638_v26, %v2465_v37  ;;  %v18640_v37 = vld [vmem:[#allocation17_spill] sm:$0xff] }
 0x1aa   : > { %v11764_v54 = vpop.f32.mrb[81].mxu1  ;;  %v2471_v26 = vrot.slane %v18640_v37, 1 }
 0x1ab   : > { %v11765_v15 = vadd.f32 %v11764_v54, %v11763_v62  ;;  %v11766_v61 = vpop.f32.mrb[82].mxu1  ;;  %v11977_v62 = vpop.f32.mrb[68].mxu0 }
 0x1ac   : > { %v11767_v39 = vpop.f32.mrb[83].mxu1  ;;  %v11978_v54 = vpop.f32.mrb[69].mxu0 }
 0x1ad   : > { %v13286_v3 = vadd.f32 %v11765_v15, %v15190_v57  ;;  %v11768_v47 = vadd.f32 %v11767_v39, %v11766_v61  ;;  %v15462_v56 = vadd.f32 %v11978_v54, %v11977_v62  ;;  %v11980_v50 = vpop.f32.mrb[70].mxu0  ;;  %v13881_v57 = vld [vmem:[%s18550_s1 + $0x158] sm:$0xff]   ;;  %v18641_v39 = vrot.slane %v14899_v44, 1 }
 0x1ae   : > { %12960 = vmatmul.mubr.bf16.gmra.mrb[60].mxu1 %v2463_v9  ;;  %v18642_v62 = vrot.slane %v14928_v41, 1  ;;  %12985 = vmatprep.subr.bf16.mxu1 %v13881_v57 }
 0x1af   : > { %v13292_v1 = vadd.f32 %v11768_v47, %v15192_v60  ;;  %12963 = vmatprep.mubr.bf16.mxu1 %v2466_v16  ;;  %v15459_v52 = vadd.f32 %v13286_v3, %v15245_v63  ;;  %v11981_v60 = vpop.f32.mrb[71].mxu0  ;;  %v2469_v3 = vsel %vm640_vm0, %v18641_v39, %v2468_v4  ;;  %12986 = vmatpush3.bf16.msra.mxu1 %v13881_v57  ;;  %v18644_v4 = vld [vmem:[#allocation19_spill] sm:$0xff]  ;;  %v18645_v57 = vrot.slane %v14959_v12, 1 }
 0x1b0   : > { %v15470_v36 = vadd.f32 %v11981_v60, %v11980_v50  ;;  %v2472_v31 = vsel %vm640_vm0, %v18642_v62, %v2471_v26  ;;  %v18643_v50 = vld [vmem:[#allocation18_spill] sm:$0xff]  ;;  %v2477_v41 = vrot.slane %v18644_v4, 1  ;;  %v18646_v62 = vrot.slane %v14984_v46, 1 }
 0x1b1   : > { %v11769_v15 = vpop.f32.mrb[84].mxu1  ;;  %v15468_v16 = vadd.f32 %v13292_v1, %v15247_v35  ;;  %v2483_v46 = vrot.slane %v15040_v59, 1 }
 0x1b2   : > { %v11770_v61 = vpop.f32.mrb[85].mxu1 }
 0x1b3   : > { %v11771_v63 = vadd.f32 %v11770_v61, %v11769_v15  ;;  %v11772_v9 = vpop.f32.mrb[86].mxu1  ;;  %v11983_v1 = vpop.f32.mrb[72].mxu0  ;;  %v2474_v15 = vrot.slane %v18643_v50, 1 }
 0x1b4   : > { %v11773_v47 = vpop.f32.mrb[87].mxu1  ;;  %v11984_v44 = vpop.f32.mrb[73].mxu0 }
 0x1b5   : > { %v13283_v54 = vadd.f32 %v11771_v63, %v15205_v45  ;;  %v11774_v35 = vadd.f32 %v11773_v47, %v11772_v9  ;;  %v15485_v60 = vadd.f32 %v11984_v44, %v11983_v1  ;;  %v11986_v26 = vpop.f32.mrb[74].mxu0 }
 0x1b6   : > { %12964 = vmatmul.mubr.bf16.gmra.mrb[64].mxu1 %v2469_v3  ;;  %v11987_v45 = vpop.f32.mrb[75].mxu0 }
 0x1b7   : > { %v13289_v37 = vadd.f32 %v11774_v35, %v15207_v34  ;;  %12967 = vmatprep.mubr.bf16.mxu1 %v2472_v31  ;;  %v15482_v11 = vadd.f32 %v13283_v54, %v15257_v40  ;;  %v15490_v34 = vadd.f32 %v11987_v45, %v11986_v26  ;;  %v2475_v40 = vsel %vm640_vm0, %v18645_v57, %v2474_v15 }
 0x1b8   : > { %v2478_v31 = vsel %vm640_vm0, %v18646_v62, %v2477_v41  ;;  %v2482_v15 = vrot.slane %v15032_v14, 1 }
 0x1b9   : > { %v11775_v61 = vpop.f32.mrb[88].mxu1  ;;  %v15488_v63 = vadd.f32 %v13289_v37, %v15259_v38  ;;  %v2480_v37 = vrot.slane %v15026_v23, 1 }
 0x1ba   : > { %v11776_v9 = vpop.f32.mrb[89].mxu1  ;;  %v2484_v59 = vsel %vm640_vm0, %v2482_v15, %v2483_v46 }
 0x1bb   : > { %v11777_v39 = vadd.f32 %v11776_v9, %v11775_v61  ;;  %v11778_v3 = vpop.f32.mrb[90].mxu1  ;;  %v11989_v38 = vpop.f32.mrb[76].mxu0 }
 0x1bc   : > { %v11779_v47 = vpop.f32.mrb[91].mxu1  ;;  %v11990_v50 = vpop.f32.mrb[77].mxu0 }
 0x1bd   : > { %v13298_v54 = vadd.f32 %v11777_v39, %v15220_v22  ;;  %v11780_v35 = vadd.f32 %v11779_v47, %v11778_v3  ;;  %v15506_v44 = vadd.f32 %v11990_v50, %v11989_v38  ;;  %v11992_v4 = vpop.f32.mrb[78].mxu0 }
 0x1be   : > { %12968 = vmatmul.mubr.bf16.gmra.mrb[68].mxu1 %v2475_v40  ;;  %v11993_v41 = vpop.f32.mrb[79].mxu0  ;;  %v2486_v40 = vrot.slane %v15066_v49, 1 }
 0x1bf   : > { %v13304_v1 = vadd.f32 %v11780_v35, %v15222_v32  ;;  %12971 = vmatprep.mubr.bf16.mxu1 %v2478_v31  ;;  %v15502_v12 = vadd.f32 %v13298_v54, %v15279_v48  ;;  %v15511_v61 = vadd.f32 %v11993_v41, %v11992_v4  ;;  %v18647_v48 = vrot.slane %v15018_v0, 1  ;;  %v18648_v4 = vld [vmem:[#allocation20_spill] sm:$0xff] }
 0x1c1   : > { %v11781_v22 = vpop.f32.mrb[92].mxu1  ;;  %v15509_v26 = vadd.f32 %v13304_v1, %v15281_v8  ;;  %v2481_v9 = vsel %vm640_vm0, %v18647_v48, %v2480_v37  ;;  %v2485_v8 = vrot.slane %v15058_v7, 1 }
 0x1c2   : > { %v11782_v32 = vpop.f32.mrb[93].mxu1 }
 0x1c3   : > { %v11783_v23 = vadd.f32 %v11782_v32, %v11781_v22  ;;  %v11784_v45 = vpop.f32.mrb[94].mxu1  ;;  %v18649_v32 = vld [vmem:[#allocation21_spill] sm:$0xff] }
 0x1c4   : > { %v11785_v14 = vpop.f32.mrb[95].mxu1 }
 0x1c5   : > { %v13295_v39 = vadd.f32 %v11783_v23, %v15232_v10  ;;  %v11786_v3 = vadd.f32 %v11785_v14, %v11784_v45  ;;  %v2487_v10 = vsel %vm640_vm0, %v2485_v8, %v2486_v40  ;;  %v18650_v14 = vld [vmem:[#allocation22_spill] sm:$0xff] }
 0x1c6   : > { %12972 = vmatmul.mubr.bf16.gmra.mrb[72].mxu1 %v2481_v9 }
 0x1c7   : > { %v13301_v57 = vadd.f32 %v11786_v3, %v15234_v28  ;;  %12975 = vmatprep.mubr.bf16.mxu1 %v2484_v59  ;;  %v15522_v47 = vadd.f32 %v13295_v39, %v15301_v2  ;;  %v18651_v3 = vld [vmem:[#allocation23_spill] sm:$0xff] }
 0x1c9   : > { %v11787_v0 = vpop.f32.mrb[96].mxu1  ;;  %v15525_v62 = vadd.f32 %v13301_v57, %v15303_v24 }
 0x1ca   : > { %v11788_v31 = vpop.f32.mrb[97].mxu1 }
 0x1cb   : > { %v11789_v54 = vadd.f32 %v11788_v31, %v11787_v0  ;;  %v11790_v35 = vpop.f32.mrb[98].mxu1 }
 0x1cc   : > { %v11791_v38 = vpop.f32.mrb[99].mxu1 }
 0x1cd   : > { %v13310_v28 = vadd.f32 %v11789_v54, %v15146_v29  ;;  %v11792_v1 = vadd.f32 %v11791_v38, %v11790_v35  ;;  %v18652_v35 = vld [vmem:[#allocation24_spill] sm:$0xff] }
 0x1ce   : > { %12976 = vmatmul.mubr.bf16.gmra.mrb[76].mxu1 %v2487_v10 }
 0x1cf   : > { %v13316_v7 = vadd.f32 %v11792_v1, %v15151_v30  ;;  %v15531_v49 = vadd.f32 %v13310_v28, %v15325_v27  ;;  %v18653_v28 = vld [vmem:[#allocation25_spill] sm:$0xff] }
 0x1d1   : > { %v11793_v2 = vpop.f32.mrb[100].mxu1  ;;  %v15534_v37 = vadd.f32 %v13316_v7, %v15327_v5 }
 0x1d2   : > { %v11794_v24 = vpop.f32.mrb[101].mxu1 }
 0x1d3   : > { %v11795_v50 = vadd.f32 %v11794_v24, %v11793_v2  ;;  %v11796_v15 = vpop.f32.mrb[102].mxu1 }
 0x1d4   : > { %v11797_v46 = vpop.f32.mrb[103].mxu1 }
 0x1d5   : > { %v13307_v22 = vadd.f32 %v11795_v50, %v18648_v4  ;;  %v11798_v41 = vadd.f32 %v11797_v46, %v11796_v15  ;;  %v18654_v46 = vld [vmem:[#allocation26_spill] sm:$0xff] }
 0x1d7   : > { %v13313_v29 = vadd.f32 %v11798_v41, %v18649_v32  ;;  %v15539_v23 = vadd.f32 %v13307_v22, %v15342_v42  ;;  %v18655_v41 = vld [vmem:[#allocation27_spill] sm:$0xff] }
 0x1d9   : > { %v11799_v30 = vpop.f32.mrb[104].mxu1  ;;  %v15542_v27 = vadd.f32 %v13313_v29, %v15344_v13  ;;  %v13883_v29 = vld [vmem:[%s18550_s1 + $0x100] sm:$0xff]  }
 0x1da   : > { %v11800_v45 = vpop.f32.mrb[105].mxu1  ;;  %12019 = vmatprep.subr.bf16.mxu0 %v13883_v29  ;;  %v18661_v29 = vld [vmem:[#allocation31_spill] sm:$0xff] }
 0x1db   : > { %v11801_v48 = vadd.f32 %v11800_v45, %v11799_v30  ;;  %v11802_v5 = vpop.f32.mrb[106].mxu1 }
 0x1dc   : > { %v11803_v9 = vpop.f32.mrb[107].mxu1 }
 0x1dd   : > { %v13322_v59 = vadd.f32 %v11801_v48, %v18650_v14  ;;  %v11804_v39 = vadd.f32 %v11803_v9, %v11802_v5  ;;  %v210_v9 = vld [vmem:[#allocation2 + $0xc] sm:$0x1] }
 0x1df   : > { %v13328_v57 = vadd.f32 %v11804_v39, %v18651_v3  ;;  %v15547_v8 = vadd.f32 %v13322_v59, %v15356_v58  ;;  %v211_v59 = vsel %vm15438_vm4, 0, %v210_v9  ;;  %v18658_v3 = vld [vmem:[#allocation28_spill] sm:$0xff]  ;;  %v13887_v9 = vld [vmem:[%s18550_s1 + $0xc8] sm:$0xff]  }
 0x1e0   : > { %212 = vst [vmem:[#allocation2 + $0xc] sm:$0x1] %v211_v59  ;;  %v13888_v59 = vld [vmem:[%s18550_s1 + $0x110] sm:$0xff]   ;;  %v14013_v39 = vld [vmem:[%s18550_s1 + $0x208] sm:$0xff]  }
 0x1e1   : > { %v11805_v40 = vpop.f32.mrb[108].mxu1  ;;  %v15550_v42 = vadd.f32 %v13328_v57, %v15358_v55 }
 0x1e2   : > { %v11806_v0 = vpop.f32.mrb[109].mxu1 }
 0x1e3   : > { %v11807_v31 = vadd.f32 %v11806_v0, %v11805_v40  ;;  %v11808_v13 = vpop.f32.mrb[110].mxu1  ;;  %v266_v0 = vld [vmem:[#allocation2 + $0x14] sm:$0x1] }
 0x1e4   : > { %v11809_v54 = vpop.f32.mrb[111].mxu1 }
 0x1e5   : > { %v13319_v10 = vadd.f32 %v11807_v31, %v18652_v35  ;;  %v11810_v38 = vadd.f32 %v11809_v54, %v11808_v13  ;;  %v267_v31 = vsel %vm15575_vm6, 0, %v266_v0  ;;  %v18659_v13 = vld [vmem:[#allocation29_spill] sm:$0xff]  ;;  %v18662_v0 = vld [vmem:[#allocation32_spill] sm:$0xff] }
 0x1e6   : > { %268 = vst [vmem:[#allocation2 + $0x14] sm:$0x1] %v267_v31 }
 0x1e7   : > { %v13325_v1 = vadd.f32 %v11810_v38, %v18653_v28  ;;  %v15555_v7 = vadd.f32 %v13319_v10, %v15370_v51 }
 0x1e9   : > { %v11811_v2 = vpop.f32.mrb[112].mxu1  ;;  %v15558_v58 = vadd.f32 %v13325_v1, %v15372_v18  ;;  %v219_v1 = vld [vmem:[#allocation2 + $0x30] sm:$0x1] }
 0x1ea   : > { %v11812_v24 = vpop.f32.mrb[113].mxu1 }
 0x1eb   : > { %v11813_v50 = vadd.f32 %v11812_v24, %v11811_v2  ;;  %v11814_v55 = vpop.f32.mrb[114].mxu1 }
 0x1ec   : > { %v11815_v15 = vpop.f32.mrb[115].mxu1 }
 0x1ed   : > { %v13334_v4 = vadd.f32 %v11813_v50, %v18654_v46  ;;  %v11816_v22 = vadd.f32 %v11815_v15, %v11814_v55  ;;  %v13882_v50 = vld [vmem:[%s18550_s1 + $0x160] sm:$0xff]   ;;  %v220_v55 = vsel %vm15438_vm4, 0, %v219_v1 }
 0x1ee   : > { %v216_v15 = vld [vmem:[#allocation2 + $0x24] sm:$0x1]  ;;  %221 = vst [vmem:[#allocation2 + $0x30] sm:$0x1] %v220_v55  ;;  %12987 = vmatprep.subr.bf16.mxu1 %v13882_v50  ;;  %v13886_v55 = vld [vmem:[%s18550_s1 + $0x168] sm:$0xff]  }
 0x1ef   : > { %v13340_v32 = vadd.f32 %v11816_v22, %v18655_v41  ;;  %v15566_v51 = vadd.f32 %v13334_v4, %v15383_v19  ;;  %v269_v19 = vld [vmem:[#allocation2 + $0x20] sm:$0x1]  ;;  %v18660_v4 = vld [vmem:[#allocation30_spill] sm:$0xff]  ;;  %12988 = vmatpush3.bf16.msra.mxu1 %v13882_v50  ;;  %v275_v41 = vld [vmem:[#allocation2 + $0x38] sm:$0x1] }
 0x1f0   : > { %12989 = vmatprep.subr.bf16.mxu1 %v13886_v55 }
 0x1f1   : > { %v11817_v30 = vpop.f32.mrb[116].mxu1  ;;  %v15569_v18 = vadd.f32 %v13340_v32, %v15385_v21  ;;  %v270_v21 = vsel %vm15575_vm6, 0, %v269_v19  ;;  %v13884_v32 = vld [vmem:[%s18550_s1 + $0xc0] sm:$0xff]  }
 0x1f2   : > { %v11818_v45 = vpop.f32.mrb[117].mxu1  ;;  %271 = vst [vmem:[#allocation2 + $0x20] sm:$0x1] %v270_v21  ;;  %12020 = vmatpush3.bf16.msra.mxu0 %v13884_v32  ;;  %v13889_v21 = vld [vmem:[%s18550_s1 + $0xd0] sm:$0xff]  }
 0x1f3   : > { %v11819_v48 = vadd.f32 %v11818_v45, %v11817_v30  ;;  %v11820_v5 = vpop.f32.mrb[118].mxu1  ;;  %v276_v45 = vsel %vm15575_vm6, 0, %v275_v41  ;;  %12990 = vmatpush3.bf16.msra.mxu1 %v13886_v55  ;;  %v225_v41 = vld [vmem:[#allocation2 + $0x48] sm:$0x1]  ;;  %v18665_v32 = vld [vmem:[#allocation34_spill] sm:$0xff]  ;;  %v18668_v55 = vld [vmem:[#allocation36_spill] sm:$0xff] }
 0x1f4   : > { %v11821_v14 = vpop.f32.mrb[119].mxu1  ;;  %277 = vst [vmem:[#allocation2 + $0x38] sm:$0x1] %v276_v45  ;;  %v226_v45 = vsel %vm15438_vm4, 0, %v225_v41 }
 0x1f5   : > { %v13331_v57 = vadd.f32 %v11819_v48, %v18658_v3  ;;  %v11822_v40 = vadd.f32 %v11821_v14, %v11820_v5  ;;  %v13885_v48 = vld [vmem:[%s18550_s1 + $0x108] sm:$0xff]   ;;  %227 = vst [vmem:[#allocation2 + $0x48] sm:$0x1] %v226_v45 }
 0x1f6   : > { %12021 = vmatprep.subr.bf16.mxu0 %v13885_v48  ;;  %v222_v48 = vld [vmem:[#allocation2 + $0x3c] sm:$0x1] }
 0x1f7   : > { %v13337_v54 = vadd.f32 %v11822_v40, %v18659_v13  ;;  %v15586_v35 = vadd.f32 %v13331_v57, %v15394_v25  ;;  %v217_v25 = vsel %vm15438_vm4, 0, %v216_v15  ;;  %12022 = vmatpush3.bf16.msra.mxu0 %v13887_v9  ;;  %v18664_v15 = vld [vmem:[#allocation7_spill] sm:$0xff]  ;;  %v13891_v9 = vld [vmem:[%s18550_s1 + $0x170] sm:$0xff]  }
 0x1f8   : > { %218 = vst [vmem:[#allocation2 + $0x24] sm:$0x1] %v217_v25  ;;  %12023 = vmatprep.subr.bf16.mxu0 %v13888_v59  ;;  %v13893_v25 = vld [vmem:[%s18550_s1 + $0x120] sm:$0xff]   ;;  %v281_v59 = vld [vmem:[#allocation2 + $0x50] sm:$0x1]  ;;  %12991 = vmatprep.subr.bf16.mxu1 %v13891_v9 }
 0x1f9   : > { %v11823_v10 = vpop.f32.mrb[120].mxu1  ;;  %v15589_v38 = vadd.f32 %v13337_v54, %v15396_v6  ;;  %v13890_v54 = vld [vmem:[%s18550_s1 + $0x118] sm:$0xff]   ;;  %12992 = vmatpush3.bf16.msra.mxu1 %v13891_v9 }
 0x1fa   : > { %v11824_v28 = vpop.f32.mrb[121].mxu1  ;;  %v13896_v9 = vld [vmem:[%s18550_s1 + $0x178] sm:$0xff]  }
 0x1fb   : > { %v11825_v2 = vadd.f32 %v11824_v28, %v11823_v10  ;;  %v11826_v24 = vpop.f32.mrb[122].mxu1  ;;  %v18663_v10 = vld [vmem:[#allocation33_spill] sm:$0xff]  ;;  %12024 = vmatpush3.bf16.msra.mxu0 %v13889_v21  ;;  %v18667_v21 = vld [vmem:[#allocation8_spill] sm:$0xff]  ;;  %12993 = vmatprep.subr.bf16.mxu1 %v13896_v9 }
 0x1fc   : > { %v11827_v46 = vpop.f32.mrb[123].mxu1  ;;  %v272_v28 = vld [vmem:[#allocation2 + $0x2c] sm:$0x1]  ;;  %12025 = vmatprep.subr.bf16.mxu0 %v13890_v54 }
 0x1fd   : > { %v13346_v6 = vadd.f32 %v11825_v2, %v18660_v4  ;;  %v11828_v22 = vadd.f32 %v11827_v46, %v11826_v24  ;;  %v273_v2 = vsel %vm15575_vm6, 0, %v272_v28  ;;  %v13892_v24 = vld [vmem:[%s18550_s1 + $0xd8] sm:$0xff]   ;;  %12994 = vmatpush3.bf16.msra.mxu1 %v13896_v9 }
 0x1fe   : > { %274 = vst [vmem:[#allocation2 + $0x2c] sm:$0x1] %v273_v2 }
 0x1ff   : > { %v13352_v30 = vadd.f32 %v11828_v22, %v18661_v29  ;;  %v15609_v5 = vadd.f32 %v13346_v6, %v15404_v53  ;;  %12026 = vmatpush3.bf16.msra.mxu0 %v13892_v24 }
 0x200   : > { %12027 = vmatprep.subr.bf16.mxu0 %v13893_v25 }
 0x201   : > { %v11829_v14 = vpop.f32.mrb[124].mxu1  ;;  %v15618_v19 = vadd.f32 %v13352_v30, %v15406_v33 }
 0x202   : > { %v11830_v3 = vpop.f32.mrb[125].mxu1 }
 0x203   : > { %v11831_v57 = vadd.f32 %v11830_v3, %v11829_v14  ;;  %v11832_v40 = vpop.f32.mrb[126].mxu1  ;;  %v223_v14 = vsel %vm15438_vm4, 0, %v222_v48  ;;  %v18666_v3 = vld [vmem:[#allocation35_spill] sm:$0xff] }
 0x204   : > { %v11833_v53 = vpop.f32.mrb[127].mxu1  ;;  %224 = vst [vmem:[#allocation2 + $0x3c] sm:$0x1] %v223_v14  ;;  %v13898_v14 = vld [vmem:[%s18550_s1 + $0x130] sm:$0xff]  }
 0x205   : > { %v13343_v31 = vadd.f32 %v11831_v57, %v18662_v0  ;;  %v11834_v13 = vadd.f32 %v11833_v53, %v11832_v40  ;;  %v282_v40 = vsel %vm15575_vm6, 0, %v281_v59  ;;  %v278_v53 = vld [vmem:[#allocation2 + $0x44] sm:$0x1] }
 0x206   : > { %283 = vst [vmem:[#allocation2 + $0x50] sm:$0x1] %v282_v40 }
 0x207   : > { %v13349_v33 = vadd.f32 %v11834_v13, %v18663_v10  ;;  %v15629_v1 = vadd.f32 %v13343_v31, %v15416_v20  ;;  %v279_v31 = vsel %vm15575_vm6, 0, %v278_v53  ;;  %v13899_v53 = vld [vmem:[%s18550_s1 + $0xf0] sm:$0xff]  }
 0x208   : > { %280 = vst [vmem:[#allocation2 + $0x44] sm:$0x1] %v279_v31 }
 0x209   : > { %v11835_v50 = vpop.f32.mrb[128].mxu1  ;;  %v15640_v46 = vadd.f32 %v13349_v33, %v18664_v15  ;;  %v13894_v33 = vld [vmem:[%s18550_s1 + $0xe0] sm:$0xff]  }
 0x20a   : > { %v11836_v20 = vpop.f32.mrb[129].mxu1  ;;  %12028 = vmatpush3.bf16.msra.mxu0 %v13894_v33 }
 0x20b   : > { %v11837_v4 = vadd.f32 %v11836_v20, %v11835_v50  ;;  %v11838_v6 = vpop.f32.mrb[130].mxu1  ;;  %v231_v50 = vld [vmem:[#allocation2 + $0x60] sm:$0x1] }
 0x20c   : > { %v11839_v22 = vpop.f32.mrb[131].mxu1  ;;  %v232_v25 = vsel %vm15438_vm4, 0, %v231_v50 }
 0x20d   : > { %v13358_v29 = vadd.f32 %v11837_v4, %v18665_v32  ;;  %v11840_v30 = vadd.f32 %v11839_v22, %v11838_v6  ;;  %233 = vst [vmem:[#allocation2 + $0x60] sm:$0x1] %v232_v25  ;;  %v228_v4 = vld [vmem:[#allocation2 + $0x54] sm:$0x1]  ;;  %v13897_v6 = vld [vmem:[%s18550_s1 + $0xe8] sm:$0xff]  }
 0x20e   : > { %v18669_v22 = vld [vmem:[#allocation37_spill] sm:$0xff]  ;;  %v229_v32 = vsel %vm15438_vm4, 0, %v228_v4  ;;  %v13902_v4 = vld [vmem:[%s18550_s1 + $0x138] sm:$0xff]  }
 0x20f   : > { %v13364_v57 = vadd.f32 %v11840_v30, %v18666_v3  ;;  %v15657_v0 = vadd.f32 %v13358_v29, %v18667_v21  ;;  %v287_v29 = vld [vmem:[#allocation2 + $0x68] sm:$0x1]  ;;  %230 = vst [vmem:[#allocation2 + $0x54] sm:$0x1] %v229_v32  ;;  %v18670_v21 = vld [vmem:[#allocation38_spill] sm:$0xff] }
 0x210   : > { %v288_v45 = vsel %vm15575_vm6, 0, %v287_v29  ;;  %v234_v32 = vld [vmem:[#allocation2 + $0x6c] sm:$0x1]  ;;  %v293_v29 = vld [vmem:[#allocation2 + $0x80] sm:$0x1] }
 0x211   : > { %v11841_v13 = vpop.f32.mrb[132].mxu1  ;;  %v15662_v54 = vadd.f32 %v13364_v57, %v15442_v17  ;;  %v13895_v17 = vld [vmem:[%s18550_s1 + $0x128] sm:$0xff]   ;;  %289 = vst [vmem:[#allocation2 + $0x68] sm:$0x1] %v288_v45  ;;  %v294_v9 = vsel %vm15575_vm6, 0, %v293_v29 }
 0x212   : > { %v11842_v10 = vpop.f32.mrb[133].mxu1  ;;  %12029 = vmatprep.subr.bf16.mxu0 %v13895_v17  ;;  %v237_v17 = vld [vmem:[#allocation2 + $0x78] sm:$0x1]  ;;  %v18673_v45 = vld [vmem:[#allocation41_spill] sm:$0xff]  ;;  %295 = vst [vmem:[#allocation2 + $0x80] sm:$0x1] %v294_v9 }
 0x213   : > { %v11843_v28 = vadd.f32 %v11842_v10, %v11841_v13  ;;  %v11844_v2 = vpop.f32.mrb[134].mxu1  ;;  %12030 = vmatpush3.bf16.msra.mxu0 %v13897_v6  ;;  %v18671_v10 = vld [vmem:[#allocation39_spill] sm:$0xff]  ;;  %v18672_v6 = vld [vmem:[#allocation40_spill] sm:$0xff] }
 0x214   : > { %v11845_v24 = vpop.f32.mrb[135].mxu1  ;;  %12031 = vmatprep.subr.bf16.mxu0 %v13898_v14 }
 0x215   : > { %v13355_v15 = vadd.f32 %v11843_v28, %v18668_v55  ;;  %v11846_v20 = vadd.f32 %v11845_v24, %v11844_v2  ;;  %v284_v28 = vld [vmem:[#allocation2 + $0x5c] sm:$0x1] }
 0x216   : > { %v285_v2 = vsel %vm15575_vm6, 0, %v284_v28 }
 0x217   : > { %v13361_v41 = vadd.f32 %v11846_v20, %v18669_v22  ;;  %v15680_v30 = vadd.f32 %v13355_v15, %v15462_v56  ;;  %12032 = vmatpush3.bf16.msra.mxu0 %v13899_v53  ;;  %286 = vst [vmem:[#allocation2 + $0x5c] sm:$0x1] %v285_v2  ;;  %v15731_v53 = vld [vmem:[%s18550_s1 + $0x80] sm:$0xff]   ;;  %v249_v2 = vld [vmem:[#allocation2 + $0xa8] sm:$0x1] }
 0x218   : > { %12033 = vmatprep.subr.bf16.mxu0 %v13902_v4  ;;  %13027 = vmatprep.subr.bf16.mxu1 %v15731_v53 }
 0x219   : > { %v11847_v48 = vpop.f32.mrb[136].mxu1  ;;  %v15691_v59 = vadd.f32 %v13361_v41, %v15470_v36  ;;  %v238_v41 = vsel %vm15438_vm4, 0, %v237_v17  ;;  %v302_v17 = vld [vmem:[#allocation2 + $0xa4] sm:$0x1] }
 0x21a   : > { %v11848_v56 = vpop.f32.mrb[137].mxu1  ;;  %239 = vst [vmem:[#allocation2 + $0x78] sm:$0x1] %v238_v41  ;;  %v303_v4 = vsel %vm15575_vm6, 0, %v302_v17 }
 0x21b   : > { %v11849_v3 = vadd.f32 %v11848_v56, %v11847_v48  ;;  %v11850_v57 = vpop.f32.mrb[138].mxu1  ;;  %v290_v56 = vld [vmem:[#allocation2 + $0x74] sm:$0x1]  ;;  %304 = vst [vmem:[#allocation2 + $0xa4] sm:$0x1] %v303_v4 }
 0x21c   : > { %v11851_v40 = vpop.f32.mrb[139].mxu1 }
 0x21d   : > { %v13370_v31 = vadd.f32 %v11849_v3, %v18670_v21  ;;  %v11852_v13 = vadd.f32 %v11851_v40, %v11850_v57  ;;  %v291_v57 = vsel %vm15575_vm6, 0, %v290_v56  ;;  %v13906_v40 = vld [vmem:[%s18550_s1 + $0xf8] sm:$0xff]  }
 0x21e   : > { %292 = vst [vmem:[#allocation2 + $0x74] sm:$0x1] %v291_v57  ;;  %12034 = vmatpush3.bf16.msra.mxu0 %v13906_v40  ;;  %v15767_v40 = vld [vmem:[%s18552_s3] ss:$0 sm:$0xff] }
 0x21f   : > { %v13376_v33 = vadd.f32 %v11852_v13, %v18671_v10  ;;  %v15699_v36 = vadd.f32 %v13370_v31, %v15485_v60  ;;  %v299_v13 = vld [vmem:[#allocation2 + $0x98] sm:$0x1] }
 0x220   : > { %v300_v10 = vsel %vm15575_vm6, 0, %v299_v13 }
 0x221   : > { %v11853_v24 = vpop.f32.mrb[140].mxu1  ;;  %v15704_v50 = vadd.f32 %v13376_v33, %v15490_v34  ;;  %v235_v34 = vsel %vm15438_vm4, 0, %v234_v32  ;;  %301 = vst [vmem:[#allocation2 + $0x98] sm:$0x1] %v300_v10  ;;  %v296_v33 = vld [vmem:[#allocation2 + $0x8c] sm:$0x1] }
 0x222   : > { %v11854_v55 = vpop.f32.mrb[141].mxu1  ;;  %236 = vst [vmem:[#allocation2 + $0x6c] sm:$0x1] %v235_v34  ;;  %v297_v28 = vsel %vm15575_vm6, 0, %v296_v33  ;;  %v311_v32 = vld [vmem:[#allocation2 + $0xc8] sm:$0x1] }
 0x223   : > { %v11855_v15 = vadd.f32 %v11854_v55, %v11853_v24  ;;  %v11856_v20 = vpop.f32.mrb[142].mxu1  ;;  %298 = vst [vmem:[#allocation2 + $0x8c] sm:$0x1] %v297_v28  ;;  %v250_v24 = vsel %vm15438_vm4, 0, %v249_v2  ;;  %v246_v55 = vld [vmem:[#allocation2 + $0x9c] sm:$0x1] }
 0x224   : > { %v11857_v25 = vpop.f32.mrb[143].mxu1  ;;  %251 = vst [vmem:[#allocation2 + $0xa8] sm:$0x1] %v250_v24  ;;  %v308_v34 = vld [vmem:[#allocation2 + $0xbc] sm:$0x1]  ;;  %v312_v29 = vsel %vm15575_vm6, 0, %v311_v32 }
 0x225   : > { %v13367_v60 = vadd.f32 %v11855_v15, %v18672_v6  ;;  %v11858_v22 = vadd.f32 %v11857_v25, %v11856_v20  ;;  %v247_v15 = vsel %vm15438_vm4, 0, %v246_v55  ;;  %v305_v20 = vld [vmem:[#allocation2 + $0xb0] sm:$0x1]  ;;  %v255_v6 = vld [vmem:[#allocation2 + $0xc0] sm:$0x1]  ;;  %v10887_v2 = vld [vmem:[%s14408_s6 + $0x31] sm:$0xff] }
 0x226   : > { %248 = vst [vmem:[#allocation2 + $0x9c] sm:$0x1] %v247_v15  ;;  %v306_v25 = vsel %vm15575_vm6, 0, %v305_v20  ;;  %313 = vst [vmem:[#allocation2 + $0xc8] sm:$0x1] %v312_v29  ;;  %v10885_v15 = vld [vmem:[%s14408_s6 + $0x19] sm:$0xff] }
 0x227   : > { %v13373_v48 = vadd.f32 %v11858_v22, %v18673_v45  ;;  %v15718_v14 = vadd.f32 %v13367_v60, %v15506_v44  ;;  %v243_v44 = vld [vmem:[#allocation2 + $0x90] sm:$0x1]  ;;  %307 = vst [vmem:[#allocation2 + $0xb0] sm:$0x1] %v306_v25  ;;  %v256_v60 = vsel %vm15438_vm4, 0, %v255_v6  ;;  %v309_v45 = vsel %vm15575_vm6, 0, %v308_v34 }
 0x228   : > { %v244_v21 = vsel %vm15438_vm4, 0, %v243_v44  ;;  %257 = vst [vmem:[#allocation2 + $0xc0] sm:$0x1] %v256_v60  ;;  %v252_v22 = vld [vmem:[#allocation2 + $0xb4] sm:$0x1]  ;;  %v10888_v25 = vld [vmem:[%s14408_s6 + $0x39] sm:$0xff] }
 0x229   : > { %v15721_v3 = vadd.f32 %v13373_v48, %v15511_v61  ;;  %245 = vst [vmem:[#allocation2 + $0x90] sm:$0x1] %v244_v21  ;;  %v240_v61 = vld [vmem:[#allocation2 + $0x84] sm:$0x1]  ;;  %v253_v41 = vsel %vm15438_vm4, 0, %v252_v22 }
 0x22a   : > { %v241_v31 = vsel %vm15438_vm4, 0, %v240_v61  ;;  %254 = vst [vmem:[#allocation2 + $0xb4] sm:$0x1] %v253_v41  ;;  %310 = vst [vmem:[#allocation2 + $0xbc] sm:$0x1] %v309_v45  ;;  %v10886_v60 = vld [vmem:[%s14408_s6 + $0x21] sm:$0xff] }
 0x22b   : > { %242 = vst [vmem:[#allocation2 + $0x84] sm:$0x1] %v241_v31  ;;  %v15761_v48 = vld [vmem:[%s18551_s2] ss:$0 sm:$0xff] }
 0x269   : > { %v12949_v9 = vpop.f32.mrb[48].mxu1 }
 0x26a   : > { %v13285_v56 = vadd.f32 %v15482_v11, %v12949_v9  ;;  %v2892_v57 = vpop.f32.mrb[49].mxu1 }
 0x26b   : > { %v13288_v44 = vadd.f32 %v15459_v52, %v2892_v57  ;;  %v12950_v21 = vpop.f32.mrb[50].mxu1 }
 0x26c   : > { %v3059_v61 = vmul.f32 %v13285_v56, %v15761_v48  ;;  %v13291_v31 = vadd.f32 %v15488_v63, %v12950_v21  ;;  %v2895_v13 = vpop.f32.mrb[51].mxu1 }
 0x26d   : > { %v3057_v10 = vmul.f32 %v13288_v44, %v15761_v48  ;;  %v13294_v11 = vadd.f32 %v15468_v16, %v2895_v13 }
 0x26e   : > { %v3097_v33 = vadd.f32 %v15767_v40, %v3059_v61  ;;  %v3060_v28 = vmul.f32 %v13291_v31, %v15761_v48 }
 0x26f   : > { %v3095_v24 = vadd.f32 %v15767_v40, %v3057_v10  ;;  %v3058_v52 = vmul.f32 %v13294_v11, %v15761_v48 }
 0x270   : > { %v3129_v55 = vmax.f32 %v3097_v33, 0.0  ;;  %v3098_v20 = vadd.f32 %v15767_v40, %v3060_v28  ;;  %v3651_v28 = vld [vmem:[#allocation2 + $0x18] sm:$0xf] }
 0x271   : > { %v3127_v63 = vmax.f32 %v3095_v24, 0.0  ;;  %v3096_v17 = vadd.f32 %v15767_v40, %v3058_v52  ;;  %v12953_v4 = vpop.f32.mrb[52].mxu1 }
 0x272   : > { %v3193_v16 = vadd.f32 %v10887_v2, %v3129_v55  ;;  %v3130_v6 = vmax.f32 %v3098_v20, 0.0  ;;  %v13297_v22 = vadd.f32 %v15522_v47, %v12953_v4  ;;  %v2908_v41 = vpop.f32.mrb[53].mxu1  ;;  %v10891_v55 = vld [vmem:[%s14408_s6 + $0x61] sm:$0xff] }
 0x273   : > { %v3191_v32 = vadd.f32 %v10885_v15, %v3127_v63  ;;  %v3128_v34 = vmax.f32 %v3096_v17, 0.0  ;;  %v13300_v29 = vadd.f32 %v15502_v12, %v2908_v41  ;;  %v12954_v45 = vpop.f32.mrb[54].mxu1  ;;  %v10889_v17 = vld [vmem:[%s14408_s6 + $0x49] sm:$0xff] }
 0x274   : > { %v11548_v9 = vpack.c.bf16 %v3193_v16, %v3193_v16  ;;  %v3194_v56 = vadd.f32 %v10888_v25, %v3130_v6  ;;  %v3063_v57 = vmul.f32 %v13297_v22, %v15761_v48  ;;  %v15788_v44 = vadd.f32 %v15525_v62, %v12954_v45  ;;  %v2911_v21 = vpop.f32.mrb[55].mxu1 }
 0x275   : > { %v11546_v61 = vpack.c.bf16 %v3191_v32, %v3191_v32  ;;  %v3192_v31 = vadd.f32 %v10886_v60, %v3128_v34  ;;  %v3061_v47 = vmul.f32 %v13300_v29, %v15761_v48  ;;  %v13306_v13 = vadd.f32 %v15509_v26, %v2911_v21  ;;  %v3644_v34 = vld [vmem:[#allocation2 + $0xc] sm:$0xf] }
 0x276   : > { %v3339_v10 = vshrl.u32 %v11548_v9, 16  ;;  %v3342_v11 = vshll.u32 %v11548_v9, 16  ;;  %v11549_v12 = vpack.c.bf16 %v3194_v56, %v3194_v56  ;;  %v3101_v33 = vadd.f32 %v15767_v40, %v3063_v57 }
 0x277   : > { %v3322_v2 = vshrl.u32 %v11546_v61, 16  ;;  %v3325_v24 = vshll.u32 %v11546_v61, 16  ;;  %v11547_v52 = vpack.c.bf16 %v3192_v31, %v3192_v31  ;;  %v3099_v62 = vadd.f32 %v15767_v40, %v3061_v47  ;;  %v3655_v61 = vld [vmem:[#allocation2 + $0x20] sm:$0x1] }
 0x278   : > { %v3341_v15 = vrot.slane %v3339_v10, 7  ;;  %v3347_v20 = vshrl.u32 %v11549_v12, 16  ;;  %v3350_v63 = vshll.u32 %v11549_v12, 16  ;;  %v3133_v25 = vmax.f32 %v3101_v33, 0.0 }
 0x279   : > { %v3324_v4 = vrot.slane %v3322_v2, 7  ;;  %v3330_v16 = vshrl.u32 %v11547_v52, 16  ;;  %v3333_v6 = vshll.u32 %v11547_v52, 16  ;;  %v3131_v60 = vmax.f32 %v3099_v62, 0.0  ;;  %v12957_v22 = vpop.f32.mrb[56].mxu1 }
 0x27a   : > { %v3344_v41 = vor.u32 %v3342_v11, %v3341_v15  ;;  %v3345_v32 = vrot.slane %v3341_v15, 4  ;;  %v3349_v29 = vrot.slane %v3347_v20, 7  ;;  %v3197_v45 = vadd.f32 %v10891_v55, %v3133_v25  ;;  %v2924_v9 = vpop.f32.mrb[57].mxu1  ;;  %v3648_v2 = vld [vmem:[#allocation2 + $0x14] sm:$0x1] }
 0x27b   : > { %v3327_v56 = vor.u32 %v3325_v24, %v3324_v4  ;;  %v3328_v57 = vrot.slane %v3324_v4, 4  ;;  %v3332_v31 = vrot.slane %v3330_v16, 7  ;;  %v3195_v47 = vadd.f32 %v10889_v17, %v3131_v60  ;;  %v12958_v10 = vpop.f32.mrb[58].mxu1 }
 0x27c   : > { %v3652_v11 = vsel %vm15798_vm9, %v3344_v41, %v3651_v28  ;;  %v3352_v12 = vor.u32 %v3350_v63, %v3349_v29  ;;  %v3354_v33 = vrot.slane %v3349_v29, 4  ;;  %v11552_v52 = vpack.c.bf16 %v3197_v45, %v3197_v45  ;;  %v2927_v55 = vpop.f32.mrb[59].mxu1  ;;  %v3665_v45 = vld [vmem:[#allocation2 + $0x30] sm:$0xf] }
 0x27d   : > { %3653 = vst [vmem:[#allocation2 + $0x18] sm:$0xf] %v3652_v11  ;;  %v3645_v24 = vsel %vm15798_vm9, %v3327_v56, %v3644_v34  ;;  %v3335_v62 = vor.u32 %v3333_v6, %v3332_v31  ;;  %v3337_v15 = vrot.slane %v3332_v31, 4  ;;  %v11550_v20 = vpack.c.bf16 %v3195_v47, %v3195_v47 }
 0x27e   : > { %3646 = vst [vmem:[#allocation2 + $0xc] sm:$0xf] %v3645_v24  ;;  %v3353_v25 = vsel %vm15804_vm10, %v3345_v32, %v3352_v12  ;;  %v3656_v17 = vsel %vm15438_vm4, %v3354_v33, %v3655_v61  ;;  %v3373_v28 = vshrl.u32 %v11552_v52, 16  ;;  %v3376_v63 = vshll.u32 %v11552_v52, 16  ;;  %v3658_v12 = vld [vmem:[#allocation2 + $0x24] sm:$0xf] }
 0x27f   : > { %3654 = vst [vmem:[#allocation2 + $0x1c] sm:$0xf] %v3353_v25  ;;  %3657 = vst [vmem:[#allocation2 + $0x20] sm:$0x1] %v3656_v17  ;;  %v3336_v4 = vsel %vm15804_vm10, %v3328_v57, %v3335_v62  ;;  %v3649_v16 = vsel %vm15438_vm4, %v3337_v15, %v3648_v2  ;;  %v3356_v6 = vshrl.u32 %v11550_v20, 16  ;;  %v3359_v60 = vshll.u32 %v11550_v20, 16 }
 0x280   : > { %3647 = vst [vmem:[#allocation2 + $0x10] sm:$0xf] %v3336_v4  ;;  %3650 = vst [vmem:[#allocation2 + $0x14] sm:$0x1] %v3649_v16  ;;  %v15820_v41 = vrot.slane %v3373_v28, 7  ;;  %v3064_v32 = vmul.f32 %v15788_v44, %v15761_v48  ;;  %v3062_v34 = vmul.f32 %v13306_v13, %v15761_v48  ;;  %v13309_v29 = vadd.f32 %v15539_v23, %v12957_v22  ;;  %v10895_v17 = vld [vmem:[%s14408_s6 + $0x91] sm:$0xff] }
 0x281   : > { %v15826_v56 = vrot.slane %v3356_v6, 7  ;;  %v13312_v57 = vadd.f32 %v15531_v49, %v2924_v9  ;;  %v13315_v61 = vadd.f32 %v15542_v27, %v12958_v10  ;;  %v13318_v31 = vadd.f32 %v15534_v37, %v2927_v55  ;;  %v12961_v47 = vpop.f32.mrb[60].mxu1  ;;  %v10892_v9 = vld [vmem:[%s14408_s6 + $0x69] sm:$0xff]  ;;  %v10890_v27 = vld [vmem:[%s14408_s6 + $0x51] sm:$0xff]  ;;  %v10893_v6 = vld [vmem:[%s14408_s6 + $0x79] sm:$0xff] }
 0x282   : > { %v3378_v11 = vor.u32 %v3376_v63, %v15820_v41  ;;  %v3379_v44 = vrot.slane %v15820_v41, 4  ;;  %v3102_v13 = vadd.f32 %v15767_v40, %v3064_v32  ;;  %v3100_v23 = vadd.f32 %v15767_v40, %v3062_v34  ;;  %v2940_v22 = vpop.f32.mrb[61].mxu1 }
 0x283   : > { %v3361_v33 = vor.u32 %v3359_v60, %v15826_v56  ;;  %v3362_v49 = vrot.slane %v15826_v56, 4  ;;  %v3067_v37 = vmul.f32 %v13309_v29, %v15761_v48  ;;  %v3065_v10 = vmul.f32 %v13312_v57, %v15761_v48  ;;  %v15841_v2 = vpop.f32.mrb[62].mxu1 }
 0x284   : > { %v3666_v52 = vsel %vm15798_vm9, %v3378_v11, %v3665_v45  ;;  %v3134_v55 = vmax.f32 %v3102_v13, 0.0  ;;  %v3132_v24 = vmax.f32 %v3100_v23, 0.0  ;;  %v3068_v62 = vmul.f32 %v13315_v61, %v15761_v48  ;;  %v15846_v15 = vpop.f32.mrb[63].mxu1  ;;  %v10896_v13 = vld [vmem:[%s14408_s6 + $0x99] sm:$0xff]  ;;  %v10894_v23 = vld [vmem:[%s14408_s6 + $0x81] sm:$0xff] }
 0x285   : > { %3667 = vst [vmem:[#allocation2 + $0x30] sm:$0xf] %v3666_v52  ;;  %v3659_v20 = vsel %vm15798_vm9, %v3361_v33, %v3658_v12  ;;  %v3105_v25 = vadd.f32 %v15767_v40, %v3067_v37  ;;  %v3103_v28 = vadd.f32 %v15767_v40, %v3065_v10  ;;  %v3066_v63 = vmul.f32 %v13318_v31, %v15761_v48 }
 0x286   : > { %3660 = vst [vmem:[#allocation2 + $0x24] sm:$0xf] %v3659_v20  ;;  %v3198_v4 = vadd.f32 %v10892_v9, %v3134_v55  ;;  %v3196_v16 = vadd.f32 %v10890_v27, %v3132_v24  ;;  %v3106_v60 = vadd.f32 %v15767_v40, %v3068_v62  ;;  %v13321_v32 = vadd.f32 %v15555_v7, %v12961_v47 }
 0x287   : > { %v3137_v34 = vmax.f32 %v3105_v25, 0.0  ;;  %v3135_v29 = vmax.f32 %v3103_v28, 0.0  ;;  %v3104_v45 = vadd.f32 %v15767_v40, %v3066_v63  ;;  %v13324_v57 = vadd.f32 %v15547_v8, %v2940_v22  ;;  %v3669_v8 = vld [vmem:[#allocation2 + $0x38] sm:$0x1]  ;;  %v3662_v22 = vld [vmem:[#allocation2 + $0x2c] sm:$0x1] }
 0x288   : > { %v11553_v61 = vpack.c.bf16 %v3198_v4, %v3198_v4  ;;  %v11551_v11 = vpack.c.bf16 %v3196_v16, %v3196_v16  ;;  %v3138_v12 = vmax.f32 %v3106_v60, 0.0  ;;  %v3071_v31 = vmul.f32 %v13321_v32, %v15761_v48 }
 0x289   : > { %v3201_v33 = vadd.f32 %v10895_v17, %v3137_v34  ;;  %v3199_v9 = vadd.f32 %v10893_v6, %v3135_v29  ;;  %v3136_v27 = vmax.f32 %v3104_v45, 0.0  ;;  %v3069_v37 = vmul.f32 %v13324_v57, %v15761_v48  ;;  %v15863_v10 = vpop.f32.mrb[64].mxu1 }
 0x28a   : > { %v3381_v7 = vshrl.u32 %v11553_v61, 16  ;;  %v3384_v47 = vshll.u32 %v11553_v61, 16  ;;  %v3364_v52 = vshrl.u32 %v11551_v11, 16  ;;  %v3367_v55 = vshll.u32 %v11551_v11, 16  ;;  %v15865_v24 = vpop.f32.mrb[65].mxu1 }
 0x28b   : > { %v11556_v62 = vpack.c.bf16 %v3201_v33, %v3201_v33  ;;  %v11554_v20 = vpack.c.bf16 %v3199_v9, %v3199_v9  ;;  %v3202_v25 = vadd.f32 %v10896_v13, %v3138_v12  ;;  %v3200_v28 = vadd.f32 %v10894_v23, %v3136_v27  ;;  %v15867_v63 = vpop.f32.mrb[66].mxu1 }
 0x28c   : > { %v3383_v17 = vrot.slane %v3381_v7, 7  ;;  %v3366_v4 = vrot.slane %v3364_v52, 7  ;;  %v3109_v16 = vadd.f32 %v15767_v40, %v3071_v31  ;;  %v3107_v6 = vadd.f32 %v15767_v40, %v3069_v37  ;;  %v15871_v60 = vpop.f32.mrb[67].mxu1  ;;  %v3672_v52 = vld [vmem:[#allocation2 + $0x3c] sm:$0xf] }
 0x28d   : > { %v3407_v32 = vshrl.u32 %v11556_v62, 16  ;;  %v3410_v34 = vshll.u32 %v11556_v62, 16  ;;  %v3390_v29 = vshrl.u32 %v11554_v20, 16  ;;  %v3393_v45 = vshll.u32 %v11554_v20, 16 }
 0x28e   : > { %v3386_v57 = vor.u32 %v3384_v47, %v3383_v17  ;;  %v3388_v61 = vrot.slane %v3383_v17, 4  ;;  %v3369_v11 = vor.u32 %v3367_v55, %v3366_v4  ;;  %v3371_v33 = vrot.slane %v3366_v4, 4  ;;  %v3679_v47 = vld [vmem:[#allocation2 + $0x48] sm:$0xf] }
 0x28f   : > { %v3409_v12 = vrot.slane %v3407_v32, 7  ;;  %v3392_v13 = vrot.slane %v3390_v29, 7  ;;  %v11557_v23 = vpack.c.bf16 %v3202_v25, %v3202_v25  ;;  %v11555_v9 = vpack.c.bf16 %v3200_v28, %v3200_v28  ;;  %v10897_v17 = vld [vmem:[%s14408_s6 + $0xa9] sm:$0xff] }
 0x290   : > { %v3387_v31 = vsel %vm15804_vm10, %v3379_v44, %v3386_v57  ;;  %v3670_v27 = vsel %vm15438_vm4, %v3388_v61, %v3669_v8  ;;  %v3370_v37 = vsel %vm15804_vm10, %v3362_v49, %v3369_v11  ;;  %v3663_v7 = vsel %vm15438_vm4, %v3371_v33, %v3662_v22  ;;  %v10899_v8 = vld [vmem:[%s14408_s6 + $0xc1] sm:$0xff] }
 0x291   : > { %3668 = vst [vmem:[#allocation2 + $0x34] sm:$0xf] %v3387_v31  ;;  %3671 = vst [vmem:[#allocation2 + $0x38] sm:$0x1] %v3670_v27  ;;  %v3412_v41 = vor.u32 %v3410_v34, %v3409_v12  ;;  %v3413_v44 = vrot.slane %v3409_v12, 4  ;;  %v3395_v55 = vor.u32 %v3393_v45, %v3392_v13  ;;  %v3396_v62 = vrot.slane %v3392_v13, 4 }
 0x292   : > { %3661 = vst [vmem:[#allocation2 + $0x28] sm:$0xf] %v3370_v37  ;;  %3664 = vst [vmem:[#allocation2 + $0x2c] sm:$0x1] %v3663_v7  ;;  %v15886_v20 = vpop.f32.mrb[68].mxu1  ;;  %v3415_v56 = vshrl.u32 %v11557_v23, 16  ;;  %v13327_v33 = vadd.f32 %v15558_v58, %v15841_v2  ;;  %v13330_v12 = vadd.f32 %v15550_v42, %v15846_v15 }
 0x293   : > { %v3418_v25 = vshll.u32 %v11557_v23, 16  ;;  %v3398_v49 = vshrl.u32 %v11555_v9, 16  ;;  %v3401_v28 = vshll.u32 %v11555_v9, 16  ;;  %v15889_v22 = vpop.f32.mrb[69].mxu1  ;;  %v3680_v4 = vsel %vm15798_vm9, %v3412_v41, %v3679_v47  ;;  %v3683_v34 = vld [vmem:[#allocation2 + $0x50] sm:$0x1] }
 0x294   : > { %v3673_v32 = vsel %vm15798_vm9, %v3395_v55, %v3672_v52  ;;  %v3141_v29 = vmax.f32 %v3109_v16, 0.0  ;;  %v3139_v45 = vmax.f32 %v3107_v6, 0.0  ;;  %v15895_v57 = vpop.f32.mrb[70].mxu1  ;;  %3681 = vst [vmem:[#allocation2 + $0x48] sm:$0xf] %v3680_v4  ;;  %v3417_v61 = vrot.slane %v3415_v56, 7 }
 0x295   : > { %3674 = vst [vmem:[#allocation2 + $0x3c] sm:$0xf] %v3673_v32  ;;  %v3400_v11 = vrot.slane %v3398_v49, 7  ;;  %v15901_v13 = vpop.f32.mrb[71].mxu1  ;;  %v3676_v23 = vld [vmem:[#allocation2 + $0x44] sm:$0x1]  ;;  %v13333_v16 = vadd.f32 %v15586_v35, %v15863_v10  ;;  %v13336_v6 = vadd.f32 %v15566_v51, %v15865_v24  ;;  %v3072_v42 = vmul.f32 %v13327_v33, %v15761_v48 }
 0x296   : > { %v3205_v9 = vadd.f32 %v10899_v8, %v3141_v29  ;;  %v3203_v31 = vadd.f32 %v10897_v17, %v3139_v45  ;;  %v3420_v27 = vor.u32 %v3418_v25, %v3417_v61  ;;  %v3422_v37 = vrot.slane %v3417_v61, 4  ;;  %v3693_v56 = vld [vmem:[#allocation2 + $0x60] sm:$0xf]  ;;  %v3686_v25 = vld [vmem:[#allocation2 + $0x54] sm:$0xf] }
 0x297   : > { %v3403_v7 = vor.u32 %v3401_v28, %v3400_v11  ;;  %v3405_v47 = vrot.slane %v3400_v11, 4  ;;  %v3070_v2 = vmul.f32 %v13330_v12, %v15761_v48  ;;  %v3110_v49 = vadd.f32 %v15767_v40, %v3072_v42  ;;  %v10898_v28 = vld [vmem:[%s14408_s6 + $0xb1] sm:$0xff] }
 0x298   : > { %v11560_v52 = vpack.c.bf16 %v3205_v9, %v3205_v9  ;;  %v11558_v58 = vpack.c.bf16 %v3203_v31, %v3203_v31  ;;  %v3421_v15 = vsel %vm15804_vm10, %v3413_v44, %v3420_v27  ;;  %v3684_v35 = vsel %vm15438_vm4, %v3422_v37, %v3683_v34  ;;  %v10900_v44 = vld [vmem:[%s14408_s6 + $0xc9] sm:$0xff]  ;;  %v10903_v29 = vld [vmem:[%s14408_s6 + $0xf1] sm:$0xff] }
 0x299   : > { %v3404_v51 = vsel %vm15804_vm10, %v3396_v62, %v3403_v7  ;;  %v3677_v10 = vsel %vm15438_vm4, %v3405_v47, %v3676_v23  ;;  %3682 = vst [vmem:[#allocation2 + $0x4c] sm:$0xf] %v3421_v15  ;;  %3685 = vst [vmem:[#allocation2 + $0x50] sm:$0x1] %v3684_v35  ;;  %v3108_v62 = vadd.f32 %v15767_v40, %v3070_v2  ;;  %v15934_v33 = vpop.f32.mrb[72].mxu1  ;;  %v3142_v12 = vmax.f32 %v3110_v49, 0.0 }
 0x29a   : > { %3675 = vst [vmem:[#allocation2 + $0x40] sm:$0xf] %v3404_v51  ;;  %3678 = vst [vmem:[#allocation2 + $0x44] sm:$0x1] %v3677_v10  ;;  %v3441_v24 = vshrl.u32 %v11560_v52, 16  ;;  %v3444_v41 = vshll.u32 %v11560_v52, 16  ;;  %v3075_v17 = vmul.f32 %v13333_v16, %v15761_v48  ;;  %v3073_v4 = vmul.f32 %v13336_v6, %v15761_v48 }
 0x29b   : > { %v3424_v55 = vshrl.u32 %v11558_v58, 16  ;;  %v3427_v8 = vshll.u32 %v11558_v58, 16  ;;  %v13339_v45 = vadd.f32 %v15589_v38, %v15867_v63  ;;  %v13342_v61 = vadd.f32 %v15569_v18, %v15871_v60  ;;  %v15932_v11 = vld [vmem:[#allocation2 + $0x14] ss:$0 sps:$4 sm:$0x11]   ;;  %v10901_v16 = vld [vmem:[%s14408_s6 + $0xd9] sm:$0xff] }
 0x29c   : > { %v15923_v32 = vrot.slane %v3441_v24, 7  ;;  %v3140_v23 = vmax.f32 %v3108_v62, 0.0  ;;  %v3113_v9 = vadd.f32 %v15767_v40, %v3075_v17  ;;  %v3111_v31 = vadd.f32 %v15767_v40, %v3073_v4  ;;  %v15939_v6 = vpop.f32.mrb[73].mxu1  ;;  %v15945_v60 = vld [vmem:[#allocation2 + $0xc] sm:$0xff]  }
 0x29d   : > { %v15925_v34 = vrot.slane %v3424_v55, 7  ;;  %v15947_v37 = vpop.f32.mrb[74].mxu1  ;;  %v3206_v7 = vadd.f32 %v10900_v44, %v3142_v12  ;;  %v3076_v35 = vmul.f32 %v13339_v45, %v15761_v48  ;;  %v3074_v51 = vmul.f32 %v13342_v61, %v15761_v48  ;;  %v3690_v45 = vld [vmem:[#allocation2 + $0x5c] sm:$0x1] }
 0x29e   : > { %v3446_v27 = vor.u32 %v3444_v41, %v15923_v32  ;;  %v3447_v38 = vrot.slane %v15923_v32, 4  ;;  %v3204_v47 = vadd.f32 %v10898_v28, %v3140_v23  ;;  %v3145_v52 = vmax.f32 %v3113_v9, 0.0  ;;  %v15949_v42 = vpop.f32.mrb[75].mxu1  ;;  %v10904_v32 = vld [vmem:[%s14408_s6 + $0xf9] sm:$0xff]  ;;  %v10902_v9 = vld [vmem:[%s14408_s6 + $0xe1] sm:$0xff] }
 0x29f   : > { %v3429_v63 = vor.u32 %v3427_v8, %v15925_v34  ;;  %v3430_v18 = vrot.slane %v15925_v34, 4  ;;  %v3143_v58 = vmax.f32 %v3111_v31, 0.0  ;;  %v11561_v10 = vpack.c.bf16 %v3206_v7, %v3206_v7  ;;  %v15957_v8 = vld [vmem:[#allocation2 + $0x18] sm:$0xff]   ;;  %v3697_v34 = vld [vmem:[#allocation2 + $0x68] sm:$0x1] }
 0x2a0   : > { %v3694_v2 = vsel %vm15798_vm9, %v3446_v27, %v3693_v56  ;;  %v11559_v24 = vpack.c.bf16 %v3204_v47, %v3204_v47  ;;  %v3209_v41 = vadd.f32 %v10903_v29, %v3145_v52  ;;  %v3114_v44 = vadd.f32 %v15767_v40, %v3076_v35  ;;  %v15968_v7 = vld [vmem:[#allocation2 + $0x20] ss:$0 sps:$4 sm:$0x11]  }
 0x2a1   : > { %v3687_v15 = vsel %vm15798_vm9, %v3429_v63, %v3686_v25  ;;  %3695 = vst [vmem:[#allocation2 + $0x60] sm:$0xf] %v3694_v2  ;;  %v3207_v55 = vadd.f32 %v10901_v16, %v3143_v58  ;;  %v3112_v56 = vadd.f32 %v15767_v40, %v3074_v51  ;;  %v4668_v25 = vrot.slane %v15945_v60, 1  ;;  %v15965_v31 = vpop.f32.mrb[76].mxu1 }
 0x2a2   : > { %3688 = vst [vmem:[#allocation2 + $0x54] sm:$0xf] %v3687_v15  ;;  %v4669_v49 = vrot.slane %v15932_v11, 1  ;;  %v3449_v62 = vshrl.u32 %v11561_v10, 16  ;;  %v3452_v28 = vshll.u32 %v11561_v10, 16  ;;  %v3432_v17 = vshrl.u32 %v11559_v24, 16 }
 0x2a3   : > { %v3435_v4 = vshll.u32 %v11559_v24, 16  ;;  %v11564_v29 = vpack.c.bf16 %v3209_v41, %v3209_v41  ;;  %v11562_v61 = vpack.c.bf16 %v3207_v55, %v3207_v55  ;;  %v3146_v12 = vmax.f32 %v3114_v44, 0.0  ;;  %v15971_v35 = vpop.f32.mrb[77].mxu1  ;;  %v3707_v55 = vld [vmem:[#allocation2 + $0x78] sm:$0xf] }
 0x2a4   : > { %v3144_v23 = vmax.f32 %v3112_v56, 0.0  ;;  %v3451_v16 = vrot.slane %v3449_v62, 7  ;;  %v3434_v27 = vrot.slane %v3432_v17, 7  ;;  %v4670_v63 = vsel %vm640_vm0, %v4668_v25, %v4669_v49  ;;  %v3700_v44 = vld [vmem:[#allocation2 + $0x6c] sm:$0xf]  ;;  %v15973_v56 = vpop.f32.mrb[78].mxu1 }
 0x2a5   : > { %v4671_v47 = vrot.slane %v15957_v8, 1  ;;  %v3475_v52 = vshrl.u32 %v11564_v29, 16  ;;  %v3478_v58 = vshll.u32 %v11564_v29, 16  ;;  %v3458_v2 = vshrl.u32 %v11562_v61, 16  ;;  %12995 = vmatprep.mubr.bf16.mxu1 %v4670_v63  ;;  %v15979_v29 = vpop.f32.mrb[79].mxu1 }
 0x2a6   : > { %v3461_v15 = vshll.u32 %v11562_v61, 16  ;;  %v3454_v51 = vor.u32 %v3452_v28, %v3451_v16  ;;  %v3456_v10 = vrot.slane %v3451_v16, 4  ;;  %v3437_v24 = vor.u32 %v3435_v4, %v3434_v27 }
 0x2a7   : > { %v3439_v41 = vrot.slane %v3434_v27, 4  ;;  %v15975_v25 = vrot.slane %v3475_v52, 7  ;;  %v15977_v49 = vrot.slane %v3458_v2, 7  ;;  %v3210_v62 = vadd.f32 %v10904_v32, %v3146_v12 }
 0x2a8   : > { %v3208_v17 = vadd.f32 %v10902_v9, %v3144_v23  ;;  %v3455_v61 = vsel %vm15804_vm10, %v3447_v38, %v3454_v51  ;;  %v3698_v28 = vsel %vm15438_vm4, %v3456_v10, %v3697_v34  ;;  %v3438_v4 = vsel %vm15804_vm10, %v3430_v18, %v3437_v24  ;;  %v13974_v34 = vld [vmem:[%s18550_s1 + $0x40] sm:$0xff]  }
 0x2a9   : > { %v3691_v16 = vsel %vm15438_vm4, %v3439_v41, %v3690_v45  ;;  %3696 = vst [vmem:[#allocation2 + $0x64] sm:$0xf] %v3455_v61  ;;  %3699 = vst [vmem:[#allocation2 + $0x68] sm:$0x1] %v3698_v28  ;;  %v3480_v32 = vor.u32 %v3478_v58, %v15975_v25  ;;  %v3481_v12 = vrot.slane %v15975_v25, 4  ;;  %v3463_v23 = vor.u32 %v3461_v15, %v15977_v49  ;;  %v13911_v15 = vld [vmem:[%s18550_s1 + $0x88] sm:$0xff]  }
 0x2aa   : > { %3689 = vst [vmem:[#allocation2 + $0x58] sm:$0xf] %v3438_v4  ;;  %3692 = vst [vmem:[#allocation2 + $0x5c] sm:$0x1] %v3691_v16  ;;  %v3464_v38 = vrot.slane %v15977_v49, 4  ;;  %v11565_v18 = vpack.c.bf16 %v3210_v62, %v3210_v62  ;;  %v11563_v9 = vpack.c.bf16 %v3208_v17, %v3208_v17  ;;  %v4672_v45 = vrot.slane %v15968_v7, 1  ;;  %12155 = vmatprep.subr.bf16.mxu0 %v13974_v34 }
 0x2ab   : > { %v13345_v27 = vadd.f32 %v15629_v1, %v15886_v20  ;;  %v3708_v63 = vsel %vm15798_vm9, %v3480_v32, %v3707_v55  ;;  %v3701_v52 = vsel %vm15798_vm9, %v3463_v23, %v3700_v44  ;;  %v4461_v58 = vshrl.u32 %v15945_v60, 16  ;;  %v3711_v24 = vld [vmem:[#allocation2 + $0x80] sm:$0x1]  ;;  %v3704_v41 = vld [vmem:[#allocation2 + $0x74] sm:$0x1]  ;;  %v10907_v61 = vld [vmem:[%s14408_s6 + $0x121] sm:$0xff] }
 0x2ac   : > { %v4463_v2 = vshll.u32 %v15945_v60, 16  ;;  %3709 = vst [vmem:[#allocation2 + $0x78] sm:$0xf] %v3708_v63  ;;  %3702 = vst [vmem:[#allocation2 + $0x6c] sm:$0xf] %v3701_v52  ;;  %v3483_v51 = vshrl.u32 %v11565_v18, 16  ;;  %v4673_v55 = vsel %vm640_vm0, %v4671_v47, %v4672_v45  ;;  %v13348_v28 = vadd.f32 %v15609_v5, %v15889_v22 }
 0x2ad   : > { %v3486_v1 = vshll.u32 %v11565_v18, 16  ;;  %v3466_v20 = vshrl.u32 %v11563_v9, 16  ;;  %v3469_v10 = vshll.u32 %v11563_v9, 16  ;;  %v3079_v44 = vmul.f32 %v13345_v27, %v15761_v48  ;;  %12996 = vmatmul.mubr.bf16.vlgmr.msra.gmra.mrb[144].mxu1 %v4673_v55  ;;  %v16016_v16 = vld [vmem:[#allocation2 + $0x24] sm:$0xff]   ;;  %v13916_v47 = vld [vmem:[%s18550_s1 + $0x90] sm:$0xff]  }
 0x2ae   : > { %v4465_v25 = vrot.slane %v4463_v2, 1  ;;  %v4468_v49 = vshll.u32 %v15932_v11, 16  ;;  %v3485_v62 = vrot.slane %v3483_v51, 7  ;;  %v13351_v4 = vadd.f32 %v15640_v46, %v15895_v57  ;;  %v16018_v32 = vld [vmem:[#allocation2 + $0x2c] ss:$0 sps:$4 sm:$0x11]   ;;  %13028 = vmatpush3.bf16.msra.mxu1 %v15731_v53 }
 0x2af   : > { %v3468_v17 = vrot.slane %v3466_v20, 7  ;;  %v13975_v11 = vld [vmem:[%s18550_s1] sm:$0xff]   ;;  %v3117_v23 = vadd.f32 %v15767_v40, %v3079_v44  ;;  %v4473_v46 = vshrl.u32 %v15957_v8, 16  ;;  %13029 = vmatprep.subr.bf16.mxu1 %v13911_v15  ;;  %v3077_v63 = vmul.f32 %v13348_v28, %v15761_v48  ;;  %v16032_v52 = vld [vmem:[#allocation2 + $0x30] sm:$0xff]  }
 0x2b0   : > { %v4466_v5 = vor.u32 %v4465_v25, %v4461_v58  ;;  %v4470_v22 = vrot.slane %v4468_v49, 1  ;;  %v3488_v57 = vor.u32 %v3486_v1, %v3485_v62  ;;  %v3490_v34 = vrot.slane %v3485_v62, 4  ;;  %v13976_v58 = vld [vmem:[%s18550_s1 + $0x48] sm:$0xff]  }
 0x2b1   : > { %v3471_v18 = vor.u32 %v3469_v10, %v3468_v17  ;;  %v3473_v9 = vrot.slane %v3468_v17, 4  ;;  %v3149_v45 = vmax.f32 %v3117_v23, 0.0  ;;  %v3080_v53 = vmul.f32 %v13351_v4, %v15761_v48  ;;  %v10905_v10 = vld [vmem:[%s14408_s6 + $0x109] sm:$0xff] }
 0x2b2   : > { %v4471_v27 = vsel %vm399_vm1, %v4466_v5, %v4470_v22  ;;  %v3489_v2 = vsel %vm15804_vm10, %v3481_v12, %v3488_v57  ;;  %v3712_v51 = vsel %vm15438_vm4, %v3490_v34, %v3711_v24  ;;  %v10908_v55 = vld [vmem:[%s14408_s6 + $0x129] sm:$0xff]  ;;  %v3115_v25 = vadd.f32 %v15767_v40, %v3077_v63  ;;  %13030 = vmatpush3.bf16.msra.mxu1 %v13911_v15 }
 0x2b3   : > { %v3472_v1 = vsel %vm15804_vm10, %v3464_v38, %v3471_v18  ;;  %v3705_v20 = vsel %vm15438_vm4, %v3473_v9, %v3704_v41  ;;  %4956 = vmatprep.mubr.bf16.mxu0 %v4471_v27  ;;  %3710 = vst [vmem:[#allocation2 + $0x7c] sm:$0xf] %v3489_v2  ;;  %3713 = vst [vmem:[#allocation2 + $0x80] sm:$0x1] %v3712_v51  ;;  %v3213_v44 = vadd.f32 %v10907_v61, %v3149_v45  ;;  %v13980_v5 = vld [vmem:[%s18550_s1 + $0x8] sm:$0xff]   ;;  %v10906_v27 = vld [vmem:[%s14408_s6 + $0x111] sm:$0xff] }
 0x2b4   : > { %3703 = vst [vmem:[#allocation2 + $0x70] sm:$0xf] %v3472_v1  ;;  %3706 = vst [vmem:[#allocation2 + $0x74] sm:$0x1] %v3705_v20  ;;  %4957 = vmatmul.mubr.bf16.vlgmr.msra.gmra.mrb[80].mxu0 %v15945_v60  ;;  %v3118_v12 = vadd.f32 %v15767_v40, %v3080_v53  ;;  %v4475_v24 = vshll.u32 %v15957_v8, 16  ;;  %v4480_v41 = vshll.u32 %v15968_v7, 16  ;;  %v13354_v49 = vadd.f32 %v15618_v19, %v15901_v13 }
 0x2b5   : > { %v16051_v38 = vld [vmem:[#allocation2 + $0x38] ss:$0 sps:$4 sm:$0x11]   ;;  %v4674_v62 = vrot.slane %v16016_v16, 1  ;;  %v4675_v17 = vrot.slane %v16018_v32, 1  ;;  %13031 = vmatprep.subr.bf16.mxu1 %v13916_v47  ;;  %12156 = vmatpush3.bf16.msra.mxu0 %v13975_v11  ;;  %v11568_v61 = vpack.c.bf16 %v3213_v44, %v3213_v44  ;;  %v3147_v28 = vmax.f32 %v3115_v25, 0.0 }
 0x2b6   : > { %v13921_v60 = vld [vmem:[%s18550_s1 + $0x98] sm:$0xff]   ;;  %v3150_v4 = vmax.f32 %v3118_v12, 0.0  ;;  %v4477_v23 = vrot.slane %v4475_v24, 1  ;;  %12157 = vmatprep.subr.bf16.mxu0 %v13976_v58  ;;  %v4482_v7 = vrot.slane %v4480_v41, 1  ;;  %v3078_v15 = vmul.f32 %v13354_v49, %v15761_v48  ;;  %13032 = vmatpush3.bf16.msra.mxu1 %v13916_v47  ;;  %v3721_v18 = vld [vmem:[#allocation2 + $0x90] sm:$0xf] }
 0x2b7   : > { %v4676_v19 = vsel %vm640_vm0, %v4674_v62, %v4675_v17  ;;  %v4677_v13 = vrot.slane %v16032_v52, 1  ;;  %v3509_v22 = vshrl.u32 %v11568_v61, 16  ;;  %v3512_v57 = vshll.u32 %v11568_v61, 16  ;;  %13033 = vmatprep.subr.bf16.mxu1 %v13921_v60  ;;  %v13926_v47 = vld [vmem:[%s18550_s1 + $0xa0] sm:$0xff]  }
 0x2b8   : > { %v3211_v11 = vadd.f32 %v10905_v10, %v3147_v28  ;;  %v3214_v34 = vadd.f32 %v10908_v55, %v3150_v4  ;;  %12999 = vmatprep.mubr.bf16.mxu1 %v4676_v19  ;;  %v4478_v9 = vor.u32 %v4477_v23, %v4473_v46  ;;  %v3116_v45 = vadd.f32 %v15767_v40, %v3078_v15  ;;  %v13984_v40 = vld [vmem:[%s18550_s1 + $0x50] sm:$0xff]   ;;  %v16086_v24 = vld [vmem:[%s18552_s3] ss:$0 sm:$0xff]  ;;  %v3714_v62 = vld [vmem:[#allocation2 + $0x84] sm:$0xf] }
 0x2b9   : > { %v4678_v63 = vrot.slane %v16051_v38, 1  ;;  %v13357_v53 = vadd.f32 %v15680_v30, %v15934_v33  ;;  %12158 = vmatpush3.bf16.msra.mxu0 %v13980_v5  ;;  %v3511_v58 = vrot.slane %v3509_v22, 7  ;;  %v13360_v1 = vadd.f32 %v15657_v0, %v15939_v6  ;;  %v16097_v17 = vld [vmem:[%s18551_s2] ss:$0 sm:$0xff]  ;;  %v3725_v5 = vld [vmem:[#allocation2 + $0x98] sm:$0x1] }
 0x2ba   : > { %v11566_v2 = vpack.c.bf16 %v3211_v11, %v3211_v11  ;;  %v11569_v51 = vpack.c.bf16 %v3214_v34, %v3214_v34  ;;  %v4483_v46 = vsel %vm399_vm1, %v4478_v9, %v4482_v7  ;;  %v3148_v20 = vmax.f32 %v3116_v45, 0.0  ;;  %13034 = vmatpush3.bf16.msra.mxu1 %v13921_v60  ;;  %12159 = vmatprep.subr.bf16.mxu0 %v13984_v40  ;;  %v10911_v7 = vld [vmem:[%s14408_s6 + $0x151] sm:$0xff] }
 0x2bb   : > { %v4679_v30 = vsel %vm640_vm0, %v4677_v13, %v4678_v63  ;;  %v3083_v33 = vmul.f32 %v13357_v53, %v15761_v48  ;;  %v3514_v10 = vor.u32 %v3512_v57, %v3511_v58  ;;  %v3515_v55 = vrot.slane %v3511_v58, 4  ;;  %4964 = vmatprep.mubr.bf16.mxu0 %v4483_v46  ;;  %13035 = vmatprep.subr.bf16.mxu1 %v13926_v47  ;;  %v13985_v9 = vld [vmem:[%s18550_s1 + $0x10] sm:$0xff]   ;;  %v13986_v46 = vld [vmem:[%s18550_s1 + $0x58] sm:$0xff]  }
 0x2bc   : > { %v3492_v44 = vshrl.u32 %v11566_v2, 16  ;;  %v3495_v25 = vshll.u32 %v11566_v2, 16  ;;  %13000 = vmatmul.mubr.bf16.gmra.mrb[148].mxu1 %v4679_v30  ;;  %v3517_v0 = vshrl.u32 %v11569_v51, 16  ;;  %v3520_v6 = vshll.u32 %v11569_v51, 16  ;;  %4965 = vmatmul.mubr.bf16.gmra.mrb[84].mxu0 %v15957_v8  ;;  %v13931_v8 = vld [vmem:[%s18550_s1 + $0xa8] sm:$0xff]   ;;  %v13936_v58 = vld [vmem:[%s18550_s1 + $0xb0] sm:$0xff]  }
 0x2bd   : > { %v3212_v12 = vadd.f32 %v10906_v27, %v3148_v20  ;;  %v3121_v41 = vadd.f32 %v16086_v24, %v3083_v33  ;;  %v3722_v48 = vsel %vm15798_vm9, %v3514_v10, %v3721_v18  ;;  %v3081_v61 = vmul.f32 %v16097_v17, %v13360_v1  ;;  %12160 = vmatpush3.bf16.msra.mxu0 %v13985_v9  ;;  %v13990_v20 = vld [vmem:[%s18550_s1 + $0x18] sm:$0xff]   ;;  %v3718_v30 = vld [vmem:[#allocation2 + $0x8c] sm:$0x1] }
 0x2be   : > { %v16092_v49 = vrot.slane %v3492_v44, 7  ;;  %v13363_v28 = vadd.f32 %v15691_v59, %v15947_v37  ;;  %3723 = vst [vmem:[#allocation2 + $0x90] sm:$0xf] %v3722_v48  ;;  %v3519_v60 = vrot.slane %v3517_v0, 7  ;;  %v4485_v15 = vshrl.u32 %v16016_v16, 16  ;;  %v10909_v37 = vld [vmem:[%s14408_s6 + $0x139] sm:$0xff]  ;;  %13036 = vmatpush3.bf16.msra.mxu1 %v13926_v47  ;;  %12161 = vmatprep.subr.bf16.mxu0 %v13986_v46 }
 0x2bf   : > { %v11567_v4 = vpack.c.bf16 %v3212_v12, %v3212_v12  ;;  %v3153_v23 = vmax.f32 %v3121_v41, 0.0  ;;  %v3119_v59 = vadd.f32 %v16086_v24, %v3081_v61  ;;  %13037 = vmatprep.subr.bf16.mxu1 %v13931_v8  ;;  %v10912_v47 = vld [vmem:[%s14408_s6 + $0x159] sm:$0xff]  ;;  %v4487_v40 = vshll.u32 %v16016_v16, 16 }
 0x2c0   : > { %v3497_v19 = vor.u32 %v3495_v25, %v16092_v49  ;;  %v3498_v13 = vrot.slane %v16092_v49, 4  ;;  %v3084_v22 = vmul.f32 %v16097_v17, %v13363_v28  ;;  %v3522_v57 = vor.u32 %v3520_v6, %v3519_v60  ;;  %v16137_v25 = vld [vmem:[%s18550_s1 + $0xb8] sm:$0xff]   ;;  %v13994_v0 = vld [vmem:[%s18550_s1 + $0x60] sm:$0xff]  }
 0x2c1   : > { %v3524_v11 = vrot.slane %v3519_v60, 4  ;;  %v3500_v34 = vshrl.u32 %v11567_v4, 16  ;;  %v3503_v18 = vshll.u32 %v11567_v4, 16  ;;  %v3217_v27 = vadd.f32 %v10911_v7, %v3153_v23  ;;  %v16144_v49 = vld [vmem:[#allocation2 + $0x3c] sm:$0xff]   ;;  %v3735_v7 = vld [vmem:[#allocation2 + $0xa8] sm:$0xf]  ;;  %12162 = vmatpush3.bf16.msra.mxu0 %v13990_v20 }
 0x2c2   : > { %v3715_v45 = vsel %vm15798_vm9, %v3497_v19, %v3714_v62  ;;  %v3151_v63 = vmax.f32 %v3119_v59, 0.0  ;;  %v3122_v53 = vadd.f32 %v16086_v24, %v3084_v22  ;;  %v3523_v2 = vsel %vm15804_vm10, %v3515_v55, %v3522_v57  ;;  %v16146_v62 = vld [vmem:[#allocation2 + $0x44] ss:$0 sps:$4 sm:$0x11]   ;;  %13038 = vmatpush3.bf16.msra.mxu1 %v13931_v8  ;;  %12163 = vmatprep.subr.bf16.mxu0 %v13994_v0  ;;  %v3728_v57 = vld [vmem:[#allocation2 + $0x9c] sm:$0xf] }
 0x2c3   : > { %3716 = vst [vmem:[#allocation2 + $0x84] sm:$0xf] %v3715_v45  ;;  %v3726_v51 = vsel %vm15438_vm4, %v3524_v11, %v3725_v5  ;;  %v3502_v1 = vrot.slane %v3500_v34, 7  ;;  %3724 = vst [vmem:[#allocation2 + $0x94] sm:$0xf] %v3523_v2  ;;  %v11572_v33 = vpack.c.bf16 %v3217_v27, %v3217_v27  ;;  %v4492_v44 = vshll.u32 %v16018_v32, 16  ;;  %13039 = vmatprep.subr.bf16.mxu1 %v13936_v58 }
 0x2c4   : > { %3727 = vst [vmem:[#allocation2 + $0x98] sm:$0x1] %v3726_v51  ;;  %v3215_v10 = vadd.f32 %v10909_v37, %v3151_v63  ;;  %v3154_v55 = vmax.f32 %v3122_v53, 0.0  ;;  %v4489_v41 = vrot.slane %v4487_v40, 1  ;;  %v13366_v48 = vadd.f32 %v15662_v54, %v15949_v42  ;;  %v16152_v42 = vld [vmem:[#allocation2 + $0x48] sm:$0xff]   ;;  %v13946_v51 = vld [vmem:[%s18550_s1 + $0x1c0] sm:$0xff]  }
 0x2c5   : > { %v3505_v6 = vor.u32 %v3503_v18, %v3502_v1  ;;  %v3507_v12 = vrot.slane %v3502_v1, 4  ;;  %v3543_v32 = vshrl.u32 %v11572_v33, 16  ;;  %v3546_v61 = vshll.u32 %v11572_v33, 16  ;;  %v16154_v5 = vld [vmem:[#allocation2 + $0x50] ss:$0 sps:$4 sm:$0x11]  }
 0x2c6   : > { %v11570_v28 = vpack.c.bf16 %v3215_v10, %v3215_v10  ;;  %v3218_v60 = vadd.f32 %v10912_v47, %v3154_v55  ;;  %v4490_v19 = vor.u32 %v4489_v41, %v4485_v15  ;;  %v4494_v54 = vrot.slane %v4492_v44, 1  ;;  %v13996_v15 = vld [vmem:[%s18550_s1 + $0x68] sm:$0xff]   ;;  %13040 = vmatpush3.bf16.msra.mxu1 %v13936_v58  ;;  %v3739_v10 = vld [vmem:[#allocation2 + $0xb0] sm:$0x1] }
 0x2c7   : > { %v3506_v4 = vsel %vm15804_vm10, %v3498_v13, %v3505_v6  ;;  %v3719_v23 = vsel %vm15438_vm4, %v3507_v12, %v3718_v30  ;;  %v3545_v8 = vrot.slane %v3543_v32, 7  ;;  %v13995_v13 = vld [vmem:[%s18550_s1 + $0x20] sm:$0xff]   ;;  %v3082_v34 = vmul.f32 %v16097_v17, %v13366_v48  ;;  %13041 = vmatprep.subr.bf16.mxu1 %v16137_v25  ;;  %v14000_v55 = vld [vmem:[%s18550_s1 + $0x28] sm:$0xff]   ;;  %v14004_v44 = vld [vmem:[%s18550_s1 + $0x70] sm:$0xff]  }
 0x2c8   : > { %3717 = vst [vmem:[#allocation2 + $0x88] sm:$0xf] %v3506_v4  ;;  %3720 = vst [vmem:[#allocation2 + $0x8c] sm:$0x1] %v3719_v23  ;;  %v3526_v59 = vshrl.u32 %v11570_v28, 16  ;;  %v3529_v37 = vshll.u32 %v11570_v28, 16  ;;  %v11573_v22 = vpack.c.bf16 %v3218_v60, %v3218_v60  ;;  %v4495_v11 = vsel %vm399_vm1, %v4490_v19, %v4494_v54  ;;  %12164 = vmatpush3.bf16.msra.mxu0 %v13995_v13 }
 0x2c9   : > { %v4680_v18 = vrot.slane %v16144_v49, 1  ;;  %v4681_v9 = vrot.slane %v16146_v62, 1  ;;  %v3548_v45 = vor.u32 %v3546_v61, %v3545_v8  ;;  %v3549_v27 = vrot.slane %v3545_v8, 4  ;;  %4972 = vmatprep.mubr.bf16.mxu0 %v4495_v11  ;;  %v10910_v2 = vld [vmem:[%s14408_s6 + $0x141] sm:$0xff]  ;;  %12165 = vmatprep.subr.bf16.mxu0 %v13996_v15  ;;  %v16197_v28 = vld [vmem:[#allocation2 + $0x54] sm:$0xff]   ;;  %v10916_v15 = vld [vmem:[%s14408_s6 + $0x189] sm:$0xff] }
 0x2ca   : > { %v16166_v63 = vrot.slane %v3526_v59, 7  ;;  %v3551_v53 = vshrl.u32 %v11573_v22, 16  ;;  %v3554_v1 = vshll.u32 %v11573_v22, 16  ;;  %v3120_v47 = vadd.f32 %v16086_v24, %v3082_v34  ;;  %4973 = vmatmul.mubr.bf16.gmra.mrb[88].mxu0 %v16016_v16  ;;  %13042 = vmatpush3.bf16.msra.mxu1 %v16137_v25  ;;  %v16202_v25 = vld [vmem:[#allocation2 + $0x5c] ss:$0 sps:$4 sm:$0x11]  }
 0x2cb   : > { %v4682_v40 = vsel %vm640_vm0, %v4680_v18, %v4681_v9  ;;  %v4683_v58 = vrot.slane %v16152_v42, 1  ;;  %v3736_v46 = vsel %vm15798_vm9, %v3548_v45, %v3735_v7  ;;  %v4684_v0 = vrot.slane %v16154_v5, 1  ;;  %12291 = vmatprep.subr.bf16.mxu1 %v13946_v51  ;;  %v14005_v7 = vld [vmem:[%s18550_s1 + $0x30] sm:$0xff]   ;;  %v16227_v18 = vld [vmem:[#allocation2 + $0x60] sm:$0xff]  }
 0x2cc   : > { %v3531_v20 = vor.u32 %v3529_v37, %v16166_v63  ;;  %v3532_v30 = vrot.slane %v16166_v63, 4  ;;  %v3553_v33 = vrot.slane %v3551_v53, 7  ;;  %13003 = vmatprep.mubr.bf16.mxu1 %v4682_v40  ;;  %3737 = vst [vmem:[#allocation2 + $0xa8] sm:$0xf] %v3736_v46  ;;  %v3152_v16 = vmax.f32 %v3120_v47, 0.0  ;;  %12166 = vmatpush3.bf16.msra.mxu0 %v14000_v55  ;;  %v14006_v37 = vld [vmem:[%s18550_s1 + $0x78] sm:$0xff]  }
 0x2cd   : > { %v13369_v6 = vadd.f32 %v15718_v14, %v15965_v31  ;;  %v13372_v12 = vadd.f32 %v15699_v36, %v15971_v35  ;;  %v13375_v61 = vadd.f32 %v15721_v3, %v15973_v56  ;;  %v4685_v31 = vsel %vm640_vm0, %v4683_v58, %v4684_v0  ;;  %v10915_v56 = vld [vmem:[%s14408_s6 + $0x181] sm:$0xff]  ;;  %12167 = vmatprep.subr.bf16.mxu0 %v14004_v44  ;;  %v10913_v22 = vld [vmem:[%s14408_s6 + $0x169] sm:$0xff] }
 0x2ce   : > { %v3729_v41 = vsel %vm15798_vm9, %v3531_v20, %v3728_v57  ;;  %v3556_v48 = vor.u32 %v3554_v1, %v3553_v33  ;;  %v3558_v32 = vrot.slane %v3553_v33, 4  ;;  %v3216_v14 = vadd.f32 %v10910_v2, %v3152_v16  ;;  %13004 = vmatmul.mubr.bf16.gmra.mrb[152].mxu1 %v4685_v31 }
 0x2cf   : > { %3730 = vst [vmem:[#allocation2 + $0x9c] sm:$0xf] %v3729_v41  ;;  %v3087_v36 = vmul.f32 %v16097_v17, %v13369_v6  ;;  %v3085_v35 = vmul.f32 %v16097_v17, %v13372_v12  ;;  %v3088_v4 = vmul.f32 %v16097_v17, %v13375_v61  ;;  %v4497_v23 = vshrl.u32 %v16032_v52, 16  ;;  %v16236_v6 = vld [vmem:[#allocation2 + $0x68] ss:$0 sps:$4 sm:$0x11]  }
 0x2d0   : > { %v3557_v60 = vsel %vm15804_vm10, %v3549_v27, %v3556_v48  ;;  %v3740_v3 = vsel %vm15438_vm4, %v3558_v32, %v3739_v10  ;;  %v11571_v19 = vpack.c.bf16 %v3216_v14, %v3216_v14  ;;  %v4499_v59 = vshll.u32 %v16032_v52, 16  ;;  %12168 = vmatpush3.bf16.msra.mxu0 %v14005_v7  ;;  %v10914_v32 = vld [vmem:[%s14408_s6 + $0x171] sm:$0xff]  ;;  %v3753_v7 = vld [vmem:[#allocation2 + $0xc8] sm:$0x1] }
 0x2d1   : > { %3738 = vst [vmem:[#allocation2 + $0xac] sm:$0xf] %v3557_v60  ;;  %3741 = vst [vmem:[#allocation2 + $0xb0] sm:$0x1] %v3740_v3  ;;  %v3125_v54 = vadd.f32 %v16086_v24, %v3087_v36  ;;  %v3123_v8 = vadd.f32 %v16086_v24, %v3085_v35  ;;  %v3126_v13 = vadd.f32 %v16086_v24, %v3088_v4  ;;  %v4504_v57 = vshll.u32 %v16051_v38, 16  ;;  %v14008_v38 = vld [vmem:[%s18550_s1 + $0x38] sm:$0xff]  }
 0x2d2   : > { %v13378_v11 = vadd.f32 %v15704_v50, %v15979_v29  ;;  %v4686_v34 = vrot.slane %v16197_v28, 1  ;;  %v3534_v9 = vshrl.u32 %v11571_v19, 16  ;;  %v3537_v45 = vshll.u32 %v11571_v19, 16  ;;  %v3732_v50 = vld [vmem:[#allocation2 + $0xa4] sm:$0x1]  ;;  %12169 = vmatprep.subr.bf16.mxu0 %v14006_v37 }
 0x2d3   : > { %v3157_v27 = vmax.f32 %v3125_v54, 0.0  ;;  %v3155_v53 = vmax.f32 %v3123_v8, 0.0  ;;  %v3158_v2 = vmax.f32 %v3126_v13, 0.0  ;;  %v4501_v51 = vrot.slane %v4499_v59, 1  ;;  %v3749_v35 = vld [vmem:[#allocation2 + $0xc0] sm:$0xf] }
 0x2d4   : > { %v4506_v1 = vrot.slane %v4504_v57, 1  ;;  %v3086_v47 = vmul.f32 %v16097_v17, %v13378_v11  ;;  %v3536_v40 = vrot.slane %v3534_v9, 7  ;;  %v4687_v46 = vrot.slane %v16202_v25, 1  ;;  %12170 = vmatpush3.bf16.msra.mxu0 %v14008_v38  ;;  %v16250_v8 = vld [vmem:[#allocation2 + $0x6c] sm:$0xff]  }
 0x2d5   : > { %v3221_v29 = vadd.f32 %v10915_v56, %v3157_v27  ;;  %v3219_v58 = vadd.f32 %v10913_v22, %v3155_v53  ;;  %v3222_v20 = vadd.f32 %v10916_v15, %v3158_v2  ;;  %v4502_v33 = vor.u32 %v4501_v51, %v4497_v23  ;;  %v3742_v23 = vld [vmem:[#allocation2 + $0xb4] sm:$0xf]  ;;  %v16257_v2 = vld [vmem:[#allocation2 + $0x78] sm:$0xff]   ;;  %v16259_v51 = vld [vmem:[#allocation2 + $0x80] ss:$0 sps:$4 sm:$0x11]  }
 0x2d6   : > { %v3124_v10 = vadd.f32 %v16086_v24, %v3086_v47  ;;  %v4689_v55 = vrot.slane %v16227_v18, 1  ;;  %v3539_v17 = vor.u32 %v3537_v45, %v3536_v40  ;;  %v3541_v44 = vrot.slane %v3536_v40, 4  ;;  %v16263_v40 = vld [vmem:[#allocation2 + $0x8c] ss:$0 sps:$4 sm:$0x11]  }
 0x2d7   : > { %v11576_v16 = vpack.c.bf16 %v3221_v29, %v3221_v29  ;;  %v11574_v0 = vpack.c.bf16 %v3219_v58, %v3219_v58  ;;  %v11577_v12 = vpack.c.bf16 %v3222_v20, %v3222_v20  ;;  %v4507_v41 = vsel %vm399_vm1, %v4502_v33, %v4506_v1  ;;  %v16271_v33 = vld [vmem:[#allocation2 + $0x84] sm:$0xff]  }
 0x2d8   : > { %v3156_v48 = vmax.f32 %v3124_v10, 0.0  ;;  %v4688_v61 = vsel %vm640_vm0, %v4686_v34, %v4687_v46  ;;  %v3540_v24 = vsel %vm15804_vm10, %v3532_v30, %v3539_v17  ;;  %v3733_v14 = vsel %vm15438_vm4, %v3541_v44, %v3732_v50  ;;  %4980 = vmatprep.mubr.bf16.mxu0 %v4507_v41  ;;  %v16255_v34 = vld [vmem:[#allocation2 + $0x74] ss:$0 sps:$4 sm:$0x11]   ;;  %v3746_v46 = vld [vmem:[#allocation2 + $0xbc] sm:$0x1] }
 0x2d9   : > { %v3577_v31 = vshrl.u32 %v11576_v16, 16  ;;  %v3580_v36 = vshll.u32 %v11576_v16, 16  ;;  %13007 = vmatprep.mubr.bf16.mxu1 %v4688_v61  ;;  %3731 = vst [vmem:[#allocation2 + $0xa0] sm:$0xf] %v3540_v24  ;;  %3734 = vst [vmem:[#allocation2 + $0xa4] sm:$0x1] %v3733_v14  ;;  %4981 = vmatmul.mubr.bf16.gmra.mrb[92].mxu0 %v16032_v52 }
 0x2da   : > { %v3560_v60 = vshrl.u32 %v11574_v0, 16  ;;  %v3563_v3 = vshll.u32 %v11574_v0, 16  ;;  %v3585_v56 = vshrl.u32 %v11577_v12, 16  ;;  %v3588_v4 = vshll.u32 %v11577_v12, 16 }
 0x2db   : > { %v3579_v63 = vrot.slane %v3577_v31, 7  ;;  %v3220_v30 = vadd.f32 %v10914_v32, %v3156_v48  ;;  %v4690_v19 = vrot.slane %v16236_v6, 1  ;;  %v4509_v54 = vshrl.u32 %v16144_v49, 16 }
 0x2dc   : > { %v3562_v59 = vrot.slane %v3560_v60, 7  ;;  %v3587_v37 = vrot.slane %v3585_v56, 7  ;;  %v4511_v22 = vshll.u32 %v16144_v49, 16  ;;  %v4516_v13 = vshll.u32 %v16146_v62, 16 }
 0x2dd   : > { %v3582_v15 = vor.u32 %v3580_v36, %v3579_v63  ;;  %v3583_v57 = vrot.slane %v3579_v63, 4  ;;  %v11575_v11 = vpack.c.bf16 %v3220_v30, %v3220_v30  ;;  %v4691_v52 = vsel %vm640_vm0, %v4689_v55, %v4690_v19 }
 0x2de   : > { %v3565_v9 = vor.u32 %v3563_v3, %v3562_v59  ;;  %v3566_v45 = vrot.slane %v3562_v59, 4  ;;  %v3590_v27 = vor.u32 %v3588_v4, %v3587_v37  ;;  %v3592_v53 = vrot.slane %v3587_v37, 4  ;;  %13008 = vmatmul.mubr.bf16.gmra.mrb[156].mxu1 %v4691_v52 }
 0x2df   : > { %v3750_v1 = vsel %vm15798_vm9, %v3582_v15, %v3749_v35  ;;  %v3568_v62 = vshrl.u32 %v11575_v11, 16  ;;  %v3571_v47 = vshll.u32 %v11575_v11, 16  ;;  %v4513_v38 = vrot.slane %v4511_v22, 1 }
 0x2e0   : > { %3751 = vst [vmem:[#allocation2 + $0xc0] sm:$0xf] %v3750_v1  ;;  %v3743_v50 = vsel %vm15798_vm9, %v3565_v9, %v3742_v23  ;;  %v3591_v29 = vsel %vm15804_vm10, %v3583_v57, %v3590_v27  ;;  %v3754_v58 = vsel %vm15438_vm4, %v3592_v53, %v3753_v7  ;;  %v4518_v20 = vrot.slane %v4516_v13, 1  ;;  %v16278_v41 = vld [vmem:[#allocation2 + $0x9c] sm:$0xff]   ;;  %v16294_v23 = vld [vmem:[#allocation2 + $0x90] sm:$0xff]   ;;  %v16309_v27 = vld [vmem:[#allocation2 + $0xa8] sm:$0xff]  }
 0x2e1   : > { %3744 = vst [vmem:[#allocation2 + $0xb4] sm:$0xf] %v3743_v50  ;;  %3752 = vst [vmem:[#allocation2 + $0xc4] sm:$0xf] %v3591_v29  ;;  %v3570_v10 = vrot.slane %v3568_v62, 7  ;;  %v4514_v55 = vor.u32 %v4513_v38, %v4509_v54  ;;  %v4692_v17 = vrot.slane %v16250_v8, 1 }
 0x2e2   : > { %3755 = vst [vmem:[#allocation2 + $0xc8] sm:$0x1] %v3754_v58  ;;  %v4693_v44 = vrot.slane %v16255_v34, 1  ;;  %v4695_v16 = vrot.slane %v16257_v2, 1  ;;  %v4696_v0 = vrot.slane %v16259_v51, 1  ;;  %v4523_v12 = vshll.u32 %v16152_v42, 16 }
 0x2e3   : > { %v3573_v48 = vor.u32 %v3571_v47, %v3570_v10  ;;  %v3575_v32 = vrot.slane %v3570_v10, 4  ;;  %v4519_v61 = vsel %vm399_vm1, %v4514_v55, %v4518_v20  ;;  %v16282_v14 = vld [vmem:[#allocation2 + $0xa4] ss:$0 sps:$4 sm:$0x11]   ;;  %v4521_v31 = vshrl.u32 %v16152_v42, 16 }
 0x2e4   : > { %v4694_v24 = vsel %vm640_vm0, %v4692_v17, %v4693_v44  ;;  %4988 = vmatprep.mubr.bf16.mxu0 %v4519_v61  ;;  %v4525_v36 = vrot.slane %v4523_v12, 1  ;;  %v4528_v35 = vshll.u32 %v16154_v5, 16  ;;  %v4698_v60 = vrot.slane %v16271_v33, 1  ;;  %v16296_v7 = vld [vmem:[#allocation2 + $0x98] ss:$0 sps:$4 sm:$0x11]  }
 0x2e5   : > { %13011 = vmatprep.mubr.bf16.mxu1 %v4694_v24  ;;  %v3574_v3 = vsel %vm15804_vm10, %v3566_v45, %v3573_v48  ;;  %v3747_v56 = vsel %vm15438_vm4, %v3575_v32, %v3746_v46  ;;  %v4697_v4 = vsel %vm640_vm0, %v4695_v16, %v4696_v0  ;;  %4989 = vmatmul.mubr.bf16.gmra.mrb[96].mxu0 %v16144_v49  ;;  %v4699_v63 = vrot.slane %v16263_v40, 1  ;;  %v16311_v53 = vld [vmem:[#allocation2 + $0xb0] ss:$0 sps:$4 sm:$0x11]  }
 0x2e6   : > { %3745 = vst [vmem:[#allocation2 + $0xb8] sm:$0xf] %v3574_v3  ;;  %3748 = vst [vmem:[#allocation2 + $0xbc] sm:$0x1] %v3747_v56  ;;  %13012 = vmatmul.mubr.bf16.gmra.mrb[160].mxu1 %v4697_v4  ;;  %v4526_v5 = vor.u32 %v4525_v36, %v4521_v31  ;;  %v4530_v30 = vrot.slane %v4528_v35, 1  ;;  %v4535_v54 = vshll.u32 %v16197_v28, 16 }
 0x2e7   : > { %v4700_v19 = vsel %vm640_vm0, %v4698_v60, %v4699_v63  ;;  %v4540_v59 = vshll.u32 %v16202_v25, 16  ;;  %v4704_v49 = vrot.slane %v16278_v41, 1  ;;  %v4705_v22 = vrot.slane %v16282_v14, 1 }
 0x2e8   : > { %v4531_v37 = vsel %vm399_vm1, %v4526_v5, %v4530_v30  ;;  %13015 = vmatprep.mubr.bf16.mxu1 %v4700_v19  ;;  %v4701_v13 = vrot.slane %v16294_v23, 1  ;;  %v4702_v15 = vrot.slane %v16296_v7, 1  ;;  %v4533_v57 = vshrl.u32 %v16197_v28, 16  ;;  %v16331_v48 = vld [vmem:[#allocation2 + $0xc0] sm:$0xff]   ;;  %v16344_v30 = vld [vmem:[#allocation2 + $0xc] sm:$0xff]   ;;  %v16346_v19 = vld [vmem:[#allocation2 + $0x18] sm:$0xff]  }
 0x2e9   : > { %4996 = vmatprep.mubr.bf16.mxu0 %v4531_v37  ;;  %v4537_v11 = vrot.slane %v4535_v54, 1  ;;  %v4547_v52 = vshll.u32 %v16227_v18, 16  ;;  %v4542_v45 = vrot.slane %v4540_v59, 1  ;;  %v4706_v25 = vsel %vm640_vm0, %v4704_v49, %v4705_v22  ;;  %v16333_v32 = vld [vmem:[#allocation2 + $0xc8] ss:$0 sps:$4 sm:$0x11]  }
 0x2ea   : > { %v4703_v1 = vsel %vm640_vm0, %v4701_v13, %v4702_v15  ;;  %v4545_v29 = vshrl.u32 %v16227_v18, 16  ;;  %v4552_v58 = vshll.u32 %v16236_v6, 16  ;;  %v14299_v46 = vmov 0   ;;  %v16351_v59 = vld [vmem:[#allocation2 + $0x14] ss:$0 sps:$4 sm:$0x11]  }
 0x2eb   : > { %v4538_v9 = vor.u32 %v4537_v11, %v4533_v57  ;;  %v4549_v47 = vrot.slane %v4547_v52, 1  ;;  %197 = vst [vmem:[#allocation2] sm:$0xf] %v14299_v46  ;;  %198 = vst [vmem:[#allocation2 + $0x4] sm:$0xf] %v14299_v46  ;;  %v4707_v10 = vrot.slane %v16309_v27, 1 }
 0x2ec   : > { %199 = vst [vmem:[#allocation2 + $0x8] sm:$0x1] %v14299_v46  ;;  %201 = vst [vmem:[#allocation2 + $0xcc] sm:$0xf] %v14299_v46  ;;  %v4708_v55 = vrot.slane %v16311_v53, 1  ;;  %v4559_v44 = vshll.u32 %v16250_v8, 16 }
 0x2ed   : > { %4997 = vmatmul.mubr.bf16.gmra.mrb[100].mxu0 %v16152_v42  ;;  %v4543_v62 = vsel %vm399_vm1, %v4538_v9, %v4542_v45  ;;  %v16316_v38 = vld [vmem:[#allocation2 + $0xb4] sm:$0xff]   ;;  %v16318_v50 = vld [vmem:[#allocation2 + $0xbc] ss:$0 sps:$4 sm:$0x11]   ;;  %202 = vst [vmem:[#allocation2 + $0xd0] sm:$0xf] %v14299_v46  ;;  %v4550_v17 = vor.u32 %v4549_v47, %v4545_v29 }
 0x2ee   : > { %13016 = vmatmul.mubr.bf16.gmra.mrb[164].mxu1 %v4703_v1  ;;  %5004 = vmatprep.mubr.bf16.mxu0 %v4543_v62  ;;  %203 = vst [vmem:[#allocation2 + $0xd4] sm:$0x1] %v14299_v46  ;;  %v4710_v42 = vrot.slane %v16316_v38, 1  ;;  %v4711_v20 = vrot.slane %v16318_v50, 1  ;;  %v4554_v16 = vrot.slane %v4552_v58, 1  ;;  %v4709_v0 = vsel %vm640_vm0, %v4707_v10, %v4708_v55  ;;  %v13952_v58 = vld [vmem:[%s18550_s1 + $0x1c8] sm:$0xff]  }
 0x2ef   : > { %13019 = vmatprep.mubr.bf16.mxu1 %v4706_v25  ;;  %v4561_v61 = vrot.slane %v4559_v44, 1  ;;  %v4557_v36 = vshrl.u32 %v16250_v8, 16  ;;  %v4564_v35 = vshll.u32 %v16255_v34, 16  ;;  %v4713_v3 = vrot.slane %v16331_v48, 1  ;;  %v16383_v44 = vld [vmem:[#allocation2 + $0x30] sm:$0xff]  }
 0x2f0   : > { %v4712_v6 = vsel %vm640_vm0, %v4710_v42, %v4711_v20  ;;  %v4555_v12 = vsel %vm399_vm1, %v4550_v17, %v4554_v16  ;;  %v4714_v56 = vrot.slane %v16333_v32, 1  ;;  %v4571_v63 = vshll.u32 %v16257_v2, 16  ;;  %v16353_v49 = vld [vmem:[#allocation2 + $0x20] ss:$0 sps:$4 sm:$0x11]   ;;  %v16378_v20 = vld [vmem:[#allocation2 + $0x24] sm:$0xff]  }
 0x2f1   : > { %v4562_v4 = vor.u32 %v4561_v61, %v4557_v36  ;;  %v4566_v5 = vrot.slane %v4564_v35, 1  ;;  %v4569_v22 = vshrl.u32 %v16257_v2, 16  ;;  %v4576_v15 = vshll.u32 %v16259_v51, 16  ;;  %v13949_v51 = vld [vmem:[%s18550_s1 + $0x180] sm:$0xff]  }
 0x2f2   : > { %v207_v24 = vld [vmem:[#allocation2] sm:$0x1]  ;;  %v4715_v34 = vsel %vm640_vm0, %v4713_v3, %v4714_v56  ;;  %v4573_v37 = vrot.slane %v4571_v63, 1  ;;  %v4159_v11 = vrot.slane %v16344_v30, 1  ;;  %v4160_v52 = vrot.slane %v16351_v59, 1  ;;  %v13964_v3 = vld [vmem:[%s18550_s1 + $0x1d8] sm:$0xff]  }
 0x2f3   : > { %v263_v31 = vld [vmem:[#allocation2 + $0x8] sm:$0x1]  ;;  %v208_v60 = vsel %vm15438_vm4, 0, %v207_v24  ;;  %v4567_v54 = vsel %vm399_vm1, %v4562_v4, %v4566_v5  ;;  %v4583_v45 = vshll.u32 %v16271_v33, 16  ;;  %v4162_v1 = vrot.slane %v16346_v19, 1  ;;  %v16409_v63 = vld [vmem:[#allocation2 + $0x3c] sm:$0xff]  }
 0x2f4   : > { %209 = vst [vmem:[#allocation2] sm:$0x1] %v208_v60  ;;  %v4574_v9 = vor.u32 %v4573_v37, %v4569_v22  ;;  %v4163_v62 = vrot.slane %v16353_v49, 1  ;;  %v4578_v47 = vrot.slane %v4576_v15, 1  ;;  %v4161_v46 = vsel %vm640_vm0, %v4159_v11, %v4160_v52  ;;  %v16417_v22 = vld [vmem:[#allocation2 + $0x48] sm:$0xff]  }
 0x2f5   : > { %5005 = vmatmul.mubr.bf16.gmra.mrb[104].mxu0 %v16197_v28  ;;  %v264_v28 = vsel %vm15575_vm6, 0, %v263_v31  ;;  %v16380_v10 = vld [vmem:[#allocation2 + $0x2c] ss:$0 sps:$4 sm:$0x11]   ;;  %v4585_v55 = vrot.slane %v4583_v45, 1  ;;  %v4165_v61 = vrot.slane %v16378_v20, 1 }
 0x2f6   : > { %13020 = vmatmul.mubr.bf16.gmra.mrb[168].mxu1 %v4709_v0  ;;  %5012 = vmatprep.mubr.bf16.mxu0 %v4555_v12  ;;  %265 = vst [vmem:[#allocation2 + $0x8] sm:$0x1] %v264_v28  ;;  %v4579_v42 = vsel %vm399_vm1, %v4574_v9, %v4578_v47  ;;  %v4164_v17 = vsel %vm640_vm0, %v4162_v1, %v4163_v62  ;;  %v16385_v16 = vld [vmem:[#allocation2 + $0x38] ss:$0 sps:$4 sm:$0x11]   ;;  %v4588_v0 = vshll.u32 %v16263_v40, 16 }
 0x2f7   : > { %13023 = vmatprep.mubr.bf16.mxu1 %v4712_v6  ;;  %v4581_v6 = vshrl.u32 %v16271_v33, 16  ;;  %v13958_v12 = vld [vmem:[%s18550_s1 + $0x1d0] sm:$0xff]   ;;  %v4166_v24 = vrot.slane %v16380_v10, 1  ;;  %v4595_v36 = vshll.u32 %v16294_v23, 16  ;;  %v4168_v35 = vrot.slane %v16383_v44, 1 }
 0x2f8   : > { %v4169_v60 = vrot.slane %v16385_v16, 1  ;;  %v4590_v28 = vrot.slane %v4588_v0, 1  ;;  %v13961_v40 = vld [vmem:[%s18550_s1 + $0x190] sm:$0xff]   ;;  %v16411_v5 = vld [vmem:[#allocation2 + $0x44] ss:$0 sps:$4 sm:$0x11]  }
 0x2f9   : > { %v4586_v31 = vor.u32 %v4585_v55, %v4581_v6  ;;  %v4167_v56 = vsel %vm640_vm0, %v4165_v61, %v4166_v24  ;;  %v16419_v15 = vld [vmem:[#allocation2 + $0x50] ss:$0 sps:$4 sm:$0x11]   ;;  %v4600_v11 = vshll.u32 %v16296_v7, 16  ;;  %v4171_v52 = vrot.slane %v16409_v63, 1  ;;  %v13973_v7 = vld [vmem:[%s18550_s1 + $0x1a0] sm:$0xff]  }
 0x2fa   : > { %v4170_v37 = vsel %vm640_vm0, %v4168_v35, %v4169_v60  ;;  %v4172_v9 = vrot.slane %v16411_v5, 1  ;;  %v4174_v1 = vrot.slane %v16417_v22, 1  ;;  %v4175_v62 = vrot.slane %v16419_v15, 1  ;;  %v16434_v47 = vld [vmem:[#allocation2 + $0x54] sm:$0xff]  }
 0x2fb   : > { %v16356_v13 = vld [vmem:[#allocation2] sm:$0xff]   ;;  %v4591_v4 = vsel %vm399_vm1, %v4586_v31, %v4590_v28  ;;  %v16447_v6 = vld [vmem:[#allocation2 + $0x68] ss:$0 sps:$4 sm:$0x11]   ;;  %v4605_v0 = vshrl.u32 %v16278_v41, 16  ;;  %v13989_v61 = vld [vmem:[%s18550_s1 + $0x1f0] sm:$0xff]  }
 0x2fc   : > { %v4177_v24 = vrot.slane %v16434_v47, 1  ;;  %v4619_v35 = vshll.u32 %v16309_v27, 16 }
 0x2fd   : > { %5013 = vmatmul.mubr.bf16.gmra.mrb[108].mxu0 %v16227_v18  ;;  %v16359_v57 = vld [vmem:[#allocation2 + $0x8] ss:$0 sps:$4 sm:$0x11]   ;;  %v4156_v18 = vrot.slane %v16356_v13, 1 }
 0x2fe   : > { %13024 = vmatmul.mubr.bf16.gmra.mrb[172].mxu1 %v4715_v34  ;;  %5020 = vmatprep.mubr.bf16.mxu0 %v4567_v54  ;;  %v4157_v25 = vrot.slane %v16359_v57, 1  ;;  %v4597_v34 = vrot.slane %v4595_v36, 1  ;;  %v13967_v54 = vld [vmem:[%s18550_s1 + $0x198] sm:$0xff]  }
 0x300   : > { %v4158_v29 = vsel %vm640_vm0, %v4156_v18, %v4157_v25  ;;  %v13970_v18 = vld [vmem:[%s18550_s1 + $0x1e0] sm:$0xff]   ;;  %v4607_v25 = vshll.u32 %v16278_v41, 16 }
 0x301   : > { %13043 = vmatprep.mubr.bf16.mxu1 %v4158_v29  ;;  %v13979_v29 = vld [vmem:[%s18550_s1 + $0x1e8] sm:$0xff]  }
 0x302   : > { %v4609_v55 = vrot.slane %v4607_v25, 1 }
 0x304   : > { %v4610_v36 = vor.u32 %v4609_v55, %v4605_v0 }
 0x305   : > { %5021 = vmatmul.mubr.bf16.gmra.mrb[112].mxu0 %v16250_v8  ;;  %v13955_v8 = vld [vmem:[%s18550_s1 + $0x188] sm:$0xff]  }
 0x306   : > { %13044 = vmatmul.mubr.bf16.vlgmr.msra.gmra.mrb[144].mxu1 %v4161_v46  ;;  %5028 = vmatprep.mubr.bf16.mxu0 %v4579_v42  ;;  %v16442_v42 = vld [vmem:[#allocation2 + $0x5c] ss:$0 sps:$4 sm:$0x11]  }
 0x307   : > { %13047 = vmatprep.mubr.bf16.mxu1 %v4164_v17  ;;  %12292 = vmatpush3.bf16.msra.mxu1 %v13949_v51  ;;  %v4602_v51 = vrot.slane %v4600_v11, 1  ;;  %v4176_v17 = vsel %vm640_vm0, %v4174_v1, %v4175_v62  ;;  %v4178_v31 = vrot.slane %v16442_v42, 1  ;;  %v16476_v11 = vld [vmem:[#allocation2 + $0x78] sm:$0xff]  }
 0x308   : > { %12293 = vmatprep.subr.bf16.mxu1 %v13952_v58  ;;  %v4173_v58 = vsel %vm640_vm0, %v4171_v52, %v4172_v9  ;;  %v4617_v52 = vshrl.u32 %v16309_v27, 16  ;;  %v14001_v9 = vld [vmem:[%s18550_s1 + $0x1b8] sm:$0xff]  }
 0x30b   : > { %12294 = vmatpush3.bf16.msra.mxu1 %v13955_v8  ;;  %v16445_v8 = vld [vmem:[#allocation2 + $0x60] sm:$0xff]  }
 0x30c   : > { %12295 = vmatprep.subr.bf16.mxu1 %v13958_v12  ;;  %v4612_v12 = vshll.u32 %v16282_v14, 16  ;;  %v4180_v60 = vrot.slane %v16445_v8, 1  ;;  %v4181_v14 = vrot.slane %v16447_v6, 1 }
 0x30d   : > { %5029 = vmatmul.mubr.bf16.gmra.mrb[116].mxu0 %v16257_v2  ;;  %v4593_v2 = vshrl.u32 %v16294_v23, 16 }
 0x30e   : > { %13048 = vmatmul.mubr.bf16.gmra.mrb[148].mxu1 %v4167_v56  ;;  %5036 = vmatprep.mubr.bf16.mxu0 %v4591_v4  ;;  %v4614_v28 = vrot.slane %v4612_v12, 1  ;;  %v4179_v56 = vsel %vm640_vm0, %v4177_v24, %v4178_v31  ;;  %v4629_v24 = vshrl.u32 %v16316_v38, 16  ;;  %v4636_v31 = vshll.u32 %v16318_v50, 16  ;;  %v16520_v50 = vld [vmem:[#allocation2 + $0xa4] ss:$0 sps:$4 sm:$0x11]  }
 0x30f   : > { %13051 = vmatprep.mubr.bf16.mxu1 %v4170_v37  ;;  %12296 = vmatpush3.bf16.msra.mxu1 %v13961_v40  ;;  %v4598_v45 = vor.u32 %v4597_v34, %v4593_v2  ;;  %v13993_v40 = vld [vmem:[%s18550_s1 + $0x1b0] sm:$0xff]   ;;  %v4621_v37 = vrot.slane %v4619_v35, 1  ;;  %v4182_v2 = vsel %vm640_vm0, %v4180_v60, %v4181_v14  ;;  %v4643_v60 = vshll.u32 %v16331_v48, 16 }
 0x310   : > { %12297 = vmatprep.subr.bf16.mxu1 %v13964_v3  ;;  %v13999_v3 = vld [vmem:[%s18550_s1 + $0x1f8] sm:$0xff]   ;;  %v4615_v4 = vsel %vm399_vm1, %v4610_v36, %v4614_v28  ;;  %v16471_v34 = vld [vmem:[#allocation2 + $0x6c] sm:$0xff]  }
 0x311   : > { %v4603_v46 = vsel %vm399_vm1, %v4598_v45, %v4602_v51  ;;  %v16488_v45 = vld [vmem:[%s18550_s1 + $0x200] sm:$0xff]   ;;  %v4183_v25 = vrot.slane %v16471_v34, 1  ;;  %v4622_v62 = vor.u32 %v4621_v37, %v4617_v52  ;;  %v4631_v51 = vshll.u32 %v16316_v38, 16  ;;  %v16523_v52 = vld [vmem:[#allocation2 + $0xa8] sm:$0xff]  }
 0x312   : > { %v4645_v37 = vrot.slane %v4643_v60, 1 }
 0x313   : > { %12298 = vmatpush3.bf16.msra.mxu1 %v13967_v54  ;;  %v16473_v54 = vld [vmem:[#allocation2 + $0x74] ss:$0 sps:$4 sm:$0x11]   ;;  %v4633_v0 = vrot.slane %v4631_v51, 1  ;;  %v4196_v51 = vrot.slane %v16520_v50, 1 }
 0x314   : > { %12299 = vmatprep.subr.bf16.mxu1 %v13970_v18  ;;  %v16478_v18 = vld [vmem:[#allocation2 + $0x80] ss:$0 sps:$4 sm:$0x11]   ;;  %v4184_v1 = vrot.slane %v16473_v54, 1 }
 0x315   : > { %5037 = vmatmul.mubr.bf16.gmra.mrb[120].mxu0 %v16271_v33  ;;  %v13983_v33 = vld [vmem:[%s18550_s1 + $0x1a8] sm:$0xff]   ;;  %v4634_v35 = vor.u32 %v4633_v0, %v4629_v24  ;;  %v3949_v0 = vshrl.u32 %v16356_v13, 16  ;;  %v3956_v24 = vshll.u32 %v16359_v57, 16 }
 0x316   : > { %13052 = vmatmul.mubr.bf16.gmra.mrb[152].mxu1 %v4173_v58  ;;  %5044 = vmatprep.mubr.bf16.mxu0 %v4603_v46  ;;  %v16495_v58 = vld [vmem:[#allocation2 + $0x8c] ss:$0 sps:$4 sm:$0x11]   ;;  %v4185_v46 = vsel %vm640_vm0, %v4183_v25, %v4184_v1  ;;  %v4648_v25 = vshll.u32 %v16333_v32, 16  ;;  %v3951_v1 = vshll.u32 %v16356_v13, 16 }
 0x317   : > { %13055 = vmatprep.mubr.bf16.mxu1 %v4176_v17  ;;  %12300 = vmatpush3.bf16.msra.mxu1 %v13973_v7  ;;  %v4187_v7 = vrot.slane %v16478_v18, 1  ;;  %v16501_v17 = vld [vmem:[#allocation2 + $0x84] sm:$0xff]   ;;  %v4190_v36 = vrot.slane %v16495_v58, 1  ;;  %v16539_v32 = vld [vmem:[#allocation2 + $0x20] ss:$0 sps:$4 sm:$0x11]  }
 0x318   : > { %12301 = vmatprep.subr.bf16.mxu1 %v13979_v29 }
 0x31b   : > { %12302 = vmatpush3.bf16.msra.mxu1 %v13983_v33  ;;  %v16504_v33 = vld [vmem:[#allocation2 + $0x90] sm:$0xff]  }
 0x31c   : > { %12303 = vmatprep.subr.bf16.mxu1 %v13989_v61  ;;  %v16506_v61 = vld [vmem:[#allocation2 + $0x98] ss:$0 sps:$4 sm:$0x11]   ;;  %v4192_v14 = vrot.slane %v16504_v33, 1 }
 0x31d   : > { %5045 = vmatmul.mubr.bf16.gmra.mrb[124].mxu0 %v16294_v23  ;;  %v4624_v23 = vshll.u32 %v16311_v53, 16  ;;  %v4186_v53 = vrot.slane %v16476_v11, 1  ;;  %v4193_v28 = vrot.slane %v16506_v61, 1 }
 0x31e   : > { %13056 = vmatmul.mubr.bf16.gmra.mrb[156].mxu1 %v4179_v56  ;;  %5052 = vmatprep.mubr.bf16.mxu0 %v4615_v4  ;;  %v16518_v4 = vld [vmem:[#allocation2 + $0x9c] sm:$0xff]  }
 0x31f   : > { %13059 = vmatprep.mubr.bf16.mxu1 %v4182_v2  ;;  %12304 = vmatpush3.bf16.msra.mxu1 %v13993_v40  ;;  %v4626_v29 = vrot.slane %v4624_v23, 1  ;;  %v4188_v12 = vsel %vm640_vm0, %v4186_v53, %v4187_v7  ;;  %v4638_v40 = vrot.slane %v4636_v31, 1  ;;  %v4194_v2 = vsel %vm640_vm0, %v4192_v14, %v4193_v28  ;;  %v16525_v23 = vld [vmem:[#allocation2 + $0xb0] ss:$0 sps:$4 sm:$0x11]   ;;  %v16549_v28 = vld [vmem:[#allocation2 + $0x24] sm:$0xff]  }
 0x320   : > { %12305 = vmatprep.subr.bf16.mxu1 %v13999_v3  ;;  %v4198_v7 = vrot.slane %v16523_v52, 1 }
 0x321   : > { %v4627_v55 = vsel %vm399_vm1, %v4622_v62, %v4626_v29  ;;  %v4639_v56 = vsel %vm399_vm1, %v4634_v35, %v4638_v40  ;;  %v4195_v62 = vrot.slane %v16518_v4, 1  ;;  %v4199_v29 = vrot.slane %v16525_v23, 1  ;;  %v16546_v35 = vld [vmem:[#allocation2 + $0xbc] ss:$0 sps:$4 sm:$0x11]  }
 0x322   : > { %v3958_v40 = vrot.slane %v3956_v24, 1  ;;  %v3961_v24 = vshrl.u32 %v16344_v30, 16 }
 0x323   : > { %12306 = vmatpush3.bf16.msra.mxu1 %v14001_v9  ;;  %v16527_v9 = vld [vmem:[#allocation2 + $0x18] sm:$0xff]   ;;  %v4197_v31 = vsel %vm640_vm0, %v4195_v62, %v4196_v51  ;;  %v4200_v60 = vsel %vm640_vm0, %v4198_v7, %v4199_v29  ;;  %v314_v7 = vld [vmem:[#allocation2 + $0xd4] sm:$0x1] }
 0x324   : > { %13075 = vmatprep.subr.bf16.mxu1 %v16488_v45 }
 0x325   : > { %5053 = vmatmul.mubr.bf16.gmra.mrb[128].mxu0 %v16278_v41  ;;  %v4189_v41 = vrot.slane %v16501_v17, 1 }
 0x326   : > { %13060 = vmatmul.mubr.bf16.gmra.mrb[160].mxu1 %v4185_v46  ;;  %5060 = vmatprep.mubr.bf16.mxu0 %v4627_v55  ;;  %v5908_v46 = vshll.u32 %v16527_v9, 16  ;;  %v4650_v55 = vrot.slane %v4648_v25, 1  ;;  %v5920_v25 = vshll.u32 %v16549_v28, 16 }
 0x327   : > { %13063 = vmatprep.mubr.bf16.mxu1 %v4188_v12  ;;  %v4191_v3 = vsel %vm640_vm0, %v4189_v41, %v4190_v36  ;;  %v3953_v12 = vrot.slane %v3951_v1, 1  ;;  %v16544_v36 = vld [vmem:[#allocation2 + $0xb4] sm:$0xff]   ;;  %v16557_v1 = vld [vmem:[#allocation2 + $0x2c] ss:$0 sps:$4 sm:$0x11]  }
 0x328   : > { %v5910_v14 = vrot.slane %v5908_v46, 1 }
 0x329   : > { %v3954_v57 = vor.u32 %v3953_v12, %v3949_v0  ;;  %v5922_v0 = vrot.slane %v5920_v25, 1  ;;  %v16563_v12 = vld [vmem:[#allocation2 + $0x30] sm:$0xff]  }
 0x32b   : > { %v3959_v62 = vsel %vm399_vm1, %v3954_v57, %v3958_v40  ;;  %v3975_v40 = vshll.u32 %v16346_v19, 16 }
 0x32d   : > { %5061 = vmatmul.mubr.bf16.gmra.mrb[132].mxu0 %v16309_v27  ;;  %v4641_v27 = vshrl.u32 %v16331_v48, 16 }
 0x32e   : > { %13064 = vmatmul.mubr.bf16.gmra.mrb[164].mxu1 %v4191_v3  ;;  %5068 = vmatprep.mubr.bf16.mxu0 %v4639_v56  ;;  %v5906_v3 = vshrl.u32 %v16527_v9, 16  ;;  %v4201_v56 = vrot.slane %v16544_v36, 1 }
 0x32f   : > { %13067 = vmatprep.mubr.bf16.mxu1 %v4194_v2  ;;  %v4646_v53 = vor.u32 %v4645_v37, %v4641_v27  ;;  %v4202_v37 = vrot.slane %v16546_v35, 1  ;;  %v3963_v2 = vshll.u32 %v16344_v30, 16 }
 0x330   : > { %v5911_v27 = vor.u32 %v5910_v14, %v5906_v3  ;;  %v5925_v14 = vshll.u32 %v16557_v1, 16 }
 0x331   : > { %v4651_v41 = vsel %vm399_vm1, %v4646_v53, %v4650_v55  ;;  %v258_v53 = vld [vmem:[#allocation2 + $0xcc] sm:$0x1]  ;;  %v4203_v29 = vsel %vm640_vm0, %v4201_v56, %v4202_v37  ;;  %v3965_v46 = vrot.slane %v3963_v2, 1  ;;  %v16575_v37 = vld [vmem:[#allocation2 + $0x38] ss:$0 sps:$4 sm:$0x11]  }
 0x333   : > { %v3966_v57 = vor.u32 %v3965_v46, %v3961_v24  ;;  %v14018_v46 = vld [vmem:[%s18550_s1 + $0x210] sm:$0xff]  }
 0x335   : > { %5069 = vmatmul.mubr.bf16.gmra.mrb[136].mxu0 %v16316_v38  ;;  %v5913_v38 = vshll.u32 %v16539_v32, 16 }
 0x336   : > { %13068 = vmatmul.mubr.bf16.gmra.mrb[168].mxu1 %v4197_v31  ;;  %5076 = vmatprep.mubr.bf16.mxu0 %v4651_v41  ;;  %v3968_v31 = vshll.u32 %v16351_v59, 16  ;;  %v259_v41 = vsel %vm15438_vm4, 0, %v258_v53  ;;  %v5927_v59 = vrot.slane %v5925_v14, 1  ;;  %v3973_v53 = vshrl.u32 %v16346_v19, 16 }
 0x337   : > { %13071 = vmatprep.mubr.bf16.mxu1 %v4200_v60  ;;  %v5915_v51 = vrot.slane %v5913_v38, 1  ;;  %v315_v60 = vsel %vm15575_vm6, 0, %v314_v7  ;;  %260 = vst [vmem:[#allocation2 + $0xcc] sm:$0x1] %v259_v41  ;;  %v5932_v38 = vshll.u32 %v16563_v12, 16  ;;  %v3980_v7 = vshll.u32 %v16353_v49, 16 }
 0x338   : > { %316 = vst [vmem:[#allocation2 + $0xd4] sm:$0x1] %v315_v60  ;;  %v3970_v56 = vrot.slane %v3968_v31, 1  ;;  %v16596_v60 = vld [vmem:[#allocation2 + $0x44] ss:$0 sps:$4 sm:$0x11]  }
 0x339   : > { %v5916_v55 = vsel %vm399_vm1, %v5911_v27, %v5915_v51  ;;  %v3977_v27 = vrot.slane %v3975_v40, 1  ;;  %v16584_v51 = vld [vmem:[#allocation2 + $0x3c] sm:$0xff]  }
 0x33a   : > { %v3971_v2 = vsel %vm399_vm1, %v3966_v57, %v3970_v56  ;;  %v5944_v31 = vshll.u32 %v16584_v51, 16  ;;  %v14023_v49 = vld [vmem:[%s18550_s1 + $0x218] sm:$0xff]   ;;  %v3992_v56 = vshll.u32 %v16380_v10, 16  ;;  %v16616_v10 = vld [vmem:[#allocation2 + $0x50] ss:$0 sps:$4 sm:$0x11]  }
 0x33c   : > { %v5946_v40 = vrot.slane %v5944_v31, 1  ;;  %v3997_v31 = vshrl.u32 %v16383_v44, 16 }
 0x33d   : > { %5077 = vmatmul.mubr.bf16.gmra.mrb[140].mxu0 %v16331_v48  ;;  %v5918_v48 = vshrl.u32 %v16549_v28, 16 }
 0x33e   : > { %13072 = vmatmul.mubr.bf16.gmra.mrb[172].mxu1 %v4203_v29  ;;  %5422 = vmatprep.mubr.bf16.mxu0 %v3959_v62  ;;  %v5934_v62 = vrot.slane %v5932_v38, 1  ;;  %v5937_v29 = vshll.u32 %v16575_v37, 16  ;;  %v3985_v38 = vshrl.u32 %v16378_v20, 16 }
 0x33f   : > { %6401 = vmatprep.mubr.bf16.mxu1 %v5916_v55  ;;  %v5923_v3 = vor.u32 %v5922_v0, %v5918_v48  ;;  %v3978_v55 = vor.u32 %v3977_v27, %v3973_v53  ;;  %v3987_v0 = vshll.u32 %v16378_v20, 16  ;;  %v3999_v27 = vshll.u32 %v16383_v44, 16 }
 0x340   : > { %v5939_v41 = vrot.slane %v5937_v29, 1  ;;  %v3994_v53 = vrot.slane %v3992_v56, 1 }
 0x341   : > { %v5928_v25 = vsel %vm399_vm1, %v5923_v3, %v5927_v59  ;;  %v3989_v14 = vrot.slane %v3987_v0, 1  ;;  %v16605_v3 = vld [vmem:[#allocation2 + $0x48] sm:$0xff]   ;;  %v5942_v59 = vshrl.u32 %v16584_v51, 16 }
 0x345   : > { %5423 = vmatmul.mubr.bf16.vlgmr.msra.gmra.mrb[144].mxu0 %v16356_v13  ;;  %v5930_v13 = vshrl.u32 %v16563_v12, 16 }
 0x346   : > { %6402 = vmatmul.mubr.bf16.vlgmr.msra.gmra.mrb[176].mxu1 %v16527_v9  ;;  %5430 = vmatprep.mubr.bf16.mxu0 %v3971_v2  ;;  %v3990_v2 = vor.u32 %v3989_v14, %v3985_v38  ;;  %v4011_v14 = vshll.u32 %v16409_v63, 16 }
 0x347   : > { %6409 = vmatprep.mubr.bf16.mxu1 %v5928_v25  ;;  %13076 = vmatpush3.bf16.msra.mxu1 %v16488_v45  ;;  %v5935_v24 = vor.u32 %v5934_v62, %v5930_v13  ;;  %v3982_v45 = vrot.slane %v3980_v7, 1  ;;  %v5947_v25 = vor.u32 %v5946_v40, %v5942_v59  ;;  %v5956_v62 = vshll.u32 %v16605_v3, 16  ;;  %v14033_v13 = vld [vmem:[%s18550_s1 + $0x228] sm:$0xff]   ;;  %v14043_v59 = vld [vmem:[%s18550_s1 + $0x238] sm:$0xff]  }
 0x348   : > { %13077 = vmatprep.subr.bf16.mxu1 %v14013_v39  ;;  %v3995_v29 = vsel %vm399_vm1, %v3990_v2, %v3994_v53  ;;  %v4016_v53 = vshll.u32 %v16411_v5, 16 }
 0x349   : > { %v3983_v48 = vsel %vm399_vm1, %v3978_v55, %v3982_v45  ;;  %v5940_v57 = vsel %vm399_vm1, %v5935_v24, %v5939_v41  ;;  %v5958_v0 = vrot.slane %v5956_v62, 1  ;;  %v16625_v24 = vld [vmem:[#allocation2 + $0x54] sm:$0xff]   ;;  %v4004_v45 = vshll.u32 %v16385_v16, 16  ;;  %v16636_v16 = vld [vmem:[#allocation2 + $0x5c] ss:$0 sps:$4 sm:$0x11]  }
 0x34a   : > { %v5954_v41 = vshrl.u32 %v16605_v3, 16  ;;  %v5968_v40 = vshll.u32 %v16625_v24, 16  ;;  %v4009_v62 = vshrl.u32 %v16409_v63, 16 }
 0x34b   : > { %13078 = vmatpush3.bf16.msra.mxu1 %v14013_v39  ;;  %v14028_v39 = vld [vmem:[%s18550_s1 + $0x220] sm:$0xff]   ;;  %v4006_v38 = vrot.slane %v4004_v45, 1  ;;  %v16653_v45 = vld [vmem:[#allocation2 + $0x68] ss:$0 sps:$4 sm:$0x11]  }
 0x34c   : > { %13079 = vmatprep.subr.bf16.mxu1 %v14018_v46 }
 0x34d   : > { %5431 = vmatmul.mubr.bf16.gmra.mrb[148].mxu0 %v16344_v30  ;;  %v5949_v30 = vshll.u32 %v16596_v60, 16 }
 0x34e   : > { %6410 = vmatmul.mubr.bf16.gmra.mrb[180].mxu1 %v16549_v28  ;;  %5438 = vmatprep.mubr.bf16.mxu0 %v3983_v48 }
 0x34f   : > { %6417 = vmatprep.mubr.bf16.mxu1 %v5940_v57  ;;  %13080 = vmatpush3.bf16.msra.mxu1 %v14018_v46  ;;  %v5951_v7 = vrot.slane %v5949_v30, 1  ;;  %v4001_v46 = vrot.slane %v3999_v27, 1  ;;  %v5959_v57 = vor.u32 %v5958_v0, %v5954_v41  ;;  %v5970_v27 = vrot.slane %v5968_v40, 1 }
 0x350   : > { %13081 = vmatprep.subr.bf16.mxu1 %v14023_v49  ;;  %v4018_v0 = vrot.slane %v4016_v53, 1 }
 0x351   : > { %v5952_v55 = vsel %vm399_vm1, %v5947_v25, %v5951_v7  ;;  %v4002_v48 = vor.u32 %v4001_v46, %v3997_v31  ;;  %v16645_v25 = vld [vmem:[#allocation2 + $0x60] sm:$0xff]   ;;  %v5966_v7 = vshrl.u32 %v16625_v24, 16 }
 0x352   : > { %v5978_v40 = vshrl.u32 %v16645_v25, 16 }
 0x353   : > { %13082 = vmatpush3.bf16.msra.mxu1 %v14023_v49  ;;  %v14038_v49 = vld [vmem:[%s18550_s1 + $0x230] sm:$0xff]   ;;  %v4007_v30 = vsel %vm399_vm1, %v4002_v48, %v4006_v38  ;;  %v5971_v46 = vor.u32 %v5970_v27, %v5966_v7 }
 0x354   : > { %13083 = vmatprep.subr.bf16.mxu1 %v14028_v39  ;;  %v16659_v48 = vld [vmem:[#allocation2 + $0x6c] sm:$0xff]   ;;  %v16667_v27 = vld [vmem:[#allocation2 + $0x74] ss:$0 sps:$4 sm:$0x11]  }
 0x355   : > { %5439 = vmatmul.mubr.bf16.gmra.mrb[152].mxu0 %v16346_v19  ;;  %v5961_v19 = vshll.u32 %v16616_v10, 16 }
 0x356   : > { %6418 = vmatmul.mubr.bf16.gmra.mrb[184].mxu1 %v16563_v12  ;;  %5446 = vmatprep.mubr.bf16.mxu0 %v3995_v29  ;;  %v4023_v29 = vshll.u32 %v16417_v22, 16 }
 0x357   : > { %6425 = vmatprep.mubr.bf16.mxu1 %v5952_v55  ;;  %13084 = vmatpush3.bf16.msra.mxu1 %v14028_v39  ;;  %v5963_v56 = vrot.slane %v5961_v19, 1  ;;  %v4013_v39 = vrot.slane %v4011_v14, 1  ;;  %v5980_v55 = vshll.u32 %v16645_v25, 16  ;;  %v4021_v14 = vshrl.u32 %v16417_v22, 16 }
 0x358   : > { %13085 = vmatprep.subr.bf16.mxu1 %v14033_v13  ;;  %v4025_v41 = vrot.slane %v4023_v29, 1  ;;  %v4040_v29 = vshll.u32 %v16442_v42, 16 }
 0x359   : > { %v5964_v2 = vsel %vm399_vm1, %v5959_v57, %v5963_v56  ;;  %v4028_v57 = vshll.u32 %v16419_v15, 16  ;;  %v4035_v56 = vshll.u32 %v16434_v47, 16 }
 0x35a   : > { %v4026_v38 = vor.u32 %v4025_v41, %v4021_v14  ;;  %v4042_v41 = vrot.slane %v4040_v29, 1 }
 0x35b   : > { %13086 = vmatpush3.bf16.msra.mxu1 %v14033_v13  ;;  %v4014_v13 = vor.u32 %v4013_v39, %v4009_v62  ;;  %v4030_v39 = vrot.slane %v4028_v57, 1  ;;  %v4037_v53 = vrot.slane %v4035_v56, 1  ;;  %v4052_v56 = vshll.u32 %v16447_v6, 16 }
 0x35c   : > { %13087 = vmatprep.subr.bf16.mxu1 %v14038_v49 }
 0x35d   : > { %5447 = vmatmul.mubr.bf16.gmra.mrb[156].mxu0 %v16378_v20  ;;  %v5973_v20 = vshll.u32 %v16636_v16, 16  ;;  %v4019_v5 = vsel %vm399_vm1, %v4014_v13, %v4018_v0  ;;  %v4031_v62 = vsel %vm399_vm1, %v4026_v38, %v4030_v39  ;;  %v4033_v13 = vshrl.u32 %v16434_v47, 16 }
 0x35e   : > { %6426 = vmatmul.mubr.bf16.gmra.mrb[188].mxu1 %v16584_v51  ;;  %5454 = vmatprep.mubr.bf16.mxu0 %v4007_v30  ;;  %v5992_v30 = vshll.u32 %v16659_v48, 16  ;;  %v4047_v0 = vshll.u32 %v16445_v8, 16  ;;  %v4045_v38 = vshrl.u32 %v16445_v8, 16  ;;  %v4059_v39 = vshll.u32 %v16471_v34, 16 }
 0x35f   : > { %6433 = vmatprep.mubr.bf16.mxu1 %v5964_v2  ;;  %13088 = vmatpush3.bf16.msra.mxu1 %v14038_v49  ;;  %v5975_v31 = vrot.slane %v5973_v20, 1  ;;  %v5982_v49 = vrot.slane %v5980_v55, 1  ;;  %v16673_v20 = vld [vmem:[#allocation2 + $0x78] sm:$0xff]   ;;  %v4038_v55 = vor.u32 %v4037_v53, %v4033_v13  ;;  %v4054_v53 = vrot.slane %v4052_v56, 1 }
 0x360   : > { %13089 = vmatprep.subr.bf16.mxu1 %v14043_v59  ;;  %v5994_v7 = vrot.slane %v5992_v30, 1  ;;  %v4049_v57 = vrot.slane %v4047_v0, 1  ;;  %v4061_v29 = vrot.slane %v4059_v39, 1  ;;  %v4064_v0 = vshll.u32 %v16473_v54, 16 }
 0x361   : > { %v5976_v19 = vsel %vm399_vm1, %v5971_v46, %v5975_v31  ;;  %v5990_v46 = vshrl.u32 %v16659_v48, 16  ;;  %v4043_v14 = vsel %vm399_vm1, %v4038_v55, %v4042_v41  ;;  %v4057_v55 = vshrl.u32 %v16471_v34, 16 }
 0x362   : > { %v4050_v30 = vor.u32 %v4049_v57, %v4045_v38  ;;  %v4071_v41 = vshll.u32 %v16476_v11, 16  ;;  %v4066_v57 = vrot.slane %v4064_v0, 1  ;;  %v4076_v39 = vshll.u32 %v16478_v18, 16 }
 0x363   : > { %13090 = vmatpush3.bf16.msra.mxu1 %v14043_v59  ;;  %v5983_v59 = vor.u32 %v5982_v49, %v5978_v40  ;;  %v5995_v31 = vor.u32 %v5994_v7, %v5990_v46  ;;  %v16681_v49 = vld [vmem:[#allocation2 + $0x80] ss:$0 sps:$4 sm:$0x11]   ;;  %v16695_v7 = vld [vmem:[#allocation2 + $0x8c] ss:$0 sps:$4 sm:$0x11]  }
 0x364   : > { %v4055_v13 = vsel %vm399_vm1, %v4050_v30, %v4054_v53  ;;  %v4073_v56 = vrot.slane %v4071_v41, 1  ;;  %v4069_v30 = vshrl.u32 %v16476_v11, 16 }
 0x365   : > { %5455 = vmatmul.mubr.bf16.gmra.mrb[160].mxu0 %v16383_v44  ;;  %v5985_v44 = vshll.u32 %v16653_v45, 16 }
 0x366   : > { %6434 = vmatmul.mubr.bf16.gmra.mrb[192].mxu1 %v16605_v3  ;;  %5462 = vmatprep.mubr.bf16.mxu0 %v4019_v5  ;;  %v6004_v5 = vshll.u32 %v16673_v20, 16 }
 0x367   : > { %6441 = vmatprep.mubr.bf16.mxu1 %v5976_v19  ;;  %v5987_v2 = vrot.slane %v5985_v44, 1  ;;  %v16687_v44 = vld [vmem:[#allocation2 + $0x84] sm:$0xff]  }
 0x368   : > { %v6006_v40 = vrot.slane %v6004_v5, 1  ;;  %v4062_v5 = vor.u32 %v4061_v29, %v4057_v55 }
 0x369   : > { %v5988_v15 = vsel %vm399_vm1, %v5983_v59, %v5987_v2  ;;  %v6002_v59 = vshrl.u32 %v16673_v20, 16 }
 0x36a   : > { %v4067_v38 = vsel %vm399_vm1, %v4062_v5, %v4066_v57  ;;  %v16727_v5 = vld [vmem:[#allocation2 + $0xa4] ss:$0 sps:$4 sm:$0x11]  }
 0x36b   : > { %v6007_v2 = vor.u32 %v6006_v40, %v6002_v59  ;;  %v16709_v40 = vld [vmem:[#allocation2 + $0x98] ss:$0 sps:$4 sm:$0x11]  }
 0x36d   : > { %5463 = vmatmul.mubr.bf16.gmra.mrb[164].mxu0 %v16409_v63  ;;  %v5997_v63 = vshll.u32 %v16667_v27, 16 }
 0x36e   : > { %6442 = vmatmul.mubr.bf16.gmra.mrb[196].mxu1 %v16625_v24  ;;  %5470 = vmatprep.mubr.bf16.mxu0 %v4031_v62  ;;  %v6016_v62 = vshll.u32 %v16687_v44, 16 }
 0x36f   : > { %6449 = vmatprep.mubr.bf16.mxu1 %v5988_v15  ;;  %v5999_v19 = vrot.slane %v5997_v63, 1  ;;  %v16701_v63 = vld [vmem:[#allocation2 + $0x90] sm:$0xff]  }
 0x370   : > { %v6018_v46 = vrot.slane %v6016_v62, 1  ;;  %v6026_v62 = vshrl.u32 %v16701_v63, 16 }
 0x371   : > { %v6000_v42 = vsel %vm399_vm1, %v5995_v31, %v5999_v19  ;;  %v6014_v31 = vshrl.u32 %v16687_v44, 16 }
 0x373   : > { %v6019_v19 = vor.u32 %v6018_v46, %v6014_v31  ;;  %v4078_v31 = vrot.slane %v4076_v39, 1  ;;  %v4095_v39 = vshll.u32 %v16504_v33, 16 }
 0x375   : > { %5471 = vmatmul.mubr.bf16.gmra.mrb[168].mxu0 %v16417_v22  ;;  %v6009_v22 = vshll.u32 %v16681_v49, 16 }
 0x376   : > { %6450 = vmatmul.mubr.bf16.gmra.mrb[200].mxu1 %v16645_v25  ;;  %5478 = vmatprep.mubr.bf16.mxu0 %v4043_v14  ;;  %v6028_v14 = vshll.u32 %v16701_v63, 16 }
 0x377   : > { %6457 = vmatprep.mubr.bf16.mxu1 %v6000_v42  ;;  %v6011_v15 = vrot.slane %v6009_v22, 1  ;;  %v16715_v22 = vld [vmem:[#allocation2 + $0x9c] sm:$0xff]  }
 0x378   : > { %v6030_v59 = vrot.slane %v6028_v14, 1  ;;  %v6040_v55 = vshll.u32 %v16715_v22, 16 }
 0x379   : > { %v6012_v6 = vsel %vm399_vm1, %v6007_v2, %v6011_v15  ;;  %v4074_v15 = vor.u32 %v4073_v56, %v4069_v30  ;;  %v4088_v56 = vshll.u32 %v16495_v58, 16 }
 0x37a   : > { %v6031_v46 = vor.u32 %v6030_v59, %v6026_v62  ;;  %v6042_v57 = vrot.slane %v6040_v55, 1  ;;  %v16743_v55 = vld [vmem:[#allocation2 + $0xb0] ss:$0 sps:$4 sm:$0x11]  }
 0x37b   : > { %v4079_v41 = vsel %vm399_vm1, %v4074_v15, %v4078_v31  ;;  %v4097_v31 = vrot.slane %v4095_v39, 1 }
 0x37d   : > { %5479 = vmatmul.mubr.bf16.gmra.mrb[172].mxu0 %v16434_v47  ;;  %v6021_v47 = vshll.u32 %v16695_v7, 16 }
 0x37e   : > { %6458 = vmatmul.mubr.bf16.gmra.mrb[204].mxu1 %v16659_v48  ;;  %5486 = vmatprep.mubr.bf16.mxu0 %v4055_v13  ;;  %v4083_v13 = vshll.u32 %v16501_v17, 16 }
 0x37f   : > { %6465 = vmatprep.mubr.bf16.mxu1 %v6012_v6  ;;  %v6023_v42 = vrot.slane %v6021_v47, 1 }
 0x381   : > { %v6024_v54 = vsel %vm399_vm1, %v6019_v19, %v6023_v42  ;;  %v4085_v19 = vrot.slane %v4083_v13, 1  ;;  %v16733_v42 = vld [vmem:[#allocation2 + $0xa8] sm:$0xff]   ;;  %v4090_v13 = vrot.slane %v4088_v56, 1 }
 0x385   : > { %5487 = vmatmul.mubr.bf16.gmra.mrb[176].mxu0 %v16445_v8  ;;  %v6033_v8 = vshll.u32 %v16709_v40, 16 }
 0x386   : > { %6466 = vmatmul.mubr.bf16.gmra.mrb[208].mxu1 %v16673_v20  ;;  %5494 = vmatprep.mubr.bf16.mxu0 %v4067_v38  ;;  %v4081_v38 = vshrl.u32 %v16501_v17, 16 }
 0x387   : > { %6473 = vmatprep.mubr.bf16.mxu1 %v6024_v54  ;;  %v12035_v2 = vpop.f32.mrb[80].mxu0  ;;  %v6035_v18 = vrot.slane %v6033_v8, 1  ;;  %v6038_v54 = vshrl.u32 %v16715_v22, 16  ;;  %v6052_v8 = vshll.u32 %v16733_v42, 16 }
 0x388   : > { %v12036_v53 = vpop.f32.mrb[81].mxu0  ;;  %v4086_v30 = vor.u32 %v4085_v19, %v4081_v38  ;;  %v16751_v19 = vld [vmem:[#allocation2 + $0xb4] sm:$0xff]   ;;  %v6050_v38 = vshrl.u32 %v16733_v42, 16 }
 0x389   : > { %v16722_v29 = vadd.f32 %v12036_v53, %v12035_v2  ;;  %v12038_v6 = vpop.f32.mrb[82].mxu0  ;;  %v6036_v14 = vsel %vm399_vm1, %v6031_v46, %v6035_v18  ;;  %v6043_v62 = vor.u32 %v6042_v57, %v6038_v54  ;;  %v4100_v57 = vshll.u32 %v16506_v61, 16 }
 0x38a   : > { %v12039_v0 = vpop.f32.mrb[83].mxu0  ;;  %v4107_v54 = vshll.u32 %v16518_v4, 16 }
 0x38b   : > { %v16725_v47 = vadd.f32 %v12039_v0, %v12038_v6  ;;  %v4091_v0 = vsel %vm399_vm1, %v4086_v30, %v4090_v13  ;;  %v4102_v30 = vrot.slane %v4100_v57, 1 }
 0x38d   : > { %5495 = vmatmul.mubr.bf16.gmra.mrb[180].mxu0 %v16471_v34  ;;  %v6045_v34 = vshll.u32 %v16727_v5, 16 }
 0x38e   : > { %6474 = vmatmul.mubr.bf16.gmra.mrb[212].mxu1 %v16687_v44  ;;  %5502 = vmatprep.mubr.bf16.mxu0 %v4079_v41  ;;  %v6054_v41 = vrot.slane %v6052_v8, 1  ;;  %v4109_v8 = vrot.slane %v4107_v54, 1 }
 0x38f   : > { %6481 = vmatprep.mubr.bf16.mxu1 %v6036_v14  ;;  %v12041_v59 = vpop.f32.mrb[84].mxu0  ;;  %v6047_v46 = vrot.slane %v6045_v34, 1  ;;  %v4093_v14 = vshrl.u32 %v16504_v33, 16 }
 0x390   : > { %v12042_v2 = vpop.f32.mrb[85].mxu0  ;;  %v6055_v34 = vor.u32 %v6054_v41, %v6050_v38 }
 0x391   : > { %v16741_v53 = vadd.f32 %v12042_v2, %v12041_v59  ;;  %v12044_v15 = vpop.f32.mrb[86].mxu0  ;;  %v6048_v18 = vsel %vm399_vm1, %v6043_v62, %v6047_v46  ;;  %v4098_v56 = vor.u32 %v4097_v31, %v4093_v14  ;;  %v6064_v59 = vshll.u32 %v16751_v19, 16  ;;  %v16759_v2 = vld [vmem:[#allocation2 + $0xbc] ss:$0 sps:$4 sm:$0x11]  }
 0x392   : > { %v12045_v6 = vpop.f32.mrb[87].mxu0  ;;  %v4105_v46 = vshrl.u32 %v16518_v4, 16 }
 0x393   : > { %v16745_v58 = vadd.f32 %v12045_v6, %v12044_v15  ;;  %v4103_v62 = vsel %vm399_vm1, %v4098_v56, %v4102_v30  ;;  %v6066_v15 = vrot.slane %v6064_v59, 1  ;;  %v16765_v6 = vld [vmem:[#allocation2 + $0xc0] sm:$0xff]  }
 0x394   : > { %v4110_v57 = vor.u32 %v4109_v8, %v4105_v46  ;;  %v6076_v54 = vshll.u32 %v16765_v6, 16  ;;  %v4124_v46 = vshll.u32 %v16525_v23, 16 }
 0x395   : > { %5503 = vmatmul.mubr.bf16.gmra.mrb[184].mxu0 %v16476_v11  ;;  %v6057_v11 = vshll.u32 %v16743_v55, 16 }
 0x396   : > { %6482 = vmatmul.mubr.bf16.gmra.mrb[216].mxu1 %v16701_v63  ;;  %5510 = vmatprep.mubr.bf16.mxu0 %v4091_v0  ;;  %v4112_v0 = vshll.u32 %v16520_v50, 16  ;;  %v16777_v50 = vld [vmem:[#allocation2 + $0xc8] ss:$0 sps:$4 sm:$0x11]  }
 0x397   : > { %6489 = vmatprep.mubr.bf16.mxu1 %v6048_v18  ;;  %v6059_v39 = vrot.slane %v6057_v11, 1  ;;  %v6069_v18 = vshll.u32 %v16759_v2, 16  ;;  %v4119_v11 = vshll.u32 %v16523_v52, 16 }
 0x398   : > { %v4114_v59 = vrot.slane %v4112_v0, 1  ;;  %v6074_v0 = vshrl.u32 %v16765_v6, 16 }
 0x399   : > { %v6060_v61 = vsel %vm399_vm1, %v6055_v34, %v6059_v39  ;;  %v6071_v30 = vrot.slane %v6069_v18, 1  ;;  %v16779_v39 = vld [vmem:[#allocation2 + $0xcc] sm:$0xff]  }
 0x39d   : > { %5511 = vmatmul.mubr.bf16.gmra.mrb[188].mxu0 %v16501_v17  ;;  %v12047_v13 = vpop.f32.mrb[88].mxu0  ;;  %v6062_v17 = vshrl.u32 %v16751_v19, 16 }
 0x39e   : > { %6490 = vmatmul.mubr.bf16.gmra.mrb[220].mxu1 %v16715_v22  ;;  %5518 = vmatprep.mubr.bf16.mxu0 %v4103_v62  ;;  %v12048_v31 = vpop.f32.mrb[89].mxu0  ;;  %v4115_v62 = vsel %vm399_vm1, %v4110_v57, %v4114_v59 }
 0x39f   : > { %6497 = vmatprep.mubr.bf16.mxu1 %v6060_v61  ;;  %v16771_v41 = vadd.f32 %v12048_v31, %v12047_v13  ;;  %v12050_v14 = vpop.f32.mrb[90].mxu0  ;;  %v6067_v56 = vor.u32 %v6066_v15, %v6062_v17  ;;  %v4121_v61 = vrot.slane %v4119_v11, 1  ;;  %v6078_v15 = vrot.slane %v6076_v54, 1  ;;  %v16789_v17 = vld [vmem:[#allocation2 + $0xd4] ss:$0 sps:$4 sm:$0x11]  }
 0x3a0   : > { %v12051_v38 = vpop.f32.mrb[91].mxu0  ;;  %v4117_v13 = vshrl.u32 %v16523_v52, 16  ;;  %v6081_v31 = vshll.u32 %v16777_v50, 16  ;;  %v6093_v59 = vshll.u32 %v16789_v17, 16 }
 0x3a1   : > { %v16775_v34 = vadd.f32 %v12051_v38, %v12050_v14  ;;  %v6072_v8 = vsel %vm399_vm1, %v6067_v56, %v6071_v30  ;;  %v4131_v14 = vshll.u32 %v16544_v36, 16  ;;  %v6079_v57 = vor.u32 %v6078_v15, %v6074_v0 }
 0x3a2   : > { %v4122_v18 = vor.u32 %v4121_v61, %v4117_v13  ;;  %v4126_v38 = vrot.slane %v4124_v46, 1  ;;  %v6083_v11 = vrot.slane %v6081_v31, 1  ;;  %v6086_v56 = vshrl.u32 %v16779_v39, 16 }
 0x3a3   : > { %v4129_v46 = vshrl.u32 %v16544_v36, 16  ;;  %v4136_v0 = vshll.u32 %v16546_v35, 16 }
 0x3a4   : > { %v4127_v23 = vsel %vm399_vm1, %v4122_v18, %v4126_v38  ;;  %v6084_v61 = vsel %vm399_vm1, %v6079_v57, %v6083_v11 }
 0x3a5   : > { %5519 = vmatmul.mubr.bf16.gmra.mrb[192].mxu0 %v16504_v33  ;;  %v6088_v33 = vshll.u32 %v16779_v39, 16  ;;  %v4138_v38 = vrot.slane %v4136_v0, 1  ;;  %v6120_v0 = vrot.slane %v16575_v37, 1 }
 0x3a6   : > { %6498 = vmatmul.mubr.bf16.gmra.mrb[224].mxu1 %v16733_v42  ;;  %5526 = vmatprep.mubr.bf16.mxu0 %v4115_v62  ;;  %v4133_v62 = vrot.slane %v4131_v14, 1 }
 0x3a7   : > { %6505 = vmatprep.mubr.bf16.mxu1 %v6072_v8  ;;  %v6090_v54 = vrot.slane %v6088_v33, 1  ;;  %v6095_v33 = vrot.slane %v6093_v59, 1  ;;  %v6114_v59 = vrot.slane %v16539_v32, 1  ;;  %v6119_v32 = vrot.slane %v16563_v12, 1 }
 0x3a8   : > { %v4134_v14 = vor.u32 %v4133_v62, %v4129_v46 }
 0x3aa   : > { %v4139_v57 = vsel %vm399_vm1, %v4134_v14, %v4138_v38  ;;  %v6122_v14 = vrot.slane %v16584_v51, 1  ;;  %v6123_v38 = vrot.slane %v16596_v60, 1  ;;  %v6128_v60 = vrot.slane %v16625_v24, 1 }
 0x3ac   : > { %v12053_v30 = vpop.f32.mrb[92].mxu0 }
 0x3ad   : > { %5527 = vmatmul.mubr.bf16.gmra.mrb[196].mxu0 %v16518_v4  ;;  %v12054_v8 = vpop.f32.mrb[93].mxu0  ;;  %v6091_v4 = vor.u32 %v6090_v54, %v6086_v56  ;;  %v6113_v54 = vrot.slane %v16527_v9, 1 }
 0x3ae   : > { %6506 = vmatmul.mubr.bf16.gmra.mrb[228].mxu1 %v16751_v19  ;;  %5534 = vmatprep.mubr.bf16.mxu0 %v4127_v23  ;;  %v16799_v15 = vadd.f32 %v12054_v8, %v12053_v30  ;;  %v12056_v13 = vpop.f32.mrb[94].mxu0  ;;  %v6116_v8 = vrot.slane %v16549_v28, 1 }
 0x3af   : > { %6513 = vmatprep.mubr.bf16.mxu1 %v6084_v61  ;;  %v12057_v31 = vpop.f32.mrb[95].mxu0  ;;  %v6096_v43 = vsel %vm399_vm1, %v6091_v4, %v6095_v33  ;;  %v14047_v4 = vld [vmem:[%s18550_s1 + $0xc0] sm:$0xff]  }
 0x3b0   : > { %v16803_v18 = vadd.f32 %v12057_v31, %v12056_v13  ;;  %v6117_v13 = vrot.slane %v16557_v1, 1  ;;  %v6121_v1 = vsel %vm640_vm0, %v6119_v32, %v6120_v0  ;;  %v14048_v32 = vld [vmem:[%s18550_s1 + $0x108] sm:$0xff]  }
 0x3b1   : > { %v14049_v0 = vld [vmem:[%s18550_s1 + $0xc8] sm:$0xff]  }
 0x3b2   : > { %v6118_v28 = vsel %vm640_vm0, %v6116_v8, %v6117_v13  ;;  %v6132_v13 = vrot.slane %v16653_v45, 1 }
 0x3b5   : > { %5535 = vmatmul.mubr.bf16.gmra.mrb[200].mxu0 %v16523_v52  ;;  %v6115_v52 = vsel %vm640_vm0, %v6113_v54, %v6114_v59 }
 0x3b6   : > { %6514 = vmatmul.mubr.bf16.gmra.mrb[232].mxu1 %v16765_v6  ;;  %5542 = vmatprep.mubr.bf16.mxu0 %v4139_v57 }
 0x3b7   : > { %6521 = vmatprep.mubr.bf16.mxu1 %v6096_v43 }
 0x3b8   : > { %v12059_v11 = vpop.f32.mrb[96].mxu0 }
 0x3b9   : > { %v12060_v23 = vpop.f32.mrb[97].mxu0 }
 0x3ba   : > { %v16809_v35 = vadd.f32 %v12060_v23, %v12059_v11  ;;  %v12062_v56 = vpop.f32.mrb[98].mxu0  ;;  %v6125_v23 = vrot.slane %v16605_v3, 1 }
 0x3bb   : > { %v12063_v30 = vpop.f32.mrb[99].mxu0 }
 0x3bc   : > { %v16813_v62 = vadd.f32 %v12063_v30, %v12062_v56  ;;  %v6126_v56 = vrot.slane %v16616_v10, 1  ;;  %v6124_v30 = vsel %vm640_vm0, %v6122_v14, %v6123_v38  ;;  %v6131_v10 = vrot.slane %v16645_v25, 1 }
 0x3bd   : > { %5543 = vmatmul.mubr.bf16.gmra.mrb[204].mxu0 %v16544_v36  ;;  %v14046_v36 = vld [vmem:[%s18550_s1 + $0x100] sm:$0xff]  }
 0x3be   : > { %6522 = vmatmul.mubr.bf16.gmra.mrb[236].mxu1 %v16779_v39  ;;  %12427 = vmatprep.subr.bf16.mxu0 %v14046_v36  ;;  %v6134_v36 = vrot.slane %v16659_v48, 1 }
 0x3bf   : > { %13091 = vmatprep.mubr.bf16.mxu1 %v6115_v52  ;;  %12428 = vmatpush3.bf16.msra.mxu0 %v14047_v4  ;;  %v6127_v52 = vsel %vm640_vm0, %v6125_v23, %v6126_v56  ;;  %v6135_v4 = vrot.slane %v16667_v27, 1  ;;  %v6140_v27 = vrot.slane %v16687_v44, 1 }
 0x3c0   : > { %v12065_v43 = vpop.f32.mrb[100].mxu0  ;;  %12429 = vmatprep.subr.bf16.mxu0 %v14048_v32  ;;  %v6149_v32 = vrot.slane %v16733_v42, 1 }
 0x3c1   : > { %v12066_v61 = vpop.f32.mrb[101].mxu0 }
 0x3c2   : > { %v16820_v46 = vadd.f32 %v12066_v61, %v12065_v43  ;;  %v12068_v9 = vpop.f32.mrb[102].mxu0  ;;  %v6129_v61 = vrot.slane %v16636_v16, 1  ;;  %v6133_v16 = vsel %vm640_vm0, %v6131_v10, %v6132_v13  ;;  %v6147_v10 = vrot.slane %v16727_v5, 1 }
 0x3c3   : > { %v12069_v31 = vpop.f32.mrb[103].mxu0  ;;  %12430 = vmatpush3.bf16.msra.mxu0 %v14049_v0  ;;  %v6150_v0 = vrot.slane %v16743_v55, 1  ;;  %v6152_v5 = vrot.slane %v16751_v19, 1  ;;  %v6155_v55 = vrot.slane %v16765_v6, 1  ;;  %v6158_v6 = vrot.slane %v16779_v39, 1  ;;  %v14054_v39 = vld [vmem:[%s18550_s1 + $0x120] sm:$0xff]  }
 0x3c4   : > { %v16830_v33 = vadd.f32 %v12069_v31, %v12068_v9  ;;  %v6130_v24 = vsel %vm640_vm0, %v6128_v60, %v6129_v61  ;;  %v14051_v60 = vld [vmem:[%s18550_s1 + $0xd0] sm:$0xff]  }
 0x3c6   : > { %13092 = vmatmul.mubr.bf16.vlgmr.msra.gmra.mrb[144].mxu1 %v6118_v28 }
 0x3c7   : > { %13095 = vmatprep.mubr.bf16.mxu1 %v6121_v1 }
 0x3c8   : > { %v12071_v12 = vpop.f32.mrb[104].mxu0 }
 0x3c9   : > { %v12072_v37 = vpop.f32.mrb[105].mxu0 }
 0x3ca   : > { %v16836_v57 = vadd.f32 %v12072_v37, %v12071_v12  ;;  %v12074_v11 = vpop.f32.mrb[106].mxu0  ;;  %v6137_v12 = vrot.slane %v16673_v20, 1  ;;  %v6138_v37 = vrot.slane %v16681_v49, 1  ;;  %v6143_v49 = vrot.slane %v16701_v63, 1 }
 0x3cb   : > { %v12075_v54 = vpop.f32.mrb[107].mxu0 }
 0x3cc   : > { %v16840_v59 = vadd.f32 %v12075_v54, %v12074_v11  ;;  %v6136_v11 = vsel %vm640_vm0, %v6134_v36, %v6135_v4  ;;  %v6139_v23 = vsel %vm640_vm0, %v6137_v12, %v6138_v37  ;;  %v6141_v54 = vrot.slane %v16695_v7, 1 }
 0x3cd   : > { %v6153_v4 = vrot.slane %v16759_v2, 1  ;;  %v6156_v12 = vrot.slane %v16777_v50, 1  ;;  %v6159_v50 = vrot.slane %v16789_v17, 1  ;;  %v14055_v17 = vld [vmem:[%s18550_s1 + $0xe0] sm:$0xff]  }
 0x3ce   : > { %13096 = vmatmul.mubr.bf16.gmra.mrb[148].mxu1 %v6124_v30  ;;  %v6142_v44 = vsel %vm640_vm0, %v6140_v27, %v6141_v54 }
 0x3cf   : > { %13099 = vmatprep.mubr.bf16.mxu1 %v6127_v52  ;;  %v6144_v52 = vrot.slane %v16709_v40, 1  ;;  %v6154_v19 = vsel %vm640_vm0, %v6152_v5, %v6153_v4  ;;  %v6157_v2 = vsel %vm640_vm0, %v6155_v55, %v6156_v12  ;;  %v14056_v5 = vld [vmem:[%s18550_s1 + $0x128] sm:$0xff]  }
 0x3d0   : > { %v12077_v43 = vpop.f32.mrb[108].mxu0  ;;  %v14057_v4 = vld [vmem:[%s18550_s1 + $0xe8] sm:$0xff]  }
 0x3d1   : > { %v12078_v51 = vpop.f32.mrb[109].mxu0  ;;  %v6145_v7 = vsel %vm640_vm0, %v6143_v49, %v6144_v52 }
 0x3d2   : > { %v16846_v8 = vadd.f32 %v12078_v51, %v12077_v43  ;;  %v12080_v3 = vpop.f32.mrb[110].mxu0  ;;  %v14050_v51 = vld [vmem:[%s18550_s1 + $0x110] sm:$0xff]  }
 0x3d3   : > { %v12081_v9 = vpop.f32.mrb[111].mxu0  ;;  %12431 = vmatprep.subr.bf16.mxu0 %v14050_v51 }
 0x3d4   : > { %v16856_v31 = vadd.f32 %v12081_v9, %v12080_v3  ;;  %12432 = vmatpush3.bf16.msra.mxu0 %v14051_v60  ;;  %v6146_v3 = vrot.slane %v16715_v22, 1 }
 0x3d6   : > { %13100 = vmatmul.mubr.bf16.gmra.mrb[152].mxu1 %v6130_v24 }
 0x3d7   : > { %13103 = vmatprep.mubr.bf16.mxu1 %v6133_v16 }
 0x3d8   : > { %v12083_v25 = vpop.f32.mrb[112].mxu0 }
 0x3d9   : > { %v12084_v45 = vpop.f32.mrb[113].mxu0 }
 0x3da   : > { %v16862_v28 = vadd.f32 %v12084_v45, %v12083_v25  ;;  %v12086_v1 = vpop.f32.mrb[114].mxu0  ;;  %v6148_v25 = vsel %vm640_vm0, %v6146_v3, %v6147_v10  ;;  %v6151_v45 = vsel %vm640_vm0, %v6149_v32, %v6150_v0 }
 0x3db   : > { %v12087_v14 = vpop.f32.mrb[115].mxu0 }
 0x3dc   : > { %v16866_v38 = vadd.f32 %v12087_v14, %v12086_v1  ;;  %v14052_v14 = vld [vmem:[%s18550_s1 + $0x118] sm:$0xff]  }
 0x3dd   : > { %12433 = vmatprep.subr.bf16.mxu0 %v14052_v14 }
 0x3de   : > { %13104 = vmatmul.mubr.bf16.gmra.mrb[156].mxu1 %v6136_v11  ;;  %v14053_v11 = vld [vmem:[%s18550_s1 + $0xd8] sm:$0xff]  }
 0x3df   : > { %13107 = vmatprep.mubr.bf16.mxu1 %v6139_v23  ;;  %12434 = vmatpush3.bf16.msra.mxu0 %v14053_v11 }
 0x3e0   : > { %v12089_v56 = vpop.f32.mrb[116].mxu0  ;;  %12435 = vmatprep.subr.bf16.mxu0 %v14054_v39 }
 0x3e1   : > { %v12090_v48 = vpop.f32.mrb[117].mxu0 }
 0x3e2   : > { %v16872_v30 = vadd.f32 %v12090_v48, %v12089_v56  ;;  %v12092_v20 = vpop.f32.mrb[118].mxu0 }
 0x3e3   : > { %v12093_v43 = vpop.f32.mrb[119].mxu0  ;;  %12436 = vmatpush3.bf16.msra.mxu0 %v14055_v17 }
 0x3e4   : > { %v16882_v61 = vadd.f32 %v12093_v43, %v12092_v20  ;;  %v6160_v20 = vsel %vm640_vm0, %v6158_v6, %v6159_v50  ;;  %12437 = vmatprep.subr.bf16.mxu0 %v14056_v5 }
 0x3e6   : > { %13108 = vmatmul.mubr.bf16.gmra.mrb[160].mxu1 %v6142_v44 }
 0x3e7   : > { %13111 = vmatprep.mubr.bf16.mxu1 %v6145_v7  ;;  %12438 = vmatpush3.bf16.msra.mxu0 %v14057_v4 }
 0x3e8   : > { %v12095_v63 = vpop.f32.mrb[120].mxu0 }
 0x3e9   : > { %v12096_v40 = vpop.f32.mrb[121].mxu0 }
 0x3ea   : > { %v16888_v13 = vadd.f32 %v12096_v40, %v12095_v63  ;;  %v12098_v9 = vpop.f32.mrb[122].mxu0 }
 0x3eb   : > { %v12099_v24 = vpop.f32.mrb[123].mxu0 }
 0x3ec   : > { %v16892_v16 = vadd.f32 %v12099_v24, %v12098_v9 }
 0x3ee   : > { %13112 = vmatmul.mubr.bf16.gmra.mrb[164].mxu1 %v6148_v25 }
 0x3ef   : > { %13115 = vmatprep.mubr.bf16.mxu1 %v6151_v45 }
 0x3f0   : > { %v12101_v36 = vpop.f32.mrb[124].mxu0 }
 0x3f1   : > { %v12102_v22 = vpop.f32.mrb[125].mxu0 }
 0x3f2   : > { %v16898_v1 = vadd.f32 %v12102_v22, %v12101_v36  ;;  %v12104_v42 = vpop.f32.mrb[126].mxu0 }
 0x3f3   : > { %v12105_v37 = vpop.f32.mrb[127].mxu0 }
 0x3f4   : > { %v16908_v23 = vadd.f32 %v12105_v37, %v12104_v42 }
 0x3f6   : > { %13116 = vmatmul.mubr.bf16.gmra.mrb[168].mxu1 %v6154_v19 }
 0x3f7   : > { %13119 = vmatprep.mubr.bf16.mxu1 %v6157_v2 }
 0x3f8   : > { %v12107_v56 = vpop.f32.mrb[128].mxu0 }
 0x3f9   : > { %v12108_v48 = vpop.f32.mrb[129].mxu0 }
 0x3fa   : > { %v16914_v27 = vadd.f32 %v12108_v48, %v12107_v56  ;;  %v12110_v54 = vpop.f32.mrb[130].mxu0 }
 0x3fb   : > { %v12111_v49 = vpop.f32.mrb[131].mxu0 }
 0x3fc   : > { %v16917_v52 = vadd.f32 %v12111_v49, %v12110_v54 }
 0x3fe   : > { %13120 = vmatmul.mubr.bf16.gmra.mrb[172].mxu1 %v6160_v20 }
 0x400   : > { %v12113_v43 = vpop.f32.mrb[132].mxu0 }
 0x401   : > { %v12114_v51 = vpop.f32.mrb[133].mxu0 }
 0x402   : > { %v16919_v60 = vadd.f32 %v12114_v51, %v12113_v43  ;;  %v12116_v44 = vpop.f32.mrb[134].mxu0 }
 0x403   : > { %v12117_v7 = vpop.f32.mrb[135].mxu0 }
 0x404   : > { %v16927_v63 = vadd.f32 %v12117_v7, %v12116_v44 }
 0x408   : > { %v12119_v40 = vpop.f32.mrb[136].mxu0 }
 0x409   : > { %v12120_v3 = vpop.f32.mrb[137].mxu0 }
 0x40a   : > { %v16929_v10 = vadd.f32 %v12120_v3, %v12119_v40  ;;  %v12122_v9 = vpop.f32.mrb[138].mxu0 }
 0x40b   : > { %v12123_v32 = vpop.f32.mrb[139].mxu0 }
 0x40c   : > { %v16931_v0 = vadd.f32 %v12123_v32, %v12122_v9 }
 0x410   : > { %v12125_v24 = vpop.f32.mrb[140].mxu0 }
 0x411   : > { %v12126_v25 = vpop.f32.mrb[141].mxu0 }
 0x412   : > { %v16933_v45 = vadd.f32 %v12126_v25, %v12125_v24  ;;  %v12128_v36 = vpop.f32.mrb[142].mxu0 }
 0x413   : > { %v12129_v22 = vpop.f32.mrb[143].mxu0 }
 0x414   : > { %v16941_v42 = vadd.f32 %v12129_v22, %v12128_v36 }
 0x418   : > { %v12171_v55 = vpop.f32.mrb[144].mxu0 }
 0x419   : > { %v12307_v12 = vpop.f32.mrb[176].mxu1  ;;  %v12172_v37 = vpop.f32.mrb[145].mxu0 }
 0x41a   : > { %v12308_v14 = vpop.f32.mrb[177].mxu1  ;;  %v12173_v11 = vadd.f32 %v12172_v37, %v12171_v55  ;;  %v12174_v19 = vpop.f32.mrb[146].mxu0 }
 0x41b   : > { %v12309_v2 = vadd.f32 %v12308_v14, %v12307_v12  ;;  %v12310_v6 = vpop.f32.mrb[178].mxu1  ;;  %v12175_v50 = vpop.f32.mrb[147].mxu0 }
 0x41c   : > { %v12311_v56 = vpop.f32.mrb[179].mxu1  ;;  %v13382_v48 = vadd.f32 %v12173_v11, %v16722_v29  ;;  %v12176_v54 = vadd.f32 %v12175_v50, %v12174_v19 }
 0x41d   : > { %v12312_v20 = vadd.f32 %v12311_v56, %v12310_v6 }
 0x41e   : > { %v13388_v49 = vadd.f32 %v12176_v54, %v16725_v47  ;;  %v16945_v40 = vadd.f32 %v13382_v48, %v12309_v2 }
 0x420   : > { %v12177_v43 = vpop.f32.mrb[148].mxu0  ;;  %v16948_v29 = vadd.f32 %v13388_v49, %v12312_v20  ;;  %v14058_v20 = vld [vmem:[%s18550_s1 + $0x40] sm:$0xff]  }
 0x421   : > { %v12313_v51 = vpop.f32.mrb[180].mxu1  ;;  %v12178_v44 = vpop.f32.mrb[149].mxu0  ;;  %v14059_v49 = vld [vmem:[%s18550_s1] sm:$0xff]   ;;  %12563 = vmatprep.subr.bf16.mxu1 %v14058_v20 }
 0x422   : > { %v12314_v7 = vpop.f32.mrb[181].mxu1  ;;  %v12179_v39 = vadd.f32 %v12178_v44, %v12177_v43  ;;  %v12180_v17 = vpop.f32.mrb[150].mxu0  ;;  %12564 = vmatpush3.bf16.msra.mxu1 %v14059_v49 }
 0x423   : > { %v12315_v3 = vadd.f32 %v12314_v7, %v12313_v51  ;;  %v12316_v9 = vpop.f32.mrb[182].mxu1  ;;  %v12181_v32 = vpop.f32.mrb[151].mxu0 }
 0x424   : > { %v12317_v24 = vpop.f32.mrb[183].mxu1  ;;  %v13379_v25 = vadd.f32 %v12179_v39, %v16741_v53  ;;  %v12182_v36 = vadd.f32 %v12181_v32, %v12180_v17 }
 0x425   : > { %v12318_v22 = vadd.f32 %v12317_v24, %v12316_v9 }
 0x426   : > { %v13385_v47 = vadd.f32 %v12182_v36, %v16745_v58  ;;  %v16951_v5 = vadd.f32 %v13379_v25, %v12315_v3 }
 0x428   : > { %v12183_v4 = vpop.f32.mrb[152].mxu0  ;;  %v16954_v48 = vadd.f32 %v13385_v47, %v12318_v22 }
 0x429   : > { %v12319_v55 = vpop.f32.mrb[184].mxu1  ;;  %v12184_v12 = vpop.f32.mrb[153].mxu0 }
 0x42a   : > { %v12320_v37 = vpop.f32.mrb[185].mxu1  ;;  %v12185_v14 = vadd.f32 %v12184_v12, %v12183_v4  ;;  %v12186_v11 = vpop.f32.mrb[154].mxu0 }
 0x42b   : > { %v12321_v19 = vadd.f32 %v12320_v37, %v12319_v55  ;;  %v12322_v2 = vpop.f32.mrb[186].mxu1  ;;  %v12187_v6 = vpop.f32.mrb[155].mxu0  ;;  %v14062_v37 = vld [vmem:[%s18550_s1 + $0x130] sm:$0xff]  }
 0x42c   : > { %v12323_v50 = vpop.f32.mrb[187].mxu1  ;;  %v13394_v53 = vadd.f32 %v12185_v14, %v16771_v41  ;;  %v12188_v56 = vadd.f32 %v12187_v6, %v12186_v11  ;;  %v14060_v41 = vld [vmem:[%s18550_s1 + $0x48] sm:$0xff]   ;;  %v14063_v14 = vld [vmem:[%s18550_s1 + $0x50] sm:$0xff]   ;;  %12439 = vmatprep.subr.bf16.mxu0 %v14062_v37 }
 0x42d   : > { %v12324_v54 = vadd.f32 %v12323_v50, %v12322_v2  ;;  %12565 = vmatprep.subr.bf16.mxu1 %v14060_v41 }
 0x42e   : > { %v13400_v58 = vadd.f32 %v12188_v56, %v16775_v34  ;;  %v14061_v34 = vld [vmem:[%s18550_s1 + $0x8] sm:$0xff]   ;;  %v16969_v3 = vadd.f32 %v13394_v53, %v12321_v19 }
 0x42f   : > { %12566 = vmatpush3.bf16.msra.mxu1 %v14061_v34 }
 0x430   : > { %v12189_v43 = vpop.f32.mrb[156].mxu0  ;;  %v16972_v47 = vadd.f32 %v13400_v58, %v12324_v54  ;;  %12567 = vmatprep.subr.bf16.mxu1 %v14063_v14  ;;  %v14068_v14 = vld [vmem:[%s18550_s1 + $0x60] sm:$0xff]  }
 0x431   : > { %v12325_v51 = vpop.f32.mrb[188].mxu1  ;;  %v12190_v44 = vpop.f32.mrb[157].mxu0 }
 0x432   : > { %v12326_v7 = vpop.f32.mrb[189].mxu1  ;;  %v12191_v39 = vadd.f32 %v12190_v44, %v12189_v43  ;;  %v12192_v17 = vpop.f32.mrb[158].mxu0 }
 0x433   : > { %v12327_v9 = vadd.f32 %v12326_v7, %v12325_v51  ;;  %v12328_v32 = vpop.f32.mrb[190].mxu1  ;;  %v12193_v24 = vpop.f32.mrb[159].mxu0  ;;  %v14064_v7 = vld [vmem:[%s18550_s1 + $0xf0] sm:$0xff]  }
 0x434   : > { %v12329_v25 = vpop.f32.mrb[191].mxu1  ;;  %v13391_v36 = vadd.f32 %v12191_v39, %v16799_v15  ;;  %v12194_v22 = vadd.f32 %v12193_v24, %v12192_v17  ;;  %v14065_v39 = vld [vmem:[%s18550_s1 + $0x10] sm:$0xff]   ;;  %12440 = vmatpush3.bf16.msra.mxu0 %v14064_v7 }
 0x435   : > { %v12330_v4 = vadd.f32 %v12329_v25, %v12328_v32  ;;  %12568 = vmatpush3.bf16.msra.mxu1 %v14065_v39 }
 0x436   : > { %v13397_v55 = vadd.f32 %v12194_v22, %v16803_v18  ;;  %v16975_v12 = vadd.f32 %v13391_v36, %v12327_v9  ;;  %v14067_v22 = vld [vmem:[%s18550_s1 + $0x18] sm:$0xff]  }
 0x438   : > { %v12195_v11 = vpop.f32.mrb[160].mxu0  ;;  %v16983_v15 = vadd.f32 %v13397_v55, %v12330_v4 }
 0x439   : > { %v12331_v19 = vpop.f32.mrb[192].mxu1  ;;  %v12196_v2 = vpop.f32.mrb[161].mxu0 }
 0x43a   : > { %v12332_v6 = vpop.f32.mrb[193].mxu1  ;;  %v12197_v50 = vadd.f32 %v12196_v2, %v12195_v11  ;;  %v12198_v18 = vpop.f32.mrb[162].mxu0 }
 0x43b   : > { %v12333_v53 = vadd.f32 %v12332_v6, %v12331_v19  ;;  %v12334_v56 = vpop.f32.mrb[194].mxu1  ;;  %v12199_v54 = vpop.f32.mrb[163].mxu0 }
 0x43c   : > { %v12335_v58 = vpop.f32.mrb[195].mxu1  ;;  %v13406_v20 = vadd.f32 %v12197_v50, %v16809_v35  ;;  %v12200_v49 = vadd.f32 %v12199_v54, %v12198_v18  ;;  %v14066_v35 = vld [vmem:[%s18550_s1 + $0x58] sm:$0xff]   ;;  %v14070_v54 = vld [vmem:[%s18550_s1 + $0x68] sm:$0xff]  }
 0x43d   : > { %v12336_v43 = vadd.f32 %v12335_v58, %v12334_v56  ;;  %12569 = vmatprep.subr.bf16.mxu1 %v14066_v35  ;;  %v14069_v56 = vld [vmem:[%s18550_s1 + $0x20] sm:$0xff]   ;;  %v14072_v35 = vld [vmem:[%s18550_s1 + $0x138] sm:$0xff]  }
 0x43e   : > { %v13412_v41 = vadd.f32 %v12200_v49, %v16813_v62  ;;  %v16996_v24 = vadd.f32 %v13406_v20, %v12333_v53  ;;  %12570 = vmatpush3.bf16.msra.mxu1 %v14067_v22  ;;  %12441 = vmatprep.subr.bf16.mxu0 %v14072_v35 }
 0x43f   : > { %12571 = vmatprep.subr.bf16.mxu1 %v14068_v14 }
 0x440   : > { %v12201_v51 = vpop.f32.mrb[164].mxu0  ;;  %v17005_v11 = vadd.f32 %v13412_v41, %v12336_v43 }
 0x441   : > { %v12337_v44 = vpop.f32.mrb[196].mxu1  ;;  %v12202_v34 = vpop.f32.mrb[165].mxu0 }
 0x442   : > { %v12338_v17 = vpop.f32.mrb[197].mxu1  ;;  %v12203_v9 = vadd.f32 %v12202_v34, %v12201_v51  ;;  %v12204_v32 = vpop.f32.mrb[166].mxu0  ;;  %12572 = vmatpush3.bf16.msra.mxu1 %v14069_v56  ;;  %v14071_v51 = vld [vmem:[%s18550_s1 + $0x28] sm:$0xff]  }
 0x443   : > { %v12339_v62 = vadd.f32 %v12338_v17, %v12337_v44  ;;  %v12340_v25 = vpop.f32.mrb[198].mxu1  ;;  %v12205_v36 = vpop.f32.mrb[167].mxu0  ;;  %12573 = vmatprep.subr.bf16.mxu1 %v14070_v54 }
 0x444   : > { %v12341_v4 = vpop.f32.mrb[199].mxu1  ;;  %v13403_v55 = vadd.f32 %v12203_v9, %v16820_v46  ;;  %v12206_v37 = vadd.f32 %v12205_v36, %v12204_v32 }
 0x445   : > { %v12342_v19 = vadd.f32 %v12341_v4, %v12340_v25 }
 0x446   : > { %v13409_v2 = vadd.f32 %v12206_v37, %v16830_v33  ;;  %v17008_v6 = vadd.f32 %v13403_v55, %v12339_v62  ;;  %12574 = vmatpush3.bf16.msra.mxu1 %v14071_v51  ;;  %v14073_v62 = vld [vmem:[%s18550_s1 + $0x70] sm:$0xff]  }
 0x447   : > { %12575 = vmatprep.subr.bf16.mxu1 %v14073_v62  ;;  %v14078_v62 = vld [vmem:[#allocation2] sm:$0xff]  }
 0x448   : > { %v12207_v50 = vpop.f32.mrb[168].mxu0  ;;  %v17010_v18 = vadd.f32 %v13409_v2, %v12342_v19 }
 0x449   : > { %v12343_v53 = vpop.f32.mrb[200].mxu1  ;;  %v12208_v46 = vpop.f32.mrb[169].mxu0 }
 0x44a   : > { %v12344_v58 = vpop.f32.mrb[201].mxu1  ;;  %v12209_v20 = vadd.f32 %v12208_v46, %v12207_v50  ;;  %v12210_v33 = vpop.f32.mrb[170].mxu0 }
 0x44b   : > { %v12345_v49 = vadd.f32 %v12344_v58, %v12343_v53  ;;  %v12346_v43 = vpop.f32.mrb[202].mxu1  ;;  %v12211_v41 = vpop.f32.mrb[171].mxu0 }
 0x44c   : > { %v12347_v44 = vpop.f32.mrb[203].mxu1  ;;  %v13418_v34 = vadd.f32 %v12209_v20, %v16836_v57  ;;  %v12212_v7 = vadd.f32 %v12211_v41, %v12210_v33 }
 0x44d   : > { %v12348_v39 = vadd.f32 %v12347_v44, %v12346_v43 }
 0x44e   : > { %v13424_v17 = vadd.f32 %v12212_v7, %v16840_v59  ;;  %v17023_v32 = vadd.f32 %v13418_v34, %v12345_v49  ;;  %v14074_v49 = vld [vmem:[%s18550_s1 + $0xf8] sm:$0xff]  }
 0x44f   : > { %12442 = vmatpush3.bf16.msra.mxu0 %v14074_v49 }
 0x450   : > { %v12213_v9 = vpop.f32.mrb[172].mxu0  ;;  %v17032_v50 = vadd.f32 %v13424_v17, %v12348_v39  ;;  %v14077_v39 = vld [vmem:[%s18550_s1 + $0x38] sm:$0xff]  }
 0x451   : > { %v12349_v25 = vpop.f32.mrb[204].mxu1  ;;  %v12214_v36 = vpop.f32.mrb[173].mxu0 }
 0x452   : > { %v12350_v57 = vpop.f32.mrb[205].mxu1  ;;  %v12215_v22 = vadd.f32 %v12214_v36, %v12213_v9  ;;  %v12216_v4 = vpop.f32.mrb[174].mxu0 }
 0x453   : > { %v12351_v59 = vadd.f32 %v12350_v57, %v12349_v25  ;;  %v12352_v55 = vpop.f32.mrb[206].mxu1  ;;  %v12217_v37 = vpop.f32.mrb[175].mxu0  ;;  %v14079_v25 = vld [vmem:[#allocation2 + $0x8] ss:$0 sps:$4 sm:$0x11]  }
 0x454   : > { %v12353_v14 = vpop.f32.mrb[207].mxu1  ;;  %v13415_v19 = vadd.f32 %v12215_v22, %v16846_v8  ;;  %v12218_v2 = vadd.f32 %v12217_v37, %v12216_v4  ;;  %v14075_v8 = vld [vmem:[%s18550_s1 + $0x30] sm:$0xff]   ;;  %v7636_v22 = vshrl.u32 %v14078_v62, 16  ;;  %v7638_v4 = vshll.u32 %v14078_v62, 16 }
 0x455   : > { %v12354_v53 = vadd.f32 %v12353_v14, %v12352_v55  ;;  %12576 = vmatpush3.bf16.msra.mxu1 %v14075_v8 }
 0x456   : > { %v13421_v46 = vadd.f32 %v12218_v2, %v16856_v31  ;;  %v17035_v56 = vadd.f32 %v13415_v19, %v12351_v59  ;;  %v14076_v31 = vld [vmem:[%s18550_s1 + $0x78] sm:$0xff]   ;;  %v7643_v59 = vshll.u32 %v14079_v25, 16  ;;  %v7640_v14 = vrot.slane %v7638_v4, 1 }
 0x457   : > { %12577 = vmatprep.subr.bf16.mxu1 %v14076_v31 }
 0x458   : > { %v12219_v54 = vpop.f32.mrb[176].mxu0  ;;  %v17037_v58 = vadd.f32 %v13421_v46, %v12354_v53  ;;  %v7645_v19 = vrot.slane %v7643_v59, 1 }
 0x459   : > { %v12355_v20 = vpop.f32.mrb[208].mxu1  ;;  %v12220_v33 = vpop.f32.mrb[177].mxu0  ;;  %12578 = vmatpush3.bf16.msra.mxu1 %v14077_v39 }
 0x45a   : > { %v12356_v43 = vpop.f32.mrb[209].mxu1  ;;  %v12221_v41 = vadd.f32 %v12220_v33, %v12219_v54  ;;  %v12222_v51 = vpop.f32.mrb[178].mxu0 }
 0x45b   : > { %v12357_v44 = vadd.f32 %v12356_v43, %v12355_v20  ;;  %v12358_v34 = vpop.f32.mrb[210].mxu1  ;;  %v12223_v7 = vpop.f32.mrb[179].mxu0  ;;  %v7641_v20 = vor.u32 %v7640_v14, %v7636_v22 }
 0x45c   : > { %v12359_v17 = vpop.f32.mrb[211].mxu1  ;;  %v13430_v9 = vadd.f32 %v12221_v41, %v16862_v28  ;;  %v12224_v35 = vadd.f32 %v12223_v7, %v12222_v51 }
 0x45d   : > { %v12360_v36 = vadd.f32 %v12359_v17, %v12358_v34  ;;  %v7646_v31 = vsel %vm399_vm1, %v7641_v20, %v7645_v19 }
 0x45e   : > { %v13436_v57 = vadd.f32 %v12224_v35, %v16866_v38  ;;  %v17053_v55 = vadd.f32 %v13430_v9, %v12357_v44  ;;  %9109 = vmatprep.mubr.bf16.mxu1 %v7646_v31 }
 0x45f   : > { %9110 = vmatmul.mubr.bf16.vlgmr.msra.gmra.mrb[240].mxu1 %v14078_v62 }
 0x460   : > { %v12225_v37 = vpop.f32.mrb[180].mxu0  ;;  %v17055_v43 = vadd.f32 %v13436_v57, %v12360_v36 }
 0x461   : > { %v12361_v2 = vpop.f32.mrb[212].mxu1  ;;  %v12226_v53 = vpop.f32.mrb[181].mxu0 }
 0x462   : > { %v12362_v46 = vpop.f32.mrb[213].mxu1  ;;  %v12227_v28 = vadd.f32 %v12226_v53, %v12225_v37  ;;  %v12228_v54 = vpop.f32.mrb[182].mxu0 }
 0x463   : > { %v12363_v33 = vadd.f32 %v12362_v46, %v12361_v2  ;;  %v12364_v49 = vpop.f32.mrb[214].mxu1  ;;  %v12229_v8 = vpop.f32.mrb[183].mxu0 }
 0x464   : > { %v12365_v38 = vpop.f32.mrb[215].mxu1  ;;  %v13427_v41 = vadd.f32 %v12227_v28, %v16872_v30  ;;  %v12230_v51 = vadd.f32 %v12229_v8, %v12228_v54 }
 0x465   : > { %v12366_v44 = vadd.f32 %v12365_v38, %v12364_v49 }
 0x466   : > { %v13433_v34 = vadd.f32 %v12230_v51, %v16882_v61  ;;  %v17060_v7 = vadd.f32 %v13427_v41, %v12363_v33 }
 0x468   : > { %v12231_v39 = vpop.f32.mrb[184].mxu0  ;;  %v17062_v17 = vadd.f32 %v13433_v34, %v12366_v44  ;;  %v17077_v34 = vld [vmem:[%s18550_s1 + $0x140] sm:$0xff]  }
 0x469   : > { %v12367_v9 = vpop.f32.mrb[216].mxu1  ;;  %v12232_v35 = vpop.f32.mrb[185].mxu0  ;;  %13123 = vmatprep.subr.bf16.mxu0 %v17077_v34 }
 0x46a   : > { %v12368_v25 = vpop.f32.mrb[217].mxu1  ;;  %v12233_v36 = vadd.f32 %v12232_v35, %v12231_v39  ;;  %v12234_v57 = vpop.f32.mrb[186].mxu0 }
 0x46b   : > { %v12369_v22 = vadd.f32 %v12368_v25, %v12367_v9  ;;  %v12370_v30 = vpop.f32.mrb[218].mxu1  ;;  %v12235_v4 = vpop.f32.mrb[187].mxu0 }
 0x46c   : > { %v12371_v59 = vpop.f32.mrb[219].mxu1  ;;  %v13442_v37 = vadd.f32 %v12233_v36, %v16888_v13  ;;  %v12236_v14 = vadd.f32 %v12235_v4, %v12234_v57 }
 0x46d   : > { %v12372_v19 = vadd.f32 %v12371_v59, %v12370_v30 }
 0x46e   : > { %v13448_v61 = vadd.f32 %v12236_v14, %v16892_v16  ;;  %v17066_v2 = vadd.f32 %v13442_v37, %v12369_v22 }
 0x470   : > { %v12237_v62 = vpop.f32.mrb[188].mxu0  ;;  %v17069_v13 = vadd.f32 %v13448_v61, %v12372_v19 }
 0x471   : > { %v12373_v53 = vpop.f32.mrb[220].mxu1  ;;  %v12238_v46 = vpop.f32.mrb[189].mxu0 }
 0x472   : > { %v12374_v28 = vpop.f32.mrb[221].mxu1  ;;  %v12239_v54 = vadd.f32 %v12238_v46, %v12237_v62  ;;  %v12240_v20 = vpop.f32.mrb[190].mxu0 }
 0x473   : > { %v12375_v33 = vadd.f32 %v12374_v28, %v12373_v53  ;;  %v12376_v49 = vpop.f32.mrb[222].mxu1  ;;  %v12241_v8 = vpop.f32.mrb[191].mxu0 }
 0x474   : > { %v12377_v38 = vpop.f32.mrb[223].mxu1  ;;  %v13439_v41 = vadd.f32 %v12239_v54, %v16898_v1  ;;  %v12242_v51 = vadd.f32 %v12241_v8, %v12240_v20 }
 0x475   : > { %v12378_v31 = vadd.f32 %v12377_v38, %v12376_v49 }
 0x476   : > { %v13445_v16 = vadd.f32 %v12242_v51, %v16908_v23  ;;  %v17072_v44 = vadd.f32 %v13439_v41, %v12375_v33 }
 0x478   : > { %v12243_v39 = vpop.f32.mrb[192].mxu0  ;;  %v17080_v9 = vadd.f32 %v13445_v16, %v12378_v31 }
 0x479   : > { %v12379_v35 = vpop.f32.mrb[224].mxu1  ;;  %v12244_v1 = vpop.f32.mrb[193].mxu0 }
 0x47a   : > { %v12380_v25 = vpop.f32.mrb[225].mxu1  ;;  %v12245_v36 = vadd.f32 %v12244_v1, %v12243_v39  ;;  %v12246_v57 = vpop.f32.mrb[194].mxu0 }
 0x47b   : > { %v12381_v22 = vadd.f32 %v12380_v25, %v12379_v35  ;;  %v12382_v30 = vpop.f32.mrb[226].mxu1  ;;  %v12247_v23 = vpop.f32.mrb[195].mxu0 }
 0x47c   : > { %v12383_v4 = vpop.f32.mrb[227].mxu1  ;;  %v13454_v59 = vadd.f32 %v12245_v36, %v16914_v27  ;;  %v12248_v37 = vadd.f32 %v12247_v23, %v12246_v57 }
 0x47d   : > { %v12384_v14 = vadd.f32 %v12383_v4, %v12382_v30 }
 0x47e   : > { %v13460_v19 = vadd.f32 %v12248_v37, %v16917_v52  ;;  %v17084_v61 = vadd.f32 %v13454_v59, %v12381_v22 }
 0x480   : > { %v12249_v62 = vpop.f32.mrb[196].mxu0  ;;  %v17086_v33 = vadd.f32 %v13460_v19, %v12384_v14 }
 0x481   : > { %v12385_v53 = vpop.f32.mrb[228].mxu1  ;;  %v12250_v46 = vpop.f32.mrb[197].mxu0 }
 0x482   : > { %v12386_v28 = vpop.f32.mrb[229].mxu1  ;;  %v12251_v54 = vadd.f32 %v12250_v46, %v12249_v62  ;;  %v12252_v20 = vpop.f32.mrb[198].mxu0 }
 0x483   : > { %v12387_v49 = vadd.f32 %v12386_v28, %v12385_v53  ;;  %v12388_v8 = vpop.f32.mrb[230].mxu1  ;;  %v12253_v38 = vpop.f32.mrb[199].mxu0 }
 0x484   : > { %v12389_v41 = vpop.f32.mrb[231].mxu1  ;;  %v13451_v27 = vadd.f32 %v12251_v54, %v16919_v60  ;;  %v12254_v51 = vadd.f32 %v12253_v38, %v12252_v20 }
 0x485   : > { %v12390_v31 = vadd.f32 %v12389_v41, %v12388_v8 }
 0x486   : > { %v13457_v52 = vadd.f32 %v12254_v51, %v16927_v63  ;;  %v17090_v16 = vadd.f32 %v13451_v27, %v12387_v49 }
 0x488   : > { %v12255_v39 = vpop.f32.mrb[200].mxu0  ;;  %v17092_v35 = vadd.f32 %v13457_v52, %v12390_v31 }
 0x489   : > { %v12391_v1 = vpop.f32.mrb[232].mxu1  ;;  %v12256_v25 = vpop.f32.mrb[201].mxu0 }
 0x48a   : > { %v12392_v36 = vpop.f32.mrb[233].mxu1  ;;  %v12257_v57 = vadd.f32 %v12256_v25, %v12255_v39  ;;  %v12258_v22 = vpop.f32.mrb[202].mxu0 }
 0x48b   : > { %v12393_v30 = vadd.f32 %v12392_v36, %v12391_v1  ;;  %v12394_v23 = vpop.f32.mrb[234].mxu1  ;;  %v12259_v4 = vpop.f32.mrb[203].mxu0 }
 0x48c   : > { %v12395_v59 = vpop.f32.mrb[235].mxu1  ;;  %v13466_v60 = vadd.f32 %v12257_v57, %v16929_v10  ;;  %v12260_v37 = vadd.f32 %v12259_v4, %v12258_v22 }
 0x48d   : > { %v12396_v14 = vadd.f32 %v12395_v59, %v12394_v23 }
 0x48e   : > { %v13472_v63 = vadd.f32 %v12260_v37, %v16931_v0  ;;  %v17096_v62 = vadd.f32 %v13466_v60, %v12393_v30  ;;  %v11215_v37 = vld [vmem:[%s14408_s6 + $0x31] sm:$0xff] }
 0x490   : > { %v12261_v19 = vpop.f32.mrb[204].mxu0  ;;  %v17098_v41 = vadd.f32 %v13472_v63, %v12396_v14 }
 0x491   : > { %v12397_v53 = vpop.f32.mrb[236].mxu1  ;;  %v12262_v46 = vpop.f32.mrb[205].mxu0 }
 0x492   : > { %v12398_v28 = vpop.f32.mrb[237].mxu1  ;;  %v12263_v54 = vadd.f32 %v12262_v46, %v12261_v19  ;;  %v12264_v20 = vpop.f32.mrb[206].mxu0  ;;  %v11213_v19 = vld [vmem:[%s14408_s6 + $0x19] sm:$0xff] }
 0x493   : > { %v12399_v49 = vadd.f32 %v12398_v28, %v12397_v53  ;;  %v12400_v8 = vpop.f32.mrb[238].mxu1  ;;  %v12265_v38 = vpop.f32.mrb[207].mxu0  ;;  %v11216_v46 = vld [vmem:[%s14408_s6 + $0x39] sm:$0xff] }
 0x494   : > { %v12401_v27 = vpop.f32.mrb[239].mxu1  ;;  %v13463_v10 = vadd.f32 %v12263_v54, %v16933_v45  ;;  %v12266_v51 = vadd.f32 %v12265_v38, %v12264_v20  ;;  %v17111_v45 = vld [vmem:[%s18551_s2] ss:$0 sm:$0xff] }
 0x495   : > { %v12402_v31 = vadd.f32 %v12401_v27, %v12400_v8  ;;  %v11214_v8 = vld [vmem:[%s14408_s6 + $0x21] sm:$0xff] }
 0x496   : > { %v13469_v0 = vadd.f32 %v12266_v51, %v16941_v42  ;;  %v17102_v52 = vadd.f32 %v13463_v10, %v12399_v49 }
 0x498   : > { %v17104_v39 = vadd.f32 %v13469_v0, %v12402_v31 }
 0x499   : > { %v13093_v1 = vpop.f32.mrb[144].mxu1 }
 0x49a   : > { %v13381_v25 = vadd.f32 %v16951_v5, %v13093_v1  ;;  %v6564_v36 = vpop.f32.mrb[145].mxu1 }
 0x49b   : > { %v13384_v57 = vadd.f32 %v16945_v40, %v6564_v36  ;;  %v13094_v22 = vpop.f32.mrb[146].mxu1  ;;  %v17120_v40 = vld [vmem:[%s18552_s3] ss:$0 sm:$0xff] }
 0x49c   : > { %v6725_v42 = vmul.f32 %v17111_v45, %v13381_v25  ;;  %v13387_v30 = vadd.f32 %v16954_v48, %v13094_v22  ;;  %v6567_v23 = vpop.f32.mrb[147].mxu1 }
 0x49d   : > { %v6723_v4 = vmul.f32 %v17111_v45, %v13384_v57  ;;  %v13390_v5 = vadd.f32 %v16948_v29, %v6567_v23 }
 0x49e   : > { %v6757_v59 = vadd.f32 %v17120_v40, %v6725_v42  ;;  %v6726_v60 = vmul.f32 %v17111_v45, %v13387_v30 }
 0x49f   : > { %v6755_v14 = vadd.f32 %v17120_v40, %v6723_v4  ;;  %v6724_v48 = vmul.f32 %v17111_v45, %v13390_v5 }
 0x4a0   : > { %v6789_v63 = vmax.f32 %v6757_v59, 0.0  ;;  %v6758_v53 = vadd.f32 %v17120_v40, %v6726_v60 }
 0x4a1   : > { %v6787_v29 = vmax.f32 %v6755_v14, 0.0  ;;  %v6756_v28 = vadd.f32 %v17120_v40, %v6724_v48  ;;  %v13097_v54 = vpop.f32.mrb[148].mxu1  ;;  %v11219_v48 = vld [vmem:[%s14408_s6 + $0x61] sm:$0xff] }
 0x4a2   : > { %v6853_v20 = vadd.f32 %v11215_v37, %v6789_v63  ;;  %v6790_v49 = vmax.f32 %v6758_v53, 0.0  ;;  %v13393_v38 = vadd.f32 %v16975_v12, %v13097_v54  ;;  %v6580_v27 = vpop.f32.mrb[149].mxu1 }
 0x4a3   : > { %v6851_v10 = vadd.f32 %v11213_v19, %v6787_v29  ;;  %v6788_v51 = vmax.f32 %v6756_v28, 0.0  ;;  %v13396_v31 = vadd.f32 %v16969_v3, %v6580_v27  ;;  %v13098_v0 = vpop.f32.mrb[150].mxu1 }
 0x4a4   : > { %v11581_v1 = vpack.c.bf16 %v6853_v20, %v6853_v20  ;;  %v6854_v25 = vadd.f32 %v11216_v46, %v6790_v49  ;;  %v6729_v36 = vmul.f32 %v17111_v45, %v13393_v38  ;;  %v17136_v57 = vadd.f32 %v16983_v15, %v13098_v0  ;;  %v6583_v22 = vpop.f32.mrb[151].mxu1  ;;  %v11217_v46 = vld [vmem:[%s14408_s6 + $0x49] sm:$0xff] }
 0x4a5   : > { %v11579_v42 = vpack.c.bf16 %v6851_v10, %v6851_v10  ;;  %v6852_v30 = vadd.f32 %v11214_v8, %v6788_v51  ;;  %v6727_v12 = vmul.f32 %v17111_v45, %v13396_v31  ;;  %v13402_v23 = vadd.f32 %v16972_v47, %v6583_v22  ;;  %v7338_v31 = vld [vmem:[#allocation2 + $0x18] sm:$0xf] }
 0x4a6   : > { %v7029_v4 = vshrl.u32 %v11581_v1, 16  ;;  %v7032_v5 = vshll.u32 %v11581_v1, 16  ;;  %v11582_v3 = vpack.c.bf16 %v6854_v25, %v6854_v25  ;;  %v6761_v59 = vadd.f32 %v17120_v40, %v6729_v36 }
 0x4a7   : > { %v7012_v60 = vshrl.u32 %v11579_v42, 16  ;;  %v7015_v37 = vshll.u32 %v11579_v42, 16  ;;  %v11580_v14 = vpack.c.bf16 %v6852_v30, %v6852_v30  ;;  %v6759_v15 = vadd.f32 %v17120_v40, %v6727_v12  ;;  %v7331_v30 = vld [vmem:[#allocation2 + $0xc] sm:$0xf] }
 0x4a8   : > { %v7031_v63 = vrot.slane %v7029_v4, 7  ;;  %v7037_v19 = vshrl.u32 %v11582_v3, 16  ;;  %v7040_v53 = vshll.u32 %v11582_v3, 16  ;;  %v6793_v29 = vmax.f32 %v6761_v59, 0.0 }
 0x4a9   : > { %v7014_v28 = vrot.slane %v7012_v60, 7  ;;  %v7020_v54 = vshrl.u32 %v11580_v14, 16  ;;  %v7023_v20 = vshll.u32 %v11580_v14, 16  ;;  %v6791_v47 = vmax.f32 %v6759_v15, 0.0  ;;  %v13101_v49 = vpop.f32.mrb[152].mxu1 }
 0x4aa   : > { %v7034_v8 = vor.u32 %v7032_v5, %v7031_v63  ;;  %v7035_v38 = vrot.slane %v7031_v63, 4  ;;  %v7039_v27 = vrot.slane %v7037_v19, 7  ;;  %v6857_v10 = vadd.f32 %v11219_v48, %v6793_v29  ;;  %v6596_v51 = vpop.f32.mrb[153].mxu1  ;;  %v7342_v60 = vld [vmem:[#allocation2 + $0x20] sm:$0x1] }
 0x4ab   : > { %v7017_v0 = vor.u32 %v7015_v37, %v7014_v28  ;;  %v7018_v1 = vrot.slane %v7014_v28, 4  ;;  %v7022_v25 = vrot.slane %v7020_v54, 7  ;;  %v6855_v36 = vadd.f32 %v11217_v46, %v6791_v47  ;;  %v13102_v22 = vpop.f32.mrb[154].mxu1  ;;  %v7335_v29 = vld [vmem:[#allocation2 + $0x14] sm:$0x1] }
 0x4ac   : > { %v7339_v42 = vsel %vm15798_vm9, %v7034_v8, %v7338_v31  ;;  %v7042_v12 = vor.u32 %v7040_v53, %v7039_v27  ;;  %v7044_v4 = vrot.slane %v7039_v27, 4  ;;  %v11585_v3 = vpack.c.bf16 %v6857_v10, %v6857_v10  ;;  %v6599_v59 = vpop.f32.mrb[155].mxu1 }
 0x4ad   : > { %7340 = vst [vmem:[#allocation2 + $0x18] sm:$0xf] %v7339_v42  ;;  %v7332_v5 = vsel %vm15798_vm9, %v7017_v0, %v7331_v30  ;;  %v7025_v14 = vor.u32 %v7023_v20, %v7022_v25  ;;  %v7027_v48 = vrot.slane %v7022_v25, 4  ;;  %v11583_v37 = vpack.c.bf16 %v6855_v36, %v6855_v36 }
 0x4ae   : > { %7333 = vst [vmem:[#allocation2 + $0xc] sm:$0xf] %v7332_v5  ;;  %v7043_v15 = vsel %vm15804_vm10, %v7035_v38, %v7042_v12  ;;  %v7343_v19 = vsel %vm15438_vm4, %v7044_v4, %v7342_v60  ;;  %v7063_v53 = vshrl.u32 %v11585_v3, 16  ;;  %v7066_v46 = vshll.u32 %v11585_v3, 16 }
 0x4af   : > { %7341 = vst [vmem:[#allocation2 + $0x1c] sm:$0xf] %v7043_v15  ;;  %7344 = vst [vmem:[#allocation2 + $0x20] sm:$0x1] %v7343_v19  ;;  %v7026_v28 = vsel %vm15804_vm10, %v7018_v1, %v7025_v14  ;;  %v7336_v54 = vsel %vm15438_vm4, %v7027_v48, %v7335_v29  ;;  %v7046_v20 = vshrl.u32 %v11583_v37, 16  ;;  %v7049_v47 = vshll.u32 %v11583_v37, 16 }
 0x4b0   : > { %7334 = vst [vmem:[#allocation2 + $0x10] sm:$0xf] %v7026_v28  ;;  %7337 = vst [vmem:[#allocation2 + $0x14] sm:$0x1] %v7336_v54  ;;  %v17156_v8 = vrot.slane %v7063_v53, 7  ;;  %v6730_v38 = vmul.f32 %v17111_v45, %v17136_v57  ;;  %v6728_v27 = vmul.f32 %v17111_v45, %v13402_v23  ;;  %v13405_v10 = vadd.f32 %v17008_v6, %v13101_v49  ;;  %v11223_v14 = vld [vmem:[%s14408_s6 + $0x91] sm:$0xff] }
 0x4b1   : > { %v17162_v31 = vrot.slane %v7046_v20, 7  ;;  %v13408_v0 = vadd.f32 %v16996_v24, %v6596_v51  ;;  %v13411_v1 = vadd.f32 %v17010_v18, %v13102_v22  ;;  %v13414_v25 = vadd.f32 %v17005_v11, %v6599_v59  ;;  %v13105_v36 = vpop.f32.mrb[156].mxu1  ;;  %v7352_v57 = vld [vmem:[#allocation2 + $0x30] sm:$0xf]  ;;  %v7345_v51 = vld [vmem:[#allocation2 + $0x24] sm:$0xf] }
 0x4b2   : > { %v7068_v42 = vor.u32 %v7066_v46, %v17156_v8  ;;  %v7069_v30 = vrot.slane %v17156_v8, 4  ;;  %v6762_v23 = vadd.f32 %v17120_v40, %v6730_v38  ;;  %v6760_v6 = vadd.f32 %v17120_v40, %v6728_v27  ;;  %v6612_v49 = vpop.f32.mrb[157].mxu1  ;;  %v11220_v18 = vld [vmem:[%s14408_s6 + $0x69] sm:$0xff]  ;;  %v11218_v22 = vld [vmem:[%s14408_s6 + $0x51] sm:$0xff]  ;;  %v11221_v54 = vld [vmem:[%s14408_s6 + $0x79] sm:$0xff] }
 0x4b3   : > { %v7051_v12 = vor.u32 %v7049_v47, %v17162_v31  ;;  %v7052_v24 = vrot.slane %v17162_v31, 4  ;;  %v6733_v11 = vmul.f32 %v17111_v45, %v13405_v10  ;;  %v6731_v4 = vmul.f32 %v17111_v45, %v13408_v0  ;;  %v17177_v3 = vpop.f32.mrb[158].mxu1 }
 0x4b4   : > { %v7353_v59 = vsel %vm15798_vm9, %v7068_v42, %v7352_v57  ;;  %v6794_v5 = vmax.f32 %v6762_v23, 0.0  ;;  %v6792_v60 = vmax.f32 %v6760_v6, 0.0  ;;  %v6734_v48 = vmul.f32 %v17111_v45, %v13411_v1  ;;  %v17183_v37 = vpop.f32.mrb[159].mxu1  ;;  %v11224_v23 = vld [vmem:[%s14408_s6 + $0x99] sm:$0xff]  ;;  %v11222_v6 = vld [vmem:[%s14408_s6 + $0x81] sm:$0xff] }
 0x4b5   : > { %7354 = vst [vmem:[#allocation2 + $0x30] sm:$0xf] %v7353_v59  ;;  %v7346_v15 = vsel %vm15798_vm9, %v7051_v12, %v7345_v51  ;;  %v6765_v19 = vadd.f32 %v17120_v40, %v6733_v11  ;;  %v6763_v29 = vadd.f32 %v17120_v40, %v6731_v4  ;;  %v6732_v53 = vmul.f32 %v17111_v45, %v13414_v25 }
 0x4b6   : > { %7347 = vst [vmem:[#allocation2 + $0x24] sm:$0xf] %v7346_v15  ;;  %v6858_v46 = vadd.f32 %v11220_v18, %v6794_v5  ;;  %v6856_v28 = vadd.f32 %v11218_v22, %v6792_v60  ;;  %v6766_v20 = vadd.f32 %v17120_v40, %v6734_v48  ;;  %v13417_v47 = vadd.f32 %v17035_v56, %v13105_v36 }
 0x4b7   : > { %v6797_v38 = vmax.f32 %v6765_v19, 0.0  ;;  %v6795_v27 = vmax.f32 %v6763_v29, 0.0  ;;  %v6764_v10 = vadd.f32 %v17120_v40, %v6732_v53  ;;  %v13420_v0 = vadd.f32 %v17023_v32, %v6612_v49 }
 0x4b8   : > { %v11586_v1 = vpack.c.bf16 %v6858_v46, %v6858_v46  ;;  %v11584_v42 = vpack.c.bf16 %v6856_v28, %v6856_v28  ;;  %v6798_v57 = vmax.f32 %v6766_v20, 0.0  ;;  %v6737_v25 = vmul.f32 %v17111_v45, %v13417_v47 }
 0x4b9   : > { %v6861_v12 = vadd.f32 %v11223_v14, %v6797_v38  ;;  %v6859_v51 = vadd.f32 %v11221_v54, %v6795_v27  ;;  %v6796_v18 = vmax.f32 %v6764_v10, 0.0  ;;  %v6735_v22 = vmul.f32 %v17111_v45, %v13420_v0  ;;  %v17199_v11 = vpop.f32.mrb[160].mxu1  ;;  %v7356_v10 = vld [vmem:[#allocation2 + $0x38] sm:$0x1] }
 0x4ba   : > { %v7071_v56 = vshrl.u32 %v11586_v1, 16  ;;  %v7074_v36 = vshll.u32 %v11586_v1, 16  ;;  %v7054_v4 = vshrl.u32 %v11584_v42, 16  ;;  %v7057_v59 = vshll.u32 %v11584_v42, 16  ;;  %v6628_v5 = vpop.f32.mrb[161].mxu1 }
 0x4bb   : > { %v11589_v32 = vpack.c.bf16 %v6861_v12, %v6861_v12  ;;  %v11587_v49 = vpack.c.bf16 %v6859_v51, %v6859_v51  ;;  %v6862_v60 = vadd.f32 %v11224_v23, %v6798_v57  ;;  %v6860_v48 = vadd.f32 %v11222_v6, %v6796_v18  ;;  %v17201_v15 = vpop.f32.mrb[162].mxu1  ;;  %v7349_v42 = vld [vmem:[#allocation2 + $0x2c] sm:$0x1] }
 0x4bc   : > { %v7073_v19 = vrot.slane %v7071_v56, 7  ;;  %v7056_v29 = vrot.slane %v7054_v4, 7  ;;  %v6769_v14 = vadd.f32 %v17120_v40, %v6737_v25  ;;  %v6767_v53 = vadd.f32 %v17120_v40, %v6735_v22  ;;  %v17205_v46 = vpop.f32.mrb[163].mxu1  ;;  %v7366_v56 = vld [vmem:[#allocation2 + $0x48] sm:$0xf] }
 0x4bd   : > { %v7097_v28 = vshrl.u32 %v11589_v32, 16  ;;  %v7100_v54 = vshll.u32 %v11589_v32, 16  ;;  %v7080_v20 = vshrl.u32 %v11587_v49, 16  ;;  %v7083_v47 = vshll.u32 %v11587_v49, 16  ;;  %v11227_v32 = vld [vmem:[%s14408_s6 + $0xc1] sm:$0xff] }
 0x4be   : > { %v7076_v38 = vor.u32 %v7074_v36, %v7073_v19  ;;  %v7078_v27 = vrot.slane %v7073_v19, 4  ;;  %v7059_v0 = vor.u32 %v7057_v59, %v7056_v29  ;;  %v7061_v1 = vrot.slane %v7056_v29, 4  ;;  %v7359_v36 = vld [vmem:[#allocation2 + $0x3c] sm:$0xf]  ;;  %v11225_v19 = vld [vmem:[%s14408_s6 + $0xa9] sm:$0xff] }
 0x4bf   : > { %v7099_v57 = vrot.slane %v7097_v28, 7  ;;  %v7082_v23 = vrot.slane %v7080_v20, 7  ;;  %v11590_v6 = vpack.c.bf16 %v6862_v60, %v6862_v60  ;;  %v11588_v12 = vpack.c.bf16 %v6860_v48, %v6860_v48 }
 0x4c0   : > { %v7077_v25 = vsel %vm15804_vm10, %v7069_v30, %v7076_v38  ;;  %v7357_v51 = vsel %vm15438_vm4, %v7078_v27, %v7356_v10  ;;  %v7060_v18 = vsel %vm15804_vm10, %v7052_v24, %v7059_v0  ;;  %v7350_v22 = vsel %vm15438_vm4, %v7061_v1, %v7349_v42 }
 0x4c1   : > { %7355 = vst [vmem:[#allocation2 + $0x34] sm:$0xf] %v7077_v25  ;;  %7358 = vst [vmem:[#allocation2 + $0x38] sm:$0x1] %v7357_v51  ;;  %v7102_v8 = vor.u32 %v7100_v54, %v7099_v57  ;;  %v7103_v30 = vrot.slane %v7099_v57, 4  ;;  %v7085_v4 = vor.u32 %v7083_v47, %v7082_v23  ;;  %v7086_v59 = vrot.slane %v7082_v23, 4 }
 0x4c2   : > { %7348 = vst [vmem:[#allocation2 + $0x28] sm:$0xf] %v7060_v18  ;;  %7351 = vst [vmem:[#allocation2 + $0x2c] sm:$0x1] %v7350_v22  ;;  %v17220_v49 = vpop.f32.mrb[164].mxu1  ;;  %v7105_v31 = vshrl.u32 %v11590_v6, 16  ;;  %v13423_v0 = vadd.f32 %v17037_v58, %v17177_v3  ;;  %v13426_v1 = vadd.f32 %v17032_v50, %v17183_v37 }
 0x4c3   : > { %v7108_v60 = vshll.u32 %v11590_v6, 16  ;;  %v7088_v24 = vshrl.u32 %v11588_v12, 16  ;;  %v7091_v48 = vshll.u32 %v11588_v12, 16  ;;  %v17223_v29 = vpop.f32.mrb[165].mxu1  ;;  %v7367_v28 = vsel %vm15798_vm9, %v7102_v8, %v7366_v56  ;;  %v7370_v18 = vld [vmem:[#allocation2 + $0x50] sm:$0x1] }
 0x4c4   : > { %v7360_v20 = vsel %vm15798_vm9, %v7085_v4, %v7359_v36  ;;  %v6801_v54 = vmax.f32 %v6769_v14, 0.0  ;;  %v6799_v38 = vmax.f32 %v6767_v53, 0.0  ;;  %v17229_v47 = vpop.f32.mrb[166].mxu1  ;;  %7368 = vst [vmem:[#allocation2 + $0x48] sm:$0xf] %v7367_v28  ;;  %v7107_v27 = vrot.slane %v7105_v31, 7 }
 0x4c5   : > { %7361 = vst [vmem:[#allocation2 + $0x3c] sm:$0xf] %v7360_v20  ;;  %v7090_v10 = vrot.slane %v7088_v24, 7  ;;  %v17235_v42 = vpop.f32.mrb[167].mxu1  ;;  %v13429_v14 = vadd.f32 %v17060_v7, %v17199_v11  ;;  %v13432_v53 = vadd.f32 %v17053_v55, %v6628_v5  ;;  %v7363_v22 = vld [vmem:[#allocation2 + $0x44] sm:$0x1]  ;;  %v6738_v3 = vmul.f32 %v17111_v45, %v13423_v0 }
 0x4c6   : > { %v6865_v57 = vadd.f32 %v11227_v32, %v6801_v54  ;;  %v6863_v23 = vadd.f32 %v11225_v19, %v6799_v38  ;;  %v7110_v6 = vor.u32 %v7108_v60, %v7107_v27  ;;  %v7112_v12 = vrot.slane %v7107_v27, 4  ;;  %v11228_v31 = vld [vmem:[%s14408_s6 + $0xc9] sm:$0xff]  ;;  %v11226_v20 = vld [vmem:[%s14408_s6 + $0xb1] sm:$0xff] }
 0x4c7   : > { %v7093_v25 = vor.u32 %v7091_v48, %v7090_v10  ;;  %v7095_v51 = vrot.slane %v7090_v10, 4  ;;  %v6736_v50 = vmul.f32 %v17111_v45, %v13426_v1  ;;  %v6741_v60 = vmul.f32 %v17111_v45, %v13429_v14  ;;  %v11229_v14 = vld [vmem:[%s14408_s6 + $0xd9] sm:$0xff] }
 0x4c8   : > { %v11593_v56 = vpack.c.bf16 %v6865_v57, %v6865_v57  ;;  %v11591_v58 = vpack.c.bf16 %v6863_v23, %v6863_v23  ;;  %v7111_v37 = vsel %vm15804_vm10, %v7103_v30, %v7110_v6  ;;  %v7371_v7 = vsel %vm15438_vm4, %v7112_v12, %v7370_v18  ;;  %v11231_v57 = vld [vmem:[%s14408_s6 + $0xf1] sm:$0xff] }
 0x4c9   : > { %v7094_v55 = vsel %vm15804_vm10, %v7086_v59, %v7093_v25  ;;  %v7364_v11 = vsel %vm15438_vm4, %v7095_v51, %v7363_v22  ;;  %7369 = vst [vmem:[#allocation2 + $0x4c] sm:$0xf] %v7111_v37  ;;  %7372 = vst [vmem:[#allocation2 + $0x50] sm:$0x1] %v7371_v7  ;;  %v17250_v32 = vpop.f32.mrb[168].mxu1  ;;  %v6770_v30 = vadd.f32 %v17120_v40, %v6738_v3 }
 0x4ca   : > { %7362 = vst [vmem:[#allocation2 + $0x40] sm:$0xf] %v7094_v55  ;;  %7365 = vst [vmem:[#allocation2 + $0x44] sm:$0x1] %v7364_v11  ;;  %v7131_v5 = vshrl.u32 %v11593_v56, 16  ;;  %v7134_v36 = vshll.u32 %v11593_v56, 16  ;;  %v6768_v59 = vadd.f32 %v17120_v40, %v6736_v50  ;;  %v6739_v24 = vmul.f32 %v17111_v45, %v13432_v53 }
 0x4cb   : > { %v7114_v8 = vshrl.u32 %v11591_v58, 16  ;;  %v7117_v4 = vshll.u32 %v11591_v58, 16  ;;  %v17257_v48 = vpop.f32.mrb[169].mxu1  ;;  %v13435_v54 = vadd.f32 %v17062_v17, %v17201_v15  ;;  %v13438_v38 = vadd.f32 %v17055_v43, %v17205_v46  ;;  %v17274_v53 = vld [vmem:[#allocation2 + $0xc] sm:$0xff]   ;;  %v7380_v46 = vld [vmem:[#allocation2 + $0x60] sm:$0xf] }
 0x4cc   : > { %v17259_v19 = vrot.slane %v7131_v5, 7  ;;  %v17268_v27 = vpop.f32.mrb[170].mxu1  ;;  %v6802_v10 = vmax.f32 %v6770_v30, 0.0  ;;  %v6800_v0 = vmax.f32 %v6768_v59, 0.0  ;;  %v6773_v1 = vadd.f32 %v17120_v40, %v6741_v60  ;;  %v7373_v25 = vld [vmem:[#allocation2 + $0x54] sm:$0xf] }
 0x4cd   : > { %v17261_v28 = vrot.slane %v7114_v8, 7  ;;  %v6771_v23 = vadd.f32 %v17120_v40, %v6739_v24  ;;  %v17276_v6 = vpop.f32.mrb[171].mxu1  ;;  %v6742_v50 = vmul.f32 %v17111_v45, %v13435_v54  ;;  %v6740_v37 = vmul.f32 %v17111_v45, %v13438_v38 }
 0x4ce   : > { %v7136_v12 = vor.u32 %v7134_v36, %v17259_v19  ;;  %v7137_v17 = vrot.slane %v17259_v19, 4  ;;  %v6866_v51 = vadd.f32 %v11228_v31, %v6802_v10  ;;  %v6864_v18 = vadd.f32 %v11226_v20, %v6800_v0  ;;  %v11232_v10 = vld [vmem:[%s14408_s6 + $0xf9] sm:$0xff] }
 0x4cf   : > { %v7119_v43 = vor.u32 %v7117_v4, %v17261_v28  ;;  %v7120_v15 = vrot.slane %v17261_v28, 4  ;;  %v6805_v22 = vmax.f32 %v6773_v1, 0.0  ;;  %v6803_v56 = vmax.f32 %v6771_v23, 0.0  ;;  %v11230_v1 = vld [vmem:[%s14408_s6 + $0xe1] sm:$0xff] }
 0x4d0   : > { %v7381_v58 = vsel %vm15798_vm9, %v7136_v12, %v7380_v46  ;;  %v11594_v7 = vpack.c.bf16 %v6866_v51, %v6866_v51  ;;  %v11592_v55 = vpack.c.bf16 %v6864_v18, %v6864_v18  ;;  %v6774_v36 = vadd.f32 %v17120_v40, %v6742_v50  ;;  %v7377_v46 = vld [vmem:[#allocation2 + $0x5c] sm:$0x1] }
 0x4d1   : > { %v7374_v3 = vsel %vm15798_vm9, %v7119_v43, %v7373_v25  ;;  %7382 = vst [vmem:[#allocation2 + $0x60] sm:$0xf] %v7381_v58  ;;  %v6869_v11 = vadd.f32 %v11231_v57, %v6805_v22  ;;  %v6867_v5 = vadd.f32 %v11229_v14, %v6803_v56  ;;  %v6772_v8 = vadd.f32 %v17120_v40, %v6740_v37  ;;  %v17293_v31 = vpop.f32.mrb[172].mxu1  ;;  %v7384_v43 = vld [vmem:[#allocation2 + $0x68] sm:$0x1] }
 0x4d2   : > { %7375 = vst [vmem:[#allocation2 + $0x54] sm:$0xf] %v7374_v3  ;;  %v13441_v4 = vadd.f32 %v17072_v44, %v17220_v49  ;;  %v8148_v30 = vshrl.u32 %v17274_v53, 16  ;;  %v7139_v59 = vshrl.u32 %v11594_v7, 16  ;;  %v7142_v60 = vshll.u32 %v11594_v7, 16  ;;  %v17295_v28 = vpop.f32.mrb[173].mxu1 }
 0x4d3   : > { %v7122_v24 = vshrl.u32 %v11592_v55, 16  ;;  %v7125_v19 = vshll.u32 %v11592_v55, 16  ;;  %v11597_v20 = vpack.c.bf16 %v6869_v11, %v6869_v11  ;;  %v11595_v54 = vpack.c.bf16 %v6867_v5, %v6867_v5  ;;  %v17299_v57 = vpop.f32.mrb[174].mxu1  ;;  %v14081_v37 = vld [vmem:[#allocation2 + $0x14] ss:$0 sps:$4 sm:$0x11]  }
 0x4d4   : > { %v6806_v38 = vmax.f32 %v6774_v36, 0.0  ;;  %v6804_v0 = vmax.f32 %v6772_v8, 0.0  ;;  %v7141_v23 = vrot.slane %v7139_v59, 7  ;;  %v6745_v49 = vmul.f32 %v17111_v45, %v13441_v4  ;;  %v17303_v12 = vpop.f32.mrb[175].mxu1  ;;  %v17305_v7 = vld [vmem:[#allocation2 + $0xc] sm:$0xff]  }
 0x4d5   : > { %v7124_v44 = vrot.slane %v7122_v24, 7  ;;  %v8150_v14 = vshll.u32 %v17274_v53, 16  ;;  %v7165_v25 = vshrl.u32 %v11597_v20, 16  ;;  %v7168_v51 = vshll.u32 %v11597_v20, 16  ;;  %v7394_v24 = vld [vmem:[#allocation2 + $0x78] sm:$0xf] }
 0x4d6   : > { %v7148_v18 = vshrl.u32 %v11595_v54, 16  ;;  %v7151_v22 = vshll.u32 %v11595_v54, 16  ;;  %v7144_v56 = vor.u32 %v7142_v60, %v7141_v23  ;;  %v7146_v58 = vrot.slane %v7141_v23, 4 }
 0x4d7   : > { %v7127_v3 = vor.u32 %v7125_v19, %v7124_v44  ;;  %v7129_v50 = vrot.slane %v7124_v44, 4  ;;  %v17307_v55 = vrot.slane %v7165_v25, 7  ;;  %v6870_v5 = vadd.f32 %v11232_v10, %v6806_v38  ;;  %v7387_v19 = vld [vmem:[#allocation2 + $0x6c] sm:$0xf] }
 0x4d8   : > { %v17309_v11 = vrot.slane %v7148_v18, 7  ;;  %v6868_v36 = vadd.f32 %v11230_v1, %v6804_v0  ;;  %v7145_v8 = vsel %vm15804_vm10, %v7137_v17, %v7144_v56  ;;  %v7385_v4 = vsel %vm15438_vm4, %v7146_v58, %v7384_v43  ;;  %v11235_v1 = vld [vmem:[%s14408_s6 + $0x121] sm:$0xff]  ;;  %v14083_v44 = vld [vmem:[#allocation2 + $0x14] ss:$0 sps:$4 sm:$0x11]  }
 0x4d9   : > { %v7128_v59 = vsel %vm15804_vm10, %v7120_v15, %v7127_v3  ;;  %v7378_v60 = vsel %vm15438_vm4, %v7129_v50, %v7377_v46  ;;  %7383 = vst [vmem:[#allocation2 + $0x64] sm:$0xf] %v7145_v8  ;;  %7386 = vst [vmem:[#allocation2 + $0x68] sm:$0x1] %v7385_v4  ;;  %v7170_v20 = vor.u32 %v7168_v51, %v17307_v55  ;;  %v7171_v17 = vrot.slane %v17307_v55, 4 }
 0x4da   : > { %7376 = vst [vmem:[#allocation2 + $0x58] sm:$0xf] %v7128_v59  ;;  %7379 = vst [vmem:[#allocation2 + $0x5c] sm:$0x1] %v7378_v60  ;;  %v7153_v54 = vor.u32 %v7151_v22, %v17309_v11  ;;  %v7154_v38 = vrot.slane %v17309_v11, 4  ;;  %v11598_v10 = vpack.c.bf16 %v6870_v5, %v6870_v5  ;;  %v11596_v0 = vpack.c.bf16 %v6868_v36, %v6868_v36 }
 0x4db   : > { %v6777_v15 = vadd.f32 %v17120_v40, %v6745_v49  ;;  %v8152_v23 = vrot.slane %v8150_v14, 1  ;;  %v7395_v43 = vsel %vm15798_vm9, %v7170_v20, %v7394_v24  ;;  %v8155_v25 = vshll.u32 %v14081_v37, 16  ;;  %v14086_v36 = vld [vmem:[#allocation2 + $0x20] ss:$0 sps:$4 sm:$0x11]   ;;  %v17335_v24 = vld [vmem:[#allocation2 + $0x18] sm:$0xff]  }
 0x4dc   : > { %v7388_v46 = vsel %vm15798_vm9, %v7153_v54, %v7387_v19  ;;  %v7648_v51 = vshrl.u32 %v17305_v7, 16  ;;  %7396 = vst [vmem:[#allocation2 + $0x78] sm:$0xf] %v7395_v43  ;;  %v7173_v18 = vshrl.u32 %v11598_v10, 16  ;;  %v7176_v22 = vshll.u32 %v11598_v10, 16 }
 0x4dd   : > { %7389 = vst [vmem:[#allocation2 + $0x6c] sm:$0xf] %v7388_v46  ;;  %v7156_v56 = vshrl.u32 %v11596_v0, 16  ;;  %v7159_v58 = vshll.u32 %v11596_v0, 16  ;;  %v6809_v3 = vmax.f32 %v6777_v15, 0.0  ;;  %v8153_v49 = vor.u32 %v8152_v23, %v8148_v30  ;;  %v14093_v30 = vld [vmem:[%s18550_s1 + $0x148] sm:$0xff]  }
 0x4de   : > { %v8157_v14 = vrot.slane %v8155_v25, 1  ;;  %v7650_v50 = vshll.u32 %v17305_v7, 16  ;;  %v7175_v55 = vrot.slane %v7173_v18, 7  ;;  %v7655_v5 = vshll.u32 %v14083_v44, 16  ;;  %v7398_v0 = vld [vmem:[#allocation2 + $0x80] sm:$0x1] }
 0x4df   : > { %v7158_v11 = vrot.slane %v7156_v56, 7  ;;  %v7846_v37 = vrot.slane %v17305_v7, 1  ;;  %v6873_v8 = vadd.f32 %v11235_v1, %v6809_v3  ;;  %v7847_v60 = vrot.slane %v14083_v44, 1  ;;  %v7391_v15 = vld [vmem:[#allocation2 + $0x74] sm:$0x1]  ;;  %v17356_v56 = vld [vmem:[#allocation2 + $0x18] sm:$0xff]  }
 0x4e0   : > { %v8158_v4 = vsel %vm399_vm1, %v8153_v49, %v8157_v14  ;;  %v7652_v59 = vrot.slane %v7650_v50, 1  ;;  %v7178_v19 = vor.u32 %v7176_v22, %v7175_v55  ;;  %v7180_v20 = vrot.slane %v7175_v55, 4 }
 0x4e1   : > { %v7161_v54 = vor.u32 %v7159_v58, %v7158_v11  ;;  %v7163_v10 = vrot.slane %v7158_v11, 4  ;;  %8643 = vmatprep.mubr.bf16.mxu0 %v8158_v4  ;;  %v11601_v23 = vpack.c.bf16 %v6873_v8, %v6873_v8  ;;  %v7657_v1 = vrot.slane %v7655_v5, 1  ;;  %v14088_v58 = vld [vmem:[#allocation2 + $0x20] ss:$0 sps:$4 sm:$0x11]   ;;  %v17544_v26 = vld [vmem:[#allocation2 + $0x54] sm:$0xff]  }
 0x4e2   : > { %v7653_v43 = vor.u32 %v7652_v59, %v7648_v51  ;;  %v17341_v46 = vsel %vm640_vm0, %v7846_v37, %v7847_v60  ;;  %8644 = vmatmul.mubr.bf16.vlgmr.msra.gmra.mrb[208].mxu0 %v17274_v53  ;;  %v7179_v44 = vsel %vm15804_vm10, %v7171_v17, %v7178_v19  ;;  %v7399_v25 = vsel %vm15438_vm4, %v7180_v20, %v7398_v0  ;;  %v7408_v11 = vld [vmem:[#allocation2 + $0x90] sm:$0xf] }
 0x4e3   : > { %18679 = vst [vmem:[#allocation10_spill] sm:$0xff] %v17341_v46  ;;  %v7162_v18 = vsel %vm15804_vm10, %v7154_v38, %v7161_v54  ;;  %v7392_v22 = vsel %vm15438_vm4, %v7163_v10, %v7391_v15  ;;  %13124 = vmatpush3.bf16.msra.mxu0 %v17077_v34  ;;  %7397 = vst [vmem:[#allocation2 + $0x7c] sm:$0xf] %v7179_v44  ;;  %v7199_v51 = vshrl.u32 %v11601_v23, 16  ;;  %v14102_v38 = vld [vmem:[%s18550_s1 + $0x150] sm:$0xff]   ;;  %v7202_v3 = vshll.u32 %v11601_v23, 16 }
 0x4e4   : > { %7400 = vst [vmem:[#allocation2 + $0x80] sm:$0x1] %v7399_v25  ;;  %7390 = vst [vmem:[#allocation2 + $0x70] sm:$0xf] %v7162_v18  ;;  %v7658_v53 = vsel %vm399_vm1, %v7653_v43, %v7657_v1  ;;  %v13444_v17 = vadd.f32 %v17066_v2, %v17223_v29  ;;  %13125 = vmatprep.subr.bf16.mxu0 %v14093_v30  ;;  %v13447_v34 = vadd.f32 %v17080_v9, %v17229_v47  ;;  %v11233_v59 = vld [vmem:[%s14408_s6 + $0x109] sm:$0xff] }
 0x4e5   : > { %7393 = vst [vmem:[#allocation2 + $0x74] sm:$0x1] %v7392_v22  ;;  %9117 = vmatprep.mubr.bf16.mxu1 %v7658_v53  ;;  %v8162_v49 = vshll.u32 %v17335_v24, 16  ;;  %v8167_v14 = vshll.u32 %v14086_v36, 16  ;;  %v17364_v50 = vrot.slane %v7199_v51, 7  ;;  %v8358_v29 = vrot.slane %v17335_v24, 1 }
 0x4e6   : > { %v6743_v2 = vmul.f32 %v17111_v45, %v13444_v17  ;;  %9118 = vmatmul.mubr.bf16.gmra.mrb[244].mxu1 %v17305_v7  ;;  %v8359_v55 = vrot.slane %v14086_v36, 1  ;;  %v6746_v5 = vmul.f32 %v17111_v45, %v13447_v34  ;;  %v8160_v37 = vshrl.u32 %v17335_v24, 16  ;;  %v14111_v36 = vld [vmem:[%s18550_s1 + $0x158] sm:$0xff]   ;;  %v11236_v15 = vld [vmem:[%s14408_s6 + $0x129] sm:$0xff] }
 0x4e7   : > { %v8164_v8 = vrot.slane %v8162_v49, 1  ;;  %v8169_v9 = vrot.slane %v8167_v14, 1  ;;  %13126 = vmatpush3.bf16.msra.mxu0 %v14093_v30  ;;  %v7204_v47 = vor.u32 %v7202_v3, %v17364_v50  ;;  %v7660_v7 = vshrl.u32 %v17356_v56, 16  ;;  %v17392_v22 = vld [vmem:[#allocation2 + $0x24] sm:$0xff]   ;;  %v11234_v3 = vld [vmem:[%s14408_s6 + $0x111] sm:$0xff] }
 0x4e8   : > { %v6775_v4 = vadd.f32 %v17120_v40, %v6743_v2  ;;  %v17375_v60 = vsel %vm640_vm0, %v8358_v29, %v8359_v55  ;;  %13127 = vmatprep.subr.bf16.mxu0 %v14102_v38  ;;  %v6778_v19 = vadd.f32 %v17120_v40, %v6746_v5  ;;  %v7662_v30 = vshll.u32 %v17356_v56, 16  ;;  %v14129_v2 = vld [vmem:[%s18550_s1 + $0x168] sm:$0xff]  }
 0x4e9   : > { %18680 = vst [vmem:[#allocation11_spill] sm:$0xff] %v17375_v60  ;;  %v8165_v20 = vor.u32 %v8164_v8, %v8160_v37  ;;  %v7667_v54 = vshll.u32 %v14088_v58, 16  ;;  %v7409_v10 = vsel %vm15798_vm9, %v7204_v47, %v7408_v11  ;;  %v13450_v23 = vadd.f32 %v17069_v13, %v17235_v42  ;;  %v14120_v42 = vld [vmem:[%s18550_s1 + $0x160] sm:$0xff]   ;;  %v14090_v11 = vld [vmem:[#allocation2 + $0x2c] ss:$0 sps:$4 sm:$0x11]  }
 0x4ea   : > { %v6807_v0 = vmax.f32 %v6775_v4, 0.0  ;;  %v13453_v43 = vadd.f32 %v17090_v16, %v17250_v32  ;;  %v7205_v1 = vrot.slane %v17364_v50, 4  ;;  %7410 = vst [vmem:[#allocation2 + $0x90] sm:$0xf] %v7409_v10  ;;  %v6810_v44 = vmax.f32 %v6778_v19, 0.0  ;;  %v14147_v50 = vld [vmem:[%s18550_s1 + $0x178] sm:$0xff]  }
 0x4eb   : > { %v8170_v25 = vsel %vm399_vm1, %v8165_v20, %v8169_v9  ;;  %v7664_v18 = vrot.slane %v7662_v30, 1  ;;  %13128 = vmatpush3.bf16.msra.mxu0 %v14102_v38  ;;  %v6744_v53 = vmul.f32 %v17111_v45, %v13450_v23  ;;  %v13456_v16 = vadd.f32 %v17084_v61, %v17257_v48  ;;  %v11239_v61 = vld [vmem:[%s14408_s6 + $0x151] sm:$0xff]  ;;  %v17419_v47 = vld [vmem:[%s18552_s3] ss:$0 sm:$0xff] }
 0x4ec   : > { %v6871_v51 = vadd.f32 %v11233_v59, %v6807_v0  ;;  %8651 = vmatprep.mubr.bf16.mxu0 %v8170_v25  ;;  %v6749_v13 = vmul.f32 %v17111_v45, %v13453_v43  ;;  %v6874_v32 = vadd.f32 %v11236_v15, %v6810_v44  ;;  %v7669_v58 = vrot.slane %v7667_v54, 1  ;;  %13129 = vmatprep.subr.bf16.mxu0 %v14111_v36  ;;  %v11237_v20 = vld [vmem:[%s14408_s6 + $0x139] sm:$0xff]  ;;  %v7401_v43 = vld [vmem:[#allocation2 + $0x84] sm:$0xf] }
 0x4ed   : > { %v7665_v17 = vor.u32 %v7664_v18, %v7660_v7  ;;  %8652 = vmatmul.mubr.bf16.gmra.mrb[212].mxu0 %v17335_v24  ;;  %v13459_v38 = vadd.f32 %v17092_v35, %v17268_v27  ;;  %v6776_v49 = vadd.f32 %v17120_v40, %v6744_v53  ;;  %v6747_v48 = vmul.f32 %v17111_v45, %v13456_v16  ;;  %v11240_v30 = vld [vmem:[%s14408_s6 + $0x159] sm:$0xff] }
 0x4ee   : > { %v11599_v34 = vpack.c.bf16 %v6871_v51, %v6871_v51  ;;  %v6781_v14 = vadd.f32 %v17120_v40, %v6749_v13  ;;  %v11602_v29 = vpack.c.bf16 %v6874_v32, %v6874_v32  ;;  %v8174_v35 = vshll.u32 %v17392_v22, 16  ;;  %v7412_v13 = vld [vmem:[#allocation2 + $0x98] sm:$0x1] }
 0x4ef   : > { %v7670_v55 = vsel %vm399_vm1, %v7665_v17, %v7669_v58  ;;  %v6750_v24 = vmul.f32 %v17111_v45, %v13459_v38  ;;  %13130 = vmatpush3.bf16.msra.mxu0 %v14111_v36  ;;  %v6808_v40 = vmax.f32 %v6776_v49, 0.0  ;;  %v8172_v37 = vshrl.u32 %v17392_v22, 16 }
 0x4f0   : > { %v7182_v27 = vshrl.u32 %v11599_v34, 16  ;;  %9125 = vmatprep.mubr.bf16.mxu1 %v7670_v55  ;;  %v6813_v5 = vmax.f32 %v6781_v14, 0.0  ;;  %13131 = vmatprep.subr.bf16.mxu0 %v14120_v42  ;;  %v7185_v8 = vshll.u32 %v11599_v34, 16  ;;  %v7207_v9 = vshrl.u32 %v11602_v29, 16 }
 0x4f1   : > { %v6779_v45 = vadd.f32 %v17419_v47, %v6747_v48  ;;  %9126 = vmatmul.mubr.bf16.gmra.mrb[248].mxu1 %v17356_v56  ;;  %v6782_v4 = vadd.f32 %v17419_v47, %v6750_v24  ;;  %v7210_v7 = vshll.u32 %v11602_v29, 16  ;;  %v6872_v36 = vadd.f32 %v11234_v3, %v6808_v40  ;;  %v14138_v56 = vld [vmem:[%s18550_s1 + $0x170] sm:$0xff]  }
 0x4f2   : > { %v7184_v59 = vrot.slane %v7182_v27, 7  ;;  %v6877_v19 = vadd.f32 %v11239_v61, %v6813_v5  ;;  %v7209_v54 = vrot.slane %v7207_v9, 7  ;;  %v8176_v15 = vrot.slane %v8174_v35, 1  ;;  %v17437_v61 = vld [vmem:[#allocation2 + $0x24] sm:$0xff]   ;;  %v7405_v35 = vld [vmem:[#allocation2 + $0x8c] sm:$0x1] }
 0x4f3   : > { %v6811_v10 = vmax.f32 %v6779_v45, 0.0  ;;  %v6814_v0 = vmax.f32 %v6782_v4, 0.0  ;;  %13132 = vmatpush3.bf16.msra.mxu0 %v14120_v42  ;;  %v11600_v44 = vpack.c.bf16 %v6872_v36, %v6872_v36  ;;  %v8179_v18 = vshll.u32 %v14090_v11, 16  ;;  %v14092_v11 = vld [vmem:[#allocation2 + $0x2c] ss:$0 sps:$4 sm:$0x11]  }
 0x4f4   : > { %v7187_v23 = vor.u32 %v7185_v8, %v7184_v59  ;;  %v11605_v25 = vpack.c.bf16 %v6877_v19, %v6877_v19  ;;  %13133 = vmatprep.subr.bf16.mxu0 %v14129_v2  ;;  %v7212_v51 = vor.u32 %v7210_v7, %v7209_v54  ;;  %v7214_v53 = vrot.slane %v7209_v54, 4  ;;  %v7422_v45 = vld [vmem:[#allocation2 + $0xa8] sm:$0xf] }
 0x4f5   : > { %v6875_v16 = vadd.f32 %v11237_v20, %v6811_v10  ;;  %v6878_v32 = vadd.f32 %v11240_v30, %v6814_v0  ;;  %v7190_v58 = vshrl.u32 %v11600_v44, 16  ;;  %v7193_v42 = vshll.u32 %v11600_v44, 16  ;;  %v7415_v30 = vld [vmem:[#allocation2 + $0x9c] sm:$0xf]  ;;  %v14150_v10 = vld [vmem:[%s18550_s1 + $0x80] sm:$0xff]   ;;  %v17458_v44 = vld [vmem:[#allocation2 + $0x30] sm:$0xff]  }
 0x4f6   : > { %v7402_v17 = vsel %vm15798_vm9, %v7187_v23, %v7401_v43  ;;  %v7233_v3 = vshrl.u32 %v11605_v25, 16  ;;  %v7213_v38 = vsel %vm15804_vm10, %v7205_v1, %v7212_v51  ;;  %v7413_v34 = vsel %vm15438_vm4, %v7214_v53, %v7412_v13 }
 0x4f7   : > { %7403 = vst [vmem:[#allocation2 + $0x84] sm:$0xf] %v7402_v17  ;;  %v7236_v49 = vshll.u32 %v11605_v25, 16  ;;  %v11603_v14 = vpack.c.bf16 %v6875_v16, %v6875_v16  ;;  %13134 = vmatpush3.bf16.msra.mxu0 %v14129_v2  ;;  %7411 = vst [vmem:[#allocation2 + $0x94] sm:$0xf] %v7213_v38  ;;  %v7192_v48 = vrot.slane %v7190_v58, 7  ;;  %v11606_v55 = vpack.c.bf16 %v6878_v32, %v6878_v32 }
 0x4f8   : > { %7414 = vst [vmem:[#allocation2 + $0x98] sm:$0x1] %v7413_v34  ;;  %v7235_v29 = vrot.slane %v7233_v3, 7  ;;  %v8177_v24 = vor.u32 %v8176_v15, %v8172_v37  ;;  %13135 = vmatprep.subr.bf16.mxu0 %v14138_v56  ;;  %v7188_v1 = vrot.slane %v7184_v59, 4  ;;  %v8181_v40 = vrot.slane %v8179_v18, 1 }
 0x4f9   : > { %v7216_v27 = vshrl.u32 %v11603_v14, 16  ;;  %v7195_v5 = vor.u32 %v7193_v42, %v7192_v48  ;;  %v7197_v8 = vrot.slane %v7192_v48, 4  ;;  %v7219_v2 = vshll.u32 %v11603_v14, 16  ;;  %v17460_v25 = vld [vmem:[#allocation2 + $0x38] ss:$0 sps:$4 sm:$0x11]  }
 0x4fa   : > { %v7238_v9 = vor.u32 %v7236_v49, %v7235_v29  ;;  %v7241_v7 = vshrl.u32 %v11606_v55, 16  ;;  %v8182_v37 = vsel %vm399_vm1, %v8177_v24, %v8181_v40  ;;  %v7672_v36 = vshrl.u32 %v17437_v61, 16  ;;  %v14219_v42 = vld [vmem:[%s18551_s2] ss:$0 sm:$0xff]  ;;  %v11241_v40 = vld [vmem:[%s14408_s6 + $0x169] sm:$0xff] }
 0x4fb   : > { %v17442_v4 = vrot.slane %v7216_v27, 7  ;;  %13136 = vmatpush3.bf16.msra.mxu0 %v14138_v56  ;;  %v7196_v19 = vsel %vm15804_vm10, %v7188_v1, %v7195_v5  ;;  %v7406_v59 = vsel %vm15438_vm4, %v7197_v8, %v7405_v35  ;;  %8659 = vmatprep.mubr.bf16.mxu0 %v8182_v37  ;;  %v7674_v54 = vshll.u32 %v17437_v61, 16 }
 0x4fc   : > { %v7423_v20 = vsel %vm15798_vm9, %v7238_v9, %v7422_v45  ;;  %13137 = vmatprep.subr.bf16.mxu0 %v14147_v50  ;;  %7404 = vst [vmem:[#allocation2 + $0x88] sm:$0xf] %v7196_v19  ;;  %7407 = vst [vmem:[#allocation2 + $0x8c] sm:$0x1] %v7406_v59  ;;  %v7243_v15 = vrot.slane %v7241_v7, 7  ;;  %v7244_v23 = vshll.u32 %v11606_v55, 16  ;;  %8660 = vmatmul.mubr.bf16.gmra.mrb[216].mxu0 %v17392_v22 }
 0x4fd   : > { %7424 = vst [vmem:[#allocation2 + $0xa8] sm:$0xf] %v7423_v20  ;;  %v7221_v0 = vor.u32 %v7219_v2, %v17442_v4  ;;  %v7679_v43 = vshll.u32 %v14092_v11, 16  ;;  %v7239_v18 = vrot.slane %v7235_v29, 4  ;;  %v7676_v56 = vrot.slane %v7674_v54, 1  ;;  %v11243_v55 = vld [vmem:[%s14408_s6 + $0x181] sm:$0xff] }
 0x4fe   : > { %v13462_v51 = vadd.f32 %v17086_v33, %v17276_v6  ;;  %v13465_v53 = vadd.f32 %v17102_v52, %v17293_v31  ;;  %v7246_v16 = vor.u32 %v7244_v23, %v7243_v15  ;;  %v7248_v32 = vrot.slane %v7243_v15, 4  ;;  %v7426_v22 = vld [vmem:[#allocation2 + $0xb0] sm:$0x1]  ;;  %v14097_v29 = vld [vmem:[#allocation2 + $0x38] ss:$0 sps:$4 sm:$0x11]  }
 0x4ff   : > { %v7416_v13 = vsel %vm15798_vm9, %v7221_v0, %v7415_v30  ;;  %v7681_v17 = vrot.slane %v7679_v43, 1  ;;  %13138 = vmatpush3.bf16.msra.mxu0 %v14147_v50  ;;  %v7677_v58 = vor.u32 %v7676_v56, %v7672_v36  ;;  %v13468_v52 = vadd.f32 %v17096_v62, %v17295_v28  ;;  %v17473_v6 = vld [vmem:[#allocation2 + $0x30] sm:$0xff]   ;;  %v11238_v62 = vld [vmem:[%s14408_s6 + $0x141] sm:$0xff] }
 0x500   : > { %7417 = vst [vmem:[#allocation2 + $0x9c] sm:$0xf] %v7416_v13  ;;  %v6748_v3 = vmul.f32 %v14219_v42, %v13462_v51  ;;  %v6753_v33 = vmul.f32 %v14219_v42, %v13465_v53  ;;  %13171 = vmatprep.subr.bf16.mxu0 %v14150_v10  ;;  %v7247_v31 = vsel %vm15804_vm10, %v7239_v18, %v7246_v16  ;;  %v8184_v11 = vshrl.u32 %v17458_v44, 16  ;;  %v11244_v36 = vld [vmem:[%s14408_s6 + $0x189] sm:$0xff]  ;;  %v17498_v23 = vld [vmem:[#allocation2 + $0x3c] sm:$0xff]  }
 0x501   : > { %v7427_v38 = vsel %vm15438_vm4, %v7248_v32, %v7426_v22  ;;  %v13471_v34 = vadd.f32 %v17104_v39, %v17299_v57  ;;  %7425 = vst [vmem:[#allocation2 + $0xac] sm:$0xf] %v7247_v31  ;;  %v7682_v49 = vsel %vm399_vm1, %v7677_v58, %v7681_v17  ;;  %v6751_v48 = vmul.f32 %v14219_v42, %v13468_v52  ;;  %v17505_v58 = vld [vmem:[#allocation2 + $0x44] ss:$0 sps:$4 sm:$0x11]  }
 0x502   : > { %7428 = vst [vmem:[#allocation2 + $0xb0] sm:$0x1] %v7427_v38  ;;  %v6780_v14 = vadd.f32 %v17419_v47, %v6748_v3  ;;  %v6785_v28 = vadd.f32 %v17419_v47, %v6753_v33  ;;  %9133 = vmatprep.mubr.bf16.mxu1 %v7682_v49  ;;  %v8186_v39 = vshll.u32 %v17458_v44, 16  ;;  %v8191_v57 = vshll.u32 %v17460_v25, 16  ;;  %v7436_v31 = vld [vmem:[#allocation2 + $0xc0] sm:$0xf] }
 0x503   : > { %v6754_v24 = vmul.f32 %v14219_v42, %v13471_v34  ;;  %v6783_v35 = vadd.f32 %v17419_v47, %v6751_v48  ;;  %9134 = vmatmul.mubr.bf16.gmra.mrb[252].mxu1 %v17437_v61  ;;  %v7684_v27 = vshrl.u32 %v17473_v6, 16  ;;  %v7686_v2 = vshll.u32 %v17473_v6, 16 }
 0x504   : > { %v6812_v50 = vmax.f32 %v6780_v14, 0.0  ;;  %v6817_v1 = vmax.f32 %v6785_v28, 0.0  ;;  %v8188_v8 = vrot.slane %v8186_v39, 1  ;;  %v8193_v9 = vrot.slane %v8191_v57, 1  ;;  %v11242_v39 = vld [vmem:[%s14408_s6 + $0x171] sm:$0xff] }
 0x505   : > { %v6786_v5 = vadd.f32 %v17419_v47, %v6754_v24  ;;  %v6815_v37 = vmax.f32 %v6783_v35, 0.0  ;;  %v7691_v19 = vshll.u32 %v14097_v29, 16  ;;  %v7688_v30 = vrot.slane %v7686_v2, 1  ;;  %v17510_v29 = vld [vmem:[#allocation2 + $0x44] ss:$0 sps:$4 sm:$0x11]  }
 0x506   : > { %v6876_v45 = vadd.f32 %v11238_v62, %v6812_v50  ;;  %v6881_v7 = vadd.f32 %v11243_v55, %v6817_v1  ;;  %v8189_v20 = vor.u32 %v8188_v8, %v8184_v11  ;;  %v13474_v61 = vadd.f32 %v17098_v41, %v17303_v12  ;;  %v17515_v50 = vld [vmem:[#allocation2 + $0x3c] sm:$0xff]  }
 0x507   : > { %v6818_v59 = vmax.f32 %v6786_v5, 0.0  ;;  %v6879_v0 = vadd.f32 %v11241_v40, %v6815_v37  ;;  %v7693_v15 = vrot.slane %v7691_v19, 1  ;;  %v7689_v56 = vor.u32 %v7688_v30, %v7684_v27  ;;  %v7429_v27 = vld [vmem:[#allocation2 + $0xb4] sm:$0xf]  ;;  %v7440_v40 = vld [vmem:[#allocation2 + $0xc8] sm:$0x1] }
 0x508   : > { %v11604_v54 = vpack.c.bf16 %v6876_v45, %v6876_v45  ;;  %v11609_v10 = vpack.c.bf16 %v6881_v7, %v6881_v7  ;;  %v8194_v18 = vsel %vm399_vm1, %v8189_v20, %v8193_v9  ;;  %v6752_v51 = vmul.f32 %v14219_v42, %v13474_v61  ;;  %v7419_v42 = vld [vmem:[#allocation2 + $0xa4] sm:$0x1]  ;;  %v17525_v7 = vld [vmem:[#allocation2 + $0x48] sm:$0xff]   ;;  %v17527_v37 = vld [vmem:[#allocation2 + $0x50] ss:$0 sps:$4 sm:$0x11]  }
 0x509   : > { %v6882_v43 = vadd.f32 %v11244_v36, %v6818_v59  ;;  %v7222_v53 = vrot.slane %v17442_v4, 4  ;;  %8667 = vmatprep.mubr.bf16.mxu0 %v8194_v18  ;;  %v11607_v17 = vpack.c.bf16 %v6879_v0, %v6879_v0  ;;  %v7694_v41 = vsel %vm399_vm1, %v7689_v56, %v7693_v15  ;;  %v17529_v20 = vld [vmem:[#allocation2 + $0x48] sm:$0xff]   ;;  %v17531_v30 = vld [vmem:[#allocation2 + $0x50] ss:$0 sps:$4 sm:$0x11]  }
 0x50a   : > { %v7224_v13 = vshrl.u32 %v11604_v54, 16  ;;  %v7227_v16 = vshll.u32 %v11604_v54, 16  ;;  %v7267_v32 = vshrl.u32 %v11609_v10, 16  ;;  %v6784_v12 = vadd.f32 %v17419_v47, %v6752_v51  ;;  %8668 = vmatmul.mubr.bf16.gmra.mrb[220].mxu0 %v17458_v44  ;;  %9141 = vmatprep.mubr.bf16.mxu1 %v7694_v41  ;;  %v17540_v15 = vld [vmem:[#allocation2 + $0x5c] ss:$0 sps:$4 sm:$0x11]  }
 0x50b   : > { %v11610_v22 = vpack.c.bf16 %v6882_v43, %v6882_v43  ;;  %v7270_v52 = vshll.u32 %v11609_v10, 16  ;;  %v8198_v4 = vshll.u32 %v17498_v23, 16  ;;  %v7250_v38 = vshrl.u32 %v11607_v17, 16  ;;  %9142 = vmatmul.mubr.bf16.gmra.mrb[0].mxu1 %v17473_v6  ;;  %v17552_v41 = vld [vmem:[#allocation2 + $0x54] sm:$0xff]  }
 0x50c   : > { %v7226_v3 = vrot.slane %v7224_v13, 7  ;;  %v7269_v33 = vrot.slane %v7267_v32, 7  ;;  %v7253_v34 = vshll.u32 %v11607_v17, 16  ;;  %v8196_v47 = vshrl.u32 %v17498_v23, 16 }
 0x50d   : > { %v7275_v49 = vshrl.u32 %v11610_v22, 16  ;;  %v7278_v48 = vshll.u32 %v11610_v22, 16  ;;  %v17512_v55 = vrot.slane %v7250_v38, 7  ;;  %v6816_v11 = vmax.f32 %v6784_v12, 0.0 }
 0x50e   : > { %v7229_v14 = vor.u32 %v7227_v16, %v7226_v3  ;;  %v7231_v62 = vrot.slane %v7226_v3, 4  ;;  %v7272_v28 = vor.u32 %v7270_v52, %v7269_v33  ;;  %v8200_v57 = vrot.slane %v8198_v4, 1  ;;  %v17554_v4 = vld [vmem:[#allocation2 + $0x5c] ss:$0 sps:$4 sm:$0x11]  }
 0x50f   : > { %v7277_v24 = vrot.slane %v7275_v49, 7  ;;  %v8203_v5 = vshll.u32 %v17505_v58, 16  ;;  %v7273_v8 = vrot.slane %v7269_v33, 4  ;;  %v7255_v9 = vor.u32 %v7253_v34, %v17512_v55 }
 0x510   : > { %v7230_v1 = vsel %vm15804_vm10, %v7222_v53, %v7229_v14  ;;  %v7420_v6 = vsel %vm15438_vm4, %v7231_v62, %v7419_v42  ;;  %v7437_v35 = vsel %vm15798_vm9, %v7272_v28, %v7436_v31  ;;  %v6880_v36 = vadd.f32 %v11242_v39, %v6816_v11  ;;  %v17562_v39 = vld [vmem:[#allocation2 + $0x60] sm:$0xff]  }
 0x511   : > { %7418 = vst [vmem:[#allocation2 + $0xa0] sm:$0xf] %v7230_v1  ;;  %7421 = vst [vmem:[#allocation2 + $0xa4] sm:$0x1] %v7420_v6  ;;  %v7280_v2 = vor.u32 %v7278_v48, %v7277_v24  ;;  %v7282_v45 = vrot.slane %v7277_v24, 4  ;;  %v8201_v19 = vor.u32 %v8200_v57, %v8196_v47  ;;  %v8205_v59 = vrot.slane %v8203_v5, 1 }
 0x512   : > { %7438 = vst [vmem:[#allocation2 + $0xc0] sm:$0xf] %v7437_v35  ;;  %v7430_v61 = vsel %vm15798_vm9, %v7255_v9, %v7429_v27  ;;  %v7698_v0 = vshll.u32 %v17515_v50, 16  ;;  %v11608_v43 = vpack.c.bf16 %v6880_v36, %v6880_v36  ;;  %v7703_v56 = vshll.u32 %v17510_v29, 16  ;;  %v17567_v27 = vld [vmem:[#allocation2 + $0x60] sm:$0xff]  }
 0x513   : > { %v7281_v54 = vsel %vm15804_vm10, %v7273_v8, %v7280_v2  ;;  %v7441_v10 = vsel %vm15438_vm4, %v7282_v45, %v7440_v40  ;;  %7431 = vst [vmem:[#allocation2 + $0xb4] sm:$0xf] %v7430_v61  ;;  %v8206_v18 = vsel %vm399_vm1, %v8201_v19, %v8205_v59  ;;  %v7696_v51 = vshrl.u32 %v17515_v50, 16  ;;  %v17574_v2 = vld [vmem:[#allocation2 + $0x68] ss:$0 sps:$4 sm:$0x11]  }
 0x514   : > { %7439 = vst [vmem:[#allocation2 + $0xc4] sm:$0xf] %v7281_v54  ;;  %7442 = vst [vmem:[#allocation2 + $0xc8] sm:$0x1] %v7441_v10  ;;  %8675 = vmatprep.mubr.bf16.mxu0 %v8206_v18  ;;  %v7700_v53 = vrot.slane %v7698_v0, 1  ;;  %v8210_v13 = vshll.u32 %v17525_v7, 16 }
 0x515   : > { %v8215_v16 = vshll.u32 %v17527_v37, 16  ;;  %v7256_v32 = vrot.slane %v17512_v55, 4  ;;  %v7258_v17 = vshrl.u32 %v11608_v43, 16  ;;  %8676 = vmatmul.mubr.bf16.gmra.mrb[224].mxu0 %v17498_v23  ;;  %v8208_v22 = vshrl.u32 %v17525_v7, 16  ;;  %v7433_v55 = vld [vmem:[#allocation2 + $0xbc] sm:$0x1] }
 0x516   : > { %v7261_v12 = vshll.u32 %v11608_v43, 16  ;;  %v7701_v3 = vor.u32 %v7700_v53, %v7696_v51  ;;  %v7705_v33 = vrot.slane %v7703_v56, 1  ;;  %v8212_v52 = vrot.slane %v8210_v13, 1  ;;  %v17581_v54 = vld [vmem:[#allocation2 + $0x6c] sm:$0xff]  }
 0x517   : > { %v7260_v42 = vrot.slane %v7258_v17, 7  ;;  %v8217_v31 = vrot.slane %v8215_v16, 1  ;;  %v7710_v38 = vshll.u32 %v17529_v20, 16  ;;  %v7715_v34 = vshll.u32 %v17531_v30, 16 }
 0x518   : > { %v7706_v49 = vsel %vm399_vm1, %v7701_v3, %v7705_v33  ;;  %v8213_v47 = vor.u32 %v8212_v52, %v8208_v22  ;;  %v8222_v14 = vshll.u32 %v17544_v26, 16  ;;  %v8227_v62 = vshll.u32 %v17540_v15, 16  ;;  %v17587_v13 = vld [vmem:[#allocation2 + $0x68] ss:$0 sps:$4 sm:$0x11]   ;;  %v17594_v3 = vld [vmem:[#allocation2 + $0x6c] sm:$0xff]  }
 0x519   : > { %v7263_v28 = vor.u32 %v7261_v12, %v7260_v42  ;;  %v7265_v48 = vrot.slane %v7260_v42, 4  ;;  %9149 = vmatprep.mubr.bf16.mxu1 %v7706_v49  ;;  %v7708_v24 = vshrl.u32 %v17529_v20, 16  ;;  %v7712_v11 = vrot.slane %v7710_v38, 1 }
 0x51a   : > { %9150 = vmatmul.mubr.bf16.gmra.mrb[4].mxu1 %v17515_v50  ;;  %v8218_v57 = vsel %vm399_vm1, %v8213_v47, %v8217_v31  ;;  %v7717_v1 = vrot.slane %v7715_v34, 1  ;;  %v8220_v6 = vshrl.u32 %v17544_v26, 16  ;;  %v8224_v35 = vrot.slane %v8222_v14, 1  ;;  %v17600_v34 = vld [vmem:[#allocation2 + $0x78] sm:$0xff]  }
 0x51b   : > { %v7264_v40 = vsel %vm15804_vm10, %v7256_v32, %v7263_v28  ;;  %v7434_v5 = vsel %vm15438_vm4, %v7265_v48, %v7433_v55  ;;  %8683 = vmatprep.mubr.bf16.mxu0 %v8218_v57  ;;  %v7713_v8 = vor.u32 %v7712_v11, %v7708_v24  ;;  %v7722_v9 = vshll.u32 %v17552_v41, 16  ;;  %v17589_v32 = vld [vmem:[#allocation2 + $0x74] ss:$0 sps:$4 sm:$0x11]  }
 0x51c   : > { %7432 = vst [vmem:[#allocation2 + $0xb8] sm:$0xf] %v7264_v40  ;;  %7435 = vst [vmem:[#allocation2 + $0xbc] sm:$0x1] %v7434_v5  ;;  %v8225_v45 = vor.u32 %v8224_v35, %v8220_v6  ;;  %v8229_v36 = vrot.slane %v8227_v62, 1  ;;  %v7727_v19 = vshll.u32 %v17554_v4, 16 }
 0x51d   : > { %v7718_v59 = vsel %vm399_vm1, %v7713_v8, %v7717_v1  ;;  %8684 = vmatmul.mubr.bf16.gmra.mrb[228].mxu0 %v17525_v7  ;;  %v7720_v21 = vshrl.u32 %v17552_v41, 16  ;;  %v7724_v63 = vrot.slane %v7722_v9, 1  ;;  %v8234_v61 = vshll.u32 %v17562_v39, 16  ;;  %v17605_v48 = vld [vmem:[#allocation2 + $0x74] ss:$0 sps:$4 sm:$0x11]  }
 0x51e   : > { %9157 = vmatprep.mubr.bf16.mxu1 %v7718_v59  ;;  %v8230_v10 = vsel %vm399_vm1, %v8225_v45, %v8229_v36  ;;  %v8232_v0 = vshrl.u32 %v17562_v39, 16  ;;  %v8239_v56 = vshll.u32 %v17574_v2, 16  ;;  %v7734_v51 = vshll.u32 %v17567_v27, 16  ;;  %v17610_v1 = vld [vmem:[#allocation2 + $0x78] sm:$0xff]   ;;  %v17616_v8 = vld [vmem:[#allocation2 + $0x84] sm:$0xff]  }
 0x51f   : > { %8691 = vmatprep.mubr.bf16.mxu0 %v8230_v10  ;;  %v7725_v43 = vor.u32 %v7724_v63, %v7720_v21  ;;  %v8236_v18 = vrot.slane %v8234_v61, 1  ;;  %v7729_v53 = vrot.slane %v7727_v19, 1  ;;  %v8246_v17 = vshll.u32 %v17581_v54, 16  ;;  %v17612_v35 = vld [vmem:[#allocation2 + $0x80] ss:$0 sps:$4 sm:$0x11]  }
 0x520   : > { %v7736_v12 = vrot.slane %v7734_v51, 1  ;;  %v8241_v33 = vrot.slane %v8239_v56, 1  ;;  %v7732_v52 = vshrl.u32 %v17567_v27, 16  ;;  %v7739_v42 = vshll.u32 %v17587_v13, 16  ;;  %v17618_v9 = vld [vmem:[#allocation2 + $0x84] sm:$0xff]   ;;  %v17625_v63 = vld [vmem:[#allocation2 + $0x90] sm:$0xff]  }
 0x521   : > { %v8237_v16 = vor.u32 %v8236_v18, %v8232_v0  ;;  %v7730_v22 = vsel %vm399_vm1, %v7725_v43, %v7729_v53  ;;  %v8248_v38 = vrot.slane %v8246_v17, 1  ;;  %v7746_v47 = vshll.u32 %v17594_v3, 16  ;;  %v17622_v59 = vld [vmem:[#allocation2 + $0x80] ss:$0 sps:$4 sm:$0x11]   ;;  %v17633_v53 = vld [vmem:[#allocation2 + $0x90] sm:$0xff]  }
 0x522   : > { %9158 = vmatmul.mubr.bf16.gmra.mrb[8].mxu1 %v17529_v20  ;;  %v7737_v49 = vor.u32 %v7736_v12, %v7732_v52  ;;  %v8244_v14 = vshrl.u32 %v17581_v54, 16  ;;  %v8251_v62 = vshll.u32 %v17589_v32, 16  ;;  %v7741_v28 = vrot.slane %v7739_v42, 1  ;;  %v17631_v51 = vld [vmem:[#allocation2 + $0x8c] ss:$0 sps:$4 sm:$0x11]  }
 0x523   : > { %9165 = vmatprep.mubr.bf16.mxu1 %v7730_v22  ;;  %v8242_v31 = vsel %vm399_vm1, %v8237_v16, %v8241_v33  ;;  %v8258_v24 = vshll.u32 %v17600_v34, 16  ;;  %v7748_v57 = vrot.slane %v7746_v47, 1  ;;  %v7744_v40 = vshrl.u32 %v17594_v3, 16  ;;  %v17638_v12 = vld [vmem:[#allocation2 + $0x8c] ss:$0 sps:$4 sm:$0x11]  }
 0x524   : > { %v8249_v55 = vor.u32 %v8248_v38, %v8244_v14  ;;  %v7742_v11 = vsel %vm399_vm1, %v7737_v49, %v7741_v28  ;;  %v8253_v6 = vrot.slane %v8251_v62, 1  ;;  %v7751_v5 = vshll.u32 %v17605_v48, 16  ;;  %v17640_v33 = vld [vmem:[#allocation2 + $0x98] ss:$0 sps:$4 sm:$0x11]   ;;  %v17647_v47 = vld [vmem:[#allocation2 + $0x9c] sm:$0xff]  }
 0x525   : > { %8692 = vmatmul.mubr.bf16.gmra.mrb[232].mxu0 %v17544_v26  ;;  %v8260_v36 = vrot.slane %v8258_v24, 1  ;;  %v7749_v19 = vor.u32 %v7748_v57, %v7744_v40  ;;  %v7758_v21 = vshll.u32 %v17610_v1, 16  ;;  %v8256_v61 = vshrl.u32 %v17600_v34, 16  ;;  %v17645_v49 = vld [vmem:[#allocation2 + $0x98] ss:$0 sps:$4 sm:$0x11]  }
 0x526   : > { %8699 = vmatprep.mubr.bf16.mxu0 %v8242_v31  ;;  %v8254_v45 = vsel %vm399_vm1, %v8249_v55, %v8253_v6  ;;  %v8263_v10 = vshll.u32 %v17612_v35, 16  ;;  %v7753_v0 = vrot.slane %v7751_v5, 1  ;;  %v8270_v43 = vshll.u32 %v17616_v8, 16 }
 0x527   : > { %v7770_v18 = vshll.u32 %v17618_v9, 16  ;;  %v8261_v56 = vor.u32 %v8260_v36, %v8256_v61  ;;  %v7760_v22 = vrot.slane %v7758_v21, 1  ;;  %v8282_v52 = vshll.u32 %v17625_v63, 16 }
 0x528   : > { %v7754_v17 = vsel %vm399_vm1, %v7749_v19, %v7753_v0  ;;  %v8265_v31 = vrot.slane %v8263_v10, 1  ;;  %v7763_v38 = vshll.u32 %v17622_v59, 16  ;;  %v7756_v62 = vshrl.u32 %v17610_v1, 16  ;;  %v17660_v10 = vld [vmem:[#allocation2 + $0xa4] ss:$0 sps:$4 sm:$0x11]  }
 0x529   : > { %v8272_v28 = vrot.slane %v8270_v43, 1  ;;  %v7772_v55 = vrot.slane %v7770_v18, 1  ;;  %v8275_v57 = vshll.u32 %v17631_v51, 16  ;;  %v7768_v6 = vshrl.u32 %v17618_v9, 16  ;;  %v17663_v43 = vld [vmem:[#allocation2 + $0x9c] sm:$0xff]  }
 0x52a   : > { %9166 = vmatmul.mubr.bf16.gmra.mrb[12].mxu1 %v17552_v41  ;;  %v8266_v24 = vsel %vm399_vm1, %v8261_v56, %v8265_v31  ;;  %v7761_v40 = vor.u32 %v7760_v22, %v7756_v62  ;;  %v7775_v5 = vshll.u32 %v17638_v12, 16  ;;  %v7782_v36 = vshll.u32 %v17633_v53, 16 }
 0x52b   : > { %9173 = vmatprep.mubr.bf16.mxu1 %v7742_v11  ;;  %v8268_v11 = vshrl.u32 %v17616_v8, 16  ;;  %v7765_v61 = vrot.slane %v7763_v38, 1  ;;  %v8294_v0 = vshll.u32 %v17647_v47, 16  ;;  %v7773_v56 = vor.u32 %v7772_v55, %v7768_v6 }
 0x52c   : > { %v8287_v22 = vshll.u32 %v17640_v33, 16  ;;  %v8383_v62 = vrot.slane %v17612_v35, 1  ;;  %v7787_v38 = vshll.u32 %v17645_v49, 16  ;;  %v7777_v42 = vrot.slane %v7775_v5, 1 }
 0x52d   : > { %8700 = vmatmul.mubr.bf16.gmra.mrb[236].mxu0 %v17562_v39  ;;  %v8273_v18 = vor.u32 %v8272_v28, %v8268_v11  ;;  %v7766_v19 = vsel %vm399_vm1, %v7761_v40, %v7765_v61  ;;  %v7784_v55 = vrot.slane %v7782_v36, 1  ;;  %v17674_v11 = vld [vmem:[#allocation2 + $0xb0] ss:$0 sps:$4 sm:$0x11]   ;;  %v8389_v21 = vrot.slane %v17640_v33, 1 }
 0x52e   : > { %8707 = vmatprep.mubr.bf16.mxu0 %v8254_v45  ;;  %v8284_v45 = vrot.slane %v8282_v52, 1  ;;  %v17667_v52 = vld [vmem:[#allocation2 + $0xa4] ss:$0 sps:$4 sm:$0x11]   ;;  %v8296_v31 = vrot.slane %v8294_v0, 1  ;;  %v7794_v35 = vshll.u32 %v17663_v43, 16  ;;  %v7778_v16 = vsel %vm399_vm1, %v7773_v56, %v7777_v42 }
 0x52f   : > { %v8289_v40 = vrot.slane %v8287_v22, 1  ;;  %v7780_v5 = vshrl.u32 %v17633_v53, 16  ;;  %v8292_v36 = vshrl.u32 %v17647_v47, 16  ;;  %v7792_v33 = vshrl.u32 %v17663_v43, 16 }
 0x530   : > { %v8364_v42 = vrot.slane %v17458_v44, 1  ;;  %v7796_v22 = vrot.slane %v7794_v35, 1  ;;  %v8395_v46 = vrot.slane %v17674_v11, 1  ;;  %v18681_v60 = vrot.slane %v17460_v25, 1  ;;  %v17701_v44 = vld [vmem:[#allocation2 + $0xa8] sm:$0xff]   ;;  %v17705_v35 = vld [vmem:[#allocation2 + $0xc0] sm:$0xff]  }
 0x531   : > { %v7785_v0 = vor.u32 %v7784_v55, %v7780_v5  ;;  %v8373_v55 = vrot.slane %v17544_v26, 1  ;;  %v8374_v25 = vrot.slane %v17540_v15, 1  ;;  %v18682_v26 = vrot.slane %v17527_v37, 1 }
 0x532   : > { %9174 = vmatmul.mubr.bf16.gmra.mrb[16].mxu1 %v17567_v27  ;;  %v12579_v56 = vpop.f32.mrb[240].mxu1  ;;  %v8379_v5 = vrot.slane %v17581_v54, 1  ;;  %v8385_v37 = vrot.slane %v17616_v8, 1 }
 0x533   : > { %9181 = vmatprep.mubr.bf16.mxu1 %v7754_v17  ;;  %v8280_v17 = vshrl.u32 %v17625_v63, 16  ;;  %v12580_v6 = vpop.f32.mrb[241].mxu1  ;;  %v17725_v15 = vsel %vm640_vm0, %v8373_v55, %v8374_v25  ;;  %v8394_v55 = vrot.slane %v17701_v44, 1 }
 0x534   : > { %v12582_v25 = vpop.f32.mrb[242].mxu1 }
 0x535   : > { %8708 = vmatmul.mubr.bf16.gmra.mrb[240].mxu0 %v17581_v54  ;;  %v8285_v28 = vor.u32 %v8284_v45, %v8280_v17  ;;  %v7789_v45 = vrot.slane %v7787_v38, 1  ;;  %v8297_v17 = vor.u32 %v8296_v31, %v8292_v36  ;;  %v8368_v38 = vrot.slane %v17505_v58, 1  ;;  %v17703_v31 = vld [vmem:[#allocation2 + $0xb4] sm:$0xff]  }
 0x536   : > { %8715 = vmatprep.mubr.bf16.mxu0 %v8266_v24  ;;  %v8277_v24 = vrot.slane %v8275_v57, 1  ;;  %v17679_v57 = vld [vmem:[#allocation2 + $0xc8] ss:$0 sps:$4 sm:$0x11]   ;;  %v8380_v36 = vrot.slane %v17589_v32, 1  ;;  %v8388_v32 = vrot.slane %v17625_v63, 1 }
 0x537   : > { %v8290_v61 = vsel %vm399_vm1, %v8285_v28, %v8289_v40  ;;  %v8370_v28 = vrot.slane %v17525_v7, 1  ;;  %v17714_v7 = vld [vmem:[#allocation2 + $0xbc] ss:$0 sps:$4 sm:$0x11]  }
 0x538   : > { %v8278_v14 = vsel %vm399_vm1, %v8273_v18, %v8277_v24  ;;  %v8367_v24 = vrot.slane %v17498_v23, 1  ;;  %v8401_v23 = vrot.slane %v17679_v57, 1 }
 0x539   : > { %v17719_v40 = vsel %vm640_vm0, %v8370_v28, %v18682_v26  ;;  %v17735_v28 = vsel %vm640_vm0, %v8379_v5, %v8380_v36  ;;  %v17753_v26 = vsel %vm640_vm0, %v8388_v32, %v8389_v21  ;;  %v8400_v5 = vrot.slane %v17705_v35, 1  ;;  %v12583_v36 = vpop.f32.mrb[243].mxu1 }
 0x53a   : > { %9182 = vmatmul.mubr.bf16.gmra.mrb[20].mxu1 %v17594_v3  ;;  %v17709_v58 = vsel %vm640_vm0, %v8367_v24, %v8368_v38  ;;  %v8386_v38 = vrot.slane %v17631_v51, 1  ;;  %v8397_v51 = vrot.slane %v17703_v31, 1  ;;  %18685 = vst [vmem:[#allocation13_spill] sm:$0xff] %v17753_v26  ;;  %v8304_v21 = vshrl.u32 %v17701_v44, 16 }
 0x53b   : > { %9189 = vmatprep.mubr.bf16.mxu1 %v7766_v19  ;;  %v8299_v19 = vshll.u32 %v17660_v10, 16  ;;  %v17772_v18 = vsel %vm640_vm0, %v8400_v5, %v8401_v23  ;;  %v7797_v26 = vor.u32 %v7796_v22, %v7792_v33  ;;  %v17784_v33 = vadd.f32 %v12583_v36, %v12582_v25 }
 0x53c   : > { %v18689_v36 = vshll.u32 %v17667_v52, 16 }
 0x53d   : > { %8716 = vmatmul.mubr.bf16.gmra.mrb[244].mxu0 %v17600_v34 }
 0x53e   : > { %8723 = vmatprep.mubr.bf16.mxu0 %v8278_v14  ;;  %v17697_v14 = vsel %vm640_vm0, %v8364_v42, %v18681_v60  ;;  %v8376_v60 = vrot.slane %v17562_v39, 1  ;;  %v8382_v42 = vrot.slane %v17600_v34, 1  ;;  %v18683_v39 = vrot.slane %v17574_v2, 1 }
 0x53f   : > { %v8391_v34 = vrot.slane %v17647_v47, 1  ;;  %v17744_v2 = vsel %vm640_vm0, %v8385_v37, %v8386_v38  ;;  %v7790_v38 = vsel %vm399_vm1, %v7785_v0, %v7789_v45  ;;  %v7858_v0 = vrot.slane %v17515_v50, 1 }
 0x540   : > { %v17730_v24 = vsel %vm640_vm0, %v8376_v60, %v18683_v39  ;;  %v17738_v54 = vsel %vm640_vm0, %v8382_v42, %v8383_v62  ;;  %18684 = vst [vmem:[#allocation12_spill] sm:$0xff] %v17744_v2  ;;  %v8306_v62 = vshll.u32 %v17701_v44, 16  ;;  %v17750_v60 = vld [vmem:[#allocation2 + $0xa8] sm:$0xff]   ;;  %v8301_v42 = vrot.slane %v8299_v19, 1 }
 0x541   : > { %v17758_v39 = vld [vmem:[#allocation2 + $0xbc] ss:$0 sps:$4 sm:$0x11]   ;;  %v8311_v2 = vshll.u32 %v17674_v11, 16  ;;  %v7806_v45 = vshll.u32 %v17750_v60, 16  ;;  %v7864_v11 = vrot.slane %v17552_v41, 1 }
 0x542   : > { %9190 = vmatmul.mubr.bf16.gmra.mrb[24].mxu1 %v17610_v1  ;;  %v8302_v19 = vsel %vm399_vm1, %v8297_v17, %v8301_v42  ;;  %v7889_v23 = vrot.slane %v17758_v39, 1  ;;  %v7862_v17 = vrot.slane %v17531_v30, 1  ;;  %v7867_v50 = vrot.slane %v17567_v27, 1 }
 0x543   : > { %9197 = vmatprep.mubr.bf16.mxu1 %v7778_v16  ;;  %v8392_v16 = vrot.slane %v17660_v10, 1  ;;  %v7883_v10 = vrot.slane %v17667_v52, 1  ;;  %v18687_v41 = vrot.slane %v17554_v4, 1  ;;  %v7879_v4 = vrot.slane %v17633_v53, 1 }
 0x544   : > { %v7885_v5 = vrot.slane %v17750_v60, 1  ;;  %v7801_v42 = vrot.slane %v18689_v36, 1 }
 0x545   : > { %8724 = vmatmul.mubr.bf16.gmra.mrb[248].mxu0 %v17616_v8  ;;  %v8398_v8 = vrot.slane %v17714_v7, 1  ;;  %v17761_v37 = vsel %vm640_vm0, %v8391_v34, %v8392_v16  ;;  %v17776_v34 = vadd.f32 %v12580_v6, %v12579_v56  ;;  %v7861_v16 = vrot.slane %v17529_v20, 1  ;;  %v17787_v6 = vld [vmem:[#allocation2 + $0xb4] sm:$0xff]  }
 0x546   : > { %8731 = vmatprep.mubr.bf16.mxu0 %v8290_v61  ;;  %v17764_v61 = vsel %vm640_vm0, %v8394_v55, %v8395_v46  ;;  %v8308_v46 = vrot.slane %v8306_v62, 1  ;;  %v14142_v55 = vld [vmem:[#allocation2 + $0xb0] ss:$0 sps:$4 sm:$0x11]   ;;  %v18686_v56 = vrot.slane %v17510_v29, 1  ;;  %v7868_v20 = vrot.slane %v17587_v13, 1 }
 0x547   : > { %v17769_v32 = vsel %vm640_vm0, %v8397_v51, %v8398_v8  ;;  %v7870_v51 = vrot.slane %v17594_v3, 1  ;;  %v17799_v30 = vsel %vm640_vm0, %v7861_v16, %v7862_v17  ;;  %v17804_v25 = vsel %vm640_vm0, %v7864_v11, %v18687_v41 }
 0x548   : > { %v17792_v22 = vsel %vm640_vm0, %v7858_v0, %v18686_v56  ;;  %v7873_v29 = vrot.slane %v17610_v1, 1  ;;  %v7874_v62 = vrot.slane %v17622_v59, 1  ;;  %v17809_v27 = vsel %vm640_vm0, %v7867_v50, %v7868_v20 }
 0x549   : > { %v18688_v13 = vrot.slane %v17605_v48, 1  ;;  %v7880_v1 = vrot.slane %v17645_v49, 1  ;;  %v7882_v59 = vrot.slane %v17663_v43, 1  ;;  %v18690_v48 = vrot.slane %v17638_v12, 1 }
 0x54a   : > { %9198 = vmatmul.mubr.bf16.gmra.mrb[28].mxu1 %v17618_v9  ;;  %v17819_v8 = vsel %vm640_vm0, %v7873_v29, %v7874_v62  ;;  %v8309_v0 = vor.u32 %v8308_v46, %v8304_v21  ;;  %v8318_v16 = vshll.u32 %v17703_v31, 16  ;;  %v7802_v52 = vsel %vm399_vm1, %v7797_v26, %v7801_v42 }
 0x54b   : > { %9205 = vmatprep.mubr.bf16.mxu1 %v7790_v38  ;;  %v17814_v3 = vsel %vm640_vm0, %v7870_v51, %v18688_v13  ;;  %v17834_v49 = vsel %vm640_vm0, %v7879_v4, %v7880_v1  ;;  %v17837_v17 = vsel %vm640_vm0, %v7882_v59, %v7883_v10  ;;  %v7808_v12 = vrot.slane %v7806_v45, 1 }
 0x54c   : > { %v8313_v21 = vrot.slane %v8311_v2, 1  ;;  %v7804_v46 = vshrl.u32 %v17750_v60, 16  ;;  %v7811_v50 = vshll.u32 %v14142_v55, 16  ;;  %v8320_v20 = vrot.slane %v8318_v16, 1 }
 0x54d   : > { %8732 = vmatmul.mubr.bf16.gmra.mrb[252].mxu0 %v17625_v63  ;;  %v7876_v63 = vrot.slane %v17618_v9, 1  ;;  %v7886_v9 = vrot.slane %v14142_v55, 1  ;;  %v7818_v26 = vshll.u32 %v17787_v6, 16  ;;  %v8316_v45 = vshrl.u32 %v17703_v31, 16 }
 0x54e   : > { %8739 = vmatprep.mubr.bf16.mxu0 %v8302_v19  ;;  %v7888_v19 = vrot.slane %v17787_v6, 1  ;;  %v8314_v10 = vsel %vm399_vm1, %v8309_v0, %v8313_v21  ;;  %v8323_v51 = vshll.u32 %v17714_v7, 16  ;;  %v8330_v2 = vshll.u32 %v17705_v35, 16  ;;  %v14223_v16 = vld [vmem:[#allocation2 + $0x2c] ss:$0 sps:$4 sm:$0x11]  }
 0x54f   : > { %v17829_v38 = vsel %vm640_vm0, %v7876_v63, %v18690_v48  ;;  %v17842_v11 = vsel %vm640_vm0, %v7885_v5, %v7886_v9  ;;  %v8321_v41 = vor.u32 %v8320_v20, %v8316_v45  ;;  %v7816_v62 = vshrl.u32 %v17787_v6, 16  ;;  %v14221_v9 = vld [vmem:[#allocation2 + $0x14] ss:$0 sps:$4 sm:$0x11]   ;;  %v18693_v20 = vld [vmem:[#allocation13_spill] sm:$0xff] }
 0x550   : > { %v17845_v56 = vsel %vm640_vm0, %v7888_v19, %v7889_v23  ;;  %v7813_v23 = vrot.slane %v7811_v50, 1  ;;  %v8325_v29 = vrot.slane %v8323_v51, 1  ;;  %v7823_v13 = vshll.u32 %v17758_v39, 16  ;;  %v14220_v39 = vld [vmem:[#allocation2 + $0xc] sm:$0xff]   ;;  %v14154_v50 = vld [vmem:[%s18550_s1 + $0xa0] sm:$0xff]  }
 0x551   : > { %v8332_v7 = vrot.slane %v8330_v2, 1  ;;  %v8328_v1 = vshrl.u32 %v17705_v35, 16  ;;  %v8355_v48 = vrot.slane %v14220_v39, 1  ;;  %v8356_v19 = vrot.slane %v14221_v9, 1  ;;  %v18694_v2 = vld [vmem:[#allocation10_spill] sm:$0xff] }
 0x552   : > { %9206 = vmatmul.mubr.bf16.gmra.mrb[32].mxu1 %v17633_v53  ;;  %v7809_v53 = vor.u32 %v7808_v12, %v7804_v46  ;;  %v8326_v63 = vsel %vm399_vm1, %v8321_v41, %v8325_v29  ;;  %v7825_v59 = vrot.slane %v7823_v13, 1  ;;  %v18691_v12 = vld [vmem:[#allocation11_spill] sm:$0xff]  ;;  %v14162_v13 = vld [vmem:[%s18550_s1 + $0x1d0] sm:$0xff]  }
 0x553   : > { %9213 = vmatprep.mubr.bf16.mxu1 %v7802_v52  ;;  %v8333_v5 = vor.u32 %v8332_v7, %v8328_v1  ;;  %v8362_v52 = vrot.slane %v14223_v16, 1  ;;  %v14153_v46 = vld [vmem:[%s18550_s1 + $0x98] sm:$0xff]   ;;  %v14229_v7 = vld [vmem:[#allocation2 + $0x2c] ss:$0 sps:$4 sm:$0x11]   ;;  %v14230_v1 = vld [vmem:[#allocation2 + $0x24] sm:$0xff]  }
 0x554   : > { %v7814_v55 = vsel %vm399_vm1, %v7809_v53, %v7813_v23  ;;  %v14226_v53 = vld [vmem:[#allocation2 + $0x8] ss:$0 sps:$4 sm:$0x11]   ;;  %v14228_v23 = vld [vmem:[#allocation2 + $0x20] ss:$0 sps:$4 sm:$0x11]  }
 0x555   : > { %8740 = vmatmul.mubr.bf16.gmra.mrb[0].mxu0 %v17647_v47  ;;  %v7820_v47 = vrot.slane %v7818_v26, 1  ;;  %v7844_v26 = vrot.slane %v14226_v53, 1  ;;  %v7850_v41 = vrot.slane %v14228_v23, 1  ;;  %v14232_v39 = vld [vmem:[#allocation2 + $0x38] ss:$0 sps:$4 sm:$0x11]  }
 0x556   : > { %8747 = vmatprep.mubr.bf16.mxu0 %v8314_v10  ;;  %v14155_v10 = vld [vmem:[%s18550_s1 + $0xa8] sm:$0xff]   ;;  %v14170_v23 = vld [vmem:[%s18550_s1 + $0x1f0] sm:$0xff]  }
 0x557   : > { %v7821_v4 = vor.u32 %v7820_v47, %v7816_v62 }
 0x559   : > { %v7826_v36 = vsel %vm399_vm1, %v7821_v4, %v7825_v59  ;;  %v7853_v4 = vrot.slane %v14229_v7, 1 }
 0x55a   : > { %9214 = vmatmul.mubr.bf16.gmra.mrb[36].mxu1 %v17663_v43  ;;  %v8335_v43 = vshll.u32 %v17679_v57, 16  ;;  %v8357_v57 = vsel %vm640_vm0, %v8355_v48, %v8356_v19  ;;  %v7856_v48 = vrot.slane %v14232_v39, 1  ;;  %v14163_v19 = vld [vmem:[%s18550_s1 + $0x190] sm:$0xff]  }
 0x55b   : > { %9221 = vmatprep.mubr.bf16.mxu1 %v7814_v55 }
 0x55c   : > { %v8337_v42 = vrot.slane %v8335_v43, 1  ;;  %v7852_v43 = vrot.slane %v14230_v1, 1 }
 0x55d   : > { %8748 = vmatmul.mubr.bf16.gmra.mrb[4].mxu0 %v17701_v44 }
 0x55e   : > { %8755 = vmatprep.mubr.bf16.mxu0 %v8326_v63  ;;  %v8338_v44 = vsel %vm399_vm1, %v8333_v5, %v8337_v42  ;;  %v14231_v42 = vld [vmem:[#allocation2 + $0x30] sm:$0xff]  }
 0x562   : > { %9222 = vmatmul.mubr.bf16.gmra.mrb[40].mxu1 %v17750_v60  ;;  %v14222_v60 = vld [vmem:[#allocation2 + $0x24] sm:$0xff]  }
 0x563   : > { %9229 = vmatprep.mubr.bf16.mxu1 %v7826_v36  ;;  %v8361_v0 = vrot.slane %v14222_v60, 1 }
 0x565   : > { %8756 = vmatmul.mubr.bf16.gmra.mrb[8].mxu0 %v17703_v31  ;;  %v14151_v31 = vld [vmem:[%s18550_s1 + $0x88] sm:$0xff]   ;;  %v8363_v21 = vsel %vm640_vm0, %v8361_v0, %v8362_v52  ;;  %v7854_v52 = vsel %vm640_vm0, %v7852_v43, %v7853_v4  ;;  %v17988_v43 = vld [vmem:[#allocation2 + $0x18] sm:$0xff]  }
 0x566   : > { %8763 = vmatprep.mubr.bf16.mxu0 %v8338_v44  ;;  %v7855_v44 = vrot.slane %v14231_v42, 1 }
 0x56a   : > { %9230 = vmatmul.mubr.bf16.gmra.mrb[44].mxu1 %v17787_v6  ;;  %v14152_v6 = vld [vmem:[%s18550_s1 + $0x90] sm:$0xff]  }
 0x56d   : > { %8764 = vmatmul.mubr.bf16.gmra.mrb[12].mxu0 %v17705_v35  ;;  %v14224_v35 = vld [vmem:[%s18550_s1 + $0x80] sm:$0xff]  }
 0x56e   : > { %13139 = vmatprep.mubr.bf16.mxu0 %v8357_v57 }
 0x575   : > { %13140 = vmatmul.mubr.bf16.vlgmr.msra.gmra.mrb[16].mxu0 %v18691_v12  ;;  %v7857_v12 = vsel %vm640_vm0, %v7855_v44, %v7856_v48 }
 0x576   : > { %13143 = vmatprep.mubr.bf16.mxu0 %v8363_v21  ;;  %13172 = vmatpush3.bf16.msra.mxu0 %v14224_v35  ;;  %v14165_v21 = vld [vmem:[%s18550_s1 + $0x198] sm:$0xff]   ;;  %v14166_v35 = vld [vmem:[%s18550_s1 + $0x1e0] sm:$0xff]  }
 0x577   : > { %13173 = vmatprep.subr.bf16.mxu0 %v14151_v31 }
 0x57a   : > { %13174 = vmatpush3.bf16.msra.mxu0 %v14151_v31 }
 0x57b   : > { %13175 = vmatprep.subr.bf16.mxu0 %v14152_v6 }
 0x57d   : > { %13144 = vmatmul.mubr.bf16.gmra.mrb[20].mxu0 %v17697_v14  ;;  %v14156_v14 = vld [vmem:[%s18550_s1 + $0xb0] sm:$0xff]  }
 0x57e   : > { %13147 = vmatprep.mubr.bf16.mxu0 %v17709_v58  ;;  %13176 = vmatpush3.bf16.msra.mxu0 %v14152_v6  ;;  %v14157_v58 = vld [vmem:[%s18550_s1 + $0xb8] sm:$0xff]  }
 0x57f   : > { %13177 = vmatprep.subr.bf16.mxu0 %v14153_v46 }
 0x582   : > { %13178 = vmatpush3.bf16.msra.mxu0 %v14153_v46 }
 0x583   : > { %13179 = vmatprep.subr.bf16.mxu0 %v14154_v50 }
 0x585   : > { %13148 = vmatmul.mubr.bf16.gmra.mrb[24].mxu0 %v17719_v40  ;;  %v14158_v40 = vld [vmem:[%s18550_s1 + $0x1c0] sm:$0xff]  }
 0x586   : > { %13151 = vmatprep.mubr.bf16.mxu0 %v17725_v15  ;;  %13180 = vmatpush3.bf16.msra.mxu0 %v14154_v50  ;;  %v18692_v15 = vld [vmem:[#allocation12_spill] sm:$0xff] }
 0x587   : > { %13181 = vmatprep.subr.bf16.mxu0 %v14155_v10 }
 0x58a   : > { %13182 = vmatpush3.bf16.msra.mxu0 %v14155_v10 }
 0x58b   : > { %13183 = vmatprep.subr.bf16.mxu0 %v14156_v14 }
 0x58d   : > { %13152 = vmatmul.mubr.bf16.gmra.mrb[28].mxu0 %v17730_v24  ;;  %v14225_v24 = vld [vmem:[#allocation2] sm:$0xff]  }
 0x58e   : > { %13155 = vmatprep.mubr.bf16.mxu0 %v17735_v28  ;;  %13184 = vmatpush3.bf16.msra.mxu0 %v14156_v14  ;;  %v7843_v28 = vrot.slane %v14225_v24, 1  ;;  %v14167_v14 = vld [vmem:[%s18550_s1 + $0x1a0] sm:$0xff]  }
 0x58f   : > { %13185 = vmatprep.subr.bf16.mxu0 %v14157_v58 }
 0x590   : > { %v7845_v45 = vsel %vm640_vm0, %v7843_v28, %v7844_v26 }
 0x592   : > { %13186 = vmatpush3.bf16.msra.mxu0 %v14157_v58 }
 0x593   : > { %12699 = vmatprep.subr.bf16.mxu0 %v14158_v40 }
 0x595   : > { %13156 = vmatmul.mubr.bf16.gmra.mrb[32].mxu0 %v17738_v54  ;;  %v14227_v54 = vld [vmem:[#allocation2 + $0x18] sm:$0xff]  }
 0x596   : > { %13159 = vmatprep.mubr.bf16.mxu0 %v18692_v15  ;;  %v7849_v51 = vrot.slane %v14227_v54, 1  ;;  %v14169_v54 = vld [vmem:[%s18550_s1 + $0x1a8] sm:$0xff]  }
 0x598   : > { %v7851_v55 = vsel %vm640_vm0, %v7849_v51, %v7850_v41  ;;  %v14173_v41 = vld [vmem:[%s18550_s1 + $0x1b8] sm:$0xff]  }
 0x59d   : > { %13160 = vmatmul.mubr.bf16.gmra.mrb[36].mxu0 %v18693_v20  ;;  %v14168_v20 = vld [vmem:[%s18550_s1 + $0x1e8] sm:$0xff]  }
 0x59e   : > { %13163 = vmatprep.mubr.bf16.mxu0 %v17761_v37  ;;  %v14159_v37 = vld [vmem:[%s18550_s1 + $0x180] sm:$0xff]  }
 0x5a5   : > { %13164 = vmatmul.mubr.bf16.gmra.mrb[40].mxu0 %v17764_v61  ;;  %v14160_v61 = vld [vmem:[%s18550_s1 + $0x1c8] sm:$0xff]  }
 0x5a6   : > { %13167 = vmatprep.mubr.bf16.mxu0 %v17769_v32 }
 0x5ad   : > { %13168 = vmatmul.mubr.bf16.gmra.mrb[44].mxu0 %v17772_v18  ;;  %v14161_v18 = vld [vmem:[%s18550_s1 + $0x188] sm:$0xff]  }
 0x5ae   : > { %13187 = vmatprep.mubr.bf16.mxu0 %v7845_v45 }
 0x5b5   : > { %v12443_v32 = vpop.f32.mrb[208].mxu0  ;;  %13188 = vmatmul.mubr.bf16.vlgmr.msra.gmra.mrb[16].mxu0 %v18694_v2 }
 0x5b6   : > { %v12444_v47 = vpop.f32.mrb[209].mxu0  ;;  %13191 = vmatprep.mubr.bf16.mxu0 %v7851_v55  ;;  %12700 = vmatpush3.bf16.msra.mxu0 %v14159_v37 }
 0x5b7   : > { %v12445_v29 = vadd.f32 %v12444_v47, %v12443_v32  ;;  %v12446_v62 = vpop.f32.mrb[210].mxu0  ;;  %12701 = vmatprep.subr.bf16.mxu0 %v14160_v61  ;;  %v17978_v61 = vld [vmem:[%s18550_s1 + $0x200] sm:$0xff]  }
 0x5b8   : > { %v12447_v63 = vpop.f32.mrb[211].mxu0 }
 0x5b9   : > { %v12585_v59 = vpop.f32.mrb[244].mxu1  ;;  %v17927_v5 = vadd.f32 %v17776_v34, %v12445_v29  ;;  %v12448_v36 = vadd.f32 %v12447_v63, %v12446_v62  ;;  %v14164_v34 = vld [vmem:[%s18550_s1 + $0x1d8] sm:$0xff]  }
 0x5ba   : > { %v12586_v9 = vpop.f32.mrb[245].mxu1  ;;  %12702 = vmatpush3.bf16.msra.mxu0 %v14161_v18 }
 0x5bb   : > { %v12587_v57 = vadd.f32 %v12586_v9, %v12585_v59  ;;  %v12588_v60 = vpop.f32.mrb[246].mxu1  ;;  %v17933_v0 = vadd.f32 %v17784_v33, %v12448_v36  ;;  %12703 = vmatprep.subr.bf16.mxu0 %v14162_v13 }
 0x5bc   : > { %v12589_v16 = vpop.f32.mrb[247].mxu1 }
 0x5bd   : > { %v12590_v31 = vadd.f32 %v12589_v16, %v12588_v60  ;;  %13192 = vmatmul.mubr.bf16.gmra.mrb[20].mxu0 %v7854_v52  ;;  %v17999_v52 = vld [vmem:[#allocation2 + $0x24] sm:$0xff]  }
 0x5be   : > { %13195 = vmatprep.mubr.bf16.mxu0 %v7857_v12  ;;  %12704 = vmatpush3.bf16.msra.mxu0 %v14163_v19 }
 0x5bf   : > { %12705 = vmatprep.subr.bf16.mxu0 %v14164_v34  ;;  %v17996_v34 = vld [vmem:[#allocation2 + $0x20] ss:$0 sps:$4 sm:$0x11]  }
 0x5c0   : > { %v12449_v33 = vpop.f32.mrb[212].mxu0  ;;  %v9599_v12 = vshll.u32 %v17996_v34, 16 }
 0x5c1   : > { %v12450_v6 = vpop.f32.mrb[213].mxu0 }
 0x5c2   : > { %v12451_v46 = vadd.f32 %v12450_v6, %v12449_v33  ;;  %v12452_v50 = vpop.f32.mrb[214].mxu0  ;;  %12706 = vmatpush3.bf16.msra.mxu0 %v14165_v21  ;;  %v9606_v6 = vshll.u32 %v17999_v52, 16 }
 0x5c3   : > { %v12453_v10 = vpop.f32.mrb[215].mxu0  ;;  %12707 = vmatprep.subr.bf16.mxu0 %v14166_v35 }
 0x5c4   : > { %v12591_v58 = vpop.f32.mrb[248].mxu1  ;;  %v17949_v40 = vadd.f32 %v12587_v57, %v12451_v46  ;;  %v12454_v15 = vadd.f32 %v12453_v10, %v12452_v50  ;;  %v9594_v57 = vshll.u32 %v17988_v43, 16 }
 0x5c5   : > { %v12592_v24 = vpop.f32.mrb[249].mxu1  ;;  %13196 = vmatmul.mubr.bf16.gmra.mrb[24].mxu0 %v17792_v22  ;;  %v14171_v22 = vld [vmem:[%s18550_s1 + $0x1b0] sm:$0xff]  }
 0x5c6   : > { %v12593_v28 = vadd.f32 %v12592_v24, %v12591_v58  ;;  %v12594_v53 = vpop.f32.mrb[250].mxu1  ;;  %v17955_v26 = vadd.f32 %v12590_v31, %v12454_v15  ;;  %13199 = vmatprep.mubr.bf16.mxu0 %v17799_v30  ;;  %12708 = vmatpush3.bf16.msra.mxu0 %v14167_v14  ;;  %v14172_v30 = vld [vmem:[%s18550_s1 + $0x1f8] sm:$0xff]   ;;  %v9592_v31 = vshrl.u32 %v17988_v43, 16  ;;  %v9601_v14 = vrot.slane %v9599_v12, 1 }
 0x5c7   : > { %v12595_v45 = vpop.f32.mrb[251].mxu1  ;;  %12709 = vmatprep.subr.bf16.mxu0 %v14168_v20  ;;  %v18005_v58 = vld [vmem:[#allocation2 + $0x2c] ss:$0 sps:$4 sm:$0x11]   ;;  %v9608_v24 = vrot.slane %v9606_v6, 1 }
 0x5c8   : > { %v12596_v51 = vadd.f32 %v12595_v45, %v12594_v53  ;;  %v18038_v6 = vld [vmem:[#allocation2 + $0x44] ss:$0 sps:$4 sm:$0x11]  }
 0x5ca   : > { %12710 = vmatpush3.bf16.msra.mxu0 %v14169_v54 }
 0x5cb   : > { %12711 = vmatprep.subr.bf16.mxu0 %v14170_v23  ;;  %v9604_v23 = vshrl.u32 %v17999_v52, 16 }
 0x5cd   : > { %13200 = vmatmul.mubr.bf16.gmra.mrb[28].mxu0 %v17804_v25 }
 0x5ce   : > { %13203 = vmatprep.mubr.bf16.mxu0 %v17809_v27  ;;  %12712 = vmatpush3.bf16.msra.mxu0 %v14171_v22  ;;  %v9611_v22 = vshll.u32 %v18005_v58, 16 }
 0x5cf   : > { %v12455_v37 = vpop.f32.mrb[216].mxu0  ;;  %12713 = vmatprep.subr.bf16.mxu0 %v14172_v30 }
 0x5d0   : > { %v12456_v32 = vpop.f32.mrb[217].mxu0 }
 0x5d1   : > { %v12457_v2 = vadd.f32 %v12456_v32, %v12455_v37  ;;  %v12458_v55 = vpop.f32.mrb[218].mxu0 }
 0x5d2   : > { %v12459_v47 = vpop.f32.mrb[219].mxu0  ;;  %12714 = vmatpush3.bf16.msra.mxu0 %v14173_v41 }
 0x5d3   : > { %v17980_v25 = vadd.f32 %v12593_v28, %v12457_v2  ;;  %v12460_v27 = vadd.f32 %v12459_v47, %v12458_v55  ;;  %13219 = vmatprep.subr.bf16.mxu0 %v17978_v61  ;;  %v18011_v28 = vld [vmem:[#allocation2 + $0x30] sm:$0xff]  }
 0x5d4   : > { %v9618_v2 = vshll.u32 %v18011_v28, 16 }
 0x5d5   : > { %13204 = vmatmul.mubr.bf16.gmra.mrb[32].mxu0 %v17814_v3  ;;  %v17984_v18 = vadd.f32 %v12596_v51, %v12460_v27 }
 0x5d6   : > { %13207 = vmatprep.mubr.bf16.mxu0 %v17819_v8  ;;  %v12597_v29 = vpop.f32.mrb[252].mxu1 }
 0x5d7   : > { %v12598_v62 = vpop.f32.mrb[253].mxu1 }
 0x5d8   : > { %v12599_v13 = vadd.f32 %v12598_v62, %v12597_v29  ;;  %v12600_v63 = vpop.f32.mrb[254].mxu1  ;;  %v9613_v29 = vrot.slane %v9611_v22, 1  ;;  %v18018_v62 = vld [vmem:[#allocation2 + $0x38] ss:$0 sps:$4 sm:$0x11]   ;;  %v9635_v22 = vshll.u32 %v18038_v6, 16 }
 0x5d9   : > { %v12601_v7 = vpop.f32.mrb[255].mxu1 }
 0x5da   : > { %v12602_v4 = vadd.f32 %v12601_v7, %v12600_v63 }
 0x5dd   : > { %13208 = vmatmul.mubr.bf16.gmra.mrb[36].mxu0 %v17829_v38  ;;  %v12461_v1 = vpop.f32.mrb[220].mxu0 }
 0x5de   : > { %13211 = vmatprep.mubr.bf16.mxu0 %v17834_v49  ;;  %v12462_v59 = vpop.f32.mrb[221].mxu0  ;;  %v12603_v36 = vpop.f32.mrb[0].mxu1  ;;  %v9596_v49 = vrot.slane %v9594_v57, 1 }
 0x5df   : > { %v12463_v3 = vadd.f32 %v12462_v59, %v12461_v1  ;;  %v12464_v42 = vpop.f32.mrb[222].mxu0  ;;  %v12604_v44 = vpop.f32.mrb[1].mxu1  ;;  %v9620_v59 = vrot.slane %v9618_v2, 1 }
 0x5e0   : > { %v12465_v39 = vpop.f32.mrb[223].mxu0  ;;  %v12605_v48 = vadd.f32 %v12604_v44, %v12603_v36  ;;  %v12606_v9 = vpop.f32.mrb[2].mxu1  ;;  %v9597_v35 = vor.u32 %v9596_v49, %v9592_v31  ;;  %v18027_v36 = vld [vmem:[#allocation2 + $0x3c] sm:$0xff]  }
 0x5e1   : > { %v17991_v8 = vadd.f32 %v12599_v13, %v12463_v3  ;;  %v12466_v19 = vadd.f32 %v12465_v39, %v12464_v42  ;;  %v12607_v60 = vpop.f32.mrb[3].mxu1  ;;  %v14181_v13 = vld [vmem:[%s18550_s1 + $0x208] sm:$0xff]   ;;  %v9630_v12 = vshll.u32 %v18027_v36, 16 }
 0x5e2   : > { %v12608_v16 = vadd.f32 %v12607_v60, %v12606_v9  ;;  %v9623_v9 = vshll.u32 %v18018_v62, 16 }
 0x5e3   : > { %v17994_v38 = vadd.f32 %v12602_v4, %v12466_v19  ;;  %v14186_v19 = vld [vmem:[%s18550_s1 + $0x210] sm:$0xff]  }
 0x5e5   : > { %13212 = vmatmul.mubr.bf16.gmra.mrb[40].mxu0 %v17837_v17 }
 0x5e6   : > { %13215 = vmatprep.mubr.bf16.mxu0 %v17842_v11  ;;  %v9602_v11 = vsel %vm399_vm1, %v9597_v35, %v9601_v14  ;;  %v9625_v35 = vrot.slane %v9623_v9, 1 }
 0x5e8   : > { %v12467_v21 = vpop.f32.mrb[224].mxu0 }
 0x5e9   : > { %v12468_v33 = vpop.f32.mrb[225].mxu0 }
 0x5ea   : > { %v12469_v46 = vadd.f32 %v12468_v33, %v12467_v21  ;;  %v12470_v50 = vpop.f32.mrb[226].mxu0 }
 0x5eb   : > { %v12471_v10 = vpop.f32.mrb[227].mxu0 }
 0x5ec   : > { %v18007_v17 = vadd.f32 %v12605_v48, %v12469_v46  ;;  %v12472_v15 = vadd.f32 %v12471_v10, %v12470_v50  ;;  %v9616_v48 = vshrl.u32 %v18011_v28, 16  ;;  %v14191_v46 = vld [vmem:[%s18550_s1 + $0x218] sm:$0xff]  }
 0x5ed   : > { %v12609_v20 = vpop.f32.mrb[4].mxu1  ;;  %13216 = vmatmul.mubr.bf16.gmra.mrb[44].mxu0 %v17845_v56  ;;  %v9609_v56 = vor.u32 %v9608_v24, %v9604_v23  ;;  %v9628_v23 = vshrl.u32 %v18027_v36, 16 }
 0x5ee   : > { %v12610_v53 = vpop.f32.mrb[5].mxu1  ;;  %v18013_v45 = vadd.f32 %v12608_v16, %v12472_v15  ;;  %10087 = vmatprep.mubr.bf16.mxu0 %v9602_v11  ;;  %v9621_v31 = vor.u32 %v9620_v59, %v9616_v48  ;;  %v18047_v11 = vld [vmem:[#allocation2 + $0x48] sm:$0xff]   ;;  %v18066_v48 = vld [vmem:[#allocation2 + $0x54] sm:$0xff]  }
 0x5ef   : > { %v12611_v54 = vadd.f32 %v12610_v53, %v12609_v20  ;;  %v12612_v51 = vpop.f32.mrb[6].mxu1  ;;  %v9614_v1 = vsel %vm399_vm1, %v9609_v56, %v9613_v29  ;;  %v9632_v20 = vrot.slane %v9630_v12, 1 }
 0x5f0   : > { %v12613_v30 = vpop.f32.mrb[7].mxu1  ;;  %v12473_v41 = vpop.f32.mrb[228].mxu0  ;;  %v9626_v15 = vsel %vm399_vm1, %v9621_v31, %v9625_v35  ;;  %v14206_v31 = vld [vmem:[%s18550_s1 + $0x230] sm:$0xff]  }
 0x5f1   : > { %v12614_v37 = vadd.f32 %v12613_v30, %v12612_v51  ;;  %v12474_v32 = vpop.f32.mrb[229].mxu0  ;;  %v14196_v30 = vld [vmem:[%s18550_s1 + $0x220] sm:$0xff]   ;;  %v9633_v2 = vor.u32 %v9632_v20, %v9628_v23 }
 0x5f2   : > { %v12475_v55 = vadd.f32 %v12474_v32, %v12473_v41  ;;  %v12476_v47 = vpop.f32.mrb[230].mxu0 }
 0x5f3   : > { %v12477_v27 = vpop.f32.mrb[231].mxu0 }
 0x5f4   : > { %v18023_v63 = vadd.f32 %v12611_v54, %v12475_v55  ;;  %v12478_v7 = vadd.f32 %v12477_v27, %v12476_v47  ;;  %v9642_v55 = vshll.u32 %v18047_v11, 16 }
 0x5f5   : > { %v12615_v4 = vpop.f32.mrb[8].mxu1  ;;  %10088 = vmatmul.mubr.bf16.vlgmr.msra.gmra.mrb[48].mxu0 %v17988_v43 }
 0x5f6   : > { %v12616_v3 = vpop.f32.mrb[9].mxu1  ;;  %v18029_v42 = vadd.f32 %v12614_v37, %v12478_v7  ;;  %10095 = vmatprep.mubr.bf16.mxu0 %v9614_v1  ;;  %13220 = vmatpush3.bf16.msra.mxu0 %v17978_v61  ;;  %v18057_v7 = vld [vmem:[#allocation2 + $0x50] ss:$0 sps:$4 sm:$0x11]  }
 0x5f7   : > { %v12617_v44 = vadd.f32 %v12616_v3, %v12615_v4  ;;  %v12618_v39 = vpop.f32.mrb[10].mxu1  ;;  %13221 = vmatprep.subr.bf16.mxu0 %v14181_v13  ;;  %v14201_v4 = vld [vmem:[%s18550_s1 + $0x228] sm:$0xff]  }
 0x5f8   : > { %v12619_v57 = vpop.f32.mrb[11].mxu1  ;;  %v12479_v60 = vpop.f32.mrb[232].mxu0 }
 0x5f9   : > { %v12620_v16 = vadd.f32 %v12619_v57, %v12618_v39  ;;  %v12480_v49 = vpop.f32.mrb[233].mxu0  ;;  %v9644_v39 = vrot.slane %v9642_v55, 1 }
 0x5fa   : > { %v12481_v21 = vadd.f32 %v12480_v49, %v12479_v60  ;;  %v12482_v61 = vpop.f32.mrb[234].mxu0  ;;  %13222 = vmatpush3.bf16.msra.mxu0 %v14181_v13  ;;  %v9637_v13 = vrot.slane %v9635_v22, 1  ;;  %v9647_v49 = vshll.u32 %v18057_v7, 16 }
 0x5fb   : > { %v12483_v33 = vpop.f32.mrb[235].mxu0  ;;  %13223 = vmatprep.subr.bf16.mxu0 %v14186_v19 }
 0x5fc   : > { %v18043_v50 = vadd.f32 %v12617_v44, %v12481_v21  ;;  %v12484_v10 = vadd.f32 %v12483_v33, %v12482_v61  ;;  %v9638_v44 = vsel %vm399_vm1, %v9633_v2, %v9637_v13  ;;  %v9649_v20 = vrot.slane %v9647_v49, 1 }
 0x5fd   : > { %v12621_v14 = vpop.f32.mrb[12].mxu1  ;;  %10096 = vmatmul.mubr.bf16.gmra.mrb[52].mxu0 %v17999_v52 }
 0x5fe   : > { %v12622_v24 = vpop.f32.mrb[13].mxu1  ;;  %v18049_v53 = vadd.f32 %v12620_v16, %v12484_v10  ;;  %10103 = vmatprep.mubr.bf16.mxu0 %v9626_v15  ;;  %13224 = vmatpush3.bf16.msra.mxu0 %v14186_v19  ;;  %v9640_v16 = vshrl.u32 %v18047_v11, 16 }
 0x5ff   : > { %v12623_v54 = vadd.f32 %v12622_v24, %v12621_v14  ;;  %v12624_v51 = vpop.f32.mrb[14].mxu1  ;;  %13225 = vmatprep.subr.bf16.mxu0 %v14191_v46  ;;  %v18076_v24 = vld [vmem:[#allocation2 + $0x5c] ss:$0 sps:$4 sm:$0x11]  }
 0x600   : > { %v12625_v41 = vpop.f32.mrb[15].mxu1  ;;  %v12485_v37 = vpop.f32.mrb[236].mxu0  ;;  %v9645_v35 = vor.u32 %v9644_v39, %v9640_v16  ;;  %v18092_v16 = vld [vmem:[#allocation2 + $0x68] ss:$0 sps:$4 sm:$0x11]  }
 0x601   : > { %v12626_v32 = vadd.f32 %v12625_v41, %v12624_v51  ;;  %v12486_v56 = vpop.f32.mrb[237].mxu0 }
 0x602   : > { %v12487_v47 = vadd.f32 %v12486_v56, %v12485_v37  ;;  %v12488_v27 = vpop.f32.mrb[238].mxu0  ;;  %13226 = vmatpush3.bf16.msra.mxu0 %v14191_v46  ;;  %v9654_v46 = vshll.u32 %v18066_v48, 16  ;;  %v18085_v37 = vld [vmem:[#allocation2 + $0x60] sm:$0xff]  }
 0x603   : > { %v12489_v29 = vpop.f32.mrb[239].mxu0  ;;  %13227 = vmatprep.subr.bf16.mxu0 %v14196_v30 }
 0x604   : > { %v18062_v1 = vadd.f32 %v12623_v54, %v12487_v47  ;;  %v12490_v59 = vadd.f32 %v12489_v29, %v12488_v27  ;;  %v14211_v54 = vld [vmem:[%s18550_s1 + $0x238] sm:$0xff]   ;;  %v9656_v41 = vrot.slane %v9654_v46, 1  ;;  %v9652_v47 = vshrl.u32 %v18066_v48, 16 }
 0x605   : > { %v12627_v3 = vpop.f32.mrb[16].mxu1  ;;  %10104 = vmatmul.mubr.bf16.gmra.mrb[56].mxu0 %v18011_v28  ;;  %v9659_v27 = vshll.u32 %v18076_v24, 16 }
 0x606   : > { %v12628_v9 = vpop.f32.mrb[17].mxu1  ;;  %v18068_v19 = vadd.f32 %v12626_v32, %v12490_v59  ;;  %10111 = vmatprep.mubr.bf16.mxu0 %v9638_v44  ;;  %13228 = vmatpush3.bf16.msra.mxu0 %v14196_v30  ;;  %v9650_v30 = vsel %vm399_vm1, %v9645_v35, %v9649_v20  ;;  %v9666_v44 = vshll.u32 %v18085_v37, 16  ;;  %v9671_v20 = vshll.u32 %v18092_v16, 16 }
 0x607   : > { %v12629_v57 = vadd.f32 %v12628_v9, %v12627_v3  ;;  %v12630_v60 = vpop.f32.mrb[18].mxu1  ;;  %13229 = vmatprep.subr.bf16.mxu0 %v14201_v4  ;;  %v9657_v3 = vor.u32 %v9656_v41, %v9652_v47 }
 0x608   : > { %v12631_v12 = vpop.f32.mrb[19].mxu1  ;;  %v12491_v21 = vpop.f32.mrb[240].mxu0 }
 0x609   : > { %v12632_v61 = vadd.f32 %v12631_v12, %v12630_v60  ;;  %v12492_v33 = vpop.f32.mrb[241].mxu0  ;;  %v9661_v60 = vrot.slane %v9659_v27, 1  ;;  %v9673_v27 = vrot.slane %v9671_v20, 1 }
 0x60a   : > { %v12493_v10 = vadd.f32 %v12492_v33, %v12491_v21  ;;  %v12494_v14 = vpop.f32.mrb[242].mxu0  ;;  %13230 = vmatpush3.bf16.msra.mxu0 %v14201_v4  ;;  %v18098_v33 = vld [vmem:[#allocation2 + $0x6c] sm:$0xff]  }
 0x60b   : > { %v12495_v15 = vpop.f32.mrb[243].mxu0  ;;  %13231 = vmatprep.subr.bf16.mxu0 %v14206_v31  ;;  %v9662_v21 = vsel %vm399_vm1, %v9657_v3, %v9661_v60 }
 0x60c   : > { %v18081_v51 = vadd.f32 %v12629_v57, %v12493_v10  ;;  %v12496_v23 = vadd.f32 %v12495_v15, %v12494_v14  ;;  %v9664_v15 = vshrl.u32 %v18085_v37, 16 }
 0x60d   : > { %v12633_v22 = vpop.f32.mrb[20].mxu1  ;;  %10112 = vmatmul.mubr.bf16.gmra.mrb[60].mxu0 %v18027_v36 }
 0x60e   : > { %v12634_v32 = vpop.f32.mrb[21].mxu1  ;;  %v18087_v56 = vadd.f32 %v12632_v61, %v12496_v23  ;;  %10119 = vmatprep.mubr.bf16.mxu0 %v9650_v30  ;;  %13232 = vmatpush3.bf16.msra.mxu0 %v14206_v31  ;;  %v9668_v61 = vrot.slane %v9666_v44, 1 }
 0x60f   : > { %v12635_v2 = vadd.f32 %v12634_v32, %v12633_v22  ;;  %v12636_v55 = vpop.f32.mrb[22].mxu1  ;;  %13233 = vmatprep.subr.bf16.mxu0 %v14211_v54  ;;  %v9678_v32 = vshll.u32 %v18098_v33, 16 }
 0x610   : > { %v12637_v29 = vpop.f32.mrb[23].mxu1  ;;  %v12497_v13 = vpop.f32.mrb[244].mxu0  ;;  %v9669_v41 = vor.u32 %v9668_v61, %v9664_v15 }
 0x611   : > { %v12638_v4 = vadd.f32 %v12637_v29, %v12636_v55  ;;  %v12498_v59 = vpop.f32.mrb[245].mxu0  ;;  %v18105_v29 = vld [vmem:[#allocation2 + $0x74] ss:$0 sps:$4 sm:$0x11]   ;;  %v9680_v44 = vrot.slane %v9678_v32, 1 }
 0x612   : > { %v12499_v39 = vadd.f32 %v12498_v59, %v12497_v13  ;;  %v12500_v9 = vpop.f32.mrb[246].mxu0  ;;  %13234 = vmatpush3.bf16.msra.mxu0 %v14211_v54  ;;  %v9674_v3 = vsel %vm399_vm1, %v9669_v41, %v9673_v27 }
 0x613   : > { %v12501_v57 = vpop.f32.mrb[247].mxu0 }
 0x614   : > { %v18094_v49 = vadd.f32 %v12635_v2, %v12499_v39  ;;  %v12502_v31 = vadd.f32 %v12501_v57, %v12500_v9  ;;  %v18111_v39 = vld [vmem:[#allocation2 + $0x78] sm:$0xff]  }
 0x615   : > { %v12639_v12 = vpop.f32.mrb[24].mxu1  ;;  %10120 = vmatmul.mubr.bf16.gmra.mrb[64].mxu0 %v18047_v11  ;;  %v9690_v20 = vshll.u32 %v18111_v39, 16 }
 0x616   : > { %18695 = vst [vmem:[#allocation14_spill] sm:$0xff] %v18094_v49  ;;  %v12640_v35 = vpop.f32.mrb[25].mxu1  ;;  %v18100_v46 = vadd.f32 %v12638_v4, %v12502_v31  ;;  %10127 = vmatprep.mubr.bf16.mxu0 %v9662_v21  ;;  %v9683_v21 = vshll.u32 %v18105_v29, 16 }
 0x617   : > { %v12641_v10 = vadd.f32 %v12640_v35, %v12639_v12  ;;  %v12642_v14 = vpop.f32.mrb[26].mxu1  ;;  %v9676_v12 = vshrl.u32 %v18098_v33, 16  ;;  %v9692_v27 = vrot.slane %v9690_v20, 1 }
 0x618   : > { %18696 = vst [vmem:[#allocation15_spill] sm:$0xff] %v18100_v46  ;;  %v12643_v54 = vpop.f32.mrb[27].mxu1  ;;  %v12503_v23 = vpop.f32.mrb[248].mxu0  ;;  %v9685_v41 = vrot.slane %v9683_v21, 1 }
 0x619   : > { %v12644_v22 = vadd.f32 %v12643_v54, %v12642_v14  ;;  %v12504_v30 = vpop.f32.mrb[249].mxu0  ;;  %v9681_v15 = vor.u32 %v9680_v44, %v9676_v12 }
 0x61a   : > { %v12505_v2 = vadd.f32 %v12504_v30, %v12503_v23  ;;  %v12506_v55 = vpop.f32.mrb[250].mxu0 }
 0x61b   : > { %v12507_v47 = vpop.f32.mrb[251].mxu0 }
 0x61c   : > { %v18107_v13 = vadd.f32 %v12641_v10, %v12505_v2  ;;  %v12508_v4 = vadd.f32 %v12507_v47, %v12506_v55  ;;  %v9686_v47 = vsel %vm399_vm1, %v9681_v15, %v9685_v41 }
 0x61d   : > { %v12645_v59 = vpop.f32.mrb[28].mxu1  ;;  %10128 = vmatmul.mubr.bf16.gmra.mrb[68].mxu0 %v18066_v48 }
 0x61e   : > { %18697 = vst [vmem:[#allocation16_spill] sm:$0xff] %v18107_v13  ;;  %v12646_v9 = vpop.f32.mrb[29].mxu1  ;;  %v18113_v57 = vadd.f32 %v12644_v22, %v12508_v4  ;;  %10135 = vmatprep.mubr.bf16.mxu0 %v9674_v3  ;;  %v18118_v22 = vld [vmem:[#allocation2 + $0x80] ss:$0 sps:$4 sm:$0x11]   ;;  %v18124_v4 = vld [vmem:[#allocation2 + $0x84] sm:$0xff]  }
 0x61f   : > { %v12647_v60 = vadd.f32 %v12646_v9, %v12645_v59  ;;  %v12648_v31 = vpop.f32.mrb[30].mxu1  ;;  %v9702_v15 = vshll.u32 %v18124_v4, 16 }
 0x620   : > { %18698 = vst [vmem:[#allocation17_spill] sm:$0xff] %v18113_v57  ;;  %v12649_v61 = vpop.f32.mrb[31].mxu1  ;;  %v12509_v35 = vpop.f32.mrb[252].mxu0 }
 0x621   : > { %v12650_v10 = vadd.f32 %v12649_v61, %v12648_v31  ;;  %v12510_v14 = vpop.f32.mrb[253].mxu0  ;;  %v9688_v31 = vshrl.u32 %v18111_v39, 16 }
 0x622   : > { %v12511_v54 = vadd.f32 %v12510_v14, %v12509_v35  ;;  %v12512_v23 = vpop.f32.mrb[254].mxu0 }
 0x623   : > { %v12513_v30 = vpop.f32.mrb[255].mxu0  ;;  %v9693_v14 = vor.u32 %v9692_v27, %v9688_v31 }
 0x624   : > { %v18120_v32 = vadd.f32 %v12647_v60, %v12511_v54  ;;  %v12514_v2 = vadd.f32 %v12513_v30, %v12512_v23  ;;  %v9695_v60 = vshll.u32 %v18118_v22, 16 }
 0x625   : > { %v12651_v55 = vpop.f32.mrb[32].mxu1  ;;  %10136 = vmatmul.mubr.bf16.gmra.mrb[72].mxu0 %v18085_v37 }
 0x626   : > { %18699 = vst [vmem:[#allocation18_spill] sm:$0xff] %v18120_v32  ;;  %v12652_v59 = vpop.f32.mrb[33].mxu1  ;;  %v18126_v3 = vadd.f32 %v12650_v10, %v12514_v2  ;;  %10143 = vmatprep.mubr.bf16.mxu0 %v9686_v47  ;;  %v9697_v30 = vrot.slane %v9695_v60, 1  ;;  %v18131_v10 = vld [vmem:[#allocation2 + $0x8c] ss:$0 sps:$4 sm:$0x11]  }
 0x627   : > { %v12653_v44 = vadd.f32 %v12652_v59, %v12651_v55  ;;  %v12654_v9 = vpop.f32.mrb[34].mxu1  ;;  %v9704_v59 = vrot.slane %v9702_v15, 1  ;;  %v9700_v60 = vshrl.u32 %v18124_v4, 16 }
 0x628   : > { %18700 = vst [vmem:[#allocation19_spill] sm:$0xff] %v18126_v3  ;;  %v12655_v12 = vpop.f32.mrb[35].mxu1  ;;  %v12515_v21 = vpop.f32.mrb[0].mxu0  ;;  %v9698_v47 = vsel %vm399_vm1, %v9693_v14, %v9697_v30 }
 0x629   : > { %v12656_v61 = vadd.f32 %v12655_v12, %v12654_v9  ;;  %v12516_v35 = vpop.f32.mrb[1].mxu0  ;;  %v18137_v9 = vld [vmem:[#allocation2 + $0x90] sm:$0xff]  }
 0x62a   : > { %v12517_v20 = vadd.f32 %v12516_v35, %v12515_v21  ;;  %v12518_v54 = vpop.f32.mrb[2].mxu0  ;;  %v9714_v14 = vshll.u32 %v18137_v9, 16 }
 0x62b   : > { %v12519_v23 = vpop.f32.mrb[3].mxu0 }
 0x62c   : > { %v18133_v41 = vadd.f32 %v12653_v44, %v12517_v20  ;;  %v12520_v2 = vadd.f32 %v12519_v23, %v12518_v54  ;;  %v9707_v44 = vshll.u32 %v18131_v10, 16 }
 0x62d   : > { %v12657_v55 = vpop.f32.mrb[36].mxu1  ;;  %10144 = vmatmul.mubr.bf16.gmra.mrb[76].mxu0 %v18098_v33 }
 0x62e   : > { %18701 = vst [vmem:[#allocation20_spill] sm:$0xff] %v18133_v41  ;;  %v12658_v27 = vpop.f32.mrb[37].mxu1  ;;  %v18139_v31 = vadd.f32 %v12656_v61, %v12520_v2  ;;  %10151 = vmatprep.mubr.bf16.mxu0 %v9698_v47  ;;  %v9705_v41 = vor.u32 %v9704_v59, %v9700_v60  ;;  %v9709_v32 = vrot.slane %v9707_v44, 1  ;;  %v18144_v61 = vld [vmem:[#allocation2 + $0x98] ss:$0 sps:$4 sm:$0x11]  }
 0x62f   : > { %v12659_v12 = vadd.f32 %v12658_v27, %v12657_v55  ;;  %v12660_v21 = vpop.f32.mrb[38].mxu1  ;;  %v9712_v44 = vshrl.u32 %v18137_v9, 16 }
 0x630   : > { %18702 = vst [vmem:[#allocation21_spill] sm:$0xff] %v18139_v31  ;;  %v12661_v35 = vpop.f32.mrb[39].mxu1  ;;  %v12521_v20 = vpop.f32.mrb[4].mxu0  ;;  %v9710_v27 = vsel %vm399_vm1, %v9705_v41, %v9709_v32  ;;  %v9716_v31 = vrot.slane %v9714_v14, 1 }
 0x631   : > { %v12662_v54 = vadd.f32 %v12661_v35, %v12660_v21  ;;  %v12522_v23 = vpop.f32.mrb[5].mxu0  ;;  %v18150_v21 = vld [vmem:[#allocation2 + $0x9c] sm:$0xff]  }
 0x632   : > { %v12523_v15 = vadd.f32 %v12522_v23, %v12521_v20  ;;  %v12524_v30 = vpop.f32.mrb[6].mxu0  ;;  %v9726_v32 = vshll.u32 %v18150_v21, 16 }
 0x633   : > { %v12525_v3 = vpop.f32.mrb[7].mxu0 }
 0x634   : > { %v18146_v2 = vadd.f32 %v12659_v12, %v12523_v15  ;;  %v12526_v55 = vadd.f32 %v12525_v3, %v12524_v30  ;;  %v9719_v12 = vshll.u32 %v18144_v61, 16 }
 0x635   : > { %v12663_v47 = vpop.f32.mrb[40].mxu1  ;;  %10152 = vmatmul.mubr.bf16.gmra.mrb[80].mxu0 %v18111_v39 }
 0x636   : > { %18703 = vst [vmem:[#allocation22_spill] sm:$0xff] %v18146_v2  ;;  %v12664_v59 = vpop.f32.mrb[41].mxu1  ;;  %v18152_v60 = vadd.f32 %v12662_v54, %v12526_v55  ;;  %10159 = vmatprep.mubr.bf16.mxu0 %v9710_v27  ;;  %v9717_v2 = vor.u32 %v9716_v31, %v9712_v44  ;;  %v9721_v13 = vrot.slane %v9719_v12, 1  ;;  %v18157_v54 = vld [vmem:[#allocation2 + $0xa4] ss:$0 sps:$4 sm:$0x11]  }
 0x637   : > { %v12665_v35 = vadd.f32 %v12664_v59, %v12663_v47  ;;  %v12666_v20 = vpop.f32.mrb[42].mxu1  ;;  %v9724_v12 = vshrl.u32 %v18150_v21, 16 }
 0x638   : > { %18704 = vst [vmem:[#allocation23_spill] sm:$0xff] %v18152_v60  ;;  %v12667_v23 = vpop.f32.mrb[43].mxu1  ;;  %v12527_v3 = vpop.f32.mrb[8].mxu0  ;;  %v9722_v59 = vsel %vm399_vm1, %v9717_v2, %v9721_v13  ;;  %v9728_v60 = vrot.slane %v9726_v32, 1 }
 0x639   : > { %v12668_v15 = vadd.f32 %v12667_v23, %v12666_v20  ;;  %v12528_v30 = vpop.f32.mrb[9].mxu0  ;;  %v18163_v20 = vld [vmem:[#allocation2 + $0xa8] sm:$0xff]  }
 0x63a   : > { %v12529_v41 = vadd.f32 %v12528_v30, %v12527_v3  ;;  %v12530_v14 = vpop.f32.mrb[10].mxu0  ;;  %v9738_v13 = vshll.u32 %v18163_v20, 16 }
 0x63b   : > { %v12531_v57 = vpop.f32.mrb[11].mxu0 }
 0x63c   : > { %v18159_v55 = vadd.f32 %v12665_v35, %v12529_v41  ;;  %v12532_v47 = vadd.f32 %v12531_v57, %v12530_v14  ;;  %v9731_v35 = vshll.u32 %v18157_v54, 16 }
 0x63d   : > { %v12669_v27 = vpop.f32.mrb[44].mxu1  ;;  %10160 = vmatmul.mubr.bf16.gmra.mrb[84].mxu0 %v18124_v4 }
 0x63e   : > { %18705 = vst [vmem:[#allocation24_spill] sm:$0xff] %v18159_v55  ;;  %v12670_v31 = vpop.f32.mrb[45].mxu1  ;;  %v18165_v44 = vadd.f32 %v12668_v15, %v12532_v47  ;;  %10167 = vmatprep.mubr.bf16.mxu0 %v9722_v59  ;;  %v9729_v55 = vor.u32 %v9728_v60, %v9724_v12  ;;  %v9733_v49 = vrot.slane %v9731_v35, 1  ;;  %v18170_v15 = vld [vmem:[#allocation2 + $0xb0] ss:$0 sps:$4 sm:$0x11]  }
 0x63f   : > { %v12671_v23 = vadd.f32 %v12670_v31, %v12669_v27  ;;  %v12672_v3 = vpop.f32.mrb[46].mxu1  ;;  %v9740_v31 = vrot.slane %v9738_v13, 1  ;;  %v9736_v60 = vshrl.u32 %v18163_v20, 16  ;;  %v9743_v12 = vshll.u32 %v18170_v15, 16 }
 0x640   : > { %18706 = vst [vmem:[#allocation25_spill] sm:$0xff] %v18165_v44  ;;  %v12673_v30 = vpop.f32.mrb[47].mxu1  ;;  %v12533_v57 = vpop.f32.mrb[12].mxu0  ;;  %v9734_v59 = vsel %vm399_vm1, %v9729_v55, %v9733_v49  ;;  %v18176_v44 = vld [vmem:[#allocation2 + $0xb4] sm:$0xff]   ;;  %v18187_v55 = vld [vmem:[#allocation2 + $0xc0] sm:$0xff]  }
 0x641   : > { %v12674_v41 = vadd.f32 %v12673_v30, %v12672_v3  ;;  %v12534_v14 = vpop.f32.mrb[13].mxu0  ;;  %v9741_v35 = vor.u32 %v9740_v31, %v9736_v60  ;;  %v9750_v30 = vshll.u32 %v18176_v44, 16 }
 0x642   : > { %v12535_v2 = vadd.f32 %v12534_v14, %v12533_v57  ;;  %v12536_v32 = vpop.f32.mrb[14].mxu0  ;;  %v18183_v57 = vld [vmem:[#allocation2 + $0xbc] ss:$0 sps:$4 sm:$0x11]  }
 0x643   : > { %v12537_v46 = vpop.f32.mrb[15].mxu0  ;;  %v9755_v14 = vshll.u32 %v18183_v57, 16 }
 0x644   : > { %v18172_v47 = vadd.f32 %v12671_v23, %v12535_v2  ;;  %v12538_v27 = vadd.f32 %v12537_v46, %v12536_v32  ;;  %v9745_v23 = vrot.slane %v9743_v12, 1  ;;  %v9752_v46 = vrot.slane %v9750_v30, 1  ;;  %v18200_v30 = vld [vmem:[#allocation2 + $0xd4] ss:$0 sps:$4 sm:$0x11]  }
 0x645   : > { %10168 = vmatmul.mubr.bf16.gmra.mrb[88].mxu0 %v18137_v9  ;;  %v9762_v2 = vshll.u32 %v18187_v55, 16  ;;  %v9757_v32 = vrot.slane %v9755_v14, 1  ;;  %v9760_v12 = vshrl.u32 %v18187_v55, 16 }
 0x646   : > { %v18178_v3 = vadd.f32 %v12674_v41, %v12538_v27  ;;  %10175 = vmatprep.mubr.bf16.mxu0 %v9734_v59  ;;  %v9746_v49 = vsel %vm399_vm1, %v9741_v35, %v9745_v23  ;;  %v9748_v41 = vshrl.u32 %v18176_v44, 16  ;;  %v18192_v27 = vld [vmem:[#allocation2 + $0xc8] ss:$0 sps:$4 sm:$0x11]   ;;  %v18194_v59 = vld [vmem:[#allocation2 + $0xcc] sm:$0xff]  }
 0x647   : > { %v9764_v60 = vrot.slane %v9762_v2, 1  ;;  %v9767_v35 = vshll.u32 %v18192_v27, 16  ;;  %v9774_v23 = vshll.u32 %v18194_v59, 16 }
 0x648   : > { %18707 = vst [vmem:[#allocation26_spill] sm:$0xff] %v18178_v3  ;;  %v9753_v13 = vor.u32 %v9752_v46, %v9748_v41  ;;  %v9772_v41 = vshrl.u32 %v18194_v59, 16  ;;  %v9779_v3 = vshll.u32 %v18200_v30, 16 }
 0x649   : > { %v9769_v46 = vrot.slane %v9767_v35, 1  ;;  %v9776_v14 = vrot.slane %v9774_v23, 1  ;;  %v9802_v23 = vrot.slane %v17999_v52, 1  ;;  %v9812_v52 = vrot.slane %v18057_v7, 1 }
 0x64a   : > { %v9758_v31 = vsel %vm399_vm1, %v9753_v13, %v9757_v32  ;;  %v9781_v32 = vrot.slane %v9779_v3, 1  ;;  %v9805_v3 = vrot.slane %v18011_v28, 1  ;;  %v9821_v7 = vrot.slane %v18105_v29, 1 }
 0x64b   : > { %v9777_v2 = vor.u32 %v9776_v14, %v9772_v41  ;;  %v9808_v14 = vrot.slane %v18027_v36, 1  ;;  %v9830_v29 = vrot.slane %v18144_v61, 1  ;;  %v9839_v61 = vrot.slane %v18183_v57, 1 }
 0x64d   : > { %10176 = vmatmul.mubr.bf16.gmra.mrb[92].mxu0 %v18150_v21 }
 0x64e   : > { %10183 = vmatprep.mubr.bf16.mxu0 %v9746_v49  ;;  %v9765_v49 = vor.u32 %v9764_v60, %v9760_v12  ;;  %v9799_v60 = vrot.slane %v17988_v43, 1  ;;  %v9800_v12 = vrot.slane %v17996_v34, 1  ;;  %v9809_v34 = vrot.slane %v18038_v6, 1 }
 0x64f   : > { %v9818_v6 = vrot.slane %v18092_v16, 1  ;;  %v9827_v16 = vrot.slane %v18131_v10, 1  ;;  %v9836_v10 = vrot.slane %v18170_v15, 1  ;;  %v9845_v15 = vrot.slane %v18200_v30, 1 }
 0x650   : > { %v9770_v13 = vsel %vm399_vm1, %v9765_v49, %v9769_v46  ;;  %v9801_v35 = vsel %vm640_vm0, %v9799_v60, %v9800_v12  ;;  %v9803_v49 = vrot.slane %v18005_v58, 1  ;;  %v9806_v46 = vrot.slane %v18018_v62, 1 }
 0x651   : > { %v9810_v58 = vsel %vm640_vm0, %v9808_v14, %v9809_v34  ;;  %v9815_v62 = vrot.slane %v18076_v24, 1  ;;  %v9823_v60 = vrot.slane %v18111_v39, 1  ;;  %v9824_v24 = vrot.slane %v18118_v22, 1 }
 0x652   : > { %v9804_v41 = vsel %vm640_vm0, %v9802_v23, %v9803_v49  ;;  %v9807_v43 = vsel %vm640_vm0, %v9805_v3, %v9806_v46  ;;  %v9826_v12 = vrot.slane %v18124_v4, 1  ;;  %v9833_v22 = vrot.slane %v18157_v54, 1 }
 0x653   : > { %v9832_v23 = vrot.slane %v18150_v21, 1  ;;  %v9835_v49 = vrot.slane %v18163_v20, 1  ;;  %v9838_v3 = vrot.slane %v18176_v44, 1  ;;  %v9841_v46 = vrot.slane %v18187_v55, 1 }
 0x654   : > { %v9842_v54 = vrot.slane %v18192_v27, 1 }
 0x655   : > { %10184 = vmatmul.mubr.bf16.gmra.mrb[96].mxu0 %v18163_v20  ;;  %v9834_v4 = vsel %vm640_vm0, %v9832_v23, %v9833_v22  ;;  %v9840_v21 = vsel %vm640_vm0, %v9838_v3, %v9839_v61 }
 0x656   : > { %10191 = vmatprep.mubr.bf16.mxu0 %v9758_v31  ;;  %v9782_v31 = vsel %vm399_vm1, %v9777_v2, %v9781_v32  ;;  %v9814_v2 = vrot.slane %v18066_v48, 1  ;;  %v9817_v32 = vrot.slane %v18085_v37, 1  ;;  %v9825_v37 = vsel %vm640_vm0, %v9823_v60, %v9824_v24 }
 0x657   : > { %v9843_v20 = vsel %vm640_vm0, %v9841_v46, %v9842_v54 }
 0x658   : > { %v9816_v36 = vsel %vm640_vm0, %v9814_v2, %v9815_v62 }
 0x65d   : > { %10192 = vmatmul.mubr.bf16.gmra.mrb[100].mxu0 %v18176_v44 }
 0x65e   : > { %10199 = vmatprep.mubr.bf16.mxu0 %v9770_v13  ;;  %v9811_v13 = vrot.slane %v18047_v11, 1  ;;  %v9819_v11 = vsel %vm640_vm0, %v9817_v32, %v9818_v6 }
 0x660   : > { %v9813_v28 = vsel %vm640_vm0, %v9811_v13, %v9812_v52 }
 0x665   : > { %10200 = vmatmul.mubr.bf16.gmra.mrb[104].mxu0 %v18187_v55 }
 0x666   : > { %10207 = vmatprep.mubr.bf16.mxu0 %v9782_v31  ;;  %v9820_v31 = vrot.slane %v18098_v33, 1  ;;  %v9828_v33 = vsel %vm640_vm0, %v9826_v12, %v9827_v16 }
 0x668   : > { %v9822_v48 = vsel %vm640_vm0, %v9820_v31, %v9821_v7 }
 0x66d   : > { %10208 = vmatmul.mubr.bf16.gmra.mrb[108].mxu0 %v18194_v59 }
 0x66e   : > { %13235 = vmatprep.mubr.bf16.mxu0 %v9801_v35  ;;  %v9829_v35 = vrot.slane %v18137_v9, 1  ;;  %v9837_v9 = vsel %vm640_vm0, %v9835_v49, %v9836_v10 }
 0x670   : > { %v9831_v39 = vsel %vm640_vm0, %v9829_v35, %v9830_v29 }
 0x675   : > { %13236 = vmatmul.mubr.bf16.vlgmr.msra.gmra.mrb[16].mxu0 %v9804_v41  ;;  %v9844_v41 = vrot.slane %v18194_v59, 1 }
 0x676   : > { %13239 = vmatprep.mubr.bf16.mxu0 %v9807_v43 }
 0x677   : > { %v9846_v43 = vsel %vm640_vm0, %v9844_v41, %v9845_v15 }
 0x67d   : > { %13240 = vmatmul.mubr.bf16.gmra.mrb[20].mxu0 %v9810_v58 }
 0x67e   : > { %13243 = vmatprep.mubr.bf16.mxu0 %v9813_v28 }
 0x685   : > { %13244 = vmatmul.mubr.bf16.gmra.mrb[24].mxu0 %v9816_v36 }
 0x686   : > { %13247 = vmatprep.mubr.bf16.mxu0 %v9819_v11 }
 0x68d   : > { %13248 = vmatmul.mubr.bf16.gmra.mrb[28].mxu0 %v9822_v48 }
 0x68e   : > { %13251 = vmatprep.mubr.bf16.mxu0 %v9825_v37 }
 0x695   : > { %13252 = vmatmul.mubr.bf16.gmra.mrb[32].mxu0 %v9828_v33 }
 0x696   : > { %13255 = vmatprep.mubr.bf16.mxu0 %v9831_v39 }
 0x69d   : > { %13256 = vmatmul.mubr.bf16.gmra.mrb[36].mxu0 %v9834_v4 }
 0x69e   : > { %13259 = vmatprep.mubr.bf16.mxu0 %v9837_v9 }
 0x6a5   : > { %13260 = vmatmul.mubr.bf16.gmra.mrb[40].mxu0 %v9840_v21 }
 0x6a6   : > { %13263 = vmatprep.mubr.bf16.mxu0 %v9843_v20 }
 0x6ad   : > { %13264 = vmatmul.mubr.bf16.gmra.mrb[44].mxu0 %v9846_v43 }
 0x6c8   : > { %v12715_v57 = vpop.f32.mrb[48].mxu0 }
 0x6c9   : > { %v12716_v34 = vpop.f32.mrb[49].mxu0 }
 0x6ca   : > { %v12717_v44 = vadd.f32 %v12716_v34, %v12715_v57  ;;  %v12718_v14 = vpop.f32.mrb[50].mxu0 }
 0x6cb   : > { %v12719_v55 = vpop.f32.mrb[51].mxu0 }
 0x6cc   : > { %v12720_v13 = vadd.f32 %v12719_v55, %v12718_v14  ;;  %v18259_v27 = vadd.f32 %v17927_v5, %v12717_v44 }
 0x6ce   : > { %v18262_v52 = vadd.f32 %v17933_v0, %v12720_v13 }
 0x6d0   : > { %v12721_v58 = vpop.f32.mrb[52].mxu0 }
 0x6d1   : > { %v12722_v30 = vpop.f32.mrb[53].mxu0 }
 0x6d2   : > { %v12723_v28 = vadd.f32 %v12722_v30, %v12721_v58  ;;  %v12724_v62 = vpop.f32.mrb[54].mxu0 }
 0x6d3   : > { %v12725_v59 = vpop.f32.mrb[55].mxu0 }
 0x6d4   : > { %v12726_v2 = vadd.f32 %v12725_v59, %v12724_v62  ;;  %v18265_v32 = vadd.f32 %v17949_v40, %v12723_v28 }
 0x6d6   : > { %v18268_v6 = vadd.f32 %v17955_v26, %v12726_v2 }
 0x6d8   : > { %v12727_v36 = vpop.f32.mrb[56].mxu0 }
 0x6d9   : > { %v12728_v11 = vpop.f32.mrb[57].mxu0 }
 0x6da   : > { %v12729_v7 = vadd.f32 %v12728_v11, %v12727_v36  ;;  %v12730_v5 = vpop.f32.mrb[58].mxu0 }
 0x6db   : > { %v12731_v31 = vpop.f32.mrb[59].mxu0 }
 0x6dc   : > { %v12732_v60 = vadd.f32 %v12731_v31, %v12730_v5  ;;  %v18271_v0 = vadd.f32 %v17980_v25, %v12729_v7 }
 0x6de   : > { %v18274_v24 = vadd.f32 %v17984_v18, %v12732_v60 }
 0x6e0   : > { %v12733_v48 = vpop.f32.mrb[60].mxu0 }
 0x6e1   : > { %v12734_v37 = vpop.f32.mrb[61].mxu0 }
 0x6e2   : > { %v12735_v16 = vadd.f32 %v12734_v37, %v12733_v48  ;;  %v12736_v40 = vpop.f32.mrb[62].mxu0  ;;  %v18709_v37 = vld [vmem:[#allocation15_spill] sm:$0xff] }
 0x6e3   : > { %v12737_v12 = vpop.f32.mrb[63].mxu0 }
 0x6e4   : > { %v12738_v35 = vadd.f32 %v12737_v12, %v12736_v40  ;;  %v18277_v26 = vadd.f32 %v17991_v8, %v12735_v16 }
 0x6e6   : > { %v18280_v29 = vadd.f32 %v17994_v38, %v12738_v35 }
 0x6e8   : > { %v12739_v33 = vpop.f32.mrb[64].mxu0 }
 0x6e9   : > { %v12740_v39 = vpop.f32.mrb[65].mxu0 }
 0x6ea   : > { %v12741_v22 = vadd.f32 %v12740_v39, %v12739_v33  ;;  %v12742_v25 = vpop.f32.mrb[66].mxu0 }
 0x6eb   : > { %v12743_v23 = vpop.f32.mrb[67].mxu0 }
 0x6ec   : > { %v12744_v49 = vadd.f32 %v12743_v23, %v12742_v25  ;;  %v18283_v18 = vadd.f32 %v18007_v17, %v12741_v22  ;;  %v18711_v25 = vld [vmem:[#allocation17_spill] sm:$0xff] }
 0x6ee   : > { %v18286_v10 = vadd.f32 %v18013_v45, %v12744_v49 }
 0x6f0   : > { %v12745_v4 = vpop.f32.mrb[68].mxu0 }
 0x6f1   : > { %v12746_v9 = vpop.f32.mrb[69].mxu0 }
 0x6f2   : > { %v12747_v61 = vadd.f32 %v12746_v9, %v12745_v4  ;;  %v12748_v8 = vpop.f32.mrb[70].mxu0 }
 0x6f3   : > { %v12749_v3 = vpop.f32.mrb[71].mxu0 }
 0x6f4   : > { %v12750_v46 = vadd.f32 %v12749_v3, %v12748_v8  ;;  %v18289_v38 = vadd.f32 %v18023_v63, %v12747_v61 }
 0x6f6   : > { %v18292_v54 = vadd.f32 %v18029_v42, %v12750_v46  ;;  %v18712_v46 = vld [vmem:[#allocation18_spill] sm:$0xff] }
 0x6f8   : > { %v12751_v21 = vpop.f32.mrb[72].mxu0 }
 0x6f9   : > { %v12752_v20 = vpop.f32.mrb[73].mxu0 }
 0x6fa   : > { %v12753_v15 = vadd.f32 %v12752_v20, %v12751_v21  ;;  %v12754_v17 = vpop.f32.mrb[74].mxu0  ;;  %v18713_v20 = vld [vmem:[#allocation19_spill] sm:$0xff] }
 0x6fb   : > { %v12755_v41 = vpop.f32.mrb[75].mxu0 }
 0x6fc   : > { %v12756_v43 = vadd.f32 %v12755_v41, %v12754_v17  ;;  %v18295_v45 = vadd.f32 %v18043_v50, %v12753_v15 }
 0x6fe   : > { %v18298_v57 = vadd.f32 %v18049_v53, %v12756_v43 }
 0x700   : > { %v12757_v34 = vpop.f32.mrb[76].mxu0 }
 0x701   : > { %v12758_v44 = vpop.f32.mrb[77].mxu0 }
 0x702   : > { %v12759_v14 = vadd.f32 %v12758_v44, %v12757_v34  ;;  %v12760_v63 = vpop.f32.mrb[78].mxu0 }
 0x703   : > { %v12761_v55 = vpop.f32.mrb[79].mxu0 }
 0x704   : > { %v12762_v13 = vadd.f32 %v12761_v55, %v12760_v63  ;;  %v18301_v42 = vadd.f32 %v18062_v1, %v12759_v14  ;;  %v18714_v63 = vld [vmem:[#allocation20_spill] sm:$0xff] }
 0x706   : > { %v18304_v58 = vadd.f32 %v18068_v19, %v12762_v13  ;;  %v18708_v19 = vld [vmem:[#allocation14_spill] sm:$0xff]  ;;  %v18715_v13 = vld [vmem:[#allocation21_spill] sm:$0xff] }
 0x708   : > { %v12763_v30 = vpop.f32.mrb[80].mxu0 }
 0x709   : > { %v12764_v28 = vpop.f32.mrb[81].mxu0 }
 0x70a   : > { %v12765_v62 = vadd.f32 %v12764_v28, %v12763_v30  ;;  %v12766_v50 = vpop.f32.mrb[82].mxu0 }
 0x70b   : > { %v12767_v59 = vpop.f32.mrb[83].mxu0 }
 0x70c   : > { %v12768_v2 = vadd.f32 %v12767_v59, %v12766_v50  ;;  %v18307_v53 = vadd.f32 %v18081_v51, %v12765_v62 }
 0x70e   : > { %v18310_v36 = vadd.f32 %v18087_v56, %v12768_v2  ;;  %v18710_v56 = vld [vmem:[#allocation16_spill] sm:$0xff] }
 0x710   : > { %v12769_v11 = vpop.f32.mrb[84].mxu0 }
 0x711   : > { %v12770_v7 = vpop.f32.mrb[85].mxu0 }
 0x712   : > { %v12771_v5 = vadd.f32 %v12770_v7, %v12769_v11  ;;  %v12772_v1 = vpop.f32.mrb[86].mxu0  ;;  %v18716_v7 = vld [vmem:[#allocation22_spill] sm:$0xff] }
 0x713   : > { %v12773_v31 = vpop.f32.mrb[87].mxu0 }
 0x714   : > { %v12774_v60 = vadd.f32 %v12773_v31, %v12772_v1  ;;  %v18313_v48 = vadd.f32 %v18708_v19, %v12771_v5  ;;  %v18717_v1 = vld [vmem:[#allocation23_spill] sm:$0xff] }
 0x716   : > { %v18316_v16 = vadd.f32 %v18709_v37, %v12774_v60 }
 0x718   : > { %v12775_v40 = vpop.f32.mrb[88].mxu0 }
 0x719   : > { %v12776_v12 = vpop.f32.mrb[89].mxu0 }
 0x71a   : > { %v12777_v35 = vadd.f32 %v12776_v12, %v12775_v40  ;;  %v12778_v51 = vpop.f32.mrb[90].mxu0 }
 0x71b   : > { %v12779_v33 = vpop.f32.mrb[91].mxu0 }
 0x71c   : > { %v12780_v39 = vadd.f32 %v12779_v33, %v12778_v51  ;;  %v18319_v22 = vadd.f32 %v18710_v56, %v12777_v35  ;;  %v18718_v51 = vld [vmem:[#allocation24_spill] sm:$0xff] }
 0x71e   : > { %v18322_v23 = vadd.f32 %v18711_v25, %v12780_v39  ;;  %v18719_v39 = vld [vmem:[#allocation25_spill] sm:$0xff] }
 0x720   : > { %v12781_v49 = vpop.f32.mrb[92].mxu0 }
 0x721   : > { %v12782_v4 = vpop.f32.mrb[93].mxu0 }
 0x722   : > { %v12783_v9 = vadd.f32 %v12782_v4, %v12781_v49  ;;  %v12784_v61 = vpop.f32.mrb[94].mxu0 }
 0x723   : > { %v12785_v8 = vpop.f32.mrb[95].mxu0 }
 0x724   : > { %v12786_v3 = vadd.f32 %v12785_v8, %v12784_v61  ;;  %v18325_v21 = vadd.f32 %v18712_v46, %v12783_v9  ;;  %v18720_v46 = vld [vmem:[#allocation26_spill] sm:$0xff] }
 0x726   : > { %v18328_v15 = vadd.f32 %v18713_v20, %v12786_v3 }
 0x728   : > { %v12787_v17 = vpop.f32.mrb[96].mxu0 }
 0x729   : > { %v12788_v41 = vpop.f32.mrb[97].mxu0 }
 0x72a   : > { %v12789_v43 = vadd.f32 %v12788_v41, %v12787_v17  ;;  %v12790_v34 = vpop.f32.mrb[98].mxu0 }
 0x72b   : > { %v12791_v44 = vpop.f32.mrb[99].mxu0 }
 0x72c   : > { %v12792_v14 = vadd.f32 %v12791_v44, %v12790_v34  ;;  %v18331_v55 = vadd.f32 %v18714_v63, %v12789_v43 }
 0x72e   : > { %v18334_v30 = vadd.f32 %v18715_v13, %v12792_v14  ;;  %v18362_v14 = vld [vmem:[%s18551_s2] ss:$0 sm:$0xff] }
 0x730   : > { %v12793_v28 = vpop.f32.mrb[100].mxu0 }
 0x731   : > { %v12794_v62 = vpop.f32.mrb[101].mxu0 }
 0x732   : > { %v12795_v50 = vadd.f32 %v12794_v62, %v12793_v28  ;;  %v12796_v59 = vpop.f32.mrb[102].mxu0 }
 0x733   : > { %v12797_v2 = vpop.f32.mrb[103].mxu0 }
 0x734   : > { %v12798_v11 = vadd.f32 %v12797_v2, %v12796_v59  ;;  %v18337_v5 = vadd.f32 %v18716_v7, %v12795_v50 }
 0x736   : > { %v18340_v31 = vadd.f32 %v18717_v1, %v12798_v11 }
 0x738   : > { %v12799_v60 = vpop.f32.mrb[104].mxu0 }
 0x739   : > { %v12800_v19 = vpop.f32.mrb[105].mxu0 }
 0x73a   : > { %v12801_v37 = vadd.f32 %v12800_v19, %v12799_v60  ;;  %v12802_v40 = vpop.f32.mrb[106].mxu0 }
 0x73b   : > { %v12803_v12 = vpop.f32.mrb[107].mxu0 }
 0x73c   : > { %v12804_v35 = vadd.f32 %v12803_v12, %v12802_v40  ;;  %v18343_v33 = vadd.f32 %v18718_v51, %v12801_v37 }
 0x73e   : > { %v18346_v56 = vadd.f32 %v18719_v39, %v12804_v35 }
 0x740   : > { %v12805_v25 = vpop.f32.mrb[108].mxu0 }
 0x741   : > { %v12806_v49 = vpop.f32.mrb[109].mxu0 }
 0x742   : > { %v12807_v4 = vadd.f32 %v12806_v49, %v12805_v25  ;;  %v12808_v9 = vpop.f32.mrb[110].mxu0 }
 0x743   : > { %v12809_v61 = vpop.f32.mrb[111].mxu0 }
 0x744   : > { %v12810_v8 = vadd.f32 %v12809_v61, %v12808_v9  ;;  %v18349_v3 = vadd.f32 %v18172_v47, %v12807_v4 }
 0x746   : > { %v18352_v20 = vadd.f32 %v18720_v46, %v12810_v8 }
 0x748   : > { %v13237_v17 = vpop.f32.mrb[16].mxu0 }
 0x749   : > { %v13477_v41 = vadd.f32 %v18265_v32, %v13237_v17  ;;  %v10250_v43 = vpop.f32.mrb[17].mxu0 }
 0x74a   : > { %v13480_v34 = vadd.f32 %v18259_v27, %v10250_v43  ;;  %v13238_v44 = vpop.f32.mrb[18].mxu0  ;;  %v18371_v27 = vld [vmem:[%s18552_s3] ss:$0 sm:$0xff] }
 0x74b   : > { %v10411_v47 = vmul.f32 %v18362_v14, %v13477_v41  ;;  %v13483_v63 = vadd.f32 %v18268_v6, %v13238_v44  ;;  %v10253_v13 = vpop.f32.mrb[19].mxu0 }
 0x74c   : > { %v10409_v28 = vmul.f32 %v18362_v14, %v13480_v34  ;;  %v13486_v32 = vadd.f32 %v18262_v52, %v10253_v13 }
 0x74d   : > { %v10443_v62 = vadd.f32 %v18371_v27, %v10411_v47  ;;  %v10412_v50 = vmul.f32 %v18362_v14, %v13483_v63 }
 0x74e   : > { %v10441_v59 = vadd.f32 %v18371_v27, %v10409_v28  ;;  %v10410_v2 = vmul.f32 %v18362_v14, %v13486_v32 }
 0x74f   : > { %v10475_v11 = vmax.f32 %v10443_v62, 0.0  ;;  %v10444_v6 = vadd.f32 %v18371_v27, %v10412_v50 }
 0x750   : > { %v10473_v7 = vmax.f32 %v10441_v59, 0.0  ;;  %v10442_v1 = vadd.f32 %v18371_v27, %v10410_v2  ;;  %v13241_v52 = vpop.f32.mrb[20].mxu0 }
 0x751   : > { %10507 = vst [vmem:[%s18379_s8 + $0x10] sm:$0xff] %v10475_v11  ;;  %v10476_v60 = vmax.f32 %v10444_v6, 0.0  ;;  %v13489_v19 = vadd.f32 %v18277_v26, %v13241_v52  ;;  %v10266_v37 = vpop.f32.mrb[21].mxu0 }
 0x752   : > { %10505 = vst [vmem:[%s18379_s8] sm:$0xff] %v10473_v7  ;;  %v10474_v40 = vmax.f32 %v10442_v1, 0.0  ;;  %v13492_v12 = vadd.f32 %v18271_v0, %v10266_v37  ;;  %v13242_v35 = vpop.f32.mrb[22].mxu0 }
 0x753   : > { %10508 = vst [vmem:[%s18379_s8 + $0x18] sm:$0xff] %v10476_v60  ;;  %v10415_v51 = vmul.f32 %v18362_v14, %v13489_v19  ;;  %v13495_v39 = vadd.f32 %v18280_v29, %v13242_v35  ;;  %v10269_v25 = vpop.f32.mrb[23].mxu0 }
 0x754   : > { %10506 = vst [vmem:[%s18379_s8 + $0x8] sm:$0xff] %v10474_v40  ;;  %v10413_v49 = vmul.f32 %v18362_v14, %v13492_v12  ;;  %v13498_v4 = vadd.f32 %v18274_v24, %v10269_v25 }
 0x755   : > { %v10447_v26 = vadd.f32 %v18371_v27, %v10415_v51  ;;  %v10416_v9 = vmul.f32 %v18362_v14, %v13495_v39 }
 0x756   : > { %v10445_v0 = vadd.f32 %v18371_v27, %v10413_v49  ;;  %v10414_v61 = vmul.f32 %v18362_v14, %v13498_v4 }
 0x757   : > { %v10479_v8 = vmax.f32 %v10447_v26, 0.0  ;;  %v10448_v46 = vadd.f32 %v18371_v27, %v10416_v9 }
 0x758   : > { %v10477_v29 = vmax.f32 %v10445_v0, 0.0  ;;  %v10446_v17 = vadd.f32 %v18371_v27, %v10414_v61  ;;  %v13245_v41 = vpop.f32.mrb[24].mxu0 }
 0x759   : > { %10511 = vst [vmem:[%s18379_s8 + $0x30] sm:$0xff] %v10479_v8  ;;  %v10480_v43 = vmax.f32 %v10448_v46, 0.0  ;;  %v13501_v24 = vadd.f32 %v18289_v38, %v13245_v41  ;;  %v10282_v34 = vpop.f32.mrb[25].mxu0 }
 0x75a   : > { %10509 = vst [vmem:[%s18379_s8 + $0x20] sm:$0xff] %v10477_v29  ;;  %v10478_v44 = vmax.f32 %v10446_v17, 0.0  ;;  %v13504_v47 = vadd.f32 %v18283_v18, %v10282_v34  ;;  %v13246_v63 = vpop.f32.mrb[26].mxu0 }
 0x75b   : > { %10512 = vst [vmem:[%s18379_s8 + $0x38] sm:$0xff] %v10480_v43  ;;  %v10419_v13 = vmul.f32 %v18362_v14, %v13501_v24  ;;  %v13507_v28 = vadd.f32 %v18292_v54, %v13246_v63  ;;  %v10285_v32 = vpop.f32.mrb[27].mxu0 }
 0x75c   : > { %10510 = vst [vmem:[%s18379_s8 + $0x28] sm:$0xff] %v10478_v44  ;;  %v10417_v62 = vmul.f32 %v18362_v14, %v13504_v47  ;;  %v13510_v50 = vadd.f32 %v18286_v10, %v10285_v32 }
 0x75d   : > { %v10451_v38 = vadd.f32 %v18371_v27, %v10419_v13  ;;  %v10420_v59 = vmul.f32 %v18362_v14, %v13507_v28 }
 0x75e   : > { %v10449_v18 = vadd.f32 %v18371_v27, %v10417_v62  ;;  %v10418_v2 = vmul.f32 %v18362_v14, %v13510_v50 }
 0x75f   : > { %v10483_v11 = vmax.f32 %v10451_v38, 0.0  ;;  %v10452_v6 = vadd.f32 %v18371_v27, %v10420_v59 }
 0x760   : > { %v10481_v54 = vmax.f32 %v10449_v18, 0.0  ;;  %v10450_v7 = vadd.f32 %v18371_v27, %v10418_v2  ;;  %v13249_v1 = vpop.f32.mrb[28].mxu0 }
 0x761   : > { %10515 = vst [vmem:[%s18379_s8 + $0x50] sm:$0xff] %v10483_v11  ;;  %v10484_v52 = vmax.f32 %v10452_v6, 0.0  ;;  %v13513_v10 = vadd.f32 %v18301_v42, %v13249_v1  ;;  %v10298_v60 = vpop.f32.mrb[29].mxu0 }
 0x762   : > { %10513 = vst [vmem:[%s18379_s8 + $0x40] sm:$0xff] %v10481_v54  ;;  %v10482_v19 = vmax.f32 %v10450_v7, 0.0  ;;  %v13516_v37 = vadd.f32 %v18295_v45, %v10298_v60  ;;  %v13250_v40 = vpop.f32.mrb[30].mxu0 }
 0x763   : > { %10516 = vst [vmem:[%s18379_s8 + $0x58] sm:$0xff] %v10484_v52  ;;  %v10423_v12 = vmul.f32 %v18362_v14, %v13513_v10  ;;  %v13519_v35 = vadd.f32 %v18304_v58, %v13250_v40  ;;  %v10301_v51 = vpop.f32.mrb[31].mxu0 }
 0x764   : > { %10514 = vst [vmem:[%s18379_s8 + $0x48] sm:$0xff] %v10482_v19  ;;  %v10421_v39 = vmul.f32 %v18362_v14, %v13516_v37  ;;  %v13522_v25 = vadd.f32 %v18298_v57, %v10301_v51 }
 0x765   : > { %v10455_v42 = vadd.f32 %v18371_v27, %v10423_v12  ;;  %v10424_v49 = vmul.f32 %v18362_v14, %v13519_v35 }
 0x766   : > { %v10453_v45 = vadd.f32 %v18371_v27, %v10421_v39  ;;  %v10422_v4 = vmul.f32 %v18362_v14, %v13522_v25 }
 0x767   : > { %v10487_v26 = vmax.f32 %v10455_v42, 0.0  ;;  %v10456_v9 = vadd.f32 %v18371_v27, %v10424_v49 }
 0x768   : > { %v10485_v58 = vmax.f32 %v10453_v45, 0.0  ;;  %v10454_v0 = vadd.f32 %v18371_v27, %v10422_v4  ;;  %v13253_v61 = vpop.f32.mrb[32].mxu0 }
 0x769   : > { %10519 = vst [vmem:[%s18379_s8 + $0x70] sm:$0xff] %v10487_v26  ;;  %v10488_v8 = vmax.f32 %v10456_v9, 0.0  ;;  %v13525_v57 = vadd.f32 %v18313_v48, %v13253_v61  ;;  %v10314_v46 = vpop.f32.mrb[33].mxu0 }
 0x76a   : > { %10517 = vst [vmem:[%s18379_s8 + $0x60] sm:$0xff] %v10485_v58  ;;  %v10486_v29 = vmax.f32 %v10454_v0, 0.0  ;;  %v13528_v17 = vadd.f32 %v18307_v53, %v10314_v46  ;;  %v13254_v41 = vpop.f32.mrb[34].mxu0 }
 0x76b   : > { %10520 = vst [vmem:[%s18379_s8 + $0x78] sm:$0xff] %v10488_v8  ;;  %v10427_v43 = vmul.f32 %v18362_v14, %v13525_v57  ;;  %v13531_v24 = vadd.f32 %v18316_v16, %v13254_v41  ;;  %v10317_v34 = vpop.f32.mrb[35].mxu0 }
 0x76c   : > { %10518 = vst [vmem:[%s18379_s8 + $0x68] sm:$0xff] %v10486_v29  ;;  %v10425_v44 = vmul.f32 %v18362_v14, %v13528_v17  ;;  %v13534_v47 = vadd.f32 %v18310_v36, %v10317_v34 }
 0x76d   : > { %v10459_v48 = vadd.f32 %v18371_v27, %v10427_v43  ;;  %v10428_v63 = vmul.f32 %v18362_v14, %v13531_v24 }
 0x76e   : > { %v10457_v53 = vadd.f32 %v18371_v27, %v10425_v44  ;;  %v10426_v13 = vmul.f32 %v18362_v14, %v13534_v47 }
 0x76f   : > { %v10491_v28 = vmax.f32 %v10459_v48, 0.0  ;;  %v10460_v32 = vadd.f32 %v18371_v27, %v10428_v63 }
 0x770   : > { %v10489_v16 = vmax.f32 %v10457_v53, 0.0  ;;  %v10458_v62 = vadd.f32 %v18371_v27, %v10426_v13  ;;  %v13257_v50 = vpop.f32.mrb[36].mxu0 }
 0x771   : > { %10523 = vst [vmem:[%s18379_s8 + $0x90] sm:$0xff] %v10491_v28  ;;  %v10492_v38 = vmax.f32 %v10460_v32, 0.0  ;;  %v13537_v36 = vadd.f32 %v18325_v21, %v13257_v50  ;;  %v10330_v59 = vpop.f32.mrb[37].mxu0 }
 0x772   : > { %10521 = vst [vmem:[%s18379_s8 + $0x80] sm:$0xff] %v10489_v16  ;;  %v10490_v18 = vmax.f32 %v10458_v62, 0.0  ;;  %v13540_v2 = vadd.f32 %v18319_v22, %v10330_v59  ;;  %v13258_v11 = vpop.f32.mrb[38].mxu0 }
 0x773   : > { %10524 = vst [vmem:[%s18379_s8 + $0x98] sm:$0xff] %v10492_v38  ;;  %v10431_v6 = vmul.f32 %v18362_v14, %v13537_v36  ;;  %v13543_v54 = vadd.f32 %v18328_v15, %v13258_v11  ;;  %v10333_v7 = vpop.f32.mrb[39].mxu0 }
 0x774   : > { %10522 = vst [vmem:[%s18379_s8 + $0x88] sm:$0xff] %v10490_v18  ;;  %v10429_v1 = vmul.f32 %v18362_v14, %v13540_v2  ;;  %v13546_v52 = vadd.f32 %v18322_v23, %v10333_v7 }
 0x775   : > { %v10463_v21 = vadd.f32 %v18371_v27, %v10431_v6  ;;  %v10432_v10 = vmul.f32 %v18362_v14, %v13543_v54 }
 0x776   : > { %v10461_v22 = vadd.f32 %v18371_v27, %v10429_v1  ;;  %v10430_v60 = vmul.f32 %v18362_v14, %v13546_v52 }
 0x777   : > { %v10495_v19 = vmax.f32 %v10463_v21, 0.0  ;;  %v10464_v37 = vadd.f32 %v18371_v27, %v10432_v10 }
 0x778   : > { %v10493_v15 = vmax.f32 %v10461_v22, 0.0  ;;  %v10462_v40 = vadd.f32 %v18371_v27, %v10430_v60  ;;  %v13261_v12 = vpop.f32.mrb[40].mxu0 }
 0x779   : > { %10527 = vst [vmem:[%s18379_s8 + $0xb0] sm:$0xff] %v10495_v19  ;;  %v10496_v35 = vmax.f32 %v10464_v37, 0.0  ;;  %v13549_v23 = vadd.f32 %v18337_v5, %v13261_v12  ;;  %v10346_v51 = vpop.f32.mrb[41].mxu0 }
 0x77a   : > { %10525 = vst [vmem:[%s18379_s8 + $0xa0] sm:$0xff] %v10493_v15  ;;  %v10494_v39 = vmax.f32 %v10462_v40, 0.0  ;;  %v13552_v25 = vadd.f32 %v18331_v55, %v10346_v51  ;;  %v13262_v42 = vpop.f32.mrb[42].mxu0 }
 0x77b   : > { %10528 = vst [vmem:[%s18379_s8 + $0xb8] sm:$0xff] %v10496_v35  ;;  %v10435_v49 = vmul.f32 %v18362_v14, %v13549_v23  ;;  %v13555_v45 = vadd.f32 %v18340_v31, %v13262_v42  ;;  %v10349_v4 = vpop.f32.mrb[43].mxu0 }
 0x77c   : > { %10526 = vst [vmem:[%s18379_s8 + $0xa8] sm:$0xff] %v10494_v39  ;;  %v10433_v26 = vmul.f32 %v18362_v14, %v13552_v25  ;;  %v13558_v9 = vadd.f32 %v18334_v30, %v10349_v4 }
 0x77d   : > { %v10467_v5 = vadd.f32 %v18371_v27, %v10435_v49  ;;  %v10436_v58 = vmul.f32 %v18362_v14, %v13555_v45 }
 0x77e   : > { %v10465_v55 = vadd.f32 %v18371_v27, %v10433_v26  ;;  %v10434_v0 = vmul.f32 %v18362_v14, %v13558_v9 }
 0x77f   : > { %v10499_v61 = vmax.f32 %v10467_v5, 0.0  ;;  %v10468_v8 = vadd.f32 %v18371_v27, %v10436_v58 }
 0x780   : > { %v10497_v31 = vmax.f32 %v10465_v55, 0.0  ;;  %v10466_v57 = vadd.f32 %v18371_v27, %v10434_v0  ;;  %v13265_v46 = vpop.f32.mrb[44].mxu0 }
 0x781   : > { %10531 = vst [vmem:[%s18379_s8 + $0xd0] sm:$0xff] %v10499_v61  ;;  %v10500_v29 = vmax.f32 %v10468_v8, 0.0  ;;  %v13561_v30 = vadd.f32 %v18349_v3, %v13265_v46  ;;  %v10362_v17 = vpop.f32.mrb[45].mxu0 }
 0x782   : > { %10529 = vst [vmem:[%s18379_s8 + $0xc0] sm:$0xff] %v10497_v31  ;;  %v10498_v41 = vmax.f32 %v10466_v57, 0.0  ;;  %v13564_v43 = vadd.f32 %v18343_v33, %v10362_v17  ;;  %v13266_v24 = vpop.f32.mrb[46].mxu0 }
 0x783   : > { %10532 = vst [vmem:[%s18379_s8 + $0xd8] sm:$0xff] %v10500_v29  ;;  %v10439_v34 = vmul.f32 %v18362_v14, %v13561_v30  ;;  %v13567_v44 = vadd.f32 %v18352_v20, %v13266_v24  ;;  %v10365_v47 = vpop.f32.mrb[47].mxu0 }
 0x784   : > { %10530 = vst [vmem:[%s18379_s8 + $0xc8] sm:$0xff] %v10498_v41  ;;  %v10437_v48 = vmul.f32 %v18362_v14, %v13564_v43  ;;  %v13570_v3 = vadd.f32 %v18346_v56, %v10365_v47 }
 0x785   : > { %v10471_v63 = vadd.f32 %v18371_v27, %v10439_v34  ;;  %v10440_v53 = vmul.f32 %v18362_v14, %v13567_v44 }
 0x786   : > { %v10469_v33 = vadd.f32 %v18371_v27, %v10437_v48  ;;  %v10438_v13 = vmul.f32 %v18362_v14, %v13570_v3 }
 0x787   : > { %v10503_v20 = vmax.f32 %v10471_v63, 0.0  ;;  %v10472_v28 = vadd.f32 %v18371_v27, %v10440_v53 }
 0x788   : > { %v10501_v32 = vmax.f32 %v10469_v33, 0.0  ;;  %v10470_v56 = vadd.f32 %v18371_v27, %v10438_v13 }
 0x789   : > { %10535 = vst [vmem:[%s18379_s8 + $0xf0] sm:$0xff] %v10503_v20  ;;  %v10504_v16 = vmax.f32 %v10472_v28, 0.0 }
 0x78a   : > { %10533 = vst [vmem:[%s18379_s8 + $0xe0] sm:$0xff] %v10501_v32  ;;  %v10502_v14 = vmax.f32 %v10470_v56, 0.0 }
 0x78b   : > { %10536 = vst [vmem:[%s18379_s8 + $0xf8] sm:$0xff] %v10504_v16 }
 0x78c   : > { %10534 = vst [vmem:[%s18379_s8 + $0xe8] sm:$0xff] %v10502_v14 }
 0x78d   : > { %14248 = shalt.err (!%p14245_p3)
}
 0x78e   : > { %s14249_s27 = scalar_lea.hbm %s18499_s13, 4096  ;;  %s14253_s30 = scalar_lea.hbm %s18553_s4, 8192 }
 0x78f   : > { %p14250_p4 = scmp.ne.s32.totalorder %s18499_s13, %s14249_s27  ;;  %p14254_p9 = scmp.lt.u32.totalorder %s18499_s13, %s18553_s4 }
 0x790   : > { %p14255_p10 = scmp.lt.u32.totalorder %s14253_s30, %s14249_s27  ;;  %p14257_p12 = scmp.lt.u32.totalorder %s14249_s27, %s18499_s13 }
 0x791   : > { %p14251_p7 = pnand %p14250_p4, %p14366_p5 }
 0x792   : > { %p14256_p11 = por %p14255_p10, %p14254_p9 }
 0x793   : > { %p14252_p8 = pneg %p14251_p7 }
 0x794   : > { %p14258_p13 = por %p14257_p12, %p14256_p11 }
 0x796   : > { %p14259_p0 = pnand %p14258_p13, %p14252_p8 }
 0x798   : > { %14262 = shalt.err (!%p14259_p0)
}
 0x799   : > { %s14301_s7 = smov 128   ;;  %s14302_s8 = smov 8  }
 0x79a   : > { %13764 = dma.vmem_to_hbm [thread:$0]  (%p14366_p5), %s18501_s10, 4096, %s18499_s13, %s18508_s19, %s14301_s7, %s14301_s7, %s14302_s8  }
 0x79b PF: > { %p13770_p1 = scmp.ge.s32.totalorder %s14297_s18, 2  ;;  %s10566_s9 = sand.u32 1, %s14285_s15  }
 0x79c   : > { %s10567_s11 = scalar_lea.sflag [#allocation5], %s10566_s9 }
 0x79d   : > { %p13767_p2 = pnand %p13770_p1, %p14370_p6 }
 0x79f   : > { %14280 = dma.done.wait (!%p13767_p2), %s10567_s11, 4096  }
 0x7a0   : > { %14282 = vsyncadd (!%p13767_p2), %s10567_s11, 4294963200  ;;  %p14_p3 = scmp.ge.s32.totalorder %s14353_s21, 4   ;;  %s18721_s15 = smov %s14289_s16 }
 0x7a1   : > { %s18722_s16 = smov %s14293_s17  ;;  %s18723_s17 = smov %s14364_s24 }
 0x7a2   : > { %s18724_s18 = smov %s14353_s21  ;;  %16 = sbr.rel (!%p14_p3) target bundleno = 3 (0x3), region = 78 }
 0x7a9   :  { %10572 = vsyncpa [#allocation5], 1 }
 0x7aa   :  { %10574 = vsyncpa [#allocation5 + $0x1], 1 }

</bundles_post_ra>
